<compile_context>
chip_gen: v5e
topology: v5e:2x2
jax: 0.10.0
libtpu: 0.0.40
codegen_flags: <defaults>
</compile_context>

<pallas_src>
import functools

import numpy as np
import jax
import jax.numpy as jnp
from jax import lax
from jax.experimental import pallas as pl
from jax.experimental.pallas import tpu as pltpu


# ----------------------------- in-kernel helpers -----------------------------

def _conv_group(x_ref, w_ref, g, *, rp, cin, cout, k, s, phw, wp):
    """One rp-stacked group of a fused conv + 2x2-maxpool layer.

    x_ref : (rows, width) bf16, channel-interleaved rows (row = h*cin + ci),
            columns grouped into 2*s phases of width `phw`.
    w_ref : (k+s, 4*rp*cout, (s*(2*rp-1)+k)*cin) bf16 folded weights; M stacks
            (horizontal pool tap, vertical parity, stacked pooled row, Cout).
    Returns the (4*rp*cout, wp) f32 accumulator for pooled rows [g*rp, (g+1)*rp).
    """
    d = 2 * s
    krows = (s * (2 * rp - 1) + k) * cin
    row0 = g * (2 * s * cin * rp)
    if not isinstance(row0, int):
        row0 = pl.multiple_of(row0, 8)
    blk = x_ref[pl.ds(row0, krows), :]           # one load per group, sliced per tap
    acc = None
    for j in range(k + s):                       # static unroll over column taps
        cs = (j % d) * phw + j // d
        a = jnp.dot(w_ref[j], blk[:, cs:cs + wp],
                    preferred_element_type=jnp.float32)
        acc = a if acc is None else acc + a
    return acc


def _pool_bias_relu6(acc, bias, nb):
    """Max over the 4 (pool-tap, parity) M-blocks, then bias + relu6 (commute)."""
    p = jnp.maximum(jnp.maximum(acc[:nb], acc[nb:2 * nb]),
                    jnp.maximum(acc[2 * nb:3 * nb], acc[3 * nb:]))
    return jnp.clip(p + bias, 0.0, 6.0)


# -------------------------------- conv1 kernel --------------------------------

def _conv1_kernel(x_ref, w_ref, b_ref, p_ref, o_ref, *,
                  groups, rp, cin, cout, k, s, phw, wp):
    nb = rp * cout
    i = pl.program_id(0)

    def body(g, carry):
        acc = _conv_group(x_ref, w_ref, i * groups + g,
                          rp=rp, cin=cin, cout=cout, k=k, s=s, phw=phw, wp=wp)
        pooled = _pool_bias_relu6(acc, b_ref[...], nb).astype(jnp.bfloat16)
        # Column-permute into conv2's 4-phase layout (exact 0/1 matmul).
        perm = jnp.dot(pooled, p_ref[...], preferred_element_type=jnp.float32)
        o_ref[pl.ds(pl.multiple_of(g * nb, 8), nb), :] = perm.astype(o_ref.dtype)
        return carry

    lax.fori_loop(0, groups, body, 0)


# -------------------------- fused conv2..4 + MLP kernel ------------------------

def _tail_kernel(y1_ref, w2_ref, b2_ref, p2_ref, w3_ref, b3_ref, p3_ref,
                 w4_ref, b4_ref, w1t_ref, b1t_ref, w2t_ref, b2t_ref,
                 w3t_ref, b3t_ref, wot_ref, bot_ref, o_ref, y2_scr, y3_scr):
    # conv2: (6ch, 148x148) -> pooled (12ch, 36x36), stored interleaved + P2-permuted.
    def conv2_body(g, carry):
        acc = _conv_group(y1_ref, w2_ref, g, rp=2, cin=8, cout=12, k=5, s=2,
                          phw=37, wp=36)
        pooled = _pool_bias_relu6(acc, b2_ref[...], 24).astype(jnp.bfloat16)
        perm = jnp.dot(pooled, p2_ref[...], preferred_element_type=jnp.float32)
        y2_scr[pl.ds(pl.multiple_of(g * 24, 8), 24), :] = perm.astype(jnp.bfloat16)
        return carry
    lax.fori_loop(0, 18, conv2_body, 0)

    # conv3: (12ch, 36x36) -> pooled (24ch, 8x8), P3-permuted for conv4.
    def conv3_body(g, carry):
        acc = _conv_group(y2_scr, w3_ref, g, rp=2, cin=12, cout=24, k=5, s=2,
                          phw=9, wp=8)
        pooled = _pool_bias_relu6(acc, b3_ref[...], 48).astype(jnp.bfloat16)
        perm = jnp.dot(pooled, p3_ref[...], preferred_element_type=jnp.float32)
        y3_scr[pl.ds(pl.multiple_of(g * 48, 8), 48), :] = perm.astype(jnp.bfloat16)
        return carry
    lax.fori_loop(0, 4, conv3_body, 0)

    # conv4: (24ch, 8x8) -> pooled (12ch, 3x3), single group, kept as a value.
    acc4 = _conv_group(y3_scr, w4_ref, 0, rp=3, cin=24, cout=12, k=3, s=1,
                       phw=4, wp=3)
    y4 = _pool_bias_relu6(acc4, b4_ref[...], 36)        # (36, 3) f32, row = hp*12 + co

    # fc1 -> fc2 -> fc3 -> out (no activations, matching the PyTorch forward).
    # Computed transposed: activations are (N, 1) columns, so the (hp, co, wp)
    # conv4 output feeds fc1 as 3 column mat-vecs (no flatten / relayout).
    h = b1t_ref[...]
    for w in range(3):
        h = h + jnp.dot(w1t_ref[w], y4[:, w:w + 1],
                        preferred_element_type=jnp.float32)
    h = jnp.dot(w2t_ref[...], h, preferred_element_type=jnp.float32) + b2t_ref[...]
    h = jnp.dot(w3t_ref[...], h, preferred_element_type=jnp.float32) + b3t_ref[...]
    o_ref[...] = (jnp.dot(wot_ref[...], h, preferred_element_type=jnp.float32)
                  + bot_ref[...])


# --------------------------- parameter preparation ----------------------------

def _fold_conv_weight(w, b, *, stride, rp, cin_pad=None, cout_pad=None):
    """torch (Cout, Cin, k, k) conv weight -> folded bf16 matmul weights.

    Returns (W, bt):
      W  : (k+s, 4*rp*Cout_p, (s*(2*rp-1)+k)*Cin_p) bf16; the M axis stacks
           (pool tap dw, vertical parity, stacked pooled row r, Cout).
      bt : (rp*Cout_p, 1) f32 bias tile.
    """
    w = np.asarray(w, np.float32)
    b = np.asarray(b, np.float32)
    cout, cin, k, _ = w.shape
    s = stride
    cin_p = cin if cin_pad is None else cin_pad
    cout_p = cout if cout_pad is None else cout_pad
    nb = rp * cout_p
    krows = (s * (2 * rp - 1) + k) * cin_p
    wf = np.zeros((k + s, 4 * nb, krows), np.float32)
    for dw in range(2):                    # horizontal pool tap
        for par in range(2):               # vertical parity within the pool pair
            t = 2 * dw + par
            for r in range(rp):             # stacked pooled row
                v = 2 * r + par             # conv row within the group
                m0 = t * nb + r * cout_p
                for kh in range(k):
                    for kw in range(k):
                        j = s * dw + kw     # column tap
                        c0 = (s * v + kh) * cin_p
                        wf[j, m0:m0 + cout, c0:c0 + cin] = w[:, :, kh, kw]
    bt = np.zeros((nb, 1), np.float32)
    for r in range(rp):
        bt[r * cout_p:r * cout_p + cout, 0] = b
    return jnp.asarray(wf, jnp.bfloat16), jnp.asarray(bt)


def _phase_perm(width, d):
    """0/1 matrix grouping columns into d phases: col c -> (c%d)*(width//d) + c//d."""
    p = np.zeros((width, width), np.float32)
    c = np.arange(width)
    p[c, (c % d) * (width // d) + c // d] = 1.0
    return jnp.asarray(p, jnp.bfloat16)


def prepare_params(p):
    """Fold PyTorch-layout params into kernel-ready form (runs once, outside jit)."""
    f = {}
    f["w1"], f["b1"] = _fold_conv_weight(p["w_c1"], p["b_c1"], stride=1, rp=2,
                                         cin_pad=4, cout_pad=8)
    f["w2"], f["b2"] = _fold_conv_weight(p["w_c2"], p["b_c2"], stride=2, rp=2,
                                         cin_pad=8)
    f["w3"], f["b3"] = _fold_conv_weight(p["w_c3"], p["b_c3"], stride=2, rp=2)
    f["w4"], f["b4"] = _fold_conv_weight(p["w_c4"], p["b_c4"], stride=1, rp=3)
    f["p1"] = _phase_perm(148, 4)   # conv1 out -> conv2 (stride 2) column phases
    f["p2"] = _phase_perm(36, 4)    # conv2 out -> conv3 (stride 2) column phases
    f["p3"] = _phase_perm(8, 2)     # conv3 out -> conv4 (stride 1) column phases
    # fc1 weight re-indexed so it consumes the (hp, co, wp)-ordered conv4 output,
    # split per wp column (the MLP runs transposed on (N, 1) activations).
    w1 = np.asarray(p["w_fc1"], np.float32).reshape(12, 3, 3, 256)   # (co, hp, wp, out)
    w1 = np.transpose(w1, (2, 3, 1, 0)).reshape(3, 256, 36)          # (wp, out, hp*12+co)
    f["w1t"] = jnp.asarray(w1)
    f["b1t"] = jnp.asarray(np.asarray(p["b_fc1"], np.float32).reshape(256, 1))
    f["w2t"] = jnp.asarray(np.asarray(p["w_fc2"], np.float32).T)     # (128, 256)
    f["b2t"] = jnp.asarray(np.asarray(p["b_fc2"], np.float32).reshape(128, 1))
    f["w3t"] = jnp.asarray(np.asarray(p["w_fc3"], np.float32).T)     # (32, 128)
    f["b3t"] = jnp.asarray(np.asarray(p["b_fc3"], np.float32).reshape(32, 1))
    f["wot"] = jnp.asarray(np.asarray(p["w_out"], np.float32).T)     # (2, 32)
    f["bot"] = jnp.asarray(np.asarray(p["b_out"], np.float32).reshape(2, 1))
    return f


# --------------------------------- forward pass --------------------------------

def _prep_input(x):
    """(1, 3, 300, 300) NCHW -> (1200, 300) bf16 channel-interleaved rows
    (row = h*4 + c, Cin padded to 4) with the width split into 2 column phases
    of 150 (conv1 has stride 1)."""
    x0 = jnp.transpose(x[0], (1, 0, 2))                 # (300, 3, 300) [h, c, w]
    x0 = jnp.pad(x0, ((0, 0), (0, 1), (0, 0)))          # pad Cin 3 -> 4
    x0 = x0.reshape(300, 4, 150, 2)
    x0 = jnp.transpose(x0, (0, 1, 3, 2))                # (h, c, phase, m)
    return x0.reshape(1200, 300).astype(jnp.bfloat16)


def hotdog_forward(x, fp):
    assert x.shape == (1, 3, 300, 300), x.shape
    x2d = _prep_input(x)

    # conv1 + relu6 + pool, output already in conv2's 4-phase column layout.
    conv1 = functools.partial(_conv1_kernel, groups=37, rp=2, cin=4, cout=8,
                              k=5, s=1, phw=150, wp=148)
    y1 = pl.pallas_call(
        conv1,
        out_shape=jax.ShapeDtypeStruct((1184, 148), jnp.bfloat16),
        grid=(2,),
        in_specs=[
            pl.BlockSpec((1200, 300), lambda i: (0, 0)),
            pl.BlockSpec((6, 64, 32), lambda i: (0, 0, 0)),
            pl.BlockSpec((16, 1), lambda i: (0, 0)),
            pl.BlockSpec((148, 148), lambda i: (0, 0)),
        ],
        out_specs=pl.BlockSpec((592, 148), lambda i: (i, 0)),
        compiler_params=pltpu.CompilerParams(dimension_semantics=("parallel",)),
    )(x2d, fp["w1"], fp["b1"], fp["p1"])

    # conv2 + conv3 + conv4 + fc1..out, fully VMEM-resident, single invocation.
    out = pl.pallas_call(
        _tail_kernel,
        out_shape=jax.ShapeDtypeStruct((2, 1), jnp.float32),
        scratch_shapes=[pltpu.VMEM((432, 36), jnp.bfloat16),   # conv2 pooled output
                        pltpu.VMEM((192, 8), jnp.bfloat16)],   # conv3 pooled output
    )(y1, fp["w2"], fp["b2"], fp["p2"], fp["w3"], fp["b3"], fp["p3"],
      fp["w4"], fp["b4"], fp["w1t"], fp["b1t"], fp["w2t"], fp["b2t"],
      fp["w3t"], fp["b3t"], fp["wot"], fp["bot"])
    return out.reshape(1, 2)


# ----------------------------- deterministic init ------------------------------

def init_params(key):
    keys = jax.random.split(key, 16)

    def rnd(k_, shape, scale=0.05):
        return jax.random.normal(k_, shape, dtype=jnp.float32) * scale

    p = {}
    # conv weights kept in PyTorch layout (Cout, Cin, kh, kw)
    p["w_c1"], p["b_c1"] = rnd(keys[0], (6, 3, 5, 5)), rnd(keys[1], (6,))
    p["w_c2"], p["b_c2"] = rnd(keys[2], (12, 6, 5, 5)), rnd(keys[3], (12,))
    p["w_c3"], p["b_c3"] = rnd(keys[4], (24, 12, 5, 5)), rnd(keys[5], (24,))
    p["w_c4"], p["b_c4"] = rnd(keys[6], (12, 24, 3, 3)), rnd(keys[7], (12,))
    # fc weights stored as (in, out) (= torch weight.T); biases as (1, out)
    p["w_fc1"], p["b_fc1"] = rnd(keys[8], (108, 256)), rnd(keys[9], (1, 256))
    p["w_fc2"], p["b_fc2"] = rnd(keys[10], (256, 128)), rnd(keys[11], (1, 128))
    p["w_fc3"], p["b_fc3"] = rnd(keys[12], (128, 32)), rnd(keys[13], (1, 32))
    p["w_out"], p["b_out"] = rnd(keys[14], (32, 2)), rnd(keys[15], (1, 2))
    return p


# ------------------------------------- main -------------------------------------

if __name__ == "__main__":
    key = jax.random.PRNGKey(0)
    k_x, k_p = jax.random.split(key)

    # Input: NCHW, batch=1, 300x300 (forced by reshape(1,-1) + fc1 in_features=108).
    x = jax.random.normal(k_x, (1, 3, 300, 300), dtype=jnp.float32)
    params = init_params(k_p)
    fparams = prepare_params(params)   # one-time weight folding, outside the jit

    fwd = jax.jit(hotdog_forward)
    out = jax.block_until_ready(fwd(x, fparams))

    assert out.shape == (1, 2), out.shape
    print("KERNEL_OK")
</pallas_src>

<mosaic_0001>
module attributes {stable_mosaic.version = 11 : i64} {
  func.func @_conv1_kernel(%arg0: i32, %arg1: memref<1200x300xbf16, #tpu.memory_space<vmem>>, %arg2: memref<6x64x32xbf16, #tpu.memory_space<vmem>>, %arg3: memref<16x1xf32, #tpu.memory_space<vmem>>, %arg4: memref<148x148xbf16, #tpu.memory_space<vmem>>, %arg5: memref<592x148xbf16, #tpu.memory_space<vmem>>) attributes {dimension_semantics = [#tpu.dimension_semantics<parallel>], iteration_bounds = array<i64: 2>, scalar_prefetch = 0 : i64, scratch_operands = 0 : i64, tpu.core_type = #tpu.core_type<tc>, window_params = [{pipeline_mode = #tpu.pipeline_mode<synchronous>, transform_indices = @transform_0, window_bounds = array<i64: 1200, 300>}, {pipeline_mode = #tpu.pipeline_mode<synchronous>, transform_indices = @transform_1, window_bounds = array<i64: 6, 64, 32>}, {pipeline_mode = #tpu.pipeline_mode<synchronous>, transform_indices = @transform_2, window_bounds = array<i64: 16, 1>}, {pipeline_mode = #tpu.pipeline_mode<synchronous>, transform_indices = @transform_3, window_bounds = array<i64: 148, 148>}, {transform_indices = @transform_4, window_bounds = array<i64: 592, 148>}]} {
    %c0_i32 = arith.constant 0 : i32
    %c37_i32 = arith.constant 37 : i32
    %0 = arith.addi %c0_i32, %c37_i32 : i32
    %c1_i32 = arith.constant 1 : i32
    scf.for %arg6 = %c0_i32 to %0 step %c1_i32  : i32 {
      %c37_i32_1 = arith.constant 37 : i32
      %1 = arith.muli %arg0, %c37_i32_1 : i32
      %2 = arith.addi %1, %arg6 : i32
      %c16_i32 = arith.constant 16 : i32
      %3 = arith.muli %2, %c16_i32 : i32
      %4 = tpu.assume_multiple %3, 8 : i32
      %5 = arith.index_cast %4 : i32 to index
      %c0 = arith.constant 0 : index
      %6 = vector.load %arg1[%5, %c0] : memref<1200x300xbf16, #tpu.memory_space<vmem>>, vector<32x300xbf16>
      %c0_2 = arith.constant 0 : index
      %c0_3 = arith.constant 0 : index
      %c0_4 = arith.constant 0 : index
      %7 = vector.load %arg2[%c0_2, %c0_3, %c0_4] : memref<6x64x32xbf16, #tpu.memory_space<vmem>>, vector<1x64x32xbf16>
      %8 = vector.shape_cast %7 : vector<1x64x32xbf16> to vector<64x32xbf16>
      %9 = vector.extract_strided_slice %6 {offsets = [0, 0], sizes = [32, 148], strides = [1, 1]} : vector<32x300xbf16> to vector<32x148xbf16>
      %cst = arith.constant dense<0.000000e+00> : vector<64x148xf32>
      %10 = tpu.matmul %8, %9, %cst {dimension_numbers = #tpu.dot_dimension_numbers<[1], [0], [0], [1], [0, 0, 1, 1], [], []>} : vector<64x32xbf16>, vector<32x148xbf16>, vector<64x148xf32> -> vector<64x148xf32>
      %c1 = arith.constant 1 : index
      %c0_5 = arith.constant 0 : index
      %c0_6 = arith.constant 0 : index
      %11 = vector.load %arg2[%c1, %c0_5, %c0_6] : memref<6x64x32xbf16, #tpu.memory_space<vmem>>, vector<1x64x32xbf16>
      %12 = vector.shape_cast %11 : vector<1x64x32xbf16> to vector<64x32xbf16>
      %13 = vector.extract_strided_slice %6 {offsets = [0, 150], sizes = [32, 148], strides = [1, 1]} : vector<32x300xbf16> to vector<32x148xbf16>
      %cst_7 = arith.constant dense<0.000000e+00> : vector<64x148xf32>
      %14 = tpu.matmul %12, %13, %cst_7 {dimension_numbers = #tpu.dot_dimension_numbers<[1], [0], [0], [1], [0, 0, 1, 1], [], []>} : vector<64x32xbf16>, vector<32x148xbf16>, vector<64x148xf32> -> vector<64x148xf32>
      %15 = arith.addf %10, %14 : vector<64x148xf32>
      %c2 = arith.constant 2 : index
      %c0_8 = arith.constant 0 : index
      %c0_9 = arith.constant 0 : index
      %16 = vector.load %arg2[%c2, %c0_8, %c0_9] : memref<6x64x32xbf16, #tpu.memory_space<vmem>>, vector<1x64x32xbf16>
      %17 = vector.shape_cast %16 : vector<1x64x32xbf16> to vector<64x32xbf16>
      %18 = vector.extract_strided_slice %6 {offsets = [0, 1], sizes = [32, 148], strides = [1, 1]} : vector<32x300xbf16> to vector<32x148xbf16>
      %cst_10 = arith.constant dense<0.000000e+00> : vector<64x148xf32>
      %19 = tpu.matmul %17, %18, %cst_10 {dimension_numbers = #tpu.dot_dimension_numbers<[1], [0], [0], [1], [0, 0, 1, 1], [], []>} : vector<64x32xbf16>, vector<32x148xbf16>, vector<64x148xf32> -> vector<64x148xf32>
      %20 = arith.addf %15, %19 : vector<64x148xf32>
      %c3 = arith.constant 3 : index
      %c0_11 = arith.constant 0 : index
      %c0_12 = arith.constant 0 : index
      %21 = vector.load %arg2[%c3, %c0_11, %c0_12] : memref<6x64x32xbf16, #tpu.memory_space<vmem>>, vector<1x64x32xbf16>
      %22 = vector.shape_cast %21 : vector<1x64x32xbf16> to vector<64x32xbf16>
      %23 = vector.extract_strided_slice %6 {offsets = [0, 151], sizes = [32, 148], strides = [1, 1]} : vector<32x300xbf16> to vector<32x148xbf16>
      %cst_13 = arith.constant dense<0.000000e+00> : vector<64x148xf32>
      %24 = tpu.matmul %22, %23, %cst_13 {dimension_numbers = #tpu.dot_dimension_numbers<[1], [0], [0], [1], [0, 0, 1, 1], [], []>} : vector<64x32xbf16>, vector<32x148xbf16>, vector<64x148xf32> -> vector<64x148xf32>
      %25 = arith.addf %20, %24 : vector<64x148xf32>
      %c4 = arith.constant 4 : index
      %c0_14 = arith.constant 0 : index
      %c0_15 = arith.constant 0 : index
      %26 = vector.load %arg2[%c4, %c0_14, %c0_15] : memref<6x64x32xbf16, #tpu.memory_space<vmem>>, vector<1x64x32xbf16>
      %27 = vector.shape_cast %26 : vector<1x64x32xbf16> to vector<64x32xbf16>
      %28 = vector.extract_strided_slice %6 {offsets = [0, 2], sizes = [32, 148], strides = [1, 1]} : vector<32x300xbf16> to vector<32x148xbf16>
      %cst_16 = arith.constant dense<0.000000e+00> : vector<64x148xf32>
      %29 = tpu.matmul %27, %28, %cst_16 {dimension_numbers = #tpu.dot_dimension_numbers<[1], [0], [0], [1], [0, 0, 1, 1], [], []>} : vector<64x32xbf16>, vector<32x148xbf16>, vector<64x148xf32> -> vector<64x148xf32>
      %30 = arith.addf %25, %29 : vector<64x148xf32>
      %c5 = arith.constant 5 : index
      %c0_17 = arith.constant 0 : index
      %c0_18 = arith.constant 0 : index
      %31 = vector.load %arg2[%c5, %c0_17, %c0_18] : memref<6x64x32xbf16, #tpu.memory_space<vmem>>, vector<1x64x32xbf16>
      %32 = vector.shape_cast %31 : vector<1x64x32xbf16> to vector<64x32xbf16>
      %33 = vector.extract_strided_slice %6 {offsets = [0, 152], sizes = [32, 148], strides = [1, 1]} : vector<32x300xbf16> to vector<32x148xbf16>
      %cst_19 = arith.constant dense<0.000000e+00> : vector<64x148xf32>
      %34 = tpu.matmul %32, %33, %cst_19 {dimension_numbers = #tpu.dot_dimension_numbers<[1], [0], [0], [1], [0, 0, 1, 1], [], []>} : vector<64x32xbf16>, vector<32x148xbf16>, vector<64x148xf32> -> vector<64x148xf32>
      %35 = arith.addf %30, %34 : vector<64x148xf32>
      %c0_20 = arith.constant 0 : index
      %c0_21 = arith.constant 0 : index
      %36 = vector.load %arg3[%c0_20, %c0_21] : memref<16x1xf32, #tpu.memory_space<vmem>>, vector<16x1xf32>
      %37 = vector.extract_strided_slice %35 {offsets = [0, 0], sizes = [16, 148], strides = [1, 1]} : vector<64x148xf32> to vector<16x148xf32>
      %38 = vector.extract_strided_slice %35 {offsets = [16, 0], sizes = [16, 148], strides = [1, 1]} : vector<64x148xf32> to vector<16x148xf32>
      %39 = arith.maximumf %37, %38 : vector<16x148xf32>
      %40 = vector.extract_strided_slice %35 {offsets = [32, 0], sizes = [16, 148], strides = [1, 1]} : vector<64x148xf32> to vector<16x148xf32>
      %41 = vector.extract_strided_slice %35 {offsets = [48, 0], sizes = [16, 148], strides = [1, 1]} : vector<64x148xf32> to vector<16x148xf32>
      %42 = arith.maximumf %40, %41 : vector<16x148xf32>
      %43 = arith.maximumf %39, %42 : vector<16x148xf32>
      %44 = vector.broadcast %36 : vector<16x1xf32> to vector<16x148xf32>
      %45 = arith.addf %43, %44 : vector<16x148xf32>
      %cst_22 = arith.constant 0.000000e+00 : f32
      %cst_23 = arith.constant 6.000000e+00 : f32
      %46 = vector.broadcast %cst_22 : f32 to vector<16x148xf32>
      %47 = arith.maximumf %46, %45 : vector<16x148xf32>
      %48 = vector.broadcast %cst_23 : f32 to vector<16x148xf32>
      %49 = arith.minimumf %48, %47 : vector<16x148xf32>
      %50 = arith.truncf %49 : vector<16x148xf32> to vector<16x148xbf16>
      %c0_24 = arith.constant 0 : index
      %c0_25 = arith.constant 0 : index
      %51 = vector.load %arg4[%c0_24, %c0_25] : memref<148x148xbf16, #tpu.memory_space<vmem>>, vector<148x148xbf16>
      %cst_26 = arith.constant dense<0.000000e+00> : vector<16x148xf32>
      %52 = tpu.matmul %50, %51, %cst_26 {dimension_numbers = #tpu.dot_dimension_numbers<[1], [0], [0], [1], [0, 0, 1, 1], [], []>} : vector<16x148xbf16>, vector<148x148xbf16>, vector<16x148xf32> -> vector<16x148xf32>
      %53 = arith.truncf %52 : vector<16x148xf32> to vector<16x148xbf16>
      %c16_i32_27 = arith.constant 16 : i32
      %54 = arith.muli %arg6, %c16_i32_27 : i32
      %55 = tpu.assume_multiple %54, 8 : i32
      %56 = arith.index_cast %55 : i32 to index
      %c0_28 = arith.constant 0 : index
      %57 = vector.load %arg5[%56, %c0_28] : memref<592x148xbf16, #tpu.memory_space<vmem>>, vector<16x148xbf16>
      tpu.vector_store %arg5[%56, %c0_28], %53 {strides = array<i32>} : memref<592x148xbf16, #tpu.memory_space<vmem>>, vector<16x148xbf16>,
    }
    %c37_i32_0 = arith.constant 37 : i32
    return
  }
  func.func @transform_0(%arg0: i32) -> (i32, i32) {
    %c0_i32 = arith.constant 0 : i32
    %c0_i32_0 = arith.constant 0 : i32
    %c0_i32_1 = arith.constant 0 : i32
    return %c0_i32, %c0_i32_0 : i32, i32
  }
  func.func @transform_1(%arg0: i32) -> (i32, i32, i32) {
    %c0_i32 = arith.constant 0 : i32
    %c0_i32_0 = arith.constant 0 : i32
    %c0_i32_1 = arith.constant 0 : i32
    %c0_i32_2 = arith.constant 0 : i32
    return %c0_i32, %c0_i32_0, %c0_i32_1 : i32, i32, i32
  }
  func.func @transform_2(%arg0: i32) -> (i32, i32) {
    %c0_i32 = arith.constant 0 : i32
    %c0_i32_0 = arith.constant 0 : i32
    %c0_i32_1 = arith.constant 0 : i32
    return %c0_i32, %c0_i32_0 : i32, i32
  }
  func.func @transform_3(%arg0: i32) -> (i32, i32) {
    %c0_i32 = arith.constant 0 : i32
    %c0_i32_0 = arith.constant 0 : i32
    %c0_i32_1 = arith.constant 0 : i32
    return %c0_i32, %c0_i32_0 : i32, i32
  }
  func.func @transform_4(%arg0: i32) -> (i32, i32) {
    %c0_i32 = arith.constant 0 : i32
    %c0_i32_0 = arith.constant 0 : i32
    return %arg0, %c0_i32 : i32, i32
  }
}

module attributes {stable_mosaic.version = 11 : i64} {
  func.func @_tail_kernel(%arg0: memref<1184x148xbf16, #tpu.memory_space<vmem>>, %arg1: memref<7x96x88xbf16, #tpu.memory_space<vmem>>, %arg2: memref<24x1xf32, #tpu.memory_space<vmem>>, %arg3: memref<36x36xbf16, #tpu.memory_space<vmem>>, %arg4: memref<7x192x132xbf16, #tpu.memory_space<vmem>>, %arg5: memref<48x1xf32, #tpu.memory_space<vmem>>, %arg6: memref<8x8xbf16, #tpu.memory_space<vmem>>, %arg7: memref<4x144x192xbf16, #tpu.memory_space<vmem>>, %arg8: memref<36x1xf32, #tpu.memory_space<vmem>>, %arg9: memref<3x256x36xf32, #tpu.memory_space<vmem>>, %arg10: memref<256x1xf32, #tpu.memory_space<vmem>>, %arg11: memref<128x256xf32, #tpu.memory_space<vmem>>, %arg12: memref<128x1xf32, #tpu.memory_space<vmem>>, %arg13: memref<32x128xf32, #tpu.memory_space<vmem>>, %arg14: memref<32x1xf32, #tpu.memory_space<vmem>>, %arg15: memref<2x32xf32, #tpu.memory_space<vmem>>, %arg16: memref<2x1xf32, #tpu.memory_space<vmem>>, %arg17: memref<2x1xf32, #tpu.memory_space<vmem>>, %arg18: memref<432x36xbf16, #tpu.memory_space<vmem>>, %arg19: memref<192x8xbf16, #tpu.memory_space<vmem>>) attributes {dimension_semantics = [], scalar_prefetch = 0 : i64, scratch_operands = 2 : i64, tpu.core_type = #tpu.core_type<tc>} {
    %c0_i32 = arith.constant 0 : i32
    %c18_i32 = arith.constant 18 : i32
    %0 = arith.addi %c0_i32, %c18_i32 : i32
    %c1_i32 = arith.constant 1 : i32
    scf.for %arg20 = %c0_i32 to %0 step %c1_i32  : i32 {
      %c64_i32 = arith.constant 64 : i32
      %65 = arith.muli %arg20, %c64_i32 : i32
      %66 = tpu.assume_multiple %65, 8 : i32
      %67 = arith.index_cast %66 : i32 to index
      %c0_52 = arith.constant 0 : index
      %68 = vector.load %arg0[%67, %c0_52] : memref<1184x148xbf16, #tpu.memory_space<vmem>>, vector<88x148xbf16>
      %c0_53 = arith.constant 0 : index
      %c0_54 = arith.constant 0 : index
      %c0_55 = arith.constant 0 : index
      %69 = vector.load %arg1[%c0_53, %c0_54, %c0_55] : memref<7x96x88xbf16, #tpu.memory_space<vmem>>, vector<1x96x88xbf16>
      %70 = vector.shape_cast %69 : vector<1x96x88xbf16> to vector<96x88xbf16>
      %71 = vector.extract_strided_slice %68 {offsets = [0, 0], sizes = [88, 36], strides = [1, 1]} : vector<88x148xbf16> to vector<88x36xbf16>
      %cst_56 = arith.constant dense<0.000000e+00> : vector<96x36xf32>
      %72 = tpu.matmul %70, %71, %cst_56 {dimension_numbers = #tpu.dot_dimension_numbers<[1], [0], [0], [1], [0, 0, 1, 1], [], []>} : vector<96x88xbf16>, vector<88x36xbf16>, vector<96x36xf32> -> vector<96x36xf32>
      %c1_57 = arith.constant 1 : index
      %c0_58 = arith.constant 0 : index
      %c0_59 = arith.constant 0 : index
      %73 = vector.load %arg1[%c1_57, %c0_58, %c0_59] : memref<7x96x88xbf16, #tpu.memory_space<vmem>>, vector<1x96x88xbf16>
      %74 = vector.shape_cast %73 : vector<1x96x88xbf16> to vector<96x88xbf16>
      %75 = vector.extract_strided_slice %68 {offsets = [0, 37], sizes = [88, 36], strides = [1, 1]} : vector<88x148xbf16> to vector<88x36xbf16>
      %cst_60 = arith.constant dense<0.000000e+00> : vector<96x36xf32>
      %76 = tpu.matmul %74, %75, %cst_60 {dimension_numbers = #tpu.dot_dimension_numbers<[1], [0], [0], [1], [0, 0, 1, 1], [], []>} : vector<96x88xbf16>, vector<88x36xbf16>, vector<96x36xf32> -> vector<96x36xf32>
      %77 = arith.addf %72, %76 : vector<96x36xf32>
      %c2_61 = arith.constant 2 : index
      %c0_62 = arith.constant 0 : index
      %c0_63 = arith.constant 0 : index
      %78 = vector.load %arg1[%c2_61, %c0_62, %c0_63] : memref<7x96x88xbf16, #tpu.memory_space<vmem>>, vector<1x96x88xbf16>
      %79 = vector.shape_cast %78 : vector<1x96x88xbf16> to vector<96x88xbf16>
      %80 = vector.extract_strided_slice %68 {offsets = [0, 74], sizes = [88, 36], strides = [1, 1]} : vector<88x148xbf16> to vector<88x36xbf16>
      %cst_64 = arith.constant dense<0.000000e+00> : vector<96x36xf32>
      %81 = tpu.matmul %79, %80, %cst_64 {dimension_numbers = #tpu.dot_dimension_numbers<[1], [0], [0], [1], [0, 0, 1, 1], [], []>} : vector<96x88xbf16>, vector<88x36xbf16>, vector<96x36xf32> -> vector<96x36xf32>
      %82 = arith.addf %77, %81 : vector<96x36xf32>
      %c3_65 = arith.constant 3 : index
      %c0_66 = arith.constant 0 : index
      %c0_67 = arith.constant 0 : index
      %83 = vector.load %arg1[%c3_65, %c0_66, %c0_67] : memref<7x96x88xbf16, #tpu.memory_space<vmem>>, vector<1x96x88xbf16>
      %84 = vector.shape_cast %83 : vector<1x96x88xbf16> to vector<96x88xbf16>
      %85 = vector.extract_strided_slice %68 {offsets = [0, 111], sizes = [88, 36], strides = [1, 1]} : vector<88x148xbf16> to vector<88x36xbf16>
      %cst_68 = arith.constant dense<0.000000e+00> : vector<96x36xf32>
      %86 = tpu.matmul %84, %85, %cst_68 {dimension_numbers = #tpu.dot_dimension_numbers<[1], [0], [0], [1], [0, 0, 1, 1], [], []>} : vector<96x88xbf16>, vector<88x36xbf16>, vector<96x36xf32> -> vector<96x36xf32>
      %87 = arith.addf %82, %86 : vector<96x36xf32>
      %c4 = arith.constant 4 : index
      %c0_69 = arith.constant 0 : index
      %c0_70 = arith.constant 0 : index
      %88 = vector.load %arg1[%c4, %c0_69, %c0_70] : memref<7x96x88xbf16, #tpu.memory_space<vmem>>, vector<1x96x88xbf16>
      %89 = vector.shape_cast %88 : vector<1x96x88xbf16> to vector<96x88xbf16>
      %90 = vector.extract_strided_slice %68 {offsets = [0, 1], sizes = [88, 36], strides = [1, 1]} : vector<88x148xbf16> to vector<88x36xbf16>
      %cst_71 = arith.constant dense<0.000000e+00> : vector<96x36xf32>
      %91 = tpu.matmul %89, %90, %cst_71 {dimension_numbers = #tpu.dot_dimension_numbers<[1], [0], [0], [1], [0, 0, 1, 1], [], []>} : vector<96x88xbf16>, vector<88x36xbf16>, vector<96x36xf32> -> vector<96x36xf32>
      %92 = arith.addf %87, %91 : vector<96x36xf32>
      %c5 = arith.constant 5 : index
      %c0_72 = arith.constant 0 : index
      %c0_73 = arith.constant 0 : index
      %93 = vector.load %arg1[%c5, %c0_72, %c0_73] : memref<7x96x88xbf16, #tpu.memory_space<vmem>>, vector<1x96x88xbf16>
      %94 = vector.shape_cast %93 : vector<1x96x88xbf16> to vector<96x88xbf16>
      %95 = vector.extract_strided_slice %68 {offsets = [0, 38], sizes = [88, 36], strides = [1, 1]} : vector<88x148xbf16> to vector<88x36xbf16>
      %cst_74 = arith.constant dense<0.000000e+00> : vector<96x36xf32>
      %96 = tpu.matmul %94, %95, %cst_74 {dimension_numbers = #tpu.dot_dimension_numbers<[1], [0], [0], [1], [0, 0, 1, 1], [], []>} : vector<96x88xbf16>, vector<88x36xbf16>, vector<96x36xf32> -> vector<96x36xf32>
      %97 = arith.addf %92, %96 : vector<96x36xf32>
      %c6 = arith.constant 6 : index
      %c0_75 = arith.constant 0 : index
      %c0_76 = arith.constant 0 : index
      %98 = vector.load %arg1[%c6, %c0_75, %c0_76] : memref<7x96x88xbf16, #tpu.memory_space<vmem>>, vector<1x96x88xbf16>
      %99 = vector.shape_cast %98 : vector<1x96x88xbf16> to vector<96x88xbf16>
      %100 = vector.extract_strided_slice %68 {offsets = [0, 75], sizes = [88, 36], strides = [1, 1]} : vector<88x148xbf16> to vector<88x36xbf16>
      %cst_77 = arith.constant dense<0.000000e+00> : vector<96x36xf32>
      %101 = tpu.matmul %99, %100, %cst_77 {dimension_numbers = #tpu.dot_dimension_numbers<[1], [0], [0], [1], [0, 0, 1, 1], [], []>} : vector<96x88xbf16>, vector<88x36xbf16>, vector<96x36xf32> -> vector<96x36xf32>
      %102 = arith.addf %97, %101 : vector<96x36xf32>
      %c0_78 = arith.constant 0 : index
      %c0_79 = arith.constant 0 : index
      %103 = vector.load %arg2[%c0_78, %c0_79] : memref<24x1xf32, #tpu.memory_space<vmem>>, vector<24x1xf32>
      %104 = vector.extract_strided_slice %102 {offsets = [0, 0], sizes = [24, 36], strides = [1, 1]} : vector<96x36xf32> to vector<24x36xf32>
      %105 = vector.extract_strided_slice %102 {offsets = [24, 0], sizes = [24, 36], strides = [1, 1]} : vector<96x36xf32> to vector<24x36xf32>
      %106 = arith.maximumf %104, %105 : vector<24x36xf32>
      %107 = vector.extract_strided_slice %102 {offsets = [48, 0], sizes = [24, 36], strides = [1, 1]} : vector<96x36xf32> to vector<24x36xf32>
      %108 = vector.extract_strided_slice %102 {offsets = [72, 0], sizes = [24, 36], strides = [1, 1]} : vector<96x36xf32> to vector<24x36xf32>
      %109 = arith.maximumf %107, %108 : vector<24x36xf32>
      %110 = arith.maximumf %106, %109 : vector<24x36xf32>
      %111 = vector.broadcast %103 : vector<24x1xf32> to vector<24x36xf32>
      %112 = arith.addf %110, %111 : vector<24x36xf32>
      %cst_80 = arith.constant 0.000000e+00 : f32
      %cst_81 = arith.constant 6.000000e+00 : f32
      %113 = vector.broadcast %cst_80 : f32 to vector<24x36xf32>
      %114 = arith.maximumf %113, %112 : vector<24x36xf32>
      %115 = vector.broadcast %cst_81 : f32 to vector<24x36xf32>
      %116 = arith.minimumf %115, %114 : vector<24x36xf32>
      %117 = arith.truncf %116 : vector<24x36xf32> to vector<24x36xbf16>
      %c0_82 = arith.constant 0 : index
      %c0_83 = arith.constant 0 : index
      %118 = vector.load %arg3[%c0_82, %c0_83] : memref<36x36xbf16, #tpu.memory_space<vmem>>, vector<36x36xbf16>
      %cst_84 = arith.constant dense<0.000000e+00> : vector<24x36xf32>
      %119 = tpu.matmul %117, %118, %cst_84 {dimension_numbers = #tpu.dot_dimension_numbers<[1], [0], [0], [1], [0, 0, 1, 1], [], []>} : vector<24x36xbf16>, vector<36x36xbf16>, vector<24x36xf32> -> vector<24x36xf32>
      %120 = arith.truncf %119 : vector<24x36xf32> to vector<24x36xbf16>
      %c24_i32 = arith.constant 24 : i32
      %121 = arith.muli %arg20, %c24_i32 : i32
      %122 = tpu.assume_multiple %121, 8 : i32
      %123 = arith.index_cast %122 : i32 to index
      %c0_85 = arith.constant 0 : index
      %124 = vector.load %arg18[%123, %c0_85] : memref<432x36xbf16, #tpu.memory_space<vmem>>, vector<24x36xbf16>
      tpu.vector_store %arg18[%123, %c0_85], %120 {strides = array<i32>} : memref<432x36xbf16, #tpu.memory_space<vmem>>, vector<24x36xbf16>,
    }
    %c18_i32_0 = arith.constant 18 : i32
    %c0_i32_1 = arith.constant 0 : i32
    %c4_i32 = arith.constant 4 : i32
    %1 = arith.addi %c0_i32_1, %c4_i32 : i32
    %c1_i32_2 = arith.constant 1 : i32
    scf.for %arg20 = %c0_i32_1 to %1 step %c1_i32_2  : i32 {
      %c96_i32 = arith.constant 96 : i32
      %65 = arith.muli %arg20, %c96_i32 : i32
      %66 = tpu.assume_multiple %65, 8 : i32
      %67 = arith.index_cast %66 : i32 to index
      %c0_52 = arith.constant 0 : index
      %68 = vector.load %arg18[%67, %c0_52] : memref<432x36xbf16, #tpu.memory_space<vmem>>, vector<132x36xbf16>
      %c0_53 = arith.constant 0 : index
      %c0_54 = arith.constant 0 : index
      %c0_55 = arith.constant 0 : index
      %69 = vector.load %arg4[%c0_53, %c0_54, %c0_55] : memref<7x192x132xbf16, #tpu.memory_space<vmem>>, vector<1x192x132xbf16>
      %70 = vector.shape_cast %69 : vector<1x192x132xbf16> to vector<192x132xbf16>
      %71 = vector.extract_strided_slice %68 {offsets = [0, 0], sizes = [132, 8], strides = [1, 1]} : vector<132x36xbf16> to vector<132x8xbf16>
      %cst_56 = arith.constant dense<0.000000e+00> : vector<192x8xf32>
      %72 = tpu.matmul %70, %71, %cst_56 {dimension_numbers = #tpu.dot_dimension_numbers<[1], [0], [0], [1], [0, 0, 1, 1], [], []>} : vector<192x132xbf16>, vector<132x8xbf16>, vector<192x8xf32> -> vector<192x8xf32>
      %c1_57 = arith.constant 1 : index
      %c0_58 = arith.constant 0 : index
      %c0_59 = arith.constant 0 : index
      %73 = vector.load %arg4[%c1_57, %c0_58, %c0_59] : memref<7x192x132xbf16, #tpu.memory_space<vmem>>, vector<1x192x132xbf16>
      %74 = vector.shape_cast %73 : vector<1x192x132xbf16> to vector<192x132xbf16>
      %75 = vector.extract_strided_slice %68 {offsets = [0, 9], sizes = [132, 8], strides = [1, 1]} : vector<132x36xbf16> to vector<132x8xbf16>
      %cst_60 = arith.constant dense<0.000000e+00> : vector<192x8xf32>
      %76 = tpu.matmul %74, %75, %cst_60 {dimension_numbers = #tpu.dot_dimension_numbers<[1], [0], [0], [1], [0, 0, 1, 1], [], []>} : vector<192x132xbf16>, vector<132x8xbf16>, vector<192x8xf32> -> vector<192x8xf32>
      %77 = arith.addf %72, %76 : vector<192x8xf32>
      %c2_61 = arith.constant 2 : index
      %c0_62 = arith.constant 0 : index
      %c0_63 = arith.constant 0 : index
      %78 = vector.load %arg4[%c2_61, %c0_62, %c0_63] : memref<7x192x132xbf16, #tpu.memory_space<vmem>>, vector<1x192x132xbf16>
      %79 = vector.shape_cast %78 : vector<1x192x132xbf16> to vector<192x132xbf16>
      %80 = vector.extract_strided_slice %68 {offsets = [0, 18], sizes = [132, 8], strides = [1, 1]} : vector<132x36xbf16> to vector<132x8xbf16>
      %cst_64 = arith.constant dense<0.000000e+00> : vector<192x8xf32>
      %81 = tpu.matmul %79, %80, %cst_64 {dimension_numbers = #tpu.dot_dimension_numbers<[1], [0], [0], [1], [0, 0, 1, 1], [], []>} : vector<192x132xbf16>, vector<132x8xbf16>, vector<192x8xf32> -> vector<192x8xf32>
      %82 = arith.addf %77, %81 : vector<192x8xf32>
      %c3_65 = arith.constant 3 : index
      %c0_66 = arith.constant 0 : index
      %c0_67 = arith.constant 0 : index
      %83 = vector.load %arg4[%c3_65, %c0_66, %c0_67] : memref<7x192x132xbf16, #tpu.memory_space<vmem>>, vector<1x192x132xbf16>
      %84 = vector.shape_cast %83 : vector<1x192x132xbf16> to vector<192x132xbf16>
      %85 = vector.extract_strided_slice %68 {offsets = [0, 27], sizes = [132, 8], strides = [1, 1]} : vector<132x36xbf16> to vector<132x8xbf16>
      %cst_68 = arith.constant dense<0.000000e+00> : vector<192x8xf32>
      %86 = tpu.matmul %84, %85, %cst_68 {dimension_numbers = #tpu.dot_dimension_numbers<[1], [0], [0], [1], [0, 0, 1, 1], [], []>} : vector<192x132xbf16>, vector<132x8xbf16>, vector<192x8xf32> -> vector<192x8xf32>
      %87 = arith.addf %82, %86 : vector<192x8xf32>
      %c4 = arith.constant 4 : index
      %c0_69 = arith.constant 0 : index
      %c0_70 = arith.constant 0 : index
      %88 = vector.load %arg4[%c4, %c0_69, %c0_70] : memref<7x192x132xbf16, #tpu.memory_space<vmem>>, vector<1x192x132xbf16>
      %89 = vector.shape_cast %88 : vector<1x192x132xbf16> to vector<192x132xbf16>
      %90 = vector.extract_strided_slice %68 {offsets = [0, 1], sizes = [132, 8], strides = [1, 1]} : vector<132x36xbf16> to vector<132x8xbf16>
      %cst_71 = arith.constant dense<0.000000e+00> : vector<192x8xf32>
      %91 = tpu.matmul %89, %90, %cst_71 {dimension_numbers = #tpu.dot_dimension_numbers<[1], [0], [0], [1], [0, 0, 1, 1], [], []>} : vector<192x132xbf16>, vector<132x8xbf16>, vector<192x8xf32> -> vector<192x8xf32>
      %92 = arith.addf %87, %91 : vector<192x8xf32>
      %c5 = arith.constant 5 : index
      %c0_72 = arith.constant 0 : index
      %c0_73 = arith.constant 0 : index
      %93 = vector.load %arg4[%c5, %c0_72, %c0_73] : memref<7x192x132xbf16, #tpu.memory_space<vmem>>, vector<1x192x132xbf16>
      %94 = vector.shape_cast %93 : vector<1x192x132xbf16> to vector<192x132xbf16>
      %95 = vector.extract_strided_slice %68 {offsets = [0, 10], sizes = [132, 8], strides = [1, 1]} : vector<132x36xbf16> to vector<132x8xbf16>
      %cst_74 = arith.constant dense<0.000000e+00> : vector<192x8xf32>
      %96 = tpu.matmul %94, %95, %cst_74 {dimension_numbers = #tpu.dot_dimension_numbers<[1], [0], [0], [1], [0, 0, 1, 1], [], []>} : vector<192x132xbf16>, vector<132x8xbf16>, vector<192x8xf32> -> vector<192x8xf32>
      %97 = arith.addf %92, %96 : vector<192x8xf32>
      %c6 = arith.constant 6 : index
      %c0_75 = arith.constant 0 : index
      %c0_76 = arith.constant 0 : index
      %98 = vector.load %arg4[%c6, %c0_75, %c0_76] : memref<7x192x132xbf16, #tpu.memory_space<vmem>>, vector<1x192x132xbf16>
      %99 = vector.shape_cast %98 : vector<1x192x132xbf16> to vector<192x132xbf16>
      %100 = vector.extract_strided_slice %68 {offsets = [0, 19], sizes = [132, 8], strides = [1, 1]} : vector<132x36xbf16> to vector<132x8xbf16>
      %cst_77 = arith.constant dense<0.000000e+00> : vector<192x8xf32>
      %101 = tpu.matmul %99, %100, %cst_77 {dimension_numbers = #tpu.dot_dimension_numbers<[1], [0], [0], [1], [0, 0, 1, 1], [], []>} : vector<192x132xbf16>, vector<132x8xbf16>, vector<192x8xf32> -> vector<192x8xf32>
      %102 = arith.addf %97, %101 : vector<192x8xf32>
      %c0_78 = arith.constant 0 : index
      %c0_79 = arith.constant 0 : index
      %103 = vector.load %arg5[%c0_78, %c0_79] : memref<48x1xf32, #tpu.memory_space<vmem>>, vector<48x1xf32>
      %104 = vector.extract_strided_slice %102 {offsets = [0, 0], sizes = [48, 8], strides = [1, 1]} : vector<192x8xf32> to vector<48x8xf32>
      %105 = vector.extract_strided_slice %102 {offsets = [48, 0], sizes = [48, 8], strides = [1, 1]} : vector<192x8xf32> to vector<48x8xf32>
      %106 = arith.maximumf %104, %105 : vector<48x8xf32>
      %107 = vector.extract_strided_slice %102 {offsets = [96, 0], sizes = [48, 8], strides = [1, 1]} : vector<192x8xf32> to vector<48x8xf32>
      %108 = vector.extract_strided_slice %102 {offsets = [144, 0], sizes = [48, 8], strides = [1, 1]} : vector<192x8xf32> to vector<48x8xf32>
      %109 = arith.maximumf %107, %108 : vector<48x8xf32>
      %110 = arith.maximumf %106, %109 : vector<48x8xf32>
      %111 = vector.broadcast %103 : vector<48x1xf32> to vector<48x8xf32>
      %112 = arith.addf %110, %111 : vector<48x8xf32>
      %cst_80 = arith.constant 0.000000e+00 : f32
      %cst_81 = arith.constant 6.000000e+00 : f32
      %113 = vector.broadcast %cst_80 : f32 to vector<48x8xf32>
      %114 = arith.maximumf %113, %112 : vector<48x8xf32>
      %115 = vector.broadcast %cst_81 : f32 to vector<48x8xf32>
      %116 = arith.minimumf %115, %114 : vector<48x8xf32>
      %117 = arith.truncf %116 : vector<48x8xf32> to vector<48x8xbf16>
      %c0_82 = arith.constant 0 : index
      %c0_83 = arith.constant 0 : index
      %118 = vector.load %arg6[%c0_82, %c0_83] : memref<8x8xbf16, #tpu.memory_space<vmem>>, vector<8x8xbf16>
      %cst_84 = arith.constant dense<0.000000e+00> : vector<48x8xf32>
      %119 = tpu.matmul %117, %118, %cst_84 {dimension_numbers = #tpu.dot_dimension_numbers<[1], [0], [0], [1], [0, 0, 1, 1], [], []>} : vector<48x8xbf16>, vector<8x8xbf16>, vector<48x8xf32> -> vector<48x8xf32>
      %120 = arith.truncf %119 : vector<48x8xf32> to vector<48x8xbf16>
      %c48_i32 = arith.constant 48 : i32
      %121 = arith.muli %arg20, %c48_i32 : i32
      %122 = tpu.assume_multiple %121, 8 : i32
      %123 = arith.index_cast %122 : i32 to index
      %c0_85 = arith.constant 0 : index
      %124 = vector.load %arg19[%123, %c0_85] : memref<192x8xbf16, #tpu.memory_space<vmem>>, vector<48x8xbf16>
      tpu.vector_store %arg19[%123, %c0_85], %120 {strides = array<i32>} : memref<192x8xbf16, #tpu.memory_space<vmem>>, vector<48x8xbf16>,
    }
    %c4_i32_3 = arith.constant 4 : i32
    %c0 = arith.constant 0 : index
    %c0_4 = arith.constant 0 : index
    %2 = vector.load %arg19[%c0, %c0_4] : memref<192x8xbf16, #tpu.memory_space<vmem>>, vector<192x8xbf16>
    %c0_5 = arith.constant 0 : index
    %c0_6 = arith.constant 0 : index
    %c0_7 = arith.constant 0 : index
    %3 = vector.load %arg7[%c0_5, %c0_6, %c0_7] : memref<4x144x192xbf16, #tpu.memory_space<vmem>>, vector<1x144x192xbf16>
    %4 = vector.shape_cast %3 : vector<1x144x192xbf16> to vector<144x192xbf16>
    %5 = vector.extract_strided_slice %2 {offsets = [0, 0], sizes = [192, 3], strides = [1, 1]} : vector<192x8xbf16> to vector<192x3xbf16>
    %cst = arith.constant dense<0.000000e+00> : vector<144x3xf32>
    %6 = tpu.matmul %4, %5, %cst {dimension_numbers = #tpu.dot_dimension_numbers<[1], [0], [0], [1], [0, 0, 1, 1], [], []>} : vector<144x192xbf16>, vector<192x3xbf16>, vector<144x3xf32> -> vector<144x3xf32>
    %c1 = arith.constant 1 : index
    %c0_8 = arith.constant 0 : index
    %c0_9 = arith.constant 0 : index
    %7 = vector.load %arg7[%c1, %c0_8, %c0_9] : memref<4x144x192xbf16, #tpu.memory_space<vmem>>, vector<1x144x192xbf16>
    %8 = vector.shape_cast %7 : vector<1x144x192xbf16> to vector<144x192xbf16>
    %9 = vector.extract_strided_slice %2 {offsets = [0, 4], sizes = [192, 3], strides = [1, 1]} : vector<192x8xbf16> to vector<192x3xbf16>
    %cst_10 = arith.constant dense<0.000000e+00> : vector<144x3xf32>
    %10 = tpu.matmul %8, %9, %cst_10 {dimension_numbers = #tpu.dot_dimension_numbers<[1], [0], [0], [1], [0, 0, 1, 1], [], []>} : vector<144x192xbf16>, vector<192x3xbf16>, vector<144x3xf32> -> vector<144x3xf32>
    %11 = arith.addf %6, %10 : vector<144x3xf32>
    %c2 = arith.constant 2 : index
    %c0_11 = arith.constant 0 : index
    %c0_12 = arith.constant 0 : index
    %12 = vector.load %arg7[%c2, %c0_11, %c0_12] : memref<4x144x192xbf16, #tpu.memory_space<vmem>>, vector<1x144x192xbf16>
    %13 = vector.shape_cast %12 : vector<1x144x192xbf16> to vector<144x192xbf16>
    %14 = vector.extract_strided_slice %2 {offsets = [0, 1], sizes = [192, 3], strides = [1, 1]} : vector<192x8xbf16> to vector<192x3xbf16>
    %cst_13 = arith.constant dense<0.000000e+00> : vector<144x3xf32>
    %15 = tpu.matmul %13, %14, %cst_13 {dimension_numbers = #tpu.dot_dimension_numbers<[1], [0], [0], [1], [0, 0, 1, 1], [], []>} : vector<144x192xbf16>, vector<192x3xbf16>, vector<144x3xf32> -> vector<144x3xf32>
    %16 = arith.addf %11, %15 : vector<144x3xf32>
    %c3 = arith.constant 3 : index
    %c0_14 = arith.constant 0 : index
    %c0_15 = arith.constant 0 : index
    %17 = vector.load %arg7[%c3, %c0_14, %c0_15] : memref<4x144x192xbf16, #tpu.memory_space<vmem>>, vector<1x144x192xbf16>
    %18 = vector.shape_cast %17 : vector<1x144x192xbf16> to vector<144x192xbf16>
    %19 = vector.extract_strided_slice %2 {offsets = [0, 5], sizes = [192, 3], strides = [1, 1]} : vector<192x8xbf16> to vector<192x3xbf16>
    %cst_16 = arith.constant dense<0.000000e+00> : vector<144x3xf32>
    %20 = tpu.matmul %18, %19, %cst_16 {dimension_numbers = #tpu.dot_dimension_numbers<[1], [0], [0], [1], [0, 0, 1, 1], [], []>} : vector<144x192xbf16>, vector<192x3xbf16>, vector<144x3xf32> -> vector<144x3xf32>
    %21 = arith.addf %16, %20 : vector<144x3xf32>
    %c0_17 = arith.constant 0 : index
    %c0_18 = arith.constant 0 : index
    %22 = vector.load %arg8[%c0_17, %c0_18] : memref<36x1xf32, #tpu.memory_space<vmem>>, vector<36x1xf32>
    %23 = vector.extract_strided_slice %21 {offsets = [0, 0], sizes = [36, 3], strides = [1, 1]} : vector<144x3xf32> to vector<36x3xf32>
    %24 = vector.extract_strided_slice %21 {offsets = [36, 0], sizes = [36, 3], strides = [1, 1]} : vector<144x3xf32> to vector<36x3xf32>
    %25 = arith.maximumf %23, %24 : vector<36x3xf32>
    %26 = vector.extract_strided_slice %21 {offsets = [72, 0], sizes = [36, 3], strides = [1, 1]} : vector<144x3xf32> to vector<36x3xf32>
    %27 = vector.extract_strided_slice %21 {offsets = [108, 0], sizes = [36, 3], strides = [1, 1]} : vector<144x3xf32> to vector<36x3xf32>
    %28 = arith.maximumf %26, %27 : vector<36x3xf32>
    %29 = arith.maximumf %25, %28 : vector<36x3xf32>
    %30 = vector.broadcast %22 : vector<36x1xf32> to vector<36x3xf32>
    %31 = arith.addf %29, %30 : vector<36x3xf32>
    %cst_19 = arith.constant 0.000000e+00 : f32
    %cst_20 = arith.constant 6.000000e+00 : f32
    %32 = vector.broadcast %cst_19 : f32 to vector<36x3xf32>
    %33 = arith.maximumf %32, %31 : vector<36x3xf32>
    %34 = vector.broadcast %cst_20 : f32 to vector<36x3xf32>
    %35 = arith.minimumf %34, %33 : vector<36x3xf32>
    %c0_21 = arith.constant 0 : index
    %c0_22 = arith.constant 0 : index
    %36 = vector.load %arg10[%c0_21, %c0_22] : memref<256x1xf32, #tpu.memory_space<vmem>>, vector<256x1xf32>
    %c0_23 = arith.constant 0 : index
    %c0_24 = arith.constant 0 : index
    %c0_25 = arith.constant 0 : index
    %37 = vector.load %arg9[%c0_23, %c0_24, %c0_25] : memref<3x256x36xf32, #tpu.memory_space<vmem>>, vector<1x256x36xf32>
    %38 = vector.shape_cast %37 : vector<1x256x36xf32> to vector<256x36xf32>
    %39 = vector.extract_strided_slice %35 {offsets = [0, 0], sizes = [36, 1], strides = [1, 1]} : vector<36x3xf32> to vector<36x1xf32>
    %cst_26 = arith.constant dense<0.000000e+00> : vector<256x1xf32>
    %40 = tpu.matmul %38, %39, %cst_26 {dimension_numbers = #tpu.dot_dimension_numbers<[1], [0], [0], [1], [0, 0, 1, 1], [], []>} : vector<256x36xf32>, vector<36x1xf32>, vector<256x1xf32> -> vector<256x1xf32>
    %41 = arith.addf %36, %40 : vector<256x1xf32>
    %c1_27 = arith.constant 1 : index
    %c0_28 = arith.constant 0 : index
    %c0_29 = arith.constant 0 : index
    %42 = vector.load %arg9[%c1_27, %c0_28, %c0_29] : memref<3x256x36xf32, #tpu.memory_space<vmem>>, vector<1x256x36xf32>
    %43 = vector.shape_cast %42 : vector<1x256x36xf32> to vector<256x36xf32>
    %44 = vector.extract_strided_slice %35 {offsets = [0, 1], sizes = [36, 1], strides = [1, 1]} : vector<36x3xf32> to vector<36x1xf32>
    %cst_30 = arith.constant dense<0.000000e+00> : vector<256x1xf32>
    %45 = tpu.matmul %43, %44, %cst_30 {dimension_numbers = #tpu.dot_dimension_numbers<[1], [0], [0], [1], [0, 0, 1, 1], [], []>} : vector<256x36xf32>, vector<36x1xf32>, vector<256x1xf32> -> vector<256x1xf32>
    %46 = arith.addf %41, %45 : vector<256x1xf32>
    %c2_31 = arith.constant 2 : index
    %c0_32 = arith.constant 0 : index
    %c0_33 = arith.constant 0 : index
    %47 = vector.load %arg9[%c2_31, %c0_32, %c0_33] : memref<3x256x36xf32, #tpu.memory_space<vmem>>, vector<1x256x36xf32>
    %48 = vector.shape_cast %47 : vector<1x256x36xf32> to vector<256x36xf32>
    %49 = vector.extract_strided_slice %35 {offsets = [0, 2], sizes = [36, 1], strides = [1, 1]} : vector<36x3xf32> to vector<36x1xf32>
    %cst_34 = arith.constant dense<0.000000e+00> : vector<256x1xf32>
    %50 = tpu.matmul %48, %49, %cst_34 {dimension_numbers = #tpu.dot_dimension_numbers<[1], [0], [0], [1], [0, 0, 1, 1], [], []>} : vector<256x36xf32>, vector<36x1xf32>, vector<256x1xf32> -> vector<256x1xf32>
    %51 = arith.addf %46, %50 : vector<256x1xf32>
    %c0_35 = arith.constant 0 : index
    %c0_36 = arith.constant 0 : index
    %52 = vector.load %arg11[%c0_35, %c0_36] : memref<128x256xf32, #tpu.memory_space<vmem>>, vector<128x256xf32>
    %cst_37 = arith.constant dense<0.000000e+00> : vector<128x1xf32>
    %53 = tpu.matmul %52, %51, %cst_37 {dimension_numbers = #tpu.dot_dimension_numbers<[1], [0], [0], [1], [0, 0, 1, 1], [], []>} : vector<128x256xf32>, vector<256x1xf32>, vector<128x1xf32> -> vector<128x1xf32>
    %c0_38 = arith.constant 0 : index
    %c0_39 = arith.constant 0 : index
    %54 = vector.load %arg12[%c0_38, %c0_39] : memref<128x1xf32, #tpu.memory_space<vmem>>, vector<128x1xf32>
    %55 = arith.addf %53, %54 : vector<128x1xf32>
    %c0_40 = arith.constant 0 : index
    %c0_41 = arith.constant 0 : index
    %56 = vector.load %arg13[%c0_40, %c0_41] : memref<32x128xf32, #tpu.memory_space<vmem>>, vector<32x128xf32>
    %cst_42 = arith.constant dense<0.000000e+00> : vector<32x1xf32>
    %57 = tpu.matmul %56, %55, %cst_42 {dimension_numbers = #tpu.dot_dimension_numbers<[1], [0], [0], [1], [0, 0, 1, 1], [], []>} : vector<32x128xf32>, vector<128x1xf32>, vector<32x1xf32> -> vector<32x1xf32>
    %c0_43 = arith.constant 0 : index
    %c0_44 = arith.constant 0 : index
    %58 = vector.load %arg14[%c0_43, %c0_44] : memref<32x1xf32, #tpu.memory_space<vmem>>, vector<32x1xf32>
    %59 = arith.addf %57, %58 : vector<32x1xf32>
    %c0_45 = arith.constant 0 : index
    %c0_46 = arith.constant 0 : index
    %60 = vector.load %arg15[%c0_45, %c0_46] : memref<2x32xf32, #tpu.memory_space<vmem>>, vector<2x32xf32>
    %cst_47 = arith.constant dense<0.000000e+00> : vector<2x1xf32>
    %61 = tpu.matmul %60, %59, %cst_47 {dimension_numbers = #tpu.dot_dimension_numbers<[1], [0], [0], [1], [0, 0, 1, 1], [], []>} : vector<2x32xf32>, vector<32x1xf32>, vector<2x1xf32> -> vector<2x1xf32>
    %c0_48 = arith.constant 0 : index
    %c0_49 = arith.constant 0 : index
    %62 = vector.load %arg16[%c0_48, %c0_49] : memref<2x1xf32, #tpu.memory_space<vmem>>, vector<2x1xf32>
    %63 = arith.addf %61, %62 : vector<2x1xf32>
    %c0_50 = arith.constant 0 : index
    %c0_51 = arith.constant 0 : index
    %64 = vector.load %arg17[%c0_50, %c0_51] : memref<2x1xf32, #tpu.memory_space<vmem>>, vector<2x1xf32>
    tpu.vector_store %arg17[%c0_50, %c0_51], %63 {strides = array<i32>} : memref<2x1xf32, #tpu.memory_space<vmem>>, vector<2x1xf32>,
    return
  }
}

</mosaic_0001>

<bundles_post_ra>
// kernel: hotdog_forward.2
= control target key start
LH: loop header
LB: loop body
LE: loop exit
PB: predicated region body
PF: predicated region fallthrough
CT: control target
= control target key end

     0   :  { %s1671_s15 = smov 0   ;;  %s2093_s0 = inlined_call_operand.vmem [shape: bf16[1200,300], index: 0, kind: input, shape index: {}]   ;;  %s2094_s1 = inlined_call_operand.vmem [shape: bf16[6,64,32], index: 1, kind: input, shape index: {}]   ;;  %s2095_s2 = inlined_call_operand.vmem [shape: f32[16,1], index: 2, kind: input, shape index: {}]   ;;  %s2096_s3 = inlined_call_operand.vmem [shape: bf16[148,148], index: 3, kind: input, shape index: {}]   ;;  %s2097_s4 = inlined_call_operand.vmem [shape: bf16[1184,148], index: 4, kind: output, shape index: {}]  }
   0x1 LB: > { %s1254_s16 = sadd.s32 4294967295, %s1634_s15   ;;  %p1257_p0 = scmp.ge.s32.totalorder %s1634_s15, 1  ;;  %s1634_s15 = sphi %s1671_s15, %s14_s15  }
   0x2   : > { %p152_p1 = scmp.lt.s32.totalorder %s1634_s15, 3 }
   0x4   : > { %p153_p2 = pnand %p1257_p0, %p152_p1 }
   0x5   : > { %s174_s17 = smul.u32 (!%p153_p2), 74, %s1254_s16  ;;  %s1686_s22 = smov (!%p153_p2), 0  }
   0x6   : > { %156 = sbr.rel (%p153_p2) target bundleno = 627 (0x273), region = 36 }
   0x7   : > { %p175_p3 = scmp.lt.s32.totalorder (!%p153_p2), %s174_s17, 147 }
   0xb   : > { %s2099_s17 = smov (!%p175_p3, %s174_s17), 147 }
   0xc   : > { %s1549_s18 = sshll.u32 %s2099_s17, 3 }
   0xd   : > { %s1684_s21 = scalar_lea.vmem %s2097_s4, %s1549_s18 }
   0xe LB: >> { %s188_s23 = smul.u32 37, %s1254_s16  ;;  %s1640_s5 = smov 106   ;;  %v1557_v18 = vld [vmem:[%s2094_s1] sm:$0xff]  ;;  %vm276_vm0 = vcmask 261120   ;;  %vm614_vm1 = vcmask 859136   ;;  %v1558_v22 = vld [vmem:[%s2094_s1 + $0x8] sm:$0xff]  ;;  %s1638_s22 = sphi %s1686_s22, %s187_s22  }
   0xf   : >> { %s1641_s6 = smov 105   ;;  %s1642_s7 = smov 127   ;;  %v1559_v25 = vld [vmem:[%s2094_s1 + $0x10] sm:$0xff]  ;;  %vm269_vm2 = vcmask 867328   ;;  %v1561_v30 = vld [vmem:[%s2094_s1 + $0x20] sm:$0xff]  ;;  %vm484_vm3 = vcmask 1039360  }
  0x10   : >> { %s189_s24 = sadd.s32 %s1638_s22, %s188_s23  ;;  %s1643_s8 = smov 104   ;;  %v1560_v34 = vld [vmem:[%s2094_s1 + $0x18] sm:$0xff]  ;;  %v1562_v41 = vld [vmem:[%s2094_s1 + $0x28] sm:$0xff]  ;;  %v1569_v42 = vld [vmem:[%s2094_s1 + $0x60] sm:$0xff]  ;;  %vm874_vm4 = vcmask 850944   ;;  %vm744_vm5 = vcmask 1031168  }
  0x11   : >> { %s1260_s25 = sshll.u32 %s189_s24, 4  ;;  %s1644_s9 = smov 126   ;;  %v1563_v49 = vld [vmem:[%s2094_s1 + $0x30] sm:$0xff]  ;;  %v1570_v50 = vld [vmem:[%s2094_s1 + $0x68] sm:$0xff]  ;;  %v1564_v51 = vld [vmem:[%s2094_s1 + $0x38] sm:$0xff]  ;;  %vm1123_vm6 = vcmask 1041408  }
  0x12   : >> { %s191_s26 = sshra.s32 %s1260_s25, 3  ;;  %v1571_v52 = vld [vmem:[%s2094_s1 + $0x70] sm:$0xff]  ;;  %v1565_v56 = vld [vmem:[%s2094_s1 + $0x40] sm:$0xff]  ;;  %v1572_v60 = vld [vmem:[%s2094_s1 + $0x78] sm:$0xff]  ;;  %vm1119_vm7 = vcmask 162816   ;;  %vm1194_vm8 = vcmask 1043456  }
  0x13   : >> { %s1550_s27 = smul.u32 12, %s191_s26  ;;  %v1566_v61 = vld [vmem:[%s2094_s1 + $0x48] sm:$0xff]  ;;  %v1577_v62 = vld [vmem:[%s2094_s1 + $0xa0] sm:$0xff]  ;;  %vm1195_vm9 = vcmask 162820  }
  0x14   : >> { %vm1196_vm10 = vmor %vm1195_vm9, %vm1194_vm8 }
  0x15   : >> { %s195_s30 = scalar_lea.vmem %s2093_s0, %s1550_s27 }
  0x16   : >> { %v1554_v0 = vld [vmem:[%s195_s30 + $0x1c] sm:$0xf]  ;;  %v1294_v1 = vld [vmem:[%s195_s30 + $0x24] sm:$0xf0]  ;;  %v1551_v2 = vld [vmem:[%s195_s30 + $0x4] sm:$0xf] }
  0x17   : >> { %v1297_v3 = vor.u32 %v1554_v0, %v1294_v1  ;;  %v1286_v4 = vld [vmem:[%s195_s30 + $0xc] sm:$0xf0]  ;;  %v1332_v6 = vld [vmem:[%s195_s30 + $0x18] sm:$0xf]  ;;  %v1555_v7 = vld [vmem:[%s195_s30 + $0x20] sm:$0xf0] }
  0x18   : >> { %v1289_v5 = vor.u32 %v1551_v2, %v1286_v4  ;;  %v1300_v8 = vld [vmem:[%s195_s30 + $0x20] sm:$0xf]  ;;  %v1556_v9 = vld [vmem:[%s195_s30 + $0x28] sm:$0xf0]  ;;  %v1292_v10 = vld [vmem:[%s195_s30 + $0x8] sm:$0xf]  ;;  %v1333_v11 = vor.u32 %v1555_v7, %v1332_v6 }
  0x19   : >> { %265 = vrot.lane.b32.xlu0 %v1297_v3, %s1640_s5  ;;  %610 = vrot.lane.b32.xlu2 %v1297_v3, %s1641_s6  ;;  %v1553_v12 = vld [vmem:[%s195_s30 + $0x10] sm:$0xf0]  ;;  %v1328_v13 = vld [vmem:[%s195_s30] sm:$0xf]  ;;  %v1301_v15 = vor.u32 %v1556_v9, %v1300_v8 }
  0x1a   : >> { %261 = vrot.lane.b32.xlu1 %v1289_v5, %s1640_s5  ;;  %424 = vmatpush.bf16.msra.mxu3 %v1297_v3  ;;  %v1552_v14 = vld [vmem:[%s195_s30 + $0x8] sm:$0xf0]  ;;  %v1293_v16 = vor.u32 %v1553_v12, %v1292_v10  ;;  %v1567_v1 = vld [vmem:[%s2094_s1 + $0x50] sm:$0xff]  ;;  %v1568_v7 = vld [vmem:[%s2094_s1 + $0x58] sm:$0xff]  ;;  %s1544_s30 = sshll.u32 %s1638_s22, 4  ;;  %s187_s22 = sadd.s32 1, %s1638_s22  }
  0x1b   : >> { %395 = vmatpush.bf16.msra.mxu2 %v1333_v11  ;;  %v1329_v17 = vor.u32 %v1552_v14, %v1328_v13  ;;  %v1578_v4 = vld [vmem:[%s2094_s1 + $0xa8] sm:$0xff]  ;;  %v1579_v10 = vld [vmem:[%s2094_s1 + $0xb0] sm:$0xff]  ;;  %v1573_v13 = vld [vmem:[%s2094_s1 + $0x80] sm:$0xff]  ;;  %p184_p4 = scmp.ge.s32.totalorder %s187_s22, 37  }
  0x1e   : >> { %425 = vmatpush.bf16.msra.mxu3 %v1289_v5 }
  0x1f   : >> { %396 = vmatpush.bf16.msra.mxu2 %v1329_v17 }
  0x21   : >> { %267 = vrot.lane.b32.xlu0 %v1301_v15, %s1640_s5  ;;  %612 = vrot.lane.b32.xlu2 %v1301_v15, %s1641_s6 }
  0x22   : >> { %263 = vrot.lane.b32.xlu1 %v1293_v16, %s1640_s5  ;;  %1334 = vmatmul.msk.bf16.vlgmr.msra.gmra.mxu2 %vm276_vm0, %v1557_v18  ;;  %s1193_s5 = scalar_lea.vmem %s1684_s21, %s1544_s30 }
  0x23   : >> { %1338 = vmatmul.msk.bf16.vlgmr.msra.gmra.mxu3 %vm276_vm0, %v1557_v18 }
  0x29   : >> { %480 = vrot.lane.b32.xlu0 %v1333_v11, %s1642_s7  ;;  %606 = vrot.lane.b32.xlu2 %v1289_v5, %s1641_s6 }
  0x2a   : >> { %482 = vrot.lane.b32.xlu1 %v1297_v3, %s1642_s7 }
  0x31   : >> { %608 = vrot.lane.b32.xlu0 %v1293_v16, %s1641_s6  ;;  %478 = vrot.lane.b32.xlu2 %v1289_v5, %s1642_s7 }
  0x32   : >> { %476 = vrot.lane.b32.xlu1 %v1329_v17, %s1642_s7  ;;  %1335 = vmatmul.msk.bf16.gmra.mxu2 %vm276_vm0, %v1558_v22 }
  0x33   : >> { %1339 = vmatmul.msk.bf16.gmra.mxu3 %vm276_vm0, %v1558_v22 }
  0x39   : >> { %870 = vrot.lane.b32.xlu0 %v1297_v3, %s1643_s8  ;;  %740 = vrot.lane.b32.xlu2 %v1333_v11, %s1644_s9 }
  0x3a   : >> { %872 = vrot.lane.b32.xlu1 %v1301_v15, %s1643_s8 }
  0x41   : >> { %742 = vrot.lane.b32.xlu0 %v1297_v3, %s1644_s9  ;;  %868 = vrot.lane.b32.xlu2 %v1293_v16, %s1643_s8 }
  0x42   : >> { %866 = vrot.lane.b32.xlu1 %v1289_v5, %s1643_s8  ;;  %1336 = vmatmul.msk.bf16.gmra.mxu2 %vm276_vm0, %v1559_v25 }
  0x43   : >> { %1340 = vmatmul.msk.bf16.gmra.mxu3 %vm276_vm0, %v1559_v25 }
  0x49   : >> { %736 = vrot.lane.b32.xlu0 %v1329_v17, %s1644_s9 }
  0x4a   : >> { %738 = vrot.lane.b32.xlu1 %v1289_v5, %s1644_s9 }
  0x52   : >> { %1337 = vmatmul.msk.bf16.gmra.mxu2 %vm276_vm0, %v1560_v34 }
  0x53   : >> { %1341 = vmatmul.msk.bf16.gmra.mxu3 %vm276_vm0, %v1560_v34 }
  0x73   : >> { %v611_v19 = vpop.permute.xlu2 %610 }
  0x7b   : >> { %v613_v20 = vpop.permute.xlu2 %612 }
  0x7c   : >> { %v616_v21 = vsel %vm614_vm1, %v611_v19, %v613_v20  ;;  %668 = vmatpush.bf16.msrb.mxu3 %v613_v20  ;;  %v1580_v20 = vld [vmem:[%s2094_s1 + $0xb8] sm:$0xff] }
  0x7d   : >> { %639 = vmatpush.bf16.msrb.mxu2 %v616_v21 }
  0x83   : >> { %v607_v29 = vpop.permute.xlu2 %606 }
  0x8b   : >> { %v266_v23 = vpop.permute.xlu0 %265  ;;  %v479_v36 = vpop.permute.xlu2 %478 }
  0x8c   : >> { %v262_v24 = vpop.permute.xlu1 %261 }
  0x93   : >> { %v268_v26 = vpop.permute.xlu0 %267  ;;  %v741_v47 = vpop.permute.xlu2 %740 }
  0x94   : >> { %v264_v27 = vpop.permute.xlu1 %263  ;;  %324 = vmatpush.bf16.msra.mxu1 %v268_v26  ;;  %v271_v28 = vsel %vm269_vm2, %v266_v23, %v268_v26  ;;  %v1574_v23 = vld [vmem:[%s2094_s1 + $0x88] sm:$0xff] }
  0x95   : >> { %295 = vmatpush.bf16.msra.mxu0 %v271_v28  ;;  %v270_v31 = vsel %vm269_vm2, %v262_v24, %v264_v27 }
  0x98   : >> { %325 = vmatpush.bf16.msra.mxu1 %v264_v27 }
  0x99   : >> { %296 = vmatpush.bf16.msra.mxu0 %v270_v31 }
  0x9b   : >> { %v481_v32 = vpop.permute.xlu0 %480  ;;  %1306 = vmatmul.msk.bf16.vlgmr.msra.gmra.mxu1 %vm276_vm0, %v1561_v30  ;;  %v869_v53 = vpop.permute.xlu2 %868 }
  0x9c   : >> { %v483_v33 = vpop.permute.xlu1 %482  ;;  %1302 = vmatmul.msk.bf16.vlgmr.msra.gmra.mxu0 %vm276_vm0, %v1561_v30 }
  0x9d   : >> { %538 = vmatpush.bf16.msrb.mxu1 %v483_v33  ;;  %v486_v35 = vsel %vm484_vm3, %v481_v32, %v483_v33 }
  0x9e   : >> { %509 = vmatpush.bf16.msrb.mxu0 %v486_v35 }
  0xa1   : >> { %539 = vmatpush.bf16.msrb.mxu1 %v479_v36 }
  0xa3   : >> { %v609_v37 = vpop.permute.xlu0 %608 }
  0xa4   : >> { %v615_v38 = vsel %vm614_vm1, %v607_v29, %v609_v37  ;;  %669 = vmatpush.bf16.msrb.mxu3 %v609_v37  ;;  %v477_v39 = vpop.permute.xlu1 %476 }
  0xa5   : >> { %640 = vmatpush.bf16.msrb.mxu2 %v615_v38  ;;  %v485_v40 = vsel %vm484_vm3, %v477_v39, %v479_v36  ;;  %v398_v63 = vpop.f32.mrf.mxu2  ;;  %v1575_v36 = vld [vmem:[%s2094_s1 + $0x90] sm:$0xff] }
  0xa6   : >> { %510 = vmatpush.bf16.msrb.mxu0 %v485_v40  ;;  %v427_v0 = vpop.f32.mrf.mxu3 }
  0xa7   : >> { %1402 = vmatmul.msk.bf16.vlgmr.msrb.gmra.mxu3 %vm276_vm0, %v1569_v42 }
  0xa8   : >> { %1398 = vmatmul.msk.bf16.vlgmr.msrb.gmra.mxu2 %vm276_vm0, %v1569_v42 }
  0xab   : >> { %1307 = vmatmul.msk.bf16.gmra.mxu1 %vm276_vm0, %v1562_v41  ;;  %v871_v43 = vpop.permute.xlu0 %870 }
  0xac   : >> { %1303 = vmatmul.msk.bf16.gmra.mxu0 %vm276_vm0, %v1562_v41  ;;  %v873_v44 = vpop.permute.xlu1 %872 }
  0xad   : >> { %v876_v45 = vsel %vm874_vm4, %v871_v43, %v873_v44  ;;  %928 = vmatpush.bf16.msra.mxu3 %v873_v44  ;;  %v1784_v2 = vpop.f32.mrf.mxu2 }
  0xae   : >> { %899 = vmatpush.bf16.msra.mxu2 %v876_v45  ;;  %v1786_v3 = vpop.f32.mrf.mxu3 }
  0xb1   : >> { %929 = vmatpush.bf16.msra.mxu3 %v869_v53 }
  0xb3   : >> { %v743_v46 = vpop.permute.xlu0 %742 }
  0xb4   : >> { %v746_v48 = vsel %vm744_vm5, %v741_v47, %v743_v46  ;;  %798 = vmatpush.bf16.msra.mxu1 %v743_v46  ;;  %v867_v54 = vpop.permute.xlu1 %866  ;;  %v968_v47 = vld [vmem:[%s2095_s2 + $0x8] sm:$0xff] }
  0xb5   : >> { %769 = vmatpush.bf16.msra.mxu0 %v746_v48  ;;  %v875_v55 = vsel %vm874_vm4, %v867_v54, %v869_v53  ;;  %v403_v5 = vpop.f32.mrf.mxu2  ;;  %v1645_v48 = vmov 0  }
  0xb6   : >> { %900 = vmatpush.bf16.msra.mxu2 %v875_v55  ;;  %v432_v6 = vpop.f32.mrf.mxu3  ;;  %1623 = vset.pattern.permute.xlu0 %v1645_v48 }
  0xb7   : >> { %1403 = vmatmul.msk.bf16.gmra.mxu3 %vm276_vm0, %v1570_v50  ;;  %1622 = vset.pattern.permute.xlu2 %v1645_v48 }
  0xb8   : >> { %1399 = vmatmul.msk.bf16.gmra.mxu2 %vm276_vm0, %v1570_v50  ;;  %988 = vperm.xlu0 %1623, %v968_v47   ;;  %v1576_v50 = vld [vmem:[%s2094_s1 + $0x98] sm:$0xff] }
  0xbb   : >> { %1308 = vmatmul.msk.bf16.gmra.mxu1 %vm276_vm0, %v1563_v49  ;;  %v737_v57 = vpop.permute.xlu0 %736 }
  0xbc   : >> { %1304 = vmatmul.msk.bf16.gmra.mxu0 %vm276_vm0, %v1563_v49  ;;  %v739_v58 = vpop.permute.xlu1 %738 }
  0xbd   : >> { %799 = vmatpush.bf16.msra.mxu1 %v739_v58  ;;  %v745_v59 = vsel %vm744_vm5, %v737_v57, %v739_v58  ;;  %v405_v8 = vpop.f32.mrf.mxu2 }
  0xbe   : >> { %770 = vmatpush.bf16.msra.mxu0 %v745_v59  ;;  %v434_v9 = vpop.f32.mrf.mxu3 }
  0xc5   : >> { %v408_v12 = vpop.f32.mrf.mxu2 }
  0xc6   : >> { %v437_v11 = vpop.f32.mrf.mxu3 }
  0xc7   : >> { %1404 = vmatmul.msk.bf16.gmra.mxu3 %vm276_vm0, %v1571_v52 }
  0xc8   : >> { %1400 = vmatmul.msk.bf16.gmra.mxu2 %vm276_vm0, %v1571_v52 }
  0xcb   : >> { %1309 = vmatmul.msk.bf16.gmra.mxu1 %vm276_vm0, %v1564_v51 }
  0xcc   : >> { %1305 = vmatmul.msk.bf16.gmra.mxu0 %vm276_vm0, %v1564_v51 }
  0xcd   : >> { %v410_v19 = vpop.f32.mrf.mxu2 }
  0xce   : >> { %v439_v18 = vpop.f32.mrf.mxu3 }
  0xd5   : >> { %v413_v28 = vpop.f32.mrf.mxu2 }
  0xd6   : >> { %v442_v25 = vpop.f32.mrf.mxu3 }
  0xd7   : >> { %1405 = vmatmul.msk.bf16.gmra.mxu3 %vm276_vm0, %v1572_v60 }
  0xd8   : >> { %1401 = vmatmul.msk.bf16.gmra.mxu2 %vm276_vm0, %v1572_v60 }
  0xdb   : >> { %1370 = vmatmul.msk.bf16.vlgmr.msrb.gmra.mxu1 %vm276_vm0, %v1565_v56 }
  0xdc   : >> { %1366 = vmatmul.msk.bf16.vlgmr.msrb.gmra.mxu0 %vm276_vm0, %v1565_v56 }
  0xdd   : >> { %v415_v35 = vpop.f32.mrf.mxu2 }
  0xde   : >> { %v444_v34 = vpop.f32.mrf.mxu3 }
  0xe7   : >> { %1466 = vmatmul.msk.bf16.vlgmr.msra.gmra.mxu3 %vm276_vm0, %v1577_v62 }
  0xe8   : >> { %1462 = vmatmul.msk.bf16.vlgmr.msra.gmra.mxu2 %vm276_vm0, %v1577_v62  ;;  %v967_v62 = vld [vmem:[%s2095_s2] sm:$0xff] }
  0xe9   : >> { %983 = vperm.xlu2 %1622, %v967_v62  }
  0xeb   : >> { %1371 = vmatmul.msk.bf16.gmra.mxu1 %vm276_vm0, %v1566_v61 }
  0xec   : >> { %1367 = vmatmul.msk.bf16.gmra.mxu0 %vm276_vm0, %v1566_v61 }
  0xf7   : >> { %1467 = vmatmul.msk.bf16.gmra.mxu3 %vm276_vm0, %v1578_v4 }
  0xf8   : >> { %1463 = vmatmul.msk.bf16.gmra.mxu2 %vm276_vm0, %v1578_v4 }
  0xfb   : >> { %1372 = vmatmul.msk.bf16.gmra.mxu1 %vm276_vm0, %v1567_v1 }
  0xfc   : >> { %1368 = vmatmul.msk.bf16.gmra.mxu0 %vm276_vm0, %v1567_v1 }
 0x107   : >> { %1468 = vmatmul.msk.bf16.gmra.mxu3 %vm276_vm0, %v1579_v10 }
 0x108   : >> { %1464 = vmatmul.msk.bf16.gmra.mxu2 %vm276_vm0, %v1579_v10 }
 0x10b   : >> { %1373 = vmatmul.msk.bf16.gmra.mxu1 %vm276_vm0, %v1568_v7 }
 0x10c   : >> { %1369 = vmatmul.msk.bf16.gmra.mxu0 %vm276_vm0, %v1568_v7 }
 0x117   : >> { %1469 = vmatmul.msk.bf16.gmra.mxu3 %vm276_vm0, %v1580_v20 }
 0x118   : >> { %v327_v14 = vpop.f32.mrf.mxu1  ;;  %1465 = vmatmul.msk.bf16.gmra.mxu2 %vm276_vm0, %v1580_v20 }
 0x119   : >> { %v1807_v15 = vadd.f32 %v427_v0, %v327_v14  ;;  %v298_v16 = vpop.f32.mrf.mxu0 }
 0x11a   : >> { %v1809_v17 = vadd.f32 %v398_v63, %v298_v16 }
 0x11b   : >> { %1434 = vmatmul.msk.bf16.vlgmr.msra.gmra.mxu1 %vm276_vm0, %v1573_v13 }
 0x11c   : >> { %1430 = vmatmul.msk.bf16.vlgmr.msra.gmra.mxu0 %vm276_vm0, %v1573_v13 }
 0x120   : >> { %v329_v21 = vpop.f32.mrf.mxu1 }
 0x121   : >> { %v300_v22 = vpop.f32.mrf.mxu0 }
 0x122   : >> { %v401_v10 = vadd.f32 %v1784_v2, %v300_v22 }
 0x128   : >> { %v332_v24 = vpop.f32.mrf.mxu1 }
 0x129   : >> { %v1821_v26 = vadd.f32 %v432_v6, %v332_v24  ;;  %v303_v27 = vpop.f32.mrf.mxu0 }
 0x12a   : >> { %v1823_v29 = vadd.f32 %v403_v5, %v303_v27  ;;  %v671_v41 = vpop.f32.mrf.mxu3 }
 0x12b   : >> { %1435 = vmatmul.msk.bf16.gmra.mxu1 %vm276_vm0, %v1574_v23  ;;  %v642_v42 = vpop.f32.mrf.mxu2 }
 0x12c   : >> { %1431 = vmatmul.msk.bf16.gmra.mxu0 %vm276_vm0, %v1574_v23 }
 0x130   : >> { %v334_v30 = vpop.f32.mrf.mxu1 }
 0x131   : >> { %v1827_v31 = vadd.f32 %v434_v9, %v334_v30  ;;  %v305_v32 = vpop.f32.mrf.mxu0  ;;  %v430_v9 = vadd.f32 %v1786_v3, %v329_v21 }
 0x132   : >> { %v1829_v33 = vadd.f32 %v405_v8, %v305_v32  ;;  %v673_v49 = vpop.f32.mrf.mxu3 }
 0x133   : >> { %v644_v51 = vpop.f32.mrf.mxu2 }
 0x138   : >> { %v337_v37 = vpop.f32.mrf.mxu1 }
 0x139   : >> { %v1834_v38 = vadd.f32 %v437_v11, %v337_v37  ;;  %v308_v39 = vpop.f32.mrf.mxu0 }
 0x13a   : >> { %v1836_v40 = vadd.f32 %v408_v12, %v308_v39  ;;  %v676_v57 = vpop.f32.mrf.mxu3 }
 0x13b   : >> { %1436 = vmatmul.msk.bf16.gmra.mxu1 %vm276_vm0, %v1575_v36  ;;  %v647_v60 = vpop.f32.mrf.mxu2 }
 0x13c   : >> { %1432 = vmatmul.msk.bf16.gmra.mxu0 %vm276_vm0, %v1575_v36 }
 0x140   : >> { %v339_v43 = vpop.f32.mrf.mxu1 }
 0x141   : >> { %v1840_v44 = vadd.f32 %v439_v18, %v339_v43  ;;  %v310_v45 = vpop.f32.mrf.mxu0 }
 0x142   : >> { %v1842_v46 = vadd.f32 %v410_v19, %v310_v45  ;;  %v678_v5 = vpop.f32.mrf.mxu3 }
 0x143   : >> { %v649_v6 = vpop.f32.mrf.mxu2 }
 0x148   : >> { %v342_v52 = vpop.f32.mrf.mxu1 }
 0x149   : >> { %v1850_v53 = vadd.f32 %v442_v25, %v342_v52  ;;  %v313_v54 = vpop.f32.mrf.mxu0 }
 0x14a   : >> { %v1852_v55 = vadd.f32 %v413_v28, %v313_v54 }
 0x14b   : >> { %1437 = vmatmul.msk.bf16.gmra.mxu1 %vm276_vm0, %v1576_v50 }
 0x14c   : >> { %1433 = vmatmul.msk.bf16.gmra.mxu0 %vm276_vm0, %v1576_v50 }
 0x150   : >> { %v344_v56 = vpop.f32.mrf.mxu1 }
 0x151   : >> { %v1856_v58 = vadd.f32 %v444_v34, %v344_v56  ;;  %v315_v59 = vpop.f32.mrf.mxu0 }
 0x152   : >> { %v1858_v61 = vadd.f32 %v415_v35, %v315_v59 }
 0x158   : >> { %v541_v63 = vpop.f32.mrf.mxu1 }
 0x159   : >> { %v562_v0 = vadd.f32 %v541_v63, %v1807_v15  ;;  %v512_v1 = vpop.f32.mrf.mxu0  ;;  %v681_v15 = vpop.f32.mrf.mxu3 }
 0x15a   : >> { %v561_v4 = vadd.f32 %v512_v1, %v1809_v17  ;;  %v652_v17 = vpop.f32.mrf.mxu2  ;;  %v1596_v1 = vld [vmem:[%s2096_s3 + $0x74] sm:$0xf0] }
 0x15b   : >> { %v1865_v7 = vadd.f32 %v671_v41, %v562_v0  ;;  %v1528_v0 = vld [vmem:[%s2096_s3 + $0x70] sm:$0xf] }
 0x15c   : >> { %v1867_v8 = vadd.f32 %v642_v42, %v561_v4 }
 0x160   : >> { %v543_v11 = vpop.f32.mrf.mxu1 }
 0x161   : >> { %v564_v12 = vadd.f32 %v543_v11, %v430_v9  ;;  %v514_v13 = vpop.f32.mrf.mxu0  ;;  %v683_v2 = vpop.f32.mrf.mxu3  ;;  %v1522_v9 = vld [vmem:[%s2096_s3 + $0x68] sm:$0xf0] }
 0x162   : >> { %v563_v14 = vadd.f32 %v514_v13, %v401_v10  ;;  %v654_v21 = vpop.f32.mrf.mxu2 }
 0x163   : >> { %v1871_v16 = vadd.f32 %v673_v49, %v564_v12 }
 0x164   : >> { %v1873_v18 = vadd.f32 %v644_v51, %v563_v14 }
 0x168   : >> { %v546_v19 = vpop.f32.mrf.mxu1 }
 0x169   : >> { %v566_v20 = vadd.f32 %v546_v19, %v1821_v26  ;;  %v517_v23 = vpop.f32.mrf.mxu0  ;;  %v686_v35 = vpop.f32.mrf.mxu3  ;;  %v1591_v19 = vld [vmem:[%s2096_s3 + $0x54] sm:$0xf] }
 0x16a   : >> { %v565_v24 = vadd.f32 %v517_v23, %v1823_v29  ;;  %v657_v37 = vpop.f32.mrf.mxu2  ;;  %v1514_v23 = vld [vmem:[%s2096_s3 + $0x58] sm:$0xf0] }
 0x16b   : >> { %v1877_v25 = vadd.f32 %v676_v57, %v566_v20 }
 0x16c   : >> { %v1879_v3 = vadd.f32 %v647_v60, %v565_v24 }
 0x170   : >> { %v548_v22 = vpop.f32.mrf.mxu1 }
 0x171   : >> { %v568_v27 = vadd.f32 %v548_v22, %v1827_v31  ;;  %v519_v28 = vpop.f32.mrf.mxu0  ;;  %v1895_v47 = vpop.f32.mrf.mxu3 }
 0x172   : >> { %v567_v30 = vadd.f32 %v519_v28, %v1829_v33  ;;  %v1897_v48 = vpop.f32.mrf.mxu2  ;;  %v1512_v28 = vld [vmem:[%s2096_s3 + $0x50] sm:$0xf] }
 0x173   : >> { %v1883_v32 = vadd.f32 %v678_v5, %v568_v27 }
 0x174   : >> { %v1885_v34 = vadd.f32 %v649_v6, %v567_v30  ;;  %v1529_v6 = vor.u32 %v1596_v1, %v1528_v0  ;;  %v1592_v30 = vld [vmem:[%s2096_s3 + $0x54] sm:$0xf0] }
 0x176   : >> { %1130 = vmatpush.bf16.msrb.mxu0 %v1529_v6 }
 0x178   : >> { %v551_v26 = vpop.f32.mrf.mxu1 }
 0x179   : >> { %v570_v29 = vadd.f32 %v551_v26, %v1834_v38  ;;  %v522_v36 = vpop.f32.mrf.mxu0  ;;  %v1595_v38 = vld [vmem:[%s2096_s3 + $0x74] sm:$0xf]  ;;  %v931_v63 = vpop.f32.mrf.mxu3  ;;  %v1589_v26 = vld [vmem:[%s2096_s3 + $0x44] sm:$0xf] }
 0x17a   : >> { %v569_v39 = vadd.f32 %v522_v36, %v1836_v40  ;;  %v1530_v40 = vld [vmem:[%s2096_s3 + $0x78] sm:$0xf0] }
 0x17b   : >> { %v1889_v41 = vadd.f32 %v681_v15, %v570_v29  ;;  %v1520_v15 = vld [vmem:[%s2096_s3 + $0x60] sm:$0xf]  ;;  %v1506_v29 = vld [vmem:[%s2096_s3 + $0x48] sm:$0xf0] }
 0x17c   : >> { %v1891_v42 = vadd.f32 %v652_v17, %v569_v39  ;;  %v1594_v17 = vld [vmem:[%s2096_s3 + $0x64] sm:$0xf0]  ;;  %v1509_v36 = vor.u32 %v1589_v26, %v1506_v29 }
 0x17d   : >> { %v1521_v20 = vor.u32 %v1594_v17, %v1520_v15 }
 0x17f   : >> { %1131 = vmatpush.bf16.msrb.mxu0 %v1521_v20 }
 0x180   : >> { %v553_v31 = vpop.f32.mrf.mxu1 }
 0x181   : >> { %v572_v43 = vadd.f32 %v553_v31, %v1840_v44  ;;  %v524_v33 = vpop.f32.mrf.mxu0  ;;  %v1023_v44 = vld [vmem:[%s2096_s3 + $0x90] sm:$0x33]  ;;  %v1948_v24 = vpop.f32.mrf.mxu3 }
 0x182   : >> { %v571_v45 = vadd.f32 %v524_v33, %v1842_v46  ;;  %v1533_v46 = vor.u32 %v1595_v38, %v1530_v40  ;;  %v1080_v51 = vunpack.c.h.b16 %v1023_v44  ;;  %v1079_v4 = vunpack.c.l.b16 %v1023_v44  ;;  %v1504_v33 = vld [vmem:[%s2096_s3 + $0x40] sm:$0xf]  ;;  %v1587_v38 = vld [vmem:[%s2096_s3 + $0x34] sm:$0xf]  ;;  %v1498_v44 = vld [vmem:[%s2096_s3 + $0x38] sm:$0xf0] }
 0x183   : >> { %v1899_v49 = vadd.f32 %v683_v2, %v572_v43  ;;  %v1517_v2 = vor.u32 %v1591_v19, %v1514_v23 }
 0x184   : >> { %v1910_v50 = vadd.f32 %v654_v21, %v571_v45  ;;  %1158 = vmatpush.bf16.msrb.mxu2 %v1533_v46  ;;  %v1100_v52 = vpack.c.b16 %v1080_v51, %v1080_v51  ;;  %v1099_v10 = vpack.c.b16 %v1079_v4, %v1079_v4  ;;  %v1590_v45 = vld [vmem:[%s2096_s3 + $0x44] sm:$0xf0]  ;;  %v1597_v46 = vld [vmem:[%s2096_s3 + $0x84] sm:$0xf]  ;;  %v1538_v51 = vld [vmem:[%s2096_s3 + $0x88] sm:$0xf0] }
 0x185   : >> { %v1505_v40 = vor.u32 %v1590_v45, %v1504_v33 }
 0x186   : >> { %v1128_v59 = vsel %vm1123_vm6, %v1100_v52, 0  ;;  %v1125_v13 = vsel %vm1123_vm6, %v1099_v10, 0  ;;  %v1501_v52 = vor.u32 %v1587_v38, %v1498_v44  ;;  %v1480_v38 = vld [vmem:[%s2096_s3 + $0x10] sm:$0xf] }
 0x187   : >> { %1178 = vmatpush.bf16.msrb.mxu3 %v1128_v59  ;;  %1150 = vmatpush.bf16.msrb.mxu1 %v1125_v13  ;;  %v1490_v13 = vld [vmem:[%s2096_s3 + $0x28] sm:$0xf0] }
 0x188   : >> { %v556_v54 = vpop.f32.mrf.mxu1 }
 0x189   : >> { %v574_v56 = vadd.f32 %v556_v54, %v1850_v53  ;;  %v527_v57 = vpop.f32.mrf.mxu0  ;;  %v1593_v53 = vld [vmem:[%s2096_s3 + $0x64] sm:$0xf]  ;;  %v936_v39 = vpop.f32.mrf.mxu3  ;;  %v1541_v54 = vor.u32 %v1597_v46, %v1538_v51  ;;  %v1474_v51 = vld [vmem:[%s2096_s3 + $0x8] sm:$0xf0] }
 0x18a   : >> { %v573_v60 = vadd.f32 %v527_v57, %v1852_v55  ;;  %v902_v55 = vpop.f32.mrf.mxu2  ;;  %v1525_v11 = vor.u32 %v1593_v53, %v1522_v9  ;;  %v1581_v46 = vld [vmem:[%s2096_s3 + $0x4] sm:$0xf] }
 0x18b   : >> { %v1915_v62 = vadd.f32 %v686_v35, %v574_v56  ;;  %v1513_v35 = vor.u32 %v1592_v30, %v1512_v28  ;;  %1179 = vmatpush.bf16.msrb.mxu3 %v1541_v54 }
 0x18c   : >> { %v1926_v5 = vadd.f32 %v657_v37, %v573_v60  ;;  %1159 = vmatpush.bf16.msrb.mxu2 %v1525_v11  ;;  %v1585_v11 = vld [vmem:[%s2096_s3 + $0x24] sm:$0xf] }
 0x18d   : >> { %1132 = vmatpush.bf16.msrb.mxu0 %v1513_v35  ;;  %v1493_v19 = vor.u32 %v1585_v11, %v1490_v13 }
 0x190   : >> { %v1931_v12 = vpop.f32.mrf.mxu1  ;;  %1160 = vmatpush.bf16.msrb.mxu2 %v1517_v2 }
 0x191   : >> { %v1934_v14 = vpop.f32.mrf.mxu0  ;;  %1133 = vmatpush.bf16.msrb.mxu0 %v1505_v40  ;;  %v938_v4 = vpop.f32.mrf.mxu3  ;;  %v1584_v40 = vld [vmem:[%s2096_s3 + $0x14] sm:$0xf0]  ;;  %v576_v13 = vadd.f32 %v1931_v12, %v1856_v58 }
 0x192   : >> { %v1950_v21 = vpop.f32.mrf.mxu2  ;;  %v1481_v44 = vor.u32 %v1584_v40, %v1480_v38 }
 0x194   : >> { %1161 = vmatpush.bf16.msrb.mxu2 %v1509_v36 }
 0x198   : >> { %v801_v22 = vpop.f32.mrf.mxu1  ;;  %1162 = vmatpush.bf16.msrb.mxu2 %v1501_v52  ;;  %v1472_v52 = vld [vmem:[%s2096_s3] sm:$0xf] }
 0x199   : >> { %v772_v27 = vpop.f32.mrf.mxu0  ;;  %v822_v56 = vadd.f32 %v801_v22, %v1865_v7  ;;  %v941_v36 = vpop.f32.mrf.mxu3 }
 0x19a   : >> { %v907_v43 = vpop.f32.mrf.mxu2  ;;  %v821_v57 = vadd.f32 %v772_v27, %v1867_v8  ;;  %v1496_v8 = vld [vmem:[%s2096_s3 + $0x30] sm:$0xf] }
 0x19b   : >> { %v1986_v53 = vadd.f32 %v931_v63, %v822_v56  ;;  %v1477_v56 = vor.u32 %v1581_v46, %v1474_v51 }
 0x19c   : >> { %v1990_v10 = vadd.f32 %v902_v55, %v821_v57  ;;  %v1598_v55 = vld [vmem:[%s2096_s3 + $0x84] sm:$0xf0]  ;;  %1163 = vmatpush.bf16.msrb.mxu2 %v1493_v19 }
 0x19d   : >> { %v1582_v57 = vld [vmem:[%s2096_s3 + $0x4] sm:$0xf0] }
 0x1a0   : >> { %v803_v37 = vpop.f32.mrf.mxu1 }
 0x1a1   : >> { %v774_v31 = vpop.f32.mrf.mxu0  ;;  %v824_v23 = vadd.f32 %v803_v37, %v1871_v16  ;;  %v1488_v37 = vld [vmem:[%s2096_s3 + $0x20] sm:$0xf]  ;;  %v943_v54 = vpop.f32.mrf.mxu3 }
 0x1a2   : >> { %v909_v9 = vpop.f32.mrf.mxu2  ;;  %v823_v2 = vadd.f32 %v774_v31, %v1873_v18 }
 0x1a3   : >> { %v2021_v26 = vadd.f32 %v1948_v24, %v824_v23  ;;  %v575_v23 = vadd.f32 %v1934_v14, %v1858_v61 }
 0x1a4   : >> { %v2026_v29 = vadd.f32 %v1950_v21, %v823_v2  ;;  %v1583_v21 = vld [vmem:[%s2096_s3 + $0x14] sm:$0xf] }
 0x1a5   : >> { %v705_v61 = vadd.f32 %v1897_v48, %v575_v23 }
 0x1a8   : >> { %v806_v59 = vpop.f32.mrf.mxu1 }
 0x1a9   : >> { %v826_v60 = vadd.f32 %v806_v59, %v1877_v25  ;;  %v777_v0 = vpop.f32.mrf.mxu0  ;;  %v1588_v25 = vld [vmem:[%s2096_s3 + $0x34] sm:$0xf0] }
 0x1aa   : >> { %v825_v1 = vadd.f32 %v777_v0, %v1879_v3  ;;  %v1536_v3 = vld [vmem:[%s2096_s3 + $0x80] sm:$0xf]  ;;  %v1497_v63 = vor.u32 %v1588_v25, %v1496_v8  ;;  %v912_v18 = vpop.f32.mrf.mxu2  ;;  %v946_v8 = vpop.f32.mrf.mxu3 }
 0x1ab   : >> { %v1988_v6 = vadd.f32 %v936_v39, %v826_v60  ;;  %v1537_v17 = vor.u32 %v1598_v55, %v1536_v3  ;;  %v1482_v39 = vld [vmem:[%s2096_s3 + $0x18] sm:$0xf0]  ;;  %v1473_v60 = vor.u32 %v1582_v57, %v1472_v52 }
 0x1ac   : >> { %v1992_v7 = vadd.f32 %v907_v43, %v825_v1  ;;  %1134 = vmatpush.bf16.msrb.mxu0 %v1497_v63  ;;  %v1485_v43 = vor.u32 %v1583_v21, %v1482_v39 }
 0x1ad   : >> { %v970_v15 = vmax.f32 %v1986_v53, %v1988_v6  ;;  %1151 = vmatpush.bf16.msrb.mxu1 %v1537_v17 }
 0x1ae   : >> { %v969_v20 = vmax.f32 %v1990_v10, %v1992_v7  ;;  %1164 = vmatpush.bf16.msrb.mxu2 %v1485_v43 }
 0x1b0   : >> { %v808_v22 = vpop.f32.mrf.mxu1 }
 0x1b1   : >> { %v828_v27 = vadd.f32 %v808_v22, %v1883_v32  ;;  %v779_v28 = vpop.f32.mrf.mxu0  ;;  %v1586_v32 = vld [vmem:[%s2096_s3 + $0x24] sm:$0xf0] }
 0x1b2   : >> { %v827_v30 = vadd.f32 %v779_v28, %v1885_v34  ;;  %v1489_v24 = vor.u32 %v1586_v32, %v1488_v37  ;;  %v914_v59 = vpop.f32.mrf.mxu2  ;;  %1165 = vmatpush.bf16.msrb.mxu2 %v1477_v56  ;;  %v989_v32 = vpop.permute.xlu0 %988 }
 0x1b3   : >> { %v2023_v35 = vadd.f32 %v938_v4, %v828_v27 }
 0x1b4   : >> { %v2028_v16 = vadd.f32 %v909_v9, %v827_v30  ;;  %1135 = vmatpush.bf16.msrb.mxu0 %v1489_v24 }
 0x1b5   : >> { %v972_v34 = vmax.f32 %v2021_v26, %v2023_v35 }
 0x1b6   : >> { %v971_v31 = vmax.f32 %v2026_v29, %v2028_v16  ;;  %v948_v29 = vpop.f32.mrf.mxu3  ;;  %v984_v16 = vpop.permute.xlu2 %983 }
 0x1b8   : >> { %v811_v33 = vpop.f32.mrf.mxu1  ;;  %1136 = vmatpush.bf16.msrb.mxu0 %v1481_v44 }
 0x1b9   : >> { %v782_v45 = vpop.f32.mrf.mxu0  ;;  %v830_v4 = vadd.f32 %v811_v33, %v1889_v41 }
 0x1ba   : >> { %v829_v9 = vadd.f32 %v782_v45, %v1891_v42  ;;  %v917_v3 = vpop.f32.mrf.mxu2 }
 0x1bb   : >> { %v960_v17 = vadd.f32 %v941_v36, %v830_v4 }
 0x1bc   : >> { %1137 = vmatpush.bf16.msrb.mxu0 %v1473_v60  ;;  %v959_v2 = vadd.f32 %v912_v18, %v829_v9 }
 0x1c0   : >> { %v813_v0 = vpop.f32.mrf.mxu1 }
 0x1c1   : >> { %v784_v1 = vpop.f32.mrf.mxu0  ;;  %v832_v27 = vadd.f32 %v813_v0, %v1899_v49 }
 0x1c2   : >> { %v831_v28 = vadd.f32 %v784_v1, %v1910_v50  ;;  %v919_v18 = vpop.f32.mrf.mxu2 }
 0x1c3   : >> { %v962_v36 = vadd.f32 %v943_v54, %v832_v27 }
 0x1c4   : >> { %v961_v6 = vadd.f32 %v914_v59, %v831_v28 }
 0x1c8   : >> { %v816_v25 = vpop.f32.mrf.mxu1 }
 0x1c9   : >> { %v834_v63 = vadd.f32 %v816_v25, %v1915_v62  ;;  %v787_v55 = vpop.f32.mrf.mxu0 }
 0x1ca   : >> { %v833_v11 = vadd.f32 %v787_v55, %v1926_v5  ;;  %v706_v5 = vadd.f32 %v1895_v47, %v576_v13 }
 0x1cb   : >> { %v964_v19 = vadd.f32 %v946_v8, %v834_v63 }
 0x1cc   : >> { %v963_v41 = vadd.f32 %v917_v3, %v833_v11 }
 0x1cd   : >> { %v974_v22 = vmax.f32 %v960_v17, %v964_v19 }
 0x1ce   : >> { %v973_v42 = vmax.f32 %v959_v2, %v963_v41 }
 0x1cf   : >> { %v978_v62 = vmax.f32 %v970_v15, %v974_v22 }
 0x1d0   : >> { %v977_v58 = vmax.f32 %v969_v20, %v973_v42  ;;  %v818_v12 = vpop.f32.mrf.mxu1 }
 0x1d1   : >> { %v836_v14 = vadd.f32 %v818_v12, %v706_v5  ;;  %v789_v30 = vpop.f32.mrf.mxu0  ;;  %v992_v47 = vadd.f32 %v984_v16, %v978_v62 }
 0x1d2   : >> { %v835_v49 = vadd.f32 %v789_v30, %v705_v61  ;;  %v991_v50 = vadd.f32 %v984_v16, %v977_v58 }
 0x1d3   : >> { %v966_v53 = vadd.f32 %v948_v29, %v836_v14  ;;  %v996_v7 = vmax.f32 %v992_v47, 0.0 }
 0x1d4   : >> { %v965_v15 = vadd.f32 %v919_v18, %v835_v49  ;;  %v995_v21 = vmax.f32 %v991_v50, 0.0 }
 0x1d5   : >> { %v976_v37 = vmax.f32 %v962_v36, %v966_v53  ;;  %v1000_v45 = vmin.f32 %v996_v7, 6.0 }
 0x1d6   : >> { %v975_v24 = vmax.f32 %v961_v6, %v965_v15  ;;  %v999_v40 = vmin.f32 %v995_v21, 6.0 }
 0x1d7   : >> { %v980_v10 = vmax.f32 %v972_v34, %v976_v37 }
 0x1d8   : >> { %v979_v48 = vmax.f32 %v971_v31, %v975_v24 }
 0x1d9   : >> { %v994_v20 = vadd.f32 %v989_v32, %v980_v10 }
 0x1da   : >> { %v993_v39 = vadd.f32 %v989_v32, %v979_v48 }
 0x1db   : >> { %v998_v43 = vmax.f32 %v994_v20, 0.0 }
 0x1dc   : >> { %v997_v33 = vmax.f32 %v993_v39, 0.0 }
 0x1dd   : >> { %v1002_v38 = vmin.f32 %v998_v43, 6.0 }
 0x1de   : >> { %v1001_v44 = vmin.f32 %v997_v33, 6.0 }
 0x1df   : >> { %v1004_v46 = vpack.c.bf16 %v1002_v38, %v1000_v45 }
 0x1e0   : >> { %v1003_v51 = vpack.c.bf16 %v1001_v44, %v999_v40 }
 0x1e1   : >> { %1542 = vmatmul.msk.bf16.vlgmr.msrb.gmra.mxu1 %vm1119_vm7, %v1004_v46  ;;  %1543 = vmatmul.msk.bf16.vlgmr.msrb.gmra.mxu3 %vm1119_vm7, %v1004_v46 }
 0x1e2   : >> { %1138 = vmatmul.bf16.vlgmr.msrb.gmra.mxu0 %v1003_v51  ;;  %1166 = vmatmul.bf16.vlgmr.msrb.gmra.mxu2 %v1003_v51 }
 0x25e   : >> { %v1153_v26 = vpop.f32.mrf.mxu1 }
 0x25f   : >> { %v1139_v35 = vpop.f32.mrf.mxu0 }
 0x260   : >> { %v1154_v52 = vadd.f32 %v1153_v26, %v1139_v35 }
 0x264   : >> { %v1181_v34 = vpop.f32.mrf.mxu3 }
 0x265   : >> { %v1167_v31 = vpop.f32.mrf.mxu2 }
 0x266   : >> { %v1182_v54 = vadd.f32 %v1181_v34, %v1167_v31  ;;  %v1155_v57 = vpop.f32.mrf.mxu1 }
 0x267   : >> { %v1141_v59 = vpop.f32.mrf.mxu0 }
 0x268   : >> { %v1186_v56 = vpack.c.bf16 %v1182_v54, %v1154_v52  ;;  %v1156_v1 = vadd.f32 %v1155_v57, %v1141_v59 }
 0x26a   : >> { %1197 = vst.msk [vmem:[%s1193_s5] sm:$0xff] %vm1196_vm10, %v1186_v56 }
 0x26c   : >> { %v1183_v60 = vpop.f32.mrf.mxu3 }
 0x26d   : >> { %v1169_v0 = vpop.f32.mrf.mxu2 }
 0x26e   : >> { %v1184_v4 = vadd.f32 %v1183_v60, %v1169_v0  ;;  %186 = sbr.rel (!%p184_p4) target bundleno = 14 (0xe), region = 77 }
 0x270   : >> { %v1187_v9 = vpack.c.bf16 %v1184_v4, %v1156_v1 }
 0x272   : >> { %1198 = vst.msk [vmem:[%s1193_s5 + $0x8] sm:$0xff] %vm1196_vm10, %v1187_v9 }
 0x273 PF: > { %s14_s15 = sadd.s32 1, %s1634_s15  }
 0x274   : > { %p11_p5 = scmp.ge.s32.totalorder %s14_s15, 4  }
 0x276   :  { %13 = sbr.rel (!%p11_p5) target bundleno = 1 (0x1), region = 88 }

// kernel: hotdog_forward.3
= control target key start
LH: loop header
LB: loop body
LE: loop exit
PB: predicated region body
PF: predicated region fallthrough
CT: control target
= control target key end

     0   :  { %s8607_s24 = smov 0   ;;  %s12515_s0 = inlined_call_operand.vmem [shape: bf16[1184,148], index: 0, kind: input, shape index: {}]   ;;  %s12516_s1 = inlined_call_operand.vmem [shape: bf16[7,96,88], index: 1, kind: input, shape index: {}]   ;;  %s12517_s2 = inlined_call_operand.vmem [shape: f32[24,1], index: 2, kind: input, shape index: {}]   ;;  %s12518_s3 = inlined_call_operand.vmem [shape: bf16[36,36], index: 3, kind: input, shape index: {}]   ;;  %s12519_s4 = inlined_call_operand.vmem [shape: bf16[7,192,132], index: 4, kind: input, shape index: {}]   ;;  %s12520_s5 = inlined_call_operand.vmem [shape: f32[48,1], index: 5, kind: input, shape index: {}]   ;;  %s12521_s6 = inlined_call_operand.vmem [shape: bf16[8,8], index: 6, kind: input, shape index: {}]   ;;  %s12522_s7 = inlined_call_operand.vmem [shape: bf16[4,144,192], index: 7, kind: input, shape index: {}]   ;;  %s12523_s8 = inlined_call_operand.vmem [shape: f32[36,1], index: 8, kind: input, shape index: {}]   ;;  %s12524_s9 = inlined_call_operand.vmem [shape: f32[3,256,36], index: 9, kind: input, shape index: {}]   ;;  %s12525_s10 = inlined_call_operand.vmem [shape: f32[256,1], index: 10, kind: input, shape index: {}]   ;;  %s12526_s11 = inlined_call_operand.vmem [shape: f32[128,256], index: 11, kind: input, shape index: {}]   ;;  %s12527_s12 = inlined_call_operand.vmem [shape: f32[128,1], index: 12, kind: input, shape index: {}]   ;;  %s12528_s13 = inlined_call_operand.vmem [shape: f32[32,128], index: 13, kind: input, shape index: {}]   ;;  %s12529_s14 = inlined_call_operand.vmem [shape: f32[32,1], index: 14, kind: input, shape index: {}]   ;;  %s12530_s15 = inlined_call_operand.vmem [shape: f32[2,32], index: 15, kind: input, shape index: {}]   ;;  %s12531_s16 = inlined_call_operand.vmem [shape: f32[2,1], index: 16, kind: input, shape index: {}]   ;;  %s12532_s17 = inlined_call_operand.vmem [shape: f32[2,1], index: 17, kind: output, shape index: {}]  }
   0x1   :  { %12536 = sst [smem:[#allocation22_spill]] %s12515_s0 }
   0x2   :  { %12537 = sst [smem:[#allocation23_spill]] %s12516_s1 }
   0x3 LB: > { %s6227_s25 = sshll.u32 %s8492_s24, 6  ;;  %s12538_s28 = sld [smem:[#allocation22_spill]]  ;;  %vm199_vm0 = vcmask 1043456   ;;  %vm180_vm1 = vcmask 719872   ;;  %vm553_vm2 = vcmask 138240   ;;  %vm1098_vm3 = vcmask 1041408   ;;  %s8492_s24 = sphi %s8607_s24, %s62_s24  }
   0x4   : > { %s8498_s0 = smov 54   ;;  %s8499_s30 = smov 91   ;;  %vm1091_vm4 = vcmask 293888   ;;  %vm1128_vm5 = vcmask 289792  }
   0x5   : > { %s8500_s18 = smov 17   ;;  %s8501_s19 = smov 90  }
   0x6   : > { %s8502_s1 = smov 53   ;;  %s8503_s20 = smov 127  }
   0x7   : > { %s12539_s23 = sld [smem:[#allocation23_spill]] }
   0x9   : > { %s8616_s29 = scalar_lea.vmem %s12538_s28, %s6227_s25  ;;  %s1123_s28 = smul.u32 24, %s8492_s24 }
   0xa   : > { %v6280_v0 = vld [vmem:[%s8616_s29 + $0x30] sm:$0xf]  ;;  %v8098_v1 = vld [vmem:[%s8616_s29 + $0x34] sm:$0xf0]  ;;  %v6276_v5 = vld [vmem:[%s8616_s29 + $0x20] sm:$0xf] }
   0xb   : > { %v79_v2 = vld [vmem:[%s8616_s29 + $0x50] sm:$0xff]  ;;  %v8621_v3 = vor.u32 %v8098_v1, %v6280_v0  ;;  %v8096_v6 = vld [vmem:[%s8616_s29 + $0x24] sm:$0xf0]  ;;  %v6284_v9 = vld [vmem:[%s8616_s29 + $0x40] sm:$0xf]  ;;  %s62_s24 = sadd.s32 1, %s8492_s24  }
   0xc   : > { %v156_v4 = vunpack.c.l.b16 %v79_v2  ;;  %v8628_v8 = vor.u32 %v8096_v6, %v6276_v5  ;;  %v8100_v10 = vld [vmem:[%s8616_s29 + $0x44] sm:$0xf0]  ;;  %v6272_v12 = vld [vmem:[%s8616_s29 + $0x10] sm:$0xf]  ;;  %v8094_v13 = vld [vmem:[%s8616_s29 + $0x14] sm:$0xf0]  ;;  %v522_v18 = vunpack.c.h.b16 %v79_v2 }
   0xd   : > { %386 = vrot.lane.b32.xlu1 %v8621_v3, %s8498_s0  ;;  %v8634_v11 = vor.u32 %v8100_v10, %v6284_v9  ;;  %v6268_v14 = vld [vmem:[%s8616_s29] sm:$0xf]  ;;  %v8092_v15 = vld [vmem:[%s8616_s29 + $0x4] sm:$0xf0]  ;;  %v8643_v16 = vor.u32 %v8094_v13, %v6272_v12  ;;  %v8099_v20 = vld [vmem:[%s8616_s29 + $0x44] sm:$0xf] }
   0xe   : > { %v8626_v7 = vpack.c.b16 %v156_v4, %v156_v4  ;;  %384 = vrot.lane.b32.xlu2 %v8628_v8, %s8498_s0  ;;  %v8645_v17 = vor.u32 %v8092_v15, %v6268_v14  ;;  %v528_v19 = vpack.c.b16 %v522_v18, %v522_v18  ;;  %v6416_v21 = vld [vmem:[%s8616_s29 + $0x48] sm:$0xf0]  ;;  %v8097_v22 = vld [vmem:[%s8616_s29 + $0x34] sm:$0xf]  ;;  %v6412_v23 = vld [vmem:[%s8616_s29 + $0x38] sm:$0xf0] }
   0xf   : > { %v6419_v24 = vor.u32 %v8099_v20, %v6416_v21  ;;  %v6415_v25 = vor.u32 %v8097_v22, %v6412_v23  ;;  %v8095_v26 = vld [vmem:[%s8616_s29 + $0x24] sm:$0xf]  ;;  %v6408_v27 = vld [vmem:[%s8616_s29 + $0x28] sm:$0xf0]  ;;  %v8093_v29 = vld [vmem:[%s8616_s29 + $0x14] sm:$0xf] }
  0x10   : > { %390 = vrot.lane.b32.xlu0 %v8626_v7, %s8498_s0  ;;  %v6411_v28 = vor.u32 %v8095_v26, %v6408_v27  ;;  %v6404_v30 = vld [vmem:[%s8616_s29 + $0x18] sm:$0xf0]  ;;  %v8091_v31 = vld [vmem:[%s8616_s29 + $0x4] sm:$0xf]  ;;  %v6400_v32 = vld [vmem:[%s8616_s29 + $0x8] sm:$0xf0] }
  0x11   : > { %v6407_v33 = vor.u32 %v8093_v29, %v6404_v30  ;;  %v6403_v34 = vor.u32 %v8091_v31, %v6400_v32  ;;  %v296_v35 = vsel %vm199_vm0, %v8626_v7, 0  ;;  %v8101_v37 = vld [vmem:[%s12539_s23] sm:$0xff]  ;;  %v8102_v40 = vld [vmem:[%s12539_s23 + $0x8] sm:$0xff]  ;;  %v8103_v49 = vld [vmem:[%s12539_s23 + $0x10] sm:$0xff]  ;;  %s1124_s29 = sshra.s32 %s1123_s28, 3  ;;  %p59_p0 = scmp.ge.s32.totalorder %s62_s24, 18  }
  0x12   : > { %300 = vmatpush.bf16.msra.mxu1 %v296_v35  ;;  %v8113_v55 = vld [vmem:[%s12539_s23 + $0x60] sm:$0xff]  ;;  %v8104_v57 = vld [vmem:[%s12539_s23 + $0x18] sm:$0xff]  ;;  %v8107_v60 = vld [vmem:[%s12539_s23 + $0x30] sm:$0xff] }
  0x13   : > { %v8114_v2 = vld [vmem:[%s12539_s23 + $0x68] sm:$0xff]  ;;  %v8105_v4 = vld [vmem:[%s12539_s23 + $0x20] sm:$0xff]  ;;  %v8108_v9 = vld [vmem:[%s12539_s23 + $0x38] sm:$0xff] }
  0x14   : > { %v8115_v15 = vld [vmem:[%s12539_s23 + $0x70] sm:$0xff]  ;;  %v8120_v30 = vld [vmem:[%s12539_s23 + $0x98] sm:$0xff] }
  0x15   : > { %173 = vrot.lane.b32.xlu1 %v8626_v7, %s8499_s30  ;;  %v8119_v20 = vld [vmem:[%s12539_s23 + $0x90] sm:$0xff] }
  0x16   : > { %171 = vrot.lane.b32.xlu2 %v8634_v11, %s8499_s30  ;;  %301 = vmatpush.bf16.msra.mxu1 %v8634_v11 }
  0x18   : > { %388 = vrot.lane.b32.xlu0 %v8634_v11, %s8498_s0 }
  0x1a   : > { %302 = vmatpush.bf16.msra.mxu1 %v8621_v3 }
  0x1d   : > { %169 = vrot.lane.b32.xlu1 %v8621_v3, %s8499_s30 }
  0x1e   : > { %380 = vrot.lane.b32.xlu2 %v8645_v17, %s8498_s0  ;;  %303 = vmatpush.bf16.msra.mxu1 %v8628_v8 }
  0x20   : > { %382 = vrot.lane.b32.xlu0 %v8643_v16, %s8498_s0  ;;  %s6562_s0 = sshll.u32 %s1124_s29, 2 }
  0x22   : > { %304 = vmatpush.bf16.msra.mxu1 %v8643_v16 }
  0x25   : > { %165 = vrot.lane.b32.xlu1 %v8643_v16, %s8499_s30 }
  0x26   : > { %163 = vrot.lane.b32.xlu2 %v8645_v17, %s8499_s30  ;;  %305 = vmatpush.bf16.msra.mxu1 %v8645_v17 }
  0x28   : > { %167 = vrot.lane.b32.xlu0 %v8628_v8, %s8499_s30  ;;  %s1127_s30 = scalar_lea.vmem [#allocation2], %s6562_s0 }
  0x29   : > { %6316 = vmatmul.msk.bf16.vlgmr.msra.gmra.mxu1 %vm180_vm1, %v8101_v37  ;;  %v8117_v37 = vld [vmem:[%s12539_s23 + $0x80] sm:$0xff] }
  0x2d   : > { %551 = vrot.lane.b32.xlu1 %v528_v19, %s8500_s18 }
  0x2e   : > { %545 = vrot.lane.b32.xlu2 %v8634_v11, %s8500_s18 }
  0x30   : > { %549 = vrot.lane.b32.xlu0 %v8626_v7, %s8500_s18 }
  0x35   : > { %541 = vrot.lane.b32.xlu1 %v8621_v3, %s8500_s18 }
  0x36   : > { %543 = vrot.lane.b32.xlu2 %v6415_v25, %s8500_s18 }
  0x38   : > { %547 = vrot.lane.b32.xlu0 %v6419_v24, %s8500_s18  ;;  %v8109_v24 = vld [vmem:[%s12539_s23 + $0x40] sm:$0xff] }
  0x39   : > { %6317 = vmatmul.msk.bf16.gmra.mxu1 %vm180_vm1, %v8102_v40 }
  0x3d   : > { %539 = vrot.lane.b32.xlu1 %v6411_v28, %s8500_s18  ;;  %v8116_v28 = vld [vmem:[%s12539_s23 + $0x78] sm:$0xff] }
  0x3e   : > { %533 = vrot.lane.b32.xlu2 %v8643_v16, %s8500_s18 }
  0x40   : > { %537 = vrot.lane.b32.xlu0 %v8628_v8, %s8500_s18 }
  0x45   : > { %529 = vrot.lane.b32.xlu1 %v8645_v17, %s8500_s18 }
  0x46   : > { %531 = vrot.lane.b32.xlu2 %v6403_v34, %s8500_s18 }
  0x48   : > { %535 = vrot.lane.b32.xlu0 %v6407_v33, %s8500_s18  ;;  %v8110_v33 = vld [vmem:[%s12539_s23 + $0x48] sm:$0xff]  ;;  %s8950_s18 = smov (%p59_p0), 0  }
  0x49   : > { %6318 = vmatmul.msk.bf16.gmra.mxu1 %vm180_vm1, %v8103_v49 }
  0x4d   : > { %822 = vrot.lane.b32.xlu1 %v8626_v7, %s8501_s19 }
  0x4e   : > { %952 = vrot.lane.b32.xlu2 %v8634_v11, %s8502_s1 }
  0x50   : > { %954 = vrot.lane.b32.xlu0 %v8626_v7, %s8502_s1 }
  0x55   : > { %950 = vrot.lane.b32.xlu1 %v8621_v3, %s8502_s1 }
  0x56   : > { %690 = vrot.lane.b32.xlu2 %v8626_v7, %s8503_s20 }
  0x58   : > { %820 = vrot.lane.b32.xlu0 %v8634_v11, %s8501_s19 }
  0x59   : > { %6319 = vmatmul.msk.bf16.gmra.mxu1 %vm180_vm1, %v8104_v57  ;;  %v8138_v57 = vld [vmem:[%s12539_s23 + $0x128] sm:$0xff] }
  0x5d   : > { %948 = vrot.lane.b32.xlu1 %v8628_v8, %s8502_s1 }
  0x5e   : > { %688 = vrot.lane.b32.xlu2 %v8634_v11, %s8503_s20 }
  0x60   : > { %818 = vrot.lane.b32.xlu0 %v8621_v3, %s8501_s19 }
  0x65   : > { %946 = vrot.lane.b32.xlu1 %v8643_v16, %s8502_s1 }
  0x66   : > { %686 = vrot.lane.b32.xlu2 %v8621_v3, %s8503_s20 }
  0x68   : > { %816 = vrot.lane.b32.xlu0 %v8628_v8, %s8501_s19  ;;  %v385_v36 = vpop.permute.xlu2 %384 }
  0x69   : > { %6320 = vmatmul.msk.bf16.gmra.mxu1 %vm180_vm1, %v8105_v4 }
  0x6d   : > { %944 = vrot.lane.b32.xlu1 %v8645_v17, %s8502_s1 }
  0x6e   : > { %684 = vrot.lane.b32.xlu2 %v8628_v8, %s8503_s20 }
  0x70   : > { %814 = vrot.lane.b32.xlu0 %v8643_v16, %s8501_s19  ;;  %v172_v38 = vpop.permute.xlu2 %171 }
  0x75   : > { %682 = vrot.lane.b32.xlu1 %v8643_v16, %s8503_s20 }
  0x76   : > { %680 = vrot.lane.b32.xlu2 %v8645_v17, %s8503_s20 }
  0x78   : > { %812 = vrot.lane.b32.xlu0 %v8645_v17, %s8501_s19  ;;  %v381_v39 = vpop.permute.xlu2 %380  ;;  %v8106_v17 = vld [vmem:[%s12539_s23 + $0x28] sm:$0xff] }
  0x79   : > { %6321 = vmatmul.msk.bf16.gmra.mxu1 %vm180_vm1, %v8106_v17 }
  0x7f   : > { %v387_v41 = vpop.permute.xlu1 %386 }
  0x80   : > { %v164_v43 = vpop.permute.xlu2 %163 }
  0x82   : > { %v391_v42 = vpop.permute.xlu0 %390 }
  0x83   : > { %v416_v44 = vsel %vm199_vm0, %v391_v42, 0 }
  0x84   : > { %420 = vmatpush.bf16.msra.mxu2 %v416_v44  ;;  %v8118_v44 = vld [vmem:[%s12539_s23 + $0x88] sm:$0xff] }
  0x87   : > { %v174_v45 = vpop.permute.xlu1 %173 }
  0x88   : > { %v201_v46 = vsel %vm199_vm0, %v174_v45, 0  ;;  %v546_v48 = vpop.permute.xlu2 %545  ;;  %v8131_v45 = vld [vmem:[%s12539_s23 + $0xf0] sm:$0xff] }
  0x89   : > { %205 = vmatpush.bf16.msra.mxu0 %v201_v46 }
  0x8a   : > { %v389_v47 = vpop.permute.xlu0 %388 }
  0x8b   : > { %421 = vmatpush.bf16.msra.mxu2 %v389_v47  ;;  %v8122_v47 = vld [vmem:[%s12539_s23 + $0xa8] sm:$0xff] }
  0x8d   : > { %206 = vmatpush.bf16.msra.mxu0 %v172_v38  ;;  %v8121_v38 = vld [vmem:[%s12539_s23 + $0xa0] sm:$0xff] }
  0x8f   : > { %422 = vmatpush.bf16.msra.mxu2 %v387_v41  ;;  %v170_v50 = vpop.permute.xlu1 %169  ;;  %v8111_v41 = vld [vmem:[%s12539_s23 + $0x50] sm:$0xff] }
  0x90   : > { %v544_v52 = vpop.permute.xlu2 %543 }
  0x91   : > { %207 = vmatpush.bf16.msra.mxu0 %v170_v50  ;;  %v8132_v50 = vld [vmem:[%s12539_s23 + $0xf8] sm:$0xff] }
  0x92   : > { %v383_v51 = vpop.permute.xlu0 %382 }
  0x93   : > { %423 = vmatpush.bf16.msra.mxu2 %v385_v36 }
  0x97   : > { %424 = vmatpush.bf16.msra.mxu2 %v383_v51  ;;  %v166_v53 = vpop.permute.xlu1 %165  ;;  %v8137_v51 = vld [vmem:[%s12539_s23 + $0x120] sm:$0xff] }
  0x98   : > { %v534_v56 = vpop.permute.xlu2 %533 }
  0x9a   : > { %v168_v54 = vpop.permute.xlu0 %167 }
  0x9b   : > { %208 = vmatpush.bf16.msra.mxu0 %v168_v54  ;;  %425 = vmatpush.bf16.msra.mxu2 %v381_v39  ;;  %v8125_v54 = vld [vmem:[%s12539_s23 + $0xc0] sm:$0xff] }
  0x9e   : > { %6358 = vmatmul.msk.bf16.vlgmr.msra.gmra.mxu2 %vm180_vm1, %v8113_v55 }
  0x9f   : > { %209 = vmatpush.bf16.msra.mxu0 %v166_v53  ;;  %v552_v58 = vpop.permute.xlu1 %551  ;;  %v8123_v53 = vld [vmem:[%s12539_s23 + $0xb0] sm:$0xff] }
  0xa0   : > { %v532_v61 = vpop.permute.xlu2 %531 }
  0xa2   : > { %v550_v59 = vpop.permute.xlu0 %549 }
  0xa3   : > { %210 = vmatpush.bf16.msra.mxu0 %v164_v43  ;;  %v559_v62 = vsel %vm553_vm2, %v550_v59, %v552_v58  ;;  %v8124_v58 = vld [vmem:[%s12539_s23 + $0xb8] sm:$0xff] }
  0xa4   : > { %v584_v63 = vsel %vm199_vm0, %v559_v62, 0  ;;  %v8139_v62 = vld [vmem:[%s12539_s23 + $0x130] sm:$0xff] }
  0xa5   : > { %588 = vmatpush.bf16.msra.mxu3 %v584_v63 }
  0xa6   : > { %6286 = vmatmul.msk.bf16.vlgmr.msra.gmra.mxu0 %vm180_vm1, %v8107_v60  ;;  %v307_v49 = vpop.f32.mrf.mxu1  ;;  %v8126_v60 = vld [vmem:[%s12539_s23 + $0xc8] sm:$0xff] }
  0xa7   : > { %v542_v0 = vpop.permute.xlu1 %541 }
  0xa8   : > { %v953_v3 = vpop.permute.xlu2 %952  ;;  %v557_v6 = vsel %vm553_vm2, %v542_v0, %v544_v52  ;;  %v8130_v0 = vld [vmem:[%s12539_s23 + $0xe8] sm:$0xff] }
  0xaa   : > { %v548_v1 = vpop.permute.xlu0 %547 }
  0xab   : > { %v558_v5 = vsel %vm553_vm2, %v546_v48, %v548_v1  ;;  %v8112_v48 = vld [vmem:[%s12539_s23 + $0x58] sm:$0xff] }
  0xac   : > { %589 = vmatpush.bf16.msra.mxu3 %v558_v5 }
  0xae   : > { %6359 = vmatmul.msk.bf16.gmra.mxu2 %vm180_vm1, %v8114_v2  ;;  %v309_v52 = vpop.f32.mrf.mxu1  ;;  %v8127_v2 = vld [vmem:[%s12539_s23 + $0xd0] sm:$0xff] }
  0xaf   : > { %v540_v7 = vpop.permute.xlu1 %539 }
  0xb0   : > { %590 = vmatpush.bf16.msra.mxu3 %v557_v6  ;;  %v691_v10 = vpop.permute.xlu2 %690 }
  0xb1   : > { %v716_v12 = vsel %vm199_vm0, %v691_v10, 0 }
  0xb2   : > { %v538_v8 = vpop.permute.xlu0 %537  ;;  %720 = vmatpush.bf16.msrb.mxu0 %v716_v12 }
  0xb3   : > { %v556_v11 = vsel %vm553_vm2, %v538_v8, %v540_v7  ;;  %v8135_v8 = vld [vmem:[%s12539_s23 + $0x110] sm:$0xff] }
  0xb4   : > { %591 = vmatpush.bf16.msra.mxu3 %v556_v11 }
  0xb6   : > { %6287 = vmatmul.msk.bf16.gmra.mxu0 %vm180_vm1, %v8108_v9  ;;  %v312_v55 = vpop.f32.mrf.mxu1  ;;  %v8140_v9 = vld [vmem:[%s12539_s23 + $0x138] sm:$0xff] }
  0xb7   : > { %v530_v13 = vpop.permute.xlu1 %529 }
  0xb8   : > { %v689_v16 = vpop.permute.xlu2 %688  ;;  %v554_v19 = vsel %vm553_vm2, %v530_v13, %v532_v61  ;;  %v8134_v61 = vld [vmem:[%s12539_s23 + $0x108] sm:$0xff] }
  0xb9   : > { %721 = vmatpush.bf16.msrb.mxu0 %v689_v16 }
  0xba   : > { %v536_v14 = vpop.permute.xlu0 %535 }
  0xbb   : > { %v555_v18 = vsel %vm553_vm2, %v534_v56, %v536_v14  ;;  %v8133_v56 = vld [vmem:[%s12539_s23 + $0x100] sm:$0xff] }
  0xbc   : > { %592 = vmatpush.bf16.msra.mxu3 %v555_v18 }
  0xbe   : > { %6360 = vmatmul.msk.bf16.gmra.mxu2 %vm180_vm1, %v8115_v15  ;;  %v314_v59 = vpop.f32.mrf.mxu1  ;;  %v8128_v15 = vld [vmem:[%s12539_s23 + $0xd8] sm:$0xff] }
  0xbf   : > { %v823_v21 = vpop.permute.xlu1 %822 }
  0xc0   : > { %593 = vmatpush.bf16.msra.mxu3 %v554_v19  ;;  %v848_v22 = vsel %vm199_vm0, %v823_v21, 0  ;;  %v687_v29 = vpop.permute.xlu2 %686  ;;  %v8136_v21 = vld [vmem:[%s12539_s23 + $0x118] sm:$0xff] }
  0xc1   : > { %852 = vmatpush.bf16.msrb.mxu1 %v848_v22  ;;  %722 = vmatpush.bf16.msrb.mxu0 %v687_v29  ;;  %v8141_v22 = vld [vmem:[%s12539_s23 + $0x140] sm:$0xff] }
  0xc2   : > { %v955_v23 = vpop.permute.xlu0 %954 }
  0xc3   : > { %6420 = vmatmul.msk.bf16.vlgmr.msra.gmra.mxu3 %vm180_vm1, %v8119_v20  ;;  %v980_v25 = vsel %vm199_vm0, %v955_v23, 0 }
  0xc4   : > { %8405 = vmatpush.bf16.msrb.mxu3 %v716_v12  ;;  %984 = vmatpush.bf16.msrb.mxu2 %v980_v25 }
  0xc6   : > { %6288 = vmatmul.msk.bf16.gmra.mxu0 %vm180_vm1, %v8109_v24  ;;  %v317_v63 = vpop.f32.mrf.mxu1 }
  0xc7   : > { %v951_v26 = vpop.permute.xlu1 %950 }
  0xc8   : > { %8406 = vmatpush.bf16.msrb.mxu3 %v689_v16  ;;  %985 = vmatpush.bf16.msrb.mxu2 %v953_v3  ;;  %v685_v34 = vpop.permute.xlu2 %684 }
  0xc9   : > { %723 = vmatpush.bf16.msrb.mxu0 %v685_v34 }
  0xca   : > { %v821_v27 = vpop.permute.xlu0 %820 }
  0xcb   : > { %853 = vmatpush.bf16.msrb.mxu1 %v821_v27  ;;  %v1033_v27 = vld [vmem:[%s12517_s2] sm:$0xff] }
  0xcc   : > { %986 = vmatpush.bf16.msrb.mxu2 %v951_v26  ;;  %8407 = vmatpush.bf16.msrb.mxu3 %v687_v29  ;;  %v8504_v29 = vmov 0  }
  0xcd   : > { %8453 = vset.pattern.permute.xlu0 %v8504_v29  ;;  %8454 = vset.pattern.permute.xlu1 %v8504_v29 }
  0xce   : > { %6361 = vmatmul.msk.bf16.gmra.mxu2 %vm180_vm1, %v8116_v28  ;;  %v319_v5 = vpop.f32.mrf.mxu1  ;;  %v8129_v28 = vld [vmem:[%s12539_s23 + $0xe0] sm:$0xff]  ;;  %1047 = vperm.xlu0 %8453, %v1033_v27  }
  0xcf   : > { %v949_v31 = vpop.permute.xlu1 %948  ;;  %8455 = vset.pattern.permute.xlu2 %v8504_v29 }
  0xd0   : > { %987 = vmatpush.bf16.msrb.mxu2 %v949_v31  ;;  %8408 = vmatpush.bf16.msrb.mxu3 %v685_v34  ;;  %v681_v46 = vpop.permute.xlu2 %680 }
  0xd2   : > { %v819_v32 = vpop.permute.xlu0 %818 }
  0xd3   : > { %6421 = vmatmul.msk.bf16.gmra.mxu3 %vm180_vm1, %v8120_v30  ;;  %854 = vmatpush.bf16.msrb.mxu1 %v819_v32 }
  0xd6   : > { %6289 = vmatmul.msk.bf16.gmra.mxu0 %vm180_vm1, %v8110_v33  ;;  %v322_v13 = vpop.f32.mrf.mxu1  ;;  %v1034_v33 = vld [vmem:[%s12517_s2 + $0x8] sm:$0xff] }
  0xd7   : > { %v947_v35 = vpop.permute.xlu1 %946  ;;  %1052 = vperm.xlu1 %8454, %v1034_v33  }
  0xd8   : > { %988 = vmatpush.bf16.msrb.mxu2 %v947_v35 }
  0xda   : > { %v817_v36 = vpop.permute.xlu0 %816 }
  0xdb   : > { %855 = vmatpush.bf16.msrb.mxu1 %v817_v36 }
  0xde   : > { %6362 = vmatmul.msk.bf16.gmra.mxu2 %vm180_vm1, %v8117_v37  ;;  %v324_v20 = vpop.f32.mrf.mxu1 }
  0xdf   : > { %v945_v39 = vpop.permute.xlu1 %944 }
  0xe0   : > { %989 = vmatpush.bf16.msrb.mxu2 %v945_v39 }
  0xe2   : > { %v815_v40 = vpop.permute.xlu0 %814 }
  0xe3   : > { %6422 = vmatmul.msk.bf16.gmra.mxu3 %vm180_vm1, %v8121_v38  ;;  %856 = vmatpush.bf16.msrb.mxu1 %v815_v40  ;;  %v8142_v38 = vld [vmem:[%s12539_s23 + $0x148] sm:$0xff] }
  0xe6   : > { %6290 = vmatmul.msk.bf16.gmra.mxu0 %vm180_vm1, %v8111_v41  ;;  %v327_v31 = vpop.f32.mrf.mxu1 }
  0xe7   : > { %v683_v42 = vpop.permute.xlu1 %682 }
  0xe8   : > { %724 = vmatpush.bf16.msrb.mxu0 %v683_v42  ;;  %8409 = vmatpush.bf16.msrb.mxu3 %v683_v42 }
  0xea   : > { %v813_v43 = vpop.permute.xlu0 %812 }
  0xeb   : > { %857 = vmatpush.bf16.msrb.mxu1 %v813_v43 }
  0xec   : > { %725 = vmatpush.bf16.msrb.mxu0 %v681_v46  ;;  %8410 = vmatpush.bf16.msrb.mxu3 %v681_v46 }
  0xee   : > { %6363 = vmatmul.msk.bf16.gmra.mxu2 %vm180_vm1, %v8118_v44  ;;  %6504 = vmatmul.msk.bf16.vlgmr.msrb.gmra.mxu1 %vm180_vm1, %v8131_v45  ;;  %v329_v41 = vpop.f32.mrf.mxu1 }
  0xf3   : > { %6423 = vmatmul.msk.bf16.gmra.mxu3 %vm180_vm1, %v8122_v47 }
  0xf6   : > { %6291 = vmatmul.msk.bf16.gmra.mxu0 %vm180_vm1, %v8112_v48 }
  0xfe   : > { %6505 = vmatmul.msk.bf16.gmra.mxu1 %vm180_vm1, %v8132_v50  ;;  %6546 = vmatmul.msk.bf16.vlgmr.msrb.gmra.mxu2 %vm180_vm1, %v8137_v51  ;;  %v332_v51 = vpop.f32.mrf.mxu1 }
 0x103   : > { %6424 = vmatmul.msk.bf16.gmra.mxu3 %vm180_vm1, %v8123_v53 }
 0x106   : > { %6462 = vmatmul.msk.bf16.vlgmr.msrb.gmra.mxu0 %vm180_vm1, %v8125_v54 }
 0x10e   : > { %6506 = vmatmul.msk.bf16.gmra.mxu1 %vm180_vm1, %v8133_v56  ;;  %6547 = vmatmul.msk.bf16.gmra.mxu2 %vm180_vm1, %v8138_v57 }
 0x113   : > { %6425 = vmatmul.msk.bf16.gmra.mxu3 %vm180_vm1, %v8124_v58 }
 0x116   : > { %6463 = vmatmul.msk.bf16.gmra.mxu0 %vm180_vm1, %v8126_v60 }
 0x11e   : > { %6507 = vmatmul.msk.bf16.gmra.mxu1 %vm180_vm1, %v8134_v61  ;;  %6548 = vmatmul.msk.bf16.gmra.mxu2 %vm180_vm1, %v8139_v62  ;;  %v1035_v62 = vld [vmem:[%s12517_s2 + $0x10] sm:$0xff] }
 0x11f   : > { %1057 = vperm.xlu2 %8455, %v1035_v62  }
 0x121   : > { %v427_v1 = vpop.f32.mrf.mxu2 }
 0x123   : > { %v212_v3 = vpop.f32.mrf.mxu0  ;;  %6467 = vmatmul.msk.bf16.vlgmr.msrb.gmra.mxu3 %vm180_vm1, %v8130_v0 }
 0x124   : > { %v308_v4 = vadd.f32 %v307_v49, %v212_v3 }
 0x126   : > { %6464 = vmatmul.msk.bf16.gmra.mxu0 %vm180_vm1, %v8127_v2  ;;  %v457_v6 = vadd.f32 %v427_v1, %v308_v4 }
 0x129   : > { %v429_v7 = vpop.f32.mrf.mxu2 }
 0x12b   : > { %v214_v10 = vpop.f32.mrf.mxu0 }
 0x12c   : > { %v310_v11 = vadd.f32 %v309_v52, %v214_v10 }
 0x12e   : > { %6508 = vmatmul.msk.bf16.gmra.mxu1 %vm180_vm1, %v8135_v8  ;;  %6549 = vmatmul.msk.bf16.gmra.mxu2 %vm180_vm1, %v8140_v9  ;;  %v458_v12 = vadd.f32 %v429_v7, %v310_v11 }
 0x131   : > { %v432_v14 = vpop.f32.mrf.mxu2 }
 0x133   : > { %v217_v16 = vpop.f32.mrf.mxu0 }
 0x134   : > { %v313_v17 = vadd.f32 %v312_v55, %v217_v16 }
 0x136   : > { %6465 = vmatmul.msk.bf16.gmra.mxu0 %vm180_vm1, %v8128_v15  ;;  %v459_v18 = vadd.f32 %v432_v14, %v313_v17 }
 0x139   : > { %v434_v19 = vpop.f32.mrf.mxu2 }
 0x13b   : > { %v219_v23 = vpop.f32.mrf.mxu0 }
 0x13c   : > { %v315_v24 = vadd.f32 %v314_v59, %v219_v23  ;;  %v334_v59 = vpop.f32.mrf.mxu1 }
 0x13e   : > { %6509 = vmatmul.msk.bf16.gmra.mxu1 %vm180_vm1, %v8136_v21  ;;  %6550 = vmatmul.msk.bf16.gmra.mxu2 %vm180_vm1, %v8141_v22  ;;  %v460_v25 = vadd.f32 %v434_v19, %v315_v24 }
 0x141   : > { %v437_v26 = vpop.f32.mrf.mxu2 }
 0x143   : > { %v222_v30 = vpop.f32.mrf.mxu0 }
 0x144   : > { %v318_v32 = vadd.f32 %v317_v63, %v222_v30 }
 0x146   : > { %v595_v34 = vpop.f32.mrf.mxu3  ;;  %6466 = vmatmul.msk.bf16.gmra.mxu0 %vm180_vm1, %v8129_v28  ;;  %v8882_v35 = vadd.f32 %v437_v26, %v318_v32 }
 0x147   : > { %v625_v36 = vadd.f32 %v595_v34, %v457_v6 }
 0x149   : > { %v439_v37 = vpop.f32.mrf.mxu2 }
 0x14b   : > { %v224_v39 = vpop.f32.mrf.mxu0 }
 0x14c   : > { %v320_v40 = vadd.f32 %v319_v5, %v224_v39 }
 0x14e   : > { %v597_v42 = vpop.f32.mrf.mxu3  ;;  %6551 = vmatmul.msk.bf16.gmra.mxu2 %vm180_vm1, %v8142_v38  ;;  %v462_v43 = vadd.f32 %v439_v37, %v320_v40 }
 0x14f   : > { %v626_v44 = vadd.f32 %v597_v42, %v458_v12 }
 0x151   : > { %v442_v45 = vpop.f32.mrf.mxu2 }
 0x153   : > { %v227_v46 = vpop.f32.mrf.mxu0 }
 0x154   : > { %v323_v47 = vadd.f32 %v322_v13, %v227_v46 }
 0x156   : > { %v600_v48 = vpop.f32.mrf.mxu3  ;;  %v8888_v49 = vadd.f32 %v442_v45, %v323_v47 }
 0x157   : > { %v627_v50 = vadd.f32 %v600_v48, %v459_v18 }
 0x159   : > { %v444_v52 = vpop.f32.mrf.mxu2 }
 0x15b   : > { %v229_v53 = vpop.f32.mrf.mxu0 }
 0x15c   : > { %v325_v54 = vadd.f32 %v324_v20, %v229_v53 }
 0x15e   : > { %v602_v55 = vpop.f32.mrf.mxu3  ;;  %v8890_v56 = vadd.f32 %v444_v52, %v325_v54 }
 0x15f   : > { %v628_v57 = vadd.f32 %v602_v55, %v460_v25 }
 0x161   : > { %v447_v58 = vpop.f32.mrf.mxu2 }
 0x163   : > { %v232_v60 = vpop.f32.mrf.mxu0 }
 0x164   : > { %v328_v61 = vadd.f32 %v327_v31, %v232_v60 }
 0x166   : > { %v605_v63 = vpop.f32.mrf.mxu3  ;;  %v8895_v0 = vadd.f32 %v447_v58, %v328_v61 }
 0x167   : > { %v629_v46 = vadd.f32 %v605_v63, %v8882_v35  ;;  %v1075_v35 = vld [vmem:[%s12518_s3 + $0x10] sm:$0x3] }
 0x168   : > { %v1085_v63 = vunpack.c.l.b16 %v1075_v35 }
 0x169   : > { %v449_v1 = vpop.f32.mrf.mxu2 }
 0x16b   : > { %v234_v2 = vpop.f32.mrf.mxu0  ;;  %v859_v3 = vpop.f32.mrf.mxu1 }
 0x16c   : > { %v330_v4 = vadd.f32 %v329_v41, %v234_v2  ;;  %v1088_v2 = vpack.c.b16 %v1085_v63, %v1085_v63 }
 0x16e   : > { %v607_v5 = vpop.f32.mrf.mxu3  ;;  %v8897_v6 = vadd.f32 %v449_v1, %v330_v4 }
 0x16f   : > { %v630_v7 = vadd.f32 %v607_v5, %v462_v43  ;;  %v1100_v5 = vsel %vm1098_vm3, %v1088_v2, 0 }
 0x170   : > { %1107 = vmatpush.bf16.msra.mxu3 %v1100_v5 }
 0x171   : > { %v452_v8 = vpop.f32.mrf.mxu2 }
 0x173   : > { %v237_v9 = vpop.f32.mrf.mxu0  ;;  %v861_v10 = vpop.f32.mrf.mxu1 }
 0x174   : > { %v333_v11 = vadd.f32 %v332_v51, %v237_v9  ;;  %v8144_v9 = vld [vmem:[%s12518_s3 + $0x8] sm:$0xff] }
 0x175   : > { %1108 = vmatpush.bf16.msra.mxu3 %v8144_v9 }
 0x176   : > { %v8899_v12 = vadd.f32 %v452_v8, %v333_v11  ;;  %v610_v27 = vpop.f32.mrf.mxu3 }
 0x179   : > { %v454_v13 = vpop.f32.mrf.mxu2 }
 0x17b   : > { %v239_v14 = vpop.f32.mrf.mxu0  ;;  %v864_v15 = vpop.f32.mrf.mxu1 }
 0x17c   : > { %v335_v16 = vadd.f32 %v334_v59, %v239_v14 }
 0x17e   : > { %v8901_v17 = vadd.f32 %v454_v13, %v335_v16  ;;  %v612_v37 = vpop.f32.mrf.mxu3  ;;  %v8143_v13 = vld [vmem:[%s12518_s3] sm:$0xff] }
 0x17f   : > { %1109 = vmatpush.bf16.msra.mxu3 %v8143_v13 }
 0x181   : > { %v991_v18 = vpop.f32.mrf.mxu2 }
 0x183   : > { %v727_v19 = vpop.f32.mrf.mxu0  ;;  %v866_v21 = vpop.f32.mrf.mxu1 }
 0x184   : > { %v757_v20 = vadd.f32 %v727_v19, %v625_v36  ;;  %v631_v19 = vadd.f32 %v610_v27, %v8888_v49 }
 0x186   : > { %v889_v22 = vadd.f32 %v859_v3, %v757_v20  ;;  %v632_v20 = vadd.f32 %v612_v37, %v8890_v56 }
 0x188   : > { %v8903_v23 = vadd.f32 %v991_v18, %v889_v22 }
 0x189   : > { %v993_v24 = vpop.f32.mrf.mxu2 }
 0x18b   : > { %v729_v25 = vpop.f32.mrf.mxu0  ;;  %v869_v29 = vpop.f32.mrf.mxu1 }
 0x18c   : > { %v758_v26 = vadd.f32 %v729_v25, %v626_v44  ;;  %v615_v44 = vpop.f32.mrf.mxu3 }
 0x18e   : > { %v890_v28 = vadd.f32 %v861_v10, %v758_v26 }
 0x190   : > { %v8905_v30 = vadd.f32 %v993_v24, %v890_v28 }
 0x191   : > { %v996_v31 = vpop.f32.mrf.mxu2 }
 0x193   : > { %v732_v32 = vpop.f32.mrf.mxu0  ;;  %v871_v36 = vpop.f32.mrf.mxu1 }
 0x194   : > { %v759_v33 = vadd.f32 %v732_v32, %v627_v50 }
 0x196   : > { %v891_v34 = vadd.f32 %v864_v15, %v759_v33 }
 0x198   : > { %v8907_v38 = vadd.f32 %v996_v31, %v891_v34 }
 0x199   : > { %v998_v39 = vpop.f32.mrf.mxu2 }
 0x19b   : > { %v734_v40 = vpop.f32.mrf.mxu0  ;;  %v874_v48 = vpop.f32.mrf.mxu1 }
 0x19c   : > { %v760_v41 = vadd.f32 %v734_v40, %v628_v57  ;;  %v617_v57 = vpop.f32.mrf.mxu3 }
 0x19d   : > { %v634_v25 = vadd.f32 %v617_v57, %v8897_v6 }
 0x19e   : > { %v892_v42 = vadd.f32 %v866_v21, %v760_v41 }
 0x1a0   : > { %v8909_v43 = vadd.f32 %v998_v39, %v892_v42  ;;  %v633_v39 = vadd.f32 %v615_v44, %v8895_v0 }
 0x1a1   : > { %v1001_v45 = vpop.f32.mrf.mxu2 }
 0x1a2   : > { %v1036_v47 = vmax.f32 %v8903_v23, %v8909_v43 }
 0x1a3   : > { %v737_v50 = vpop.f32.mrf.mxu0  ;;  %v876_v60 = vpop.f32.mrf.mxu1 }
 0x1a4   : > { %v761_v51 = vadd.f32 %v737_v50, %v629_v46  ;;  %v620_v8 = vpop.f32.mrf.mxu3  ;;  %v1048_v46 = vpop.permute.xlu0 %1047 }
 0x1a6   : > { %v893_v52 = vadd.f32 %v869_v29, %v761_v51 }
 0x1a8   : > { %v8914_v53 = vadd.f32 %v1001_v45, %v893_v52  ;;  %v1053_v52 = vpop.permute.xlu1 %1052 }
 0x1a9   : > { %v1003_v54 = vpop.f32.mrf.mxu2 }
 0x1aa   : > { %v1037_v55 = vmax.f32 %v8905_v30, %v8914_v53  ;;  %v635_v30 = vadd.f32 %v620_v8, %v8899_v12 }
 0x1ab   : > { %v739_v58 = vpop.f32.mrf.mxu0 }
 0x1ac   : > { %v762_v59 = vadd.f32 %v739_v58, %v630_v7  ;;  %v879_v7 = vpop.f32.mrf.mxu1  ;;  %v622_v14 = vpop.f32.mrf.mxu3 }
 0x1ad   : > { %v636_v50 = vadd.f32 %v622_v14, %v8901_v17 }
 0x1ae   : > { %v894_v61 = vadd.f32 %v871_v36, %v762_v59 }
 0x1b0   : > { %v8921_v62 = vadd.f32 %v1003_v54, %v894_v61 }
 0x1b1   : > { %v1006_v1 = vpop.f32.mrf.mxu2 }
 0x1b2   : > { %v1038_v3 = vmax.f32 %v8907_v38, %v8921_v62 }
 0x1b3   : > { %v742_v4 = vpop.f32.mrf.mxu0 }
 0x1b4   : > { %v881_v15 = vpop.f32.mrf.mxu1  ;;  %v763_v21 = vadd.f32 %v742_v4, %v631_v19  ;;  %v752_v22 = vpop.f32.mrf.mxu3 }
 0x1b5   : > { %v767_v33 = vadd.f32 %v752_v22, %v635_v30 }
 0x1b6   : > { %v895_v31 = vadd.f32 %v874_v48, %v763_v21 }
 0x1b8   : > { %v1027_v49 = vadd.f32 %v1006_v1, %v895_v31 }
 0x1b9   : > { %v1008_v10 = vpop.f32.mrf.mxu2 }
 0x1bb   : > { %v744_v11 = vpop.f32.mrf.mxu0 }
 0x1bc   : > { %v764_v26 = vadd.f32 %v744_v11, %v632_v20  ;;  %v884_v28 = vpop.f32.mrf.mxu1  ;;  %v754_v45 = vpop.f32.mrf.mxu3 }
 0x1bd   : > { %v899_v27 = vadd.f32 %v884_v28, %v767_v33  ;;  %v768_v0 = vadd.f32 %v754_v45, %v636_v50 }
 0x1be   : > { %v896_v34 = vadd.f32 %v876_v60, %v764_v26 }
 0x1c0   : > { %v1028_v41 = vadd.f32 %v1008_v10, %v896_v34 }
 0x1c1   : > { %v1011_v16 = vpop.f32.mrf.mxu2 }
 0x1c3   : > { %v747_v18 = vpop.f32.mrf.mxu0 }
 0x1c4   : > { %v765_v40 = vadd.f32 %v747_v18, %v633_v39  ;;  %v886_v51 = vpop.f32.mrf.mxu1 }
 0x1c5   : > { %v900_v57 = vadd.f32 %v886_v51, %v768_v0 }
 0x1c6   : > { %v897_v44 = vadd.f32 %v879_v7, %v765_v40 }
 0x1c8   : > { %v1029_v35 = vadd.f32 %v1011_v16, %v897_v44 }
 0x1c9   : > { %v1013_v24 = vpop.f32.mrf.mxu2 }
 0x1cb   : > { %v749_v29 = vpop.f32.mrf.mxu0 }
 0x1cc   : > { %v766_v32 = vadd.f32 %v749_v29, %v634_v25 }
 0x1ce   : > { %v898_v36 = vadd.f32 %v881_v15, %v766_v32 }
 0x1d0   : > { %v1030_v56 = vadd.f32 %v1013_v24, %v898_v36 }
 0x1d1   : > { %v1016_v37 = vpop.f32.mrf.mxu2 }
 0x1d2   : > { %v1031_v42 = vadd.f32 %v1016_v37, %v899_v27  ;;  %v1039_v6 = vmax.f32 %v1027_v49, %v1030_v56 }
 0x1d4   : > { %v1040_v12 = vmax.f32 %v1028_v41, %v1031_v42  ;;  %v1042_v48 = vmax.f32 %v1036_v47, %v1039_v6  ;;  %v1058_v47 = vpop.permute.xlu2 %1057 }
 0x1d6   : > { %v1060_v53 = vadd.f32 %v1048_v46, %v1042_v48  ;;  %v1043_v54 = vmax.f32 %v1037_v55, %v1040_v12 }
 0x1d8   : > { %v1063_v58 = vmax.f32 %v1060_v53, 0.0  ;;  %v1061_v59 = vadd.f32 %v1053_v52, %v1043_v54 }
 0x1d9   : > { %v1018_v60 = vpop.f32.mrf.mxu2 }
 0x1da   : > { %v1064_v61 = vmax.f32 %v1061_v59, 0.0  ;;  %v1032_v63 = vadd.f32 %v1018_v60, %v900_v57  ;;  %v1066_v17 = vmin.f32 %v1063_v58, 6.0 }
 0x1dc   : > { %v1067_v1 = vmin.f32 %v1064_v61, 6.0  ;;  %v1041_v2 = vmax.f32 %v1029_v35, %v1032_v63 }
 0x1de   : > { %v1069_v23 = vpack.c.bf16 %v1067_v1, %v1066_v17  ;;  %v1044_v43 = vmax.f32 %v1038_v3, %v1041_v2 }
 0x1e0   : > { %6560 = vmatmul.msk.bf16.vlgmr.msra.gmra.mxu3 %vm1091_vm4, %v1069_v23  ;;  %v1062_v55 = vadd.f32 %v1058_v47, %v1044_v43 }
 0x1e2   : > { %v1065_v4 = vmax.f32 %v1062_v55, 0.0 }
 0x1e4   : > { %v1068_v5 = vmin.f32 %v1065_v4, 6.0 }
 0x1e6   : > { %v1070_v8 = vpack.c.bf16 %v1068_v5, %v1068_v5 }
 0x1f0   : > { %6561 = vmatmul.msk.bf16.gmra.mxu3 %vm1091_vm4, %v1070_v8 }
 0x263   : > { %v1111_v7 = vpop.f32.mrf.mxu3 }
 0x264   : > { %v1120_v9 = vpack.c.bf16 %v1111_v7, %v1111_v7 }
 0x266   : > { %1129 = vst.msk [vmem:[%s1127_s30] sm:$0xf] %vm1128_vm5, %v1120_v9 }
 0x26b   : > { %v1113_v10 = vpop.f32.mrf.mxu3 }
 0x26c   : > { %v1121_v38 = vpack.c.bf16 %v1113_v10, %v1113_v10 }
 0x26e   : > { %1130 = vst.msk [vmem:[%s1127_s30 + $0x4] sm:$0xf] %vm1128_vm5, %v1121_v38 }
 0x273   : > { %v1116_v62 = vpop.f32.mrf.mxu3 }
 0x274   : > { %v1122_v3 = vpack.c.bf16 %v1116_v62, %v1116_v62 }
 0x276   : > { %1131 = vst.msk [vmem:[%s1127_s30 + $0x8] sm:$0xf] %vm1128_vm5, %v1122_v3 }
 0x277   :  { %61 = sbr.rel (!%p59_p0) target bundleno = 3 (0x3), region = 123 }
 0x27b   : > { %v1118_v11 = vpop.f32.mrf.mxu3 }
 0x27c LB: > { %s1138_s19 = smul.u32 96, %s8496_s18  ;;  %s8505_s2 = smov 110   ;;  %v8161_v28 = vld [vmem:[%s12519_s4 + $0x44] sm:$0xf]  ;;  %v6764_v29 = vld [vmem:[%s12519_s4 + $0x48] sm:$0xf0]  ;;  %s8496_s18 = sphi %s8950_s18, %s1137_s18  }
 0x27d   : > { %s8506_s3 = smov 119   ;;  %s8507_s24 = smov 127   ;;  %vm1386_vm6 = vcmask 31744   ;;  %v6767_v30 = vor.u32 %v8161_v28, %v6764_v29  ;;  %v8163_v31 = vld [vmem:[%s12519_s4 + $0x54] sm:$0xf]  ;;  %vm3734_vm7 = vcmask 64512  }
 0x27e   : > { %s1139_s1 = sshra.s32 %s1138_s19, 3  ;;  %s8508_s23 = smov 101   ;;  %v6772_v32 = vld [vmem:[%s12519_s4 + $0x58] sm:$0xf0]  ;;  %v8177_v39 = vld [vmem:[%s12519_s4 + $0xc4] sm:$0xf] }
 0x27f   : > { %s6563_s20 = sshll.u32 %s1139_s1, 2  ;;  %v6775_v33 = vor.u32 %v8163_v31, %v6772_v32  ;;  %v8165_v49 = vld [vmem:[%s12519_s4 + $0x64] sm:$0xf]  ;;  %v6780_v27 = vld [vmem:[%s12519_s4 + $0x68] sm:$0xf0]  ;;  %s8509_s28 = smov 118  }
 0x280   : > { %s8956_s21 = scalar_lea.vmem [#allocation2], %s6563_s20  ;;  %v6592_v56 = vld [vmem:[%s12519_s4 + $0xc8] sm:$0xf0]  ;;  %v8193_v37 = vld [vmem:[%s12519_s4 + $0x144] sm:$0xf]  ;;  %v6783_v41 = vor.u32 %v8165_v49, %v6780_v27  ;;  %s8510_s29 = smov 109  }
 0x281   : > { %v8959_v13 = vld [vmem:[%s8956_s21 + $0x38] sm:$0xff]  ;;  %v1159_v14 = vld [vmem:[%s8956_s21 + $0x40] sm:$0x3]  ;;  %v8963_v15 = vld [vmem:[%s8956_s21 + $0x30] sm:$0xff]  ;;  %v6595_v46 = vor.u32 %v8177_v39, %v6592_v56  ;;  %s3778_s0 = smul.u32 48, %s8496_s18  ;;  %vm3783_vm8 = vcmask 60416  }
 0x282   : > { %v1350_v16 = vunpack.c.l.b16 %v1159_v14  ;;  %2005 = vrot.lane.b32.xlu1 %v8959_v13, %s8505_s2  ;;  %2003 = vrot.lane.b32.xlu2 %v8963_v15, %s8505_s2  ;;  %v8971_v19 = vld [vmem:[%s8956_s21 + $0x28] sm:$0xff]  ;;  %v8982_v21 = vld [vmem:[%s8956_s21 + $0x20] sm:$0xff]  ;;  %s1137_s18 = sadd.s32 1, %s8496_s18  }
 0x283   : > { %v8988_v22 = vld [vmem:[%s8956_s21 + $0x18] sm:$0xff]  ;;  %v8991_v24 = vld [vmem:[%s8956_s21 + $0x10] sm:$0xff]  ;;  %v8997_v25 = vld [vmem:[%s8956_s21 + $0x8] sm:$0xff]  ;;  %s3779_s30 = sshra.s32 %s3778_s0, 3  ;;  %p1134_p1 = scmp.ge.s32.totalorder %s1137_s18, 4  }
 0x284   : > { %v8967_v18 = vpack.c.b16 %v1350_v16, %v1350_v16  ;;  %v9003_v26 = vld [vmem:[%s8956_s21] sm:$0xff]  ;;  %v6656_v40 = vld [vmem:[%s12519_s4 + $0x148] sm:$0xf0]  ;;  %v8167_v51 = vld [vmem:[%s12519_s4 + $0x74] sm:$0xf]  ;;  %s7499_s19 = sshll.u32 %s3779_s30, 2 }
 0x285   : > { %v6659_v50 = vor.u32 %v8193_v37, %v6656_v40  ;;  %v6788_v52 = vld [vmem:[%s12519_s4 + $0x78] sm:$0xf0]  ;;  %v8179_v54 = vld [vmem:[%s12519_s4 + $0xd4] sm:$0xf]  ;;  %v8169_v2 = vld [vmem:[%s12519_s4 + $0x84] sm:$0xf] }
 0x286   : > { %1376 = vrot.lane.b32.xlu0 %v8967_v18, %s8506_s3  ;;  %v8977_v20 = vsel %vm1098_vm3, %v8967_v18, 0  ;;  %v6791_v44 = vor.u32 %v8167_v51, %v6788_v52  ;;  %v6600_v57 = vld [vmem:[%s12519_s4 + $0xd8] sm:$0xf0]  ;;  %v8195_v58 = vld [vmem:[%s12519_s4 + $0x154] sm:$0xf]  ;;  %s3782_s1 = scalar_lea.vmem [#allocation3], %s7499_s19 }
 0x287   : > { %8412 = vmatpush.bf16.msra.mxu3 %v8977_v20  ;;  %v6664_v59 = vld [vmem:[%s12519_s4 + $0x158] sm:$0xf0]  ;;  %v6603_v61 = vor.u32 %v8179_v54, %v6600_v57  ;;  %v6796_v23 = vld [vmem:[%s12519_s4 + $0x88] sm:$0xf0]  ;;  %v8181_v5 = vld [vmem:[%s12519_s4 + $0xe4] sm:$0xf] }
 0x288   : > { %v6667_v35 = vor.u32 %v8195_v58, %v6664_v59  ;;  %v6799_v43 = vor.u32 %v8169_v2, %v6796_v23  ;;  %v6608_v8 = vld [vmem:[%s12519_s4 + $0xe8] sm:$0xf0]  ;;  %v8197_v7 = vld [vmem:[%s12519_s4 + $0x164] sm:$0xf]  ;;  %v6590_v62 = vld [vmem:[%s12519_s4 + $0xc0] sm:$0xf] }
 0x289   : > { %v6672_v9 = vld [vmem:[%s12519_s4 + $0x168] sm:$0xf0]  ;;  %v6611_v10 = vor.u32 %v8181_v5, %v6608_v8  ;;  %v8178_v3 = vld [vmem:[%s12519_s4 + $0xc4] sm:$0xf0]  ;;  %v8171_v16 = vld [vmem:[%s12519_s4 + $0x94] sm:$0xf] }
 0x28a   : > { %1372 = vrot.lane.b32.xlu1 %v8963_v15, %s8506_s3  ;;  %1370 = vrot.lane.b32.xlu2 %v8971_v19, %s8506_s3  ;;  %v6675_v38 = vor.u32 %v8197_v7, %v6672_v9  ;;  %v6591_v14 = vor.u32 %v8178_v3, %v6590_v62  ;;  %v8183_v29 = vld [vmem:[%s12519_s4 + $0xf4] sm:$0xf]  ;;  %v6680_v32 = vld [vmem:[%s12519_s4 + $0x178] sm:$0xf0]  ;;  %s8512_s20 = smov (%p1134_p1), 124   ;;  %vm4028_vm9 = vcmask (%p1134_p1), 523264  }
 0x28b   : > { %6828 = vmatmul.msk.bf16.vlgmr.msra.gmra.mxu3 %vm1386_vm6, %v6767_v30  ;;  %v6616_v30 = vld [vmem:[%s12519_s4 + $0xf8] sm:$0xf0]  ;;  %v8199_v31 = vld [vmem:[%s12519_s4 + $0x174] sm:$0xf]  ;;  %v8180_v39 = vld [vmem:[%s12519_s4 + $0xd4] sm:$0xf0] }
 0x28c   : > { %v8173_v27 = vld [vmem:[%s12519_s4 + $0xa4] sm:$0xf]  ;;  %v6812_v56 = vld [vmem:[%s12519_s4 + $0xa8] sm:$0xf0]  ;;  %v8175_v52 = vld [vmem:[%s12519_s4 + $0xb4] sm:$0xf] }
 0x28d   : > { %v6815_v37 = vor.u32 %v8173_v27, %v6812_v56  ;;  %v8185_v40 = vld [vmem:[%s12519_s4 + $0x104] sm:$0xf]  ;;  %v6632_v54 = vld [vmem:[%s12519_s4 + $0x118] sm:$0xf0]  ;;  %v6738_v57 = vld [vmem:[%s12519_s4 + $0x10] sm:$0xf] }
 0x28e   : > { %1374 = vrot.lane.b32.xlu0 %v8959_v13, %s8506_s3  ;;  %v8189_v23 = vld [vmem:[%s12519_s4 + $0x124] sm:$0xf]  ;;  %v6622_v8 = vld [vmem:[%s12519_s4 + $0x100] sm:$0xf]  ;;  %v8186_v7 = vld [vmem:[%s12519_s4 + $0x104] sm:$0xf0] }
 0x28f   :  { %vm6179_vm10 = vcmask (%p1134_p1), 261120   ;;  %vm6203_vm11 = vcmask (%p1134_p1), 1024  }
 0x292   : > { %1368 = vrot.lane.b32.xlu1 %v8982_v21, %s8506_s3  ;;  %1999 = vrot.lane.b32.xlu2 %v8982_v21, %s8505_s2 }
 0x296   : > { %2001 = vrot.lane.b32.xlu0 %v8971_v19, %s8505_s2 }
 0x29a   : > { %1997 = vrot.lane.b32.xlu1 %v8988_v22, %s8505_s2  ;;  %1364 = vrot.lane.b32.xlu2 %v8991_v24, %s8506_s3 }
 0x29b   : > { %6829 = vmatmul.msk.bf16.gmra.mxu3 %vm1386_vm6, %v6775_v33  ;;  %v6619_v33 = vor.u32 %v8183_v29, %v6616_v30  ;;  %v6648_v29 = vld [vmem:[%s12519_s4 + $0x138] sm:$0xf0] }
 0x29e   : > { %1366 = vrot.lane.b32.xlu0 %v8988_v22, %s8506_s3 }
 0x2a2   : > { %2007 = vrot.lane.b32.xlu1 %v8967_v18, %s8505_s2  ;;  %1362 = vrot.lane.b32.xlu2 %v8997_v25, %s8506_s3 }
 0x2a6   : > { %1995 = vrot.lane.b32.xlu0 %v8991_v24, %s8505_s2 }
 0x2aa   : > { %1360 = vrot.lane.b32.xlu1 %v9003_v26, %s8506_s3  ;;  %1991 = vrot.lane.b32.xlu2 %v9003_v26, %s8505_s2 }
 0x2ab   : > { %6830 = vmatmul.msk.bf16.gmra.mxu3 %vm1386_vm6, %v6783_v41  ;;  %v6624_v41 = vld [vmem:[%s12519_s4 + $0x108] sm:$0xf0] }
 0x2ae   : > { %1993 = vrot.lane.b32.xlu0 %v8997_v25, %s8505_s2 }
 0x2b2   : > { %2725 = vrot.lane.b32.xlu1 %v8959_v13, %s8507_s24  ;;  %2363 = vrot.lane.b32.xlu2 %v8963_v15, %s8508_s23 }
 0x2b6   : > { %2365 = vrot.lane.b32.xlu0 %v8959_v13, %s8508_s23 }
 0x2ba   : > { %2361 = vrot.lane.b32.xlu1 %v8971_v19, %s8508_s23  ;;  %2721 = vrot.lane.b32.xlu2 %v8971_v19, %s8507_s24 }
 0x2bb   : > { %6831 = vmatmul.msk.bf16.gmra.mxu3 %vm1386_vm6, %v6791_v44 }
 0x2be   : > { %2723 = vrot.lane.b32.xlu0 %v8963_v15, %s8507_s24 }
 0x2c2   : > { %2719 = vrot.lane.b32.xlu1 %v8982_v21, %s8507_s24  ;;  %2357 = vrot.lane.b32.xlu2 %v8988_v22, %s8508_s23 }
 0x2c6   : > { %2359 = vrot.lane.b32.xlu0 %v8982_v21, %s8508_s23 }
 0x2ca   : > { %2355 = vrot.lane.b32.xlu1 %v8991_v24, %s8508_s23  ;;  %2367 = vrot.lane.b32.xlu2 %v8967_v18, %s8508_s23 }
 0x2cb   : > { %6832 = vmatmul.msk.bf16.gmra.mxu3 %vm1386_vm6, %v6799_v43  ;;  %v6640_v43 = vld [vmem:[%s12519_s4 + $0x128] sm:$0xf0] }
 0x2ce   : > { %2717 = vrot.lane.b32.xlu0 %v8988_v22, %s8507_s24 }
 0x2d2   : > { %2727 = vrot.lane.b32.xlu1 %v8967_v18, %s8507_s24  ;;  %2353 = vrot.lane.b32.xlu2 %v8997_v25, %s8508_s23 }
 0x2d6   : > { %2715 = vrot.lane.b32.xlu0 %v8991_v24, %s8507_s24 }
 0x2da   : > { %2351 = vrot.lane.b32.xlu1 %v9003_v26, %s8508_s23  ;;  %2711 = vrot.lane.b32.xlu2 %v9003_v26, %s8507_s24 }
 0x2dc   : > { %v2004_v34 = vpop.permute.xlu2 %2003 }
 0x2de   : > { %2713 = vrot.lane.b32.xlu0 %v8997_v25, %s8507_s24 }
 0x2e2   : > { %3445 = vrot.lane.b32.xlu1 %v8959_v13, %s8510_s29  ;;  %3083 = vrot.lane.b32.xlu2 %v8963_v15, %s8509_s28 }
 0x2e4   : > { %v1371_v6 = vpop.permute.xlu2 %1370 }
 0x2e6   : > { %3085 = vrot.lane.b32.xlu0 %v8959_v13, %s8509_s28 }
 0x2ea   : > { %3081 = vrot.lane.b32.xlu1 %v8971_v19, %s8509_s28  ;;  %3441 = vrot.lane.b32.xlu2 %v8971_v19, %s8510_s29 }
 0x2ec   : > { %v2000_v0 = vpop.permute.xlu2 %1999 }
 0x2ee   : > { %3443 = vrot.lane.b32.xlu0 %v8963_v15, %s8510_s29 }
 0x2f2   : > { %3439 = vrot.lane.b32.xlu1 %v8982_v21, %s8510_s29  ;;  %3077 = vrot.lane.b32.xlu2 %v8988_v22, %s8509_s28 }
 0x2f4   : > { %v2006_v36 = vpop.permute.xlu1 %2005  ;;  %v1365_v63 = vpop.permute.xlu2 %1364 }
 0x2f6   : > { %3079 = vrot.lane.b32.xlu0 %v8982_v21, %s8509_s28 }
 0x2f8   : > { %v1377_v42 = vpop.permute.xlu0 %1376 }
 0x2f9   : > { %v1425_v45 = vsel %vm1098_vm3, %v1377_v42, 0  ;;  %v6730_v42 = vld [vmem:[%s12519_s4] sm:$0xf] }
 0x2fa   : > { %1503 = vmatpush.bf16.msra.mxu1 %v1425_v45  ;;  %8411 = vmatpush.bf16.msra.mxu2 %v1425_v45  ;;  %v6627_v45 = vor.u32 %v8185_v40, %v6624_v41  ;;  %v8205_v40 = vld [vmem:[%s12519_s4 + $0x1a4] sm:$0xf] }
 0x2fb   : > { %3075 = vrot.lane.b32.xlu1 %v8991_v24, %s8509_s28  ;;  %3087 = vrot.lane.b32.xlu2 %v8967_v18, %s8509_s28 }
 0x2fc   : > { %v1373_v12 = vpop.permute.xlu1 %1372  ;;  %v1363_v4 = vpop.permute.xlu2 %1362 }
 0x2fd   : > { %6716 = vmatmul.msk.bf16.vlgmr.msra.gmra.mxu1 %vm1386_vm6, %v6595_v46  ;;  %6724 = vmatmul.msk.bf16.vlgmr.msra.gmra.mxu2 %vm1386_vm6, %v6659_v50  ;;  %v6606_v50 = vld [vmem:[%s12519_s4 + $0xe0] sm:$0xf] }
 0x2fe   : > { %2056 = vmatpush.bf16.msrb.mxu1 %v2006_v36  ;;  %1720 = vmatpush.bf16.msrb.mxu2 %v8959_v13  ;;  %v6598_v36 = vld [vmem:[%s12519_s4 + $0xd0] sm:$0xf]  ;;  %v8156_v13 = vld [vmem:[%s12519_s4 + $0x14] sm:$0xf0] }
 0x2ff   : > { %v6599_v49 = vor.u32 %v8180_v39, %v6598_v36  ;;  %v6739_v59 = vor.u32 %v8156_v13, %v6738_v57  ;;  %3437 = vrot.lane.b32.xlu0 %v8988_v22, %s8510_s29  ;;  %v8188_v36 = vld [vmem:[%s12519_s4 + $0x114] sm:$0xf0] }
 0x300   : > { %v1375_v48 = vpop.permute.xlu0 %1374 }
 0x301   : > { %1427 = vmatpush.bf16.msra.mxu0 %v1375_v48 }
 0x302   : > { %2057 = vmatpush.bf16.msrb.mxu1 %v2004_v34  ;;  %1721 = vmatpush.bf16.msrb.mxu2 %v8963_v15  ;;  %v6683_v34 = vor.u32 %v8199_v31, %v6680_v32  ;;  %v6864_v15 = vld [vmem:[%s12519_s4 + $0x188] sm:$0xf0] }
 0x303   : > { %3447 = vrot.lane.b32.xlu1 %v8967_v18, %s8510_s29  ;;  %3073 = vrot.lane.b32.xlu2 %v8997_v25, %s8509_s28  ;;  %v8160_v18 = vld [vmem:[%s12519_s4 + $0x34] sm:$0xf0] }
 0x304   : > { %v1369_v53 = vpop.permute.xlu1 %1368 }
 0x305   : > { %1428 = vmatpush.bf16.msra.mxu0 %v1373_v12  ;;  %v8182_v12 = vld [vmem:[%s12519_s4 + $0xe4] sm:$0xf0] }
 0x306   : > { %1722 = vmatpush.bf16.msrb.mxu2 %v8971_v19  ;;  %v6607_v48 = vor.u32 %v8182_v12, %v6606_v50 }
 0x307   : > { %3435 = vrot.lane.b32.xlu0 %v8991_v24, %s8510_s29 }
 0x308   : > { %v2002_v60 = vpop.permute.xlu0 %2001 }
 0x309   : > { %1429 = vmatpush.bf16.msra.mxu0 %v1371_v6  ;;  %2058 = vmatpush.bf16.msrb.mxu1 %v2002_v60  ;;  %v8154_v6 = vld [vmem:[%s12519_s4 + $0x4] sm:$0xf0]  ;;  %v6614_v60 = vld [vmem:[%s12519_s4 + $0xf0] sm:$0xf] }
 0x30a   : > { %1723 = vmatpush.bf16.msrb.mxu2 %v8982_v21  ;;  %v6731_v46 = vor.u32 %v8154_v6, %v6730_v42  ;;  %v8158_v21 = vld [vmem:[%s12519_s4 + $0x24] sm:$0xf0]  ;;  %v6862_v42 = vld [vmem:[%s12519_s4 + $0x180] sm:$0xf] }
 0x30b   : > { %3071 = vrot.lane.b32.xlu1 %v9003_v26, %s8509_s28  ;;  %3431 = vrot.lane.b32.xlu2 %v9003_v26, %s8510_s29 }
 0x30c   : > { %v1998_v17 = vpop.permute.xlu1 %1997 }
 0x30d   : > { %1430 = vmatpush.bf16.msra.mxu0 %v1369_v53  ;;  %6717 = vmatmul.msk.bf16.gmra.mxu1 %vm1386_vm6, %v6603_v61  ;;  %v8187_v53 = vld [vmem:[%s12519_s4 + $0x114] sm:$0xf]  ;;  %v8184_v61 = vld [vmem:[%s12519_s4 + $0xf4] sm:$0xf0] }
 0x30e   : > { %1724 = vmatpush.bf16.msrb.mxu2 %v8988_v22  ;;  %2059 = vmatpush.bf16.msrb.mxu1 %v2000_v0  ;;  %v6820_v0 = vld [vmem:[%s12519_s4 + $0xb8] sm:$0xf0]  ;;  %v6635_v58 = vor.u32 %v8187_v53, %v6632_v54  ;;  %v9242_v9 = vpop.f32.mrf.mxu3  ;;  %v8203_v22 = vld [vmem:[%s12519_s4 + $0x194] sm:$0xf] }
 0x30f   : > { %6725 = vmatmul.msk.bf16.gmra.mxu2 %vm1386_vm6, %v6667_v35  ;;  %v6823_v44 = vor.u32 %v8175_v52, %v6820_v0  ;;  %v6615_v35 = vor.u32 %v8184_v61, %v6614_v60  ;;  %3433 = vrot.lane.b32.xlu0 %v8997_v25, %s8510_s29  ;;  %v6638_v52 = vld [vmem:[%s12519_s4 + $0x120] sm:$0xf]  ;;  %v8190_v0 = vld [vmem:[%s12519_s4 + $0x124] sm:$0xf0]  ;;  %v6870_v60 = vld [vmem:[%s12519_s4 + $0x190] sm:$0xf] }
 0x310   : > { %v1367_v1 = vpop.permute.xlu0 %1366  ;;  %v6639_v53 = vor.u32 %v8190_v0, %v6638_v52  ;;  %v8204_v61 = vld [vmem:[%s12519_s4 + $0x194] sm:$0xf0] }
 0x311   : > { %1431 = vmatpush.bf16.msra.mxu0 %v1367_v1  ;;  %v8201_v1 = vld [vmem:[%s12519_s4 + $0x184] sm:$0xf] }
 0x312   : > { %1725 = vmatpush.bf16.msrb.mxu2 %v8991_v24  ;;  %2060 = vmatpush.bf16.msrb.mxu1 %v1998_v17  ;;  %v1992_v17 = vpop.permute.xlu2 %1991  ;;  %v6867_v19 = vor.u32 %v8201_v1, %v6864_v15  ;;  %v6754_v24 = vld [vmem:[%s12519_s4 + $0x30] sm:$0xf]  ;;  %v6871_v15 = vor.u32 %v8204_v61, %v6870_v60  ;;  %v8213_v61 = vld [vmem:[%s12519_s4 + $0x1e4] sm:$0xf] }
 0x314   : > { %v2008_v47 = vpop.permute.xlu1 %2007 }
 0x315   : > { %1432 = vmatpush.bf16.msra.mxu0 %v1365_v63  ;;  %v2054_v55 = vsel %vm1098_vm3, %v2008_v47, 0 }
 0x316   : > { %1726 = vmatpush.bf16.msrb.mxu2 %v8997_v25  ;;  %2132 = vmatpush.bf16.msrb.mxu3 %v2054_v55  ;;  %v6746_v55 = vld [vmem:[%s12519_s4 + $0x20] sm:$0xf]  ;;  %v6880_v25 = vld [vmem:[%s12519_s4 + $0x1a8] sm:$0xf0] }
 0x317   : > { %v6747_v5 = vor.u32 %v8158_v21, %v6746_v55  ;;  %v6883_v41 = vor.u32 %v8205_v40, %v6880_v25  ;;  %v6886_v40 = vld [vmem:[%s12519_s4 + $0x1b0] sm:$0xf]  ;;  %v8208_v25 = vld [vmem:[%s12519_s4 + $0x1b4] sm:$0xf0] }
 0x318   : > { %v1996_v51 = vpop.permute.xlu0 %1995 }
 0x319   : > { %1433 = vmatpush.bf16.msra.mxu0 %v1363_v4  ;;  %2061 = vmatpush.bf16.msrb.mxu1 %v1996_v51  ;;  %v6643_v4 = vor.u32 %v8189_v23, %v6640_v43  ;;  %v6646_v23 = vld [vmem:[%s12519_s4 + $0x130] sm:$0xf]  ;;  %v8192_v43 = vld [vmem:[%s12519_s4 + $0x134] sm:$0xf0] }
 0x31a   : > { %1727 = vmatpush.bf16.msrb.mxu2 %v9003_v26  ;;  %v8202_v26 = vld [vmem:[%s12519_s4 + $0x184] sm:$0xf0]  ;;  %v6647_v55 = vor.u32 %v8192_v43, %v6646_v23 }
 0x31b   : > { %v6863_v12 = vor.u32 %v8202_v26, %v6862_v42  ;;  %v6786_v42 = vld [vmem:[%s12519_s4 + $0x70] sm:$0xf]  ;;  %v8168_v26 = vld [vmem:[%s12519_s4 + $0x74] sm:$0xf0]  ;;  %v8170_v23 = vld [vmem:[%s12519_s4 + $0x84] sm:$0xf0] }
 0x31c   : > { %v1361_v11 = vpop.permute.xlu1 %1360 }
 0x31d   : > { %6718 = vmatmul.msk.bf16.gmra.mxu1 %vm1386_vm6, %v6611_v10  ;;  %1434 = vmatpush.bf16.msra.mxu0 %v1361_v11  ;;  %v2364_v10 = vpop.permute.xlu2 %2363  ;;  %v9251_v11 = vpop.f32.mrf.mxu3 }
 0x31e   : > { %1796 = vmatpush.bf16.msra.mxu2 %v8977_v20  ;;  %v6804_v20 = vld [vmem:[%s12519_s4 + $0x98] sm:$0xf0] }
 0x31f   : > { %6726 = vmatmul.msk.bf16.gmra.mxu2 %vm1386_vm6, %v6675_v38  ;;  %v6807_v28 = vor.u32 %v8171_v16, %v6804_v20  ;;  %v6623_v38 = vor.u32 %v8186_v7, %v6622_v8  ;;  %v6872_v16 = vld [vmem:[%s12519_s4 + $0x198] sm:$0xf0]  ;;  %v8209_v8 = vld [vmem:[%s12519_s4 + $0x1c4] sm:$0xf]  ;;  %v6896_v7 = vld [vmem:[%s12519_s4 + $0x1c8] sm:$0xf0] }
 0x320   : > { %1435 = vmatmul.bf16.vlgmr.msra.gmra.mxu0 %v6591_v14  ;;  %v1994_v63 = vpop.permute.xlu0 %1993  ;;  %v6875_v20 = vor.u32 %v8203_v22, %v6872_v16 }
 0x321   : > { %6833 = vmatmul.msk.bf16.gmra.mxu3 %vm1386_vm6, %v6807_v28  ;;  %2062 = vmatpush.bf16.msrb.mxu1 %v1994_v63  ;;  %v8191_v28 = vld [vmem:[%s12519_s4 + $0x134] sm:$0xf]  ;;  %v6770_v63 = vld [vmem:[%s12519_s4 + $0x50] sm:$0xf] }
 0x322   : > { %v6651_v32 = vor.u32 %v8191_v28, %v6648_v29  ;;  %v6654_v29 = vld [vmem:[%s12519_s4 + $0x140] sm:$0xf] }
 0x324   : > { %v2726_v2 = vpop.permute.xlu1 %2725 }
 0x325   : > { %2063 = vmatpush.bf16.msrb.mxu1 %v1992_v17  ;;  %v2722_v14 = vpop.permute.xlu2 %2721  ;;  %v9284_v39 = vpop.f32.mrf.mxu3  ;;  %v8164_v17 = vld [vmem:[%s12519_s4 + $0x54] sm:$0xf0] }
 0x328   : > { %v2366_v47 = vpop.permute.xlu0 %2365 }
 0x329   : > { %2776 = vmatpush.bf16.msra.mxu1 %v2726_v2  ;;  %2416 = vmatpush.bf16.msrb.mxu0 %v2366_v47 }
 0x32c   : > { %v2362_v3 = vpop.permute.xlu1 %2361 }
 0x32d   : > { %6719 = vmatmul.msk.bf16.gmra.mxu1 %vm1386_vm6, %v6619_v33  ;;  %2417 = vmatpush.bf16.msrb.mxu0 %v2364_v10  ;;  %v6755_v33 = vor.u32 %v8160_v18, %v6754_v24  ;;  %v6878_v10 = vld [vmem:[%s12519_s4 + $0x1a0] sm:$0xf] }
 0x32f   : > { %6727 = vmatmul.msk.bf16.gmra.mxu2 %vm1386_vm6, %v6683_v34  ;;  %v6630_v34 = vld [vmem:[%s12519_s4 + $0x110] sm:$0xf] }
 0x330   : > { %1440 = vmatmul.bf16.gmra.mxu0 %v6599_v49  ;;  %v2724_v62 = vpop.permute.xlu0 %2723  ;;  %v2358_v49 = vpop.permute.xlu2 %2357  ;;  %v6631_v27 = vor.u32 %v8188_v36, %v6630_v34 }
 0x331   : > { %6834 = vmatmul.msk.bf16.gmra.mxu3 %vm1386_vm6, %v6815_v37  ;;  %2418 = vmatpush.bf16.msrb.mxu0 %v2362_v3  ;;  %v9293_v37 = vpop.f32.mrf.mxu3  ;;  %v6778_v3 = vld [vmem:[%s12519_s4 + $0x60] sm:$0xf] }
 0x332   : > { %2777 = vmatpush.bf16.msra.mxu1 %v2724_v62  ;;  %v6899_v62 = vor.u32 %v8209_v8, %v6896_v7 }
 0x334   : > { %v2720_v31 = vpop.permute.xlu1 %2719 }
 0x336   : > { %2778 = vmatpush.bf16.msra.mxu1 %v2722_v14  ;;  %v8166_v14 = vld [vmem:[%s12519_s4 + $0x64] sm:$0xf0] }
 0x337   : > { %v6779_v28 = vor.u32 %v8166_v14, %v6778_v3 }
 0x338   : > { %v2360_v30 = vpop.permute.xlu0 %2359 }
 0x339   : > { %2419 = vmatpush.bf16.msrb.mxu0 %v2360_v30  ;;  %v8194_v30 = vld [vmem:[%s12519_s4 + $0x144] sm:$0xf0] }
 0x33a   : > { %2779 = vmatpush.bf16.msra.mxu1 %v2720_v31  ;;  %v6655_v24 = vor.u32 %v8194_v30, %v6654_v29 }
 0x33c   : > { %v2356_v56 = vpop.permute.xlu1 %2355 }
 0x33d   : > { %6720 = vmatmul.msk.bf16.gmra.mxu1 %vm1386_vm6, %v6627_v45  ;;  %2420 = vmatpush.bf16.msrb.mxu0 %v2358_v49  ;;  %v6762_v45 = vld [vmem:[%s12519_s4 + $0x40] sm:$0xf]  ;;  %v8211_v49 = vld [vmem:[%s12519_s4 + $0x1d4] sm:$0xf] }
 0x33f   : > { %1728 = vmatmul.bf16.vlgmr.msrb.gmra.mxu2 %v6731_v46  ;;  %v8162_v46 = vld [vmem:[%s12519_s4 + $0x44] sm:$0xf0] }
 0x340   : > { %1445 = vmatmul.bf16.gmra.mxu0 %v6607_v48  ;;  %v6763_v51 = vor.u32 %v8162_v46, %v6762_v45  ;;  %v6887_v45 = vor.u32 %v8208_v25, %v6886_v40  ;;  %v6802_v25 = vld [vmem:[%s12519_s4 + $0x90] sm:$0xf] }
 0x341   : > { %6835 = vmatmul.msk.bf16.gmra.mxu3 %vm1386_vm6, %v6823_v44  ;;  %2421 = vmatpush.bf16.msrb.mxu0 %v2356_v56  ;;  %v9321_v44 = vpop.f32.mrf.mxu3 }
 0x344   : > { %v2728_v6 = vpop.permute.xlu1 %2727 }
 0x345   : > { %v2774_v50 = vsel %vm1098_vm3, %v2728_v6, 0 }
 0x346   : > { %2852 = vmatpush.bf16.msra.mxu3 %v2774_v50  ;;  %v6787_v50 = vor.u32 %v8168_v26, %v6786_v42 }
 0x349   : > { %v9327_v13 = vpop.f32.mrf.mxu3 }
 0x34d   : > { %6721 = vmatmul.msk.bf16.gmra.mxu1 %vm1386_vm6, %v6635_v58  ;;  %v8207_v58 = vld [vmem:[%s12519_s4 + $0x1b4] sm:$0xf] }
 0x34f   : > { %1733 = vmatmul.bf16.gmra.mxu2 %v6739_v59  ;;  %v6888_v59 = vld [vmem:[%s12519_s4 + $0x1b8] sm:$0xf0] }
 0x350   : > { %1450 = vmatmul.bf16.gmra.mxu0 %v6615_v35  ;;  %v6891_v35 = vor.u32 %v8207_v58, %v6888_v59 }
 0x351   : > { %6956 = vmatmul.msk.bf16.vlgmr.msrb.gmra.mxu3 %vm1386_vm6, %v6867_v19  ;;  %v6771_v19 = vor.u32 %v8164_v17, %v6770_v63  ;;  %v9356_v47 = vpop.f32.mrf.mxu3  ;;  %v6894_v17 = vld [vmem:[%s12519_s4 + $0x1c0] sm:$0xf] }
 0x35d   : > { %6722 = vmatmul.msk.bf16.gmra.mxu1 %vm1386_vm6, %v6643_v4 }
 0x35f   : > { %1738 = vmatmul.bf16.gmra.mxu2 %v6747_v5  ;;  %v9362_v5 = vpop.f32.mrf.mxu3 }
 0x360   : > { %1455 = vmatmul.bf16.gmra.mxu0 %v6623_v38  ;;  %v8206_v38 = vld [vmem:[%s12519_s4 + $0x1a4] sm:$0xf0] }
 0x361   : > { %6957 = vmatmul.msk.bf16.gmra.mxu3 %vm1386_vm6, %v6875_v20  ;;  %v6879_v16 = vor.u32 %v8206_v38, %v6878_v10  ;;  %v6670_v10 = vld [vmem:[%s12519_s4 + $0x160] sm:$0xf]  ;;  %v8198_v38 = vld [vmem:[%s12519_s4 + $0x164] sm:$0xf0] }
 0x362   : > { %v6671_v3 = vor.u32 %v8198_v38, %v6670_v10  ;;  %v6810_v38 = vld [vmem:[%s12519_s4 + $0xa0] sm:$0xf] }
 0x367   : > { %v9391_v31 = vpop.f32.mrf.mxu3 }
 0x36d   : > { %6723 = vmatmul.msk.bf16.gmra.mxu1 %vm1386_vm6, %v6651_v32 }
 0x36f   : > { %1743 = vmatmul.bf16.gmra.mxu2 %v6755_v33  ;;  %v9397_v36 = vpop.f32.mrf.mxu3 }
 0x370   : > { %1460 = vmatmul.bf16.gmra.mxu0 %v6631_v27  ;;  %v6904_v27 = vld [vmem:[%s12519_s4 + $0x1d8] sm:$0xf0] }
 0x371   : > { %6958 = vmatmul.msk.bf16.gmra.mxu3 %vm1386_vm6, %v6883_v41  ;;  %v6907_v41 = vor.u32 %v8211_v49, %v6904_v27  ;;  %v6920_v49 = vld [vmem:[%s12519_s4 + $0x1f8] sm:$0xf0] }
 0x37a   : > { %v1505_v48 = vpop.f32.mrf.mxu1 }
 0x37d   : > { %2064 = vmatmul.bf16.vlgmr.msrb.gmra.mxu1 %v6863_v12  ;;  %v6662_v12 = vld [vmem:[%s12519_s4 + $0x150] sm:$0xf] }
 0x37f   : > { %1748 = vmatmul.bf16.gmra.mxu2 %v6763_v51 }
 0x380   : > { %v9323_v54 = vpop.f32.mrf.mxu2  ;;  %1465 = vmatmul.bf16.gmra.mxu0 %v6639_v53 }
 0x381   : > { %6959 = vmatmul.msk.bf16.gmra.mxu3 %vm1386_vm6, %v6891_v35  ;;  %v6912_v35 = vld [vmem:[%s12519_s4 + $0x1e8] sm:$0xf0] }
 0x382   : > { %v9325_v57 = vpop.f32.mrf.mxu1 }
 0x388   : > { %v9347_v1 = vpop.f32.mrf.mxu2 }
 0x38a   : > { %v1510_v2 = vpop.f32.mrf.mxu1 }
 0x38d   : > { %2069 = vmatmul.bf16.gmra.mxu1 %v6871_v15  ;;  %v8210_v15 = vld [vmem:[%s12519_s4 + $0x1c4] sm:$0xf0] }
 0x38f   : > { %1753 = vmatmul.bf16.gmra.mxu2 %v6771_v19  ;;  %v6794_v19 = vld [vmem:[%s12519_s4 + $0x80] sm:$0xf] }
 0x390   : > { %1470 = vmatmul.bf16.gmra.mxu0 %v6647_v55  ;;  %v6895_v55 = vor.u32 %v8210_v15, %v6894_v17  ;;  %v6795_v7 = vor.u32 %v8170_v23, %v6794_v19  ;;  %v8217_v23 = vld [vmem:[%s12519_s4 + $0x204] sm:$0xf] }
 0x391   : > { %6960 = vmatmul.msk.bf16.gmra.mxu3 %vm1386_vm6, %v6899_v62 }
 0x392   : > { %v9358_v21 = vpop.f32.mrf.mxu2  ;;  %v9360_v4 = vpop.f32.mrf.mxu1 }
 0x39a   : > { %v9383_v22 = vpop.f32.mrf.mxu2  ;;  %v1515_v20 = vpop.f32.mrf.mxu1 }
 0x39d   : > { %2074 = vmatmul.bf16.gmra.mxu1 %v6879_v16  ;;  %v1436_v18 = vpop.f32.mrf.mxu0 }
 0x39e   : > { %v1506_v32 = vadd.f32 %v1505_v48, %v1436_v18  ;;  %v8196_v48 = vld [vmem:[%s12519_s4 + $0x154] sm:$0xf0]  ;;  %v8215_v18 = vld [vmem:[%s12519_s4 + $0x1f4] sm:$0xf] }
 0x39f   : > { %1758 = vmatmul.bf16.gmra.mxu2 %v6779_v28  ;;  %v6663_v52 = vor.u32 %v8196_v48, %v6662_v12  ;;  %v6923_v40 = vor.u32 %v8215_v18, %v6920_v49 }
 0x3a0   : > { %1475 = vmatmul.bf16.gmra.mxu0 %v6655_v24 }
 0x3a1   : > { %6961 = vmatmul.msk.bf16.gmra.mxu3 %vm1386_vm6, %v6907_v41  ;;  %v8172_v41 = vld [vmem:[%s12519_s4 + $0x94] sm:$0xf0] }
 0x3a2   : > { %v9393_v33 = vpop.f32.mrf.mxu2  ;;  %v9395_v34 = vpop.f32.mrf.mxu1  ;;  %v6803_v48 = vor.u32 %v8172_v41, %v6802_v25 }
 0x3a3   : > { %v2718_v25 = vpop.permute.xlu0 %2717 }
 0x3a4   : > { %v9426_v51 = vpop.f32.mrf.mxu3  ;;  %2780 = vmatpush.bf16.msra.mxu1 %v2718_v25 }
 0x3a5   : > { %v1438_v56 = vpop.f32.mrf.mxu0 }
 0x3a6   : > { %v1508_v42 = vadd.f32 %v9325_v57, %v1438_v56 }
 0x3aa   : > { %v9418_v6 = vpop.f32.mrf.mxu2  ;;  %v1520_v46 = vpop.f32.mrf.mxu1 }
 0x3ac   : > { %v9432_v60 = vpop.f32.mrf.mxu3 }
 0x3ad   : > { %2079 = vmatmul.bf16.gmra.mxu1 %v6887_v45  ;;  %v1441_v0 = vpop.f32.mrf.mxu0 }
 0x3ae   : > { %v1511_v53 = vadd.f32 %v1510_v2, %v1441_v0  ;;  %v6915_v2 = vor.u32 %v8213_v61, %v6912_v35  ;;  %v8200_v0 = vld [vmem:[%s12519_s4 + $0x174] sm:$0xf0] }
 0x3af   : > { %1763 = vmatmul.bf16.gmra.mxu2 %v6787_v50 }
 0x3b0   : > { %1480 = vmatmul.bf16.gmra.mxu0 %v6663_v52  ;;  %v6678_v52 = vld [vmem:[%s12519_s4 + $0x170] sm:$0xf] }
 0x3b1   : > { %6962 = vmatmul.msk.bf16.gmra.mxu3 %vm1386_vm6, %v6915_v2  ;;  %v6679_v57 = vor.u32 %v8200_v0, %v6678_v52  ;;  %v6936_v52 = vld [vmem:[%s12519_s4 + $0x218] sm:$0xf0] }
 0x3b2   : > { %v9428_v58 = vpop.f32.mrf.mxu2  ;;  %v9430_v59 = vpop.f32.mrf.mxu1 }
 0x3b4   : > { %v9463_v62 = vpop.f32.mrf.mxu3 }
 0x3b5   : > { %v1443_v63 = vpop.f32.mrf.mxu0 }
 0x3ba   : > { %v9453_v43 = vpop.f32.mrf.mxu2  ;;  %v9455_v8 = vpop.f32.mrf.mxu1 }
 0x3bb   : > { %12540 = vst [vmem:[#allocation4_spill] sm:$0xff] %v9453_v43 }
 0x3bc   : > { %v9469_v24 = vpop.f32.mrf.mxu3 }
 0x3bd   : > { %2084 = vmatmul.bf16.gmra.mxu1 %v6895_v55  ;;  %v1446_v14 = vpop.f32.mrf.mxu0  ;;  %v6928_v55 = vld [vmem:[%s12519_s4 + $0x208] sm:$0xf0] }
 0x3be   : > { %v1516_v16 = vadd.f32 %v1515_v20, %v1446_v14  ;;  %v6902_v20 = vld [vmem:[%s12519_s4 + $0x1d0] sm:$0xf]  ;;  %v6931_v10 = vor.u32 %v8217_v23, %v6928_v55  ;;  %v1513_v14 = vadd.f32 %v9360_v4, %v1443_v63 }
 0x3bf   : > { %1768 = vmatmul.bf16.gmra.mxu2 %v6795_v7 }
 0x3c0   : > { %1485 = vmatmul.bf16.gmra.mxu0 %v6671_v3  ;;  %v8174_v3 = vld [vmem:[%s12519_s4 + $0xa4] sm:$0xf0] }
 0x3c1   : > { %6963 = vmatmul.msk.bf16.gmra.mxu3 %vm1386_vm6, %v6923_v40 }
 0x3c2   : > { %v1729_v28 = vpop.f32.mrf.mxu2  ;;  %v9467_v30 = vpop.f32.mrf.mxu1 }
 0x3c3   : > { %v9465_v29 = vadd.f32 %v1729_v28, %v1506_v32  ;;  %v8212_v32 = vld [vmem:[%s12519_s4 + $0x1d4] sm:$0xf0] }
 0x3c4   : > { %v6903_v45 = vor.u32 %v8212_v32, %v6902_v20  ;;  %v9499_v61 = vpop.f32.mrf.mxu3  ;;  %v6811_v32 = vor.u32 %v8174_v3, %v6810_v38 }
 0x3c5   : > { %v1448_v27 = vpop.f32.mrf.mxu0 }
 0x3c6   : > { %v1518_v23 = vadd.f32 %v9395_v34, %v1448_v27  ;;  %v2368_v27 = vpop.permute.xlu2 %2367 }
 0x3ca   : > { %v1731_v26 = vpop.f32.mrf.mxu2  ;;  %v1530_v12 = vpop.f32.mrf.mxu1 }
 0x3cb   : > { %v9491_v50 = vadd.f32 %v1731_v26, %v1508_v42 }
 0x3cc   : > { %v9505_v19 = vpop.f32.mrf.mxu3 }
 0x3cd   : > { %2089 = vmatmul.bf16.gmra.mxu1 %v6903_v45  ;;  %v1451_v56 = vpop.f32.mrf.mxu0  ;;  %12541 = vst [vmem:[#allocation5_spill] sm:$0xff] %v9505_v19 }
 0x3ce   : > { %v1521_v35 = vadd.f32 %v1520_v46, %v1451_v56  ;;  %v6910_v46 = vld [vmem:[%s12519_s4 + $0x1e0] sm:$0xf]  ;;  %v6818_v56 = vld [vmem:[%s12519_s4 + $0xb0] sm:$0xf] }
 0x3cf   : > { %1773 = vmatmul.bf16.gmra.mxu2 %v6803_v48  ;;  %v8219_v48 = vld [vmem:[%s12519_s4 + $0x214] sm:$0xf] }
 0x3d0   : > { %1490 = vmatmul.bf16.gmra.mxu0 %v6679_v57  ;;  %v6918_v57 = vld [vmem:[%s12519_s4 + $0x1f0] sm:$0xf] }
 0x3d1   : > { %6964 = vmatmul.msk.bf16.gmra.mxu3 %vm1386_vm6, %v6931_v10 }
 0x3d2   : > { %v1734_v17 = vpop.f32.mrf.mxu2  ;;  %v9503_v2 = vpop.f32.mrf.mxu1 }
 0x3d3   : > { %v9501_v15 = vadd.f32 %v1734_v17, %v1511_v53  ;;  %v8214_v53 = vld [vmem:[%s12519_s4 + $0x1e4] sm:$0xf0]  ;;  %v8176_v17 = vld [vmem:[%s12519_s4 + $0xb4] sm:$0xf0] }
 0x3d4   : > { %v6911_v18 = vor.u32 %v8214_v53, %v6910_v46  ;;  %v2134_v40 = vpop.f32.mrf.mxu3  ;;  %v6819_v38 = vor.u32 %v8176_v17, %v6818_v56  ;;  %v6732_v56 = vld [vmem:[%s12519_s4 + $0x8] sm:$0xf0] }
 0x3d5   : > { %v1453_v7 = vpop.f32.mrf.mxu0 }
 0x3d6   : > { %v1523_v17 = vadd.f32 %v9430_v59, %v1453_v7 }
 0x3da   : > { %v1736_v28 = vpop.f32.mrf.mxu2  ;;  %v1535_v20 = vpop.f32.mrf.mxu1 }
 0x3db   : > { %v9527_v49 = vadd.f32 %v1736_v28, %v1513_v14 }
 0x3dc   : > { %v2136_v63 = vpop.f32.mrf.mxu3 }
 0x3dd   : > { %2094 = vmatmul.bf16.gmra.mxu1 %v6911_v18  ;;  %v1456_v41 = vpop.f32.mrf.mxu0 }
 0x3de   : > { %v1526_v42 = vadd.f32 %v9455_v8, %v1456_v41  ;;  %v8216_v8 = vld [vmem:[%s12519_s4 + $0x1f4] sm:$0xf0]  ;;  %v2716_v41 = vpop.permute.xlu0 %2715 }
 0x3df   : > { %1778 = vmatmul.bf16.gmra.mxu2 %v6811_v32  ;;  %v6919_v46 = vor.u32 %v8216_v8, %v6918_v57  ;;  %2781 = vmatpush.bf16.msra.mxu1 %v2716_v41  ;;  %v8218_v57 = vld [vmem:[%s12519_s4 + $0x204] sm:$0xf0] }
 0x3e2   : > { %v1739_v26 = vpop.f32.mrf.mxu2  ;;  %v9532_v4 = vpop.f32.mrf.mxu1 }
 0x3e3   : > { %v9530_v45 = vadd.f32 %v1739_v26, %v1516_v16  ;;  %v6939_v16 = vor.u32 %v8219_v48, %v6936_v52  ;;  %v2414_v26 = vsel %vm1098_vm3, %v2368_v27, 0  ;;  %v8221_v48 = vld [vmem:[%s12519_s4 + $0x224] sm:$0xf] }
 0x3e4   : > { %v2139_v3 = vpop.f32.mrf.mxu3  ;;  %2492 = vmatpush.bf16.msrb.mxu2 %v2414_v26 }
 0x3e5   : > { %v1458_v0 = vpop.f32.mrf.mxu0  ;;  %6965 = vmatmul.msk.bf16.gmra.mxu3 %vm1386_vm6, %v6939_v16  ;;  %v8153_v16 = vld [vmem:[%s12519_s4 + $0x4] sm:$0xf] }
 0x3ea   : > { %v1741_v55 = vpop.f32.mrf.mxu2  ;;  %v9556_v10 = vpop.f32.mrf.mxu1 }
 0x3eb   : > { %v9554_v53 = vadd.f32 %v1741_v55, %v1518_v23 }
 0x3ec   : > { %v2141_v34 = vpop.f32.mrf.mxu3 }
 0x3ed   : > { %2099 = vmatmul.bf16.gmra.mxu1 %v6919_v46  ;;  %v1461_v14 = vpop.f32.mrf.mxu0 }
 0x3ee   : > { %v9558_v28 = vadd.f32 %v1530_v12, %v1461_v14  ;;  %v6944_v12 = vld [vmem:[%s12519_s4 + $0x228] sm:$0xf0]  ;;  %v6735_v14 = vor.u32 %v8153_v16, %v6732_v56  ;;  %v8155_v16 = vld [vmem:[%s12519_s4 + $0x14] sm:$0xf]  ;;  %v6740_v56 = vld [vmem:[%s12519_s4 + $0x18] sm:$0xf0] }
 0x3ef   : > { %1783 = vmatmul.bf16.gmra.mxu2 %v6819_v38  ;;  %v6947_v8 = vor.u32 %v8221_v48, %v6944_v12 }
 0x3f2   : > { %v1744_v18 = vpop.f32.mrf.mxu2  ;;  %v9562_v25 = vpop.f32.mrf.mxu1 }
 0x3f3   : > { %v9560_v32 = vadd.f32 %v1744_v18, %v1521_v35  ;;  %v6926_v35 = vld [vmem:[%s12519_s4 + $0x200] sm:$0xf] }
 0x3f4   : > { %v6927_v55 = vor.u32 %v8218_v57, %v6926_v35  ;;  %v9591_v27 = vpop.f32.mrf.mxu3  ;;  %v6952_v57 = vld [vmem:[%s12519_s4 + $0x238] sm:$0xf0] }
 0x3f5   : > { %12542 = vst [vmem:[#allocation6_spill] sm:$0xff] %v9560_v32  ;;  %v9571_v52 = vpop.f32.mrf.mxu0  ;;  %6966 = vmatmul.msk.bf16.gmra.mxu3 %vm1386_vm6, %v6947_v8 }
 0x3fa   : > { %v1746_v23 = vpop.f32.mrf.mxu2  ;;  %v2065_v38 = vpop.f32.mrf.mxu1 }
 0x3fb   : > { %v9587_v46 = vadd.f32 %v1746_v23, %v1523_v17  ;;  %v9589_v18 = vadd.f32 %v2134_v40, %v2065_v38  ;;  %v8223_v40 = vld [vmem:[%s12519_s4 + $0x234] sm:$0xf]  ;;  %v1528_v17 = vadd.f32 %v9467_v30, %v1458_v0  ;;  %v2352_v30 = vpop.permute.xlu1 %2351 }
 0x3fc   : > { %v9600_v35 = vpop.f32.mrf.mxu3 }
 0x3fd   : > { %12543 = vst [vmem:[#allocation7_spill] sm:$0xff] %v9587_v46  ;;  %2104 = vmatmul.bf16.gmra.mxu1 %v6927_v55  ;;  %v1466_v41 = vpop.f32.mrf.mxu0 }
 0x3fe   : > { %v9594_v26 = vadd.f32 %v1535_v20, %v1466_v41  ;;  %v6934_v20 = vld [vmem:[%s12519_s4 + $0x210] sm:$0xf]  ;;  %v6743_v41 = vor.u32 %v8155_v16, %v6740_v56 }
 0x3ff   : > { %6824 = vmatmul.msk.bf16.vlgmr.msra.gmra.mxu2 %vm1386_vm6, %v6735_v14 }
 0x402   : > { %v1749_v48 = vpop.f32.mrf.mxu2  ;;  %v2067_v7 = vpop.f32.mrf.mxu1 }
 0x403   : > { %v9596_v59 = vadd.f32 %v1749_v48, %v1526_v42  ;;  %v9598_v12 = vadd.f32 %v2136_v63, %v2067_v7  ;;  %v8220_v42 = vld [vmem:[%s12519_s4 + $0x214] sm:$0xf0]  ;;  %v6955_v63 = vor.u32 %v8223_v40, %v6952_v57  ;;  %v2354_v40 = vpop.permute.xlu2 %2353  ;;  %v2714_v57 = vpop.permute.xlu0 %2713 }
 0x404   : > { %v6935_v55 = vor.u32 %v8220_v42, %v6934_v20  ;;  %v9628_v7 = vpop.f32.mrf.mxu3  ;;  %2422 = vmatpush.bf16.msrb.mxu0 %v2354_v40  ;;  %2782 = vmatpush.bf16.msra.mxu1 %v2714_v57  ;;  %v1533_v40 = vadd.f32 %v9503_v2, %v9571_v52 }
 0x405   : > { %v9608_v8 = vpop.f32.mrf.mxu0  ;;  %6967 = vmatmul.msk.bf16.gmra.mxu3 %vm1386_vm6, %v6955_v63 }
 0x408   : > { %2423 = vmatpush.bf16.msrb.mxu0 %v2352_v30 }
 0x40a   : > { %v1751_v23 = vpop.f32.mrf.mxu2  ;;  %v2070_v14 = vpop.f32.mrf.mxu1 }
 0x40b   : > { %v9624_v38 = vadd.f32 %v1751_v23, %v1528_v17  ;;  %v9626_v48 = vadd.f32 %v2139_v3, %v2070_v14  ;;  %v2712_v56 = vpop.permute.xlu2 %2711  ;;  %v3086_v17 = vpop.permute.xlu0 %3085  ;;  %v8249_v23 = vld [vmem:[%s12519_s4 + $0x304] sm:$0xf] }
 0x40c   : > { %v9639_v16 = vpop.f32.mrf.mxu3  ;;  %2783 = vmatpush.bf16.msra.mxu1 %v2712_v56  ;;  %3136 = vmatpush.bf16.msra.mxu0 %v3086_v17  ;;  %v8157_v14 = vld [vmem:[%s12519_s4 + $0x24] sm:$0xf] }
 0x40d   : > { %2109 = vmatmul.bf16.gmra.mxu1 %v6935_v55  ;;  %v1471_v46 = vpop.f32.mrf.mxu0 }
 0x40e   : > { %v9632_v0 = vadd.f32 %v9556_v10, %v1471_v46  ;;  %v7128_v10 = vld [vmem:[%s12519_s4 + $0x308] sm:$0xf0]  ;;  %v3446_v46 = vpop.permute.xlu1 %3445 }
 0x40f   : > { %6825 = vmatmul.msk.bf16.gmra.mxu2 %vm1386_vm6, %v6743_v41  ;;  %v7131_v55 = vor.u32 %v8249_v23, %v7128_v10  ;;  %v6748_v41 = vld [vmem:[%s12519_s4 + $0x28] sm:$0xf0] }
 0x410   : > { %3496 = vmatpush.bf16.msrb.mxu1 %v3446_v46  ;;  %v6751_v23 = vor.u32 %v8157_v14, %v6748_v41 }
 0x412   : > { %v1754_v20 = vpop.f32.mrf.mxu2  ;;  %v2072_v3 = vpop.f32.mrf.mxu1 }
 0x413   : > { %v9635_v42 = vadd.f32 %v1754_v20, %v9558_v28  ;;  %v9637_v63 = vadd.f32 %v2141_v34, %v2072_v3  ;;  %v6942_v28 = vld [vmem:[%s12519_s4 + $0x220] sm:$0xf]  ;;  %v8222_v34 = vld [vmem:[%s12519_s4 + $0x224] sm:$0xf0]  ;;  %v3084_v52 = vpop.permute.xlu2 %3083 }
 0x414   : > { %v6943_v30 = vor.u32 %v8222_v34, %v6942_v28  ;;  %v6994_v20 = vld [vmem:[%s12519_s4 + $0x240] sm:$0xf]  ;;  %v8226_v3 = vld [vmem:[%s12519_s4 + $0x244] sm:$0xf0]  ;;  %v9673_v2 = vpop.f32.mrf.mxu3  ;;  %3137 = vmatpush.bf16.msra.mxu0 %v3084_v52  ;;  %v3444_v28 = vpop.permute.xlu0 %3443  ;;  %v6756_v52 = vld [vmem:[%s12519_s4 + $0x38] sm:$0xf0] }
 0x415   : > { %7220 = vmatmul.msk.bf16.vlgmr.msra.gmra.mxu3 %vm1386_vm6, %v7131_v55  ;;  %v6995_v10 = vor.u32 %v8226_v3, %v6994_v20  ;;  %3497 = vmatpush.bf16.msrb.mxu1 %v3444_v28  ;;  %v7136_v20 = vld [vmem:[%s12519_s4 + $0x318] sm:$0xf0] }
 0x416   : > { %v3082_v34 = vpop.permute.xlu1 %3081 }
 0x417   : > { %2424 = vmatmul.bf16.vlgmr.msrb.gmra.mxu0 %v6995_v10  ;;  %v8159_v10 = vld [vmem:[%s12519_s4 + $0x34] sm:$0xf] }
 0x418   : > { %3138 = vmatpush.bf16.msra.mxu0 %v3082_v34  ;;  %v1538_v34 = vadd.f32 %v9532_v4, %v9608_v8  ;;  %v6759_v32 = vor.u32 %v8159_v10, %v6756_v52 }
 0x41a   : > { %v1756_v57 = vpop.f32.mrf.mxu2  ;;  %v2075_v17 = vpop.f32.mrf.mxu1 }
 0x41b   : > { %v9668_v56 = vadd.f32 %v1756_v57, %v1533_v40  ;;  %v9671_v46 = vadd.f32 %v9591_v27, %v2075_v17  ;;  %v3442_v57 = vpop.permute.xlu2 %3441 }
 0x41c   : > { %v9682_v41 = vpop.f32.mrf.mxu3  ;;  %3498 = vmatpush.bf16.msrb.mxu1 %v3442_v57  ;;  %v3080_v3 = vpop.permute.xlu0 %3079  ;;  %v7002_v57 = vld [vmem:[%s12519_s4 + $0x250] sm:$0xf] }
 0x41d   : > { %2114 = vmatmul.bf16.gmra.mxu1 %v6943_v30  ;;  %v8251_v30 = vld [vmem:[%s12519_s4 + $0x314] sm:$0xf]  ;;  %3139 = vmatpush.bf16.msra.mxu0 %v3080_v3 }
 0x41e   : > { %v7139_v17 = vor.u32 %v8251_v30, %v7136_v20  ;;  %v3440_v28 = vpop.permute.xlu1 %3439  ;;  %v8228_v30 = vld [vmem:[%s12519_s4 + $0x254] sm:$0xf0] }
 0x41f   : > { %6826 = vmatmul.msk.bf16.gmra.mxu2 %vm1386_vm6, %v6751_v23  ;;  %v1473_v23 = vpop.f32.mrf.mxu0  ;;  %v7003_v3 = vor.u32 %v8228_v30, %v7002_v57  ;;  %v6996_v57 = vld [vmem:[%s12519_s4 + $0x248] sm:$0xf0] }
 0x420   : > { %3499 = vmatpush.bf16.msrb.mxu1 %v3440_v28  ;;  %v8253_v28 = vld [vmem:[%s12519_s4 + $0x324] sm:$0xf] }
 0x422   : > { %v1759_v55 = vpop.f32.mrf.mxu2  ;;  %v2077_v14 = vpop.f32.mrf.mxu1 }
 0x423   : > { %v9677_v40 = vadd.f32 %v1759_v55, %v9594_v26  ;;  %v9680_v27 = vadd.f32 %v9600_v35, %v2077_v14  ;;  %v6950_v26 = vld [vmem:[%s12519_s4 + $0x230] sm:$0xf]  ;;  %v8224_v35 = vld [vmem:[%s12519_s4 + $0x234] sm:$0xf0] }
 0x424   : > { %v6951_v14 = vor.u32 %v8224_v35, %v6950_v26  ;;  %v9716_v8 = vpop.f32.mrf.mxu3  ;;  %v3078_v26 = vpop.permute.xlu2 %3077 }
 0x425   : > { %7221 = vmatmul.msk.bf16.gmra.mxu3 %vm1386_vm6, %v7139_v17  ;;  %3140 = vmatpush.bf16.msra.mxu0 %v3078_v26 }
 0x426   : > { %v3076_v35 = vpop.permute.xlu1 %3075 }
 0x427   : > { %2429 = vmatmul.bf16.gmra.mxu0 %v7003_v3  ;;  %v1476_v17 = vpop.f32.mrf.mxu0  ;;  %v1543_v3 = vadd.f32 %v9562_v25, %v1473_v23  ;;  %v1819_v23 = vadd.f32 %v9242_v9, %v9596_v59  ;;  %v1821_v9 = vadd.f32 %v9251_v11, %v9624_v38  ;;  %v8252_v11 = vld [vmem:[%s12519_s4 + $0x314] sm:$0xf0] }
 0x429   : > { %3141 = vmatpush.bf16.msra.mxu0 %v3076_v35 }
 0x42a   : > { %v1761_v55 = vpop.f32.mrf.mxu2  ;;  %v2080_v19 = vpop.f32.mrf.mxu1 }
 0x42b   : > { %v9711_v20 = vadd.f32 %v1761_v55, %v1538_v34  ;;  %v9714_v4 = vadd.f32 %v9628_v7, %v2080_v19 }
 0x42c   : > { %v9725_v19 = vpop.f32.mrf.mxu3  ;;  %v3088_v7 = vpop.permute.xlu2 %3087 }
 0x42d   : > { %2119 = vmatmul.bf16.gmra.mxu1 %v6951_v14  ;;  %v8225_v14 = vld [vmem:[%s12519_s4 + $0x244] sm:$0xf] }
 0x42e   : > { %v3448_v30 = vpop.permute.xlu1 %3447 }
 0x42f   : > { %6827 = vmatmul.msk.bf16.gmra.mxu2 %vm1386_vm6, %v6759_v32  ;;  %v7144_v32 = vld [vmem:[%s12519_s4 + $0x328] sm:$0xf0]  ;;  %v3494_v26 = vsel %vm1098_vm3, %v3448_v30, 0 }
 0x430   : > { %v7147_v55 = vor.u32 %v8253_v28, %v7144_v32  ;;  %3572 = vmatpush.bf16.msrb.mxu3 %v3494_v26  ;;  %v8230_v28 = vld [vmem:[%s12519_s4 + $0x264] sm:$0xf0] }
 0x432   : > { %v1764_v43 = vpop.f32.mrf.mxu2  ;;  %v2082_v10 = vpop.f32.mrf.mxu1 }
 0x433   : > { %v9720_v34 = vadd.f32 %v1764_v43, %v9632_v0  ;;  %v9723_v52 = vadd.f32 %v9639_v16, %v2082_v10  ;;  %v7126_v43 = vld [vmem:[%s12519_s4 + $0x300] sm:$0xf]  ;;  %v8250_v0 = vld [vmem:[%s12519_s4 + $0x304] sm:$0xf0]  ;;  %v3134_v16 = vsel %vm1098_vm3, %v3088_v7, 0 }
 0x434   : > { %3212 = vmatpush.bf16.msra.mxu2 %v3134_v16  ;;  %v7127_v10 = vor.u32 %v8250_v0, %v7126_v43  ;;  %v7010_v7 = vld [vmem:[%s12519_s4 + $0x260] sm:$0xf]  ;;  %v2164_v0 = vpop.f32.mrf.mxu3 }
 0x435   : > { %12544 = vst [vmem:[#allocation8_spill] sm:$0xff] %v9723_v52  ;;  %7222 = vmatmul.msk.bf16.gmra.mxu3 %vm1386_vm6, %v7147_v55  ;;  %v6999_v52 = vor.u32 %v8225_v14, %v6996_v57  ;;  %v7011_v25 = vor.u32 %v8230_v28, %v7010_v7  ;;  %v9759_v55 = vpop.f32.mrf.mxu0 }
 0x437   : > { %2434 = vmatmul.bf16.gmra.mxu0 %v7011_v25  ;;  %v7018_v25 = vld [vmem:[%s12519_s4 + $0x270] sm:$0xf] }
 0x43a   : > { %v1766_v35 = vpop.f32.mrf.mxu2  ;;  %v2085_v16 = vpop.f32.mrf.mxu1 }
 0x43b   : > { %v9755_v32 = vadd.f32 %v1766_v35, %v1543_v3  ;;  %v2155_v43 = vadd.f32 %v9673_v2, %v2085_v16  ;;  %v1546_v3 = vadd.f32 %v9323_v54, %v1476_v17  ;;  %v7152_v54 = vld [vmem:[%s12519_s4 + $0x338] sm:$0xf0]  ;;  %v7134_v17 = vld [vmem:[%s12519_s4 + $0x310] sm:$0xf] }
 0x43c   : > { %v9771_v57 = vpop.f32.mrf.mxu3  ;;  %v7135_v16 = vor.u32 %v8252_v11, %v7134_v17 }
 0x43d   : > { %v9762_v30 = vadd.f32 %v2155_v43, %v1819_v23  ;;  %2784 = vmatmul.bf16.vlgmr.msra.gmra.mxu1 %v7127_v10  ;;  %v1481_v2 = vpop.f32.mrf.mxu0  ;;  %v7004_v10 = vld [vmem:[%s12519_s4 + $0x258] sm:$0xf0]  ;;  %v8232_v23 = vld [vmem:[%s12519_s4 + $0x274] sm:$0xf0] }
 0x43e   : > { %v1551_v17 = vadd.f32 %v9358_v21, %v1481_v2  ;;  %v7160_v21 = vld [vmem:[%s12519_s4 + $0x348] sm:$0xf0]  ;;  %v7142_v2 = vld [vmem:[%s12519_s4 + $0x320] sm:$0xf] }
 0x43f   : > { %7088 = vmatmul.msk.bf16.vlgmr.msrb.gmra.mxu2 %vm1386_vm6, %v6999_v52  ;;  %v8255_v52 = vld [vmem:[%s12519_s4 + $0x334] sm:$0xf] }
 0x440   : > { %v7155_v38 = vor.u32 %v8255_v52, %v7152_v54 }
 0x442   : > { %v1769_v26 = vpop.f32.mrf.mxu2  ;;  %v2087_v14 = vpop.f32.mrf.mxu1 }
 0x443   : > { %v9766_v35 = vadd.f32 %v1769_v26, %v1546_v3  ;;  %v2157_v59 = vadd.f32 %v9682_v41, %v2087_v14  ;;  %v8227_v41 = vld [vmem:[%s12519_s4 + $0x254] sm:$0xf]  ;;  %v7019_v26 = vor.u32 %v8232_v23, %v7018_v25  ;;  %v1824_v14 = vadd.f32 %v9284_v39, %v9635_v42  ;;  %v7012_v25 = vld [vmem:[%s12519_s4 + $0x268] sm:$0xf0] }
 0x444   : > { %v7007_v3 = vor.u32 %v8227_v41, %v7004_v10  ;;  %v1826_v39 = vadd.f32 %v9293_v37, %v9668_v56  ;;  %v8254_v37 = vld [vmem:[%s12519_s4 + $0x324] sm:$0xf0] }
 0x445   : > { %v9773_v7 = vadd.f32 %v2157_v59, %v1821_v9  ;;  %7223 = vmatmul.msk.bf16.gmra.mxu3 %vm1386_vm6, %v7155_v38  ;;  %v2169_v59 = vpop.f32.mrf.mxu3  ;;  %v9808_v54 = vpop.f32.mrf.mxu0 }
 0x447   : > { %2439 = vmatmul.bf16.gmra.mxu0 %v7019_v26  ;;  %v7026_v26 = vld [vmem:[%s12519_s4 + $0x280] sm:$0xf] }
 0x44a   : > { %v9794_v28 = vpop.f32.mrf.mxu2  ;;  %v2090_v43 = vpop.f32.mrf.mxu1 }
 0x44b   : > { %v2160_v9 = vadd.f32 %v9716_v8, %v2090_v43 }
 0x44d   : > { %v9805_v52 = vadd.f32 %v2160_v9, %v1824_v14  ;;  %2789 = vmatmul.bf16.gmra.mxu1 %v7135_v16  ;;  %v2171_v8 = vpop.f32.mrf.mxu3  ;;  %v8257_v16 = vld [vmem:[%s12519_s4 + $0x344] sm:$0xf]  ;;  %v1486_v23 = vpop.f32.mrf.mxu0  ;;  %v8234_v14 = vld [vmem:[%s12519_s4 + $0x284] sm:$0xf0] }
 0x44e   : > { %v7163_v56 = vor.u32 %v8257_v16, %v7160_v21  ;;  %v1556_v21 = vadd.f32 %v9393_v33, %v1486_v23  ;;  %v7168_v33 = vld [vmem:[%s12519_s4 + $0x358] sm:$0xf0]  ;;  %v7150_v23 = vld [vmem:[%s12519_s4 + $0x330] sm:$0xf] }
 0x44f   : > { %7089 = vmatmul.msk.bf16.gmra.mxu2 %vm1386_vm6, %v7007_v3  ;;  %v7143_v3 = vor.u32 %v8254_v37, %v7142_v2 }
 0x452   : > { %v1774_v11 = vpop.f32.mrf.mxu2  ;;  %v2092_v41 = vpop.f32.mrf.mxu1 }
 0x453   : > { %v9811_v38 = vadd.f32 %v1774_v11, %v1551_v17  ;;  %v2162_v42 = vadd.f32 %v9725_v19, %v2092_v41  ;;  %v8229_v19 = vld [vmem:[%s12519_s4 + $0x264] sm:$0xf]  ;;  %v7027_v11 = vor.u32 %v8234_v14, %v7026_v26  ;;  %v1829_v41 = vadd.f32 %v9321_v44, %v9677_v40  ;;  %v7020_v26 = vld [vmem:[%s12519_s4 + $0x278] sm:$0xf0] }
 0x454   : > { %v7015_v17 = vor.u32 %v8229_v19, %v7012_v25  ;;  %v1831_v19 = vadd.f32 %v9327_v13, %v9711_v20  ;;  %v8256_v13 = vld [vmem:[%s12519_s4 + $0x334] sm:$0xf0] }
 0x455   : > { %v9816_v10 = vadd.f32 %v2162_v42, %v1826_v39  ;;  %7224 = vmatmul.msk.bf16.gmra.mxu3 %vm1386_vm6, %v7163_v56  ;;  %v2174_v42 = vpop.f32.mrf.mxu3  ;;  %v9855_v25 = vpop.f32.mrf.mxu0 }
 0x457   : > { %2444 = vmatmul.bf16.gmra.mxu0 %v7027_v11  ;;  %v8236_v11 = vld [vmem:[%s12519_s4 + $0x294] sm:$0xf0] }
 0x45a   : > { %v9837_v43 = vpop.f32.mrf.mxu2  ;;  %v2095_v9 = vpop.f32.mrf.mxu1 }
 0x45b   : > { %v2165_v39 = vadd.f32 %v2164_v0, %v2095_v9  ;;  %v7151_v9 = vor.u32 %v8256_v13, %v7150_v23 }
 0x45d   : > { %v9847_v16 = vadd.f32 %v2165_v39, %v1829_v41  ;;  %2794 = vmatmul.bf16.gmra.mxu1 %v7143_v3  ;;  %v2176_v40 = vpop.f32.mrf.mxu3  ;;  %v8259_v3 = vld [vmem:[%s12519_s4 + $0x354] sm:$0xf] }
 0x45e   : > { %v7171_v20 = vor.u32 %v8259_v3, %v7168_v33 }
 0x45f   : > { %7090 = vmatmul.msk.bf16.gmra.mxu2 %vm1386_vm6, %v7015_v17  ;;  %v7034_v17 = vld [vmem:[%s12519_s4 + $0x290] sm:$0xf] }
 0x462   : > { %v1779_v2 = vpop.f32.mrf.mxu2  ;;  %v2097_v56 = vpop.f32.mrf.mxu1 }
 0x463   : > { %v9851_v37 = vadd.f32 %v1779_v2, %v1556_v21  ;;  %v2167_v44 = vadd.f32 %v9771_v57, %v2097_v56  ;;  %v8231_v57 = vld [vmem:[%s12519_s4 + $0x274] sm:$0xf]  ;;  %v7035_v21 = vor.u32 %v8236_v11, %v7034_v17  ;;  %v1834_v2 = vadd.f32 %v9356_v47, %v9720_v34  ;;  %v7028_v17 = vld [vmem:[%s12519_s4 + $0x288] sm:$0xf0] }
 0x464   : > { %v7023_v39 = vor.u32 %v8231_v57, %v7020_v26  ;;  %v1836_v57 = vadd.f32 %v9362_v5, %v9755_v32  ;;  %v8261_v26 = vld [vmem:[%s12519_s4 + $0x364] sm:$0xf]  ;;  %v8258_v5 = vld [vmem:[%s12519_s4 + $0x344] sm:$0xf0] }
 0x465   : > { %v9858_v0 = vadd.f32 %v2167_v44, %v1831_v19  ;;  %7225 = vmatmul.msk.bf16.gmra.mxu3 %vm1386_vm6, %v7171_v20  ;;  %v1491_v44 = vpop.f32.mrf.mxu0 }
 0x466   : > { %v1561_v33 = vadd.f32 %v9428_v58, %v1491_v44  ;;  %v7176_v58 = vld [vmem:[%s12519_s4 + $0x368] sm:$0xf0] }
 0x467   : > { %2449 = vmatmul.bf16.gmra.mxu0 %v7035_v21  ;;  %v7179_v32 = vor.u32 %v8261_v26, %v7176_v58  ;;  %v8238_v21 = vld [vmem:[%s12519_s4 + $0x2a4] sm:$0xf0] }
 0x468   : > { %v9889_v19 = vpop.f32.mrf.mxu3 }
 0x46a   : > { %v9879_v14 = vpop.f32.mrf.mxu2  ;;  %v2100_v41 = vpop.f32.mrf.mxu1 }
 0x46b   : > { %v2170_v56 = vadd.f32 %v2169_v59, %v2100_v41 }
 0x46d   : > { %v9891_v3 = vadd.f32 %v2170_v56, %v1834_v2  ;;  %2799 = vmatmul.bf16.gmra.mxu1 %v7151_v9  ;;  %v7158_v9 = vld [vmem:[%s12519_s4 + $0x340] sm:$0xf] }
 0x46e   : > { %v7159_v41 = vor.u32 %v8258_v5, %v7158_v9 }
 0x46f   : > { %7091 = vmatmul.msk.bf16.gmra.mxu2 %vm1386_vm6, %v7023_v39  ;;  %v7042_v39 = vld [vmem:[%s12519_s4 + $0x2a0] sm:$0xf] }
 0x470   : > { %v9899_v34 = vpop.f32.mrf.mxu3  ;;  %v7043_v44 = vor.u32 %v8238_v21, %v7042_v39  ;;  %v7050_v39 = vld [vmem:[%s12519_s4 + $0x2b0] sm:$0xf]  ;;  %v8240_v21 = vld [vmem:[%s12519_s4 + $0x2b4] sm:$0xf0] }
 0x472   : > { %v1784_v23 = vpop.f32.mrf.mxu2  ;;  %v2102_v20 = vpop.f32.mrf.mxu1 }
 0x473   : > { %v9895_v13 = vadd.f32 %v1784_v23, %v1561_v33  ;;  %v2172_v47 = vadd.f32 %v2171_v8, %v2102_v20  ;;  %v8233_v8 = vld [vmem:[%s12519_s4 + $0x284] sm:$0xf]  ;;  %v1839_v33 = vadd.f32 %v9391_v31, %v9766_v35 }
 0x474   : > { %v7031_v56 = vor.u32 %v8233_v8, %v7028_v17  ;;  %v7036_v8 = vld [vmem:[%s12519_s4 + $0x298] sm:$0xf0] }
 0x475   : > { %v9901_v59 = vadd.f32 %v2172_v47, %v1836_v57  ;;  %7226 = vmatmul.msk.bf16.gmra.mxu3 %vm1386_vm6, %v7179_v32  ;;  %v1548_v57 = vadd.f32 %v9347_v1, %v9759_v55  ;;  %v8263_v55 = vld [vmem:[%s12519_s4 + $0x374] sm:$0xf] }
 0x477   : > { %2454 = vmatmul.bf16.gmra.mxu0 %v7043_v44  ;;  %v1772_v26 = vadd.f32 %v9794_v28, %v1548_v57  ;;  %v7184_v28 = vld [vmem:[%s12519_s4 + $0x378] sm:$0xf0] }
 0x478   : > { %v9932_v20 = vpop.f32.mrf.mxu3 }
 0x479   : > { %v1841_v31 = vadd.f32 %v9397_v36, %v1772_v26  ;;  %v7166_v36 = vld [vmem:[%s12519_s4 + $0x350] sm:$0xf] }
 0x47a   : > { %v9922_v11 = vpop.f32.mrf.mxu2  ;;  %v2105_v2 = vpop.f32.mrf.mxu1 }
 0x47b   : > { %v2175_v23 = vadd.f32 %v2174_v42, %v2105_v2 }
 0x47d   : > { %v9936_v47 = vadd.f32 %v2175_v23, %v1839_v33  ;;  %2804 = vmatmul.bf16.gmra.mxu1 %v7159_v41  ;;  %v7051_v33 = vor.u32 %v8240_v21, %v7050_v39  ;;  %v1844_v23 = vadd.f32 %v9426_v51, %v9811_v38 }
 0x47f   : > { %7092 = vmatmul.msk.bf16.gmra.mxu2 %vm1386_vm6, %v7031_v56 }
 0x480   : > { %v9942_v42 = vpop.f32.mrf.mxu3 }
 0x482   : > { %v1798_v58 = vpop.f32.mrf.mxu2  ;;  %v2107_v5 = vpop.f32.mrf.mxu1 }
 0x483   : > { %v1799_v9 = vadd.f32 %v1798_v58, %v9465_v29  ;;  %v2177_v35 = vadd.f32 %v2176_v40, %v2107_v5  ;;  %v8260_v29 = vld [vmem:[%s12519_s4 + $0x354] sm:$0xf0]  ;;  %v8235_v40 = vld [vmem:[%s12519_s4 + $0x294] sm:$0xf] }
 0x484   : > { %v7167_v41 = vor.u32 %v8260_v29, %v7166_v36  ;;  %v7039_v44 = vor.u32 %v8235_v40, %v7036_v8  ;;  %v7044_v36 = vld [vmem:[%s12519_s4 + $0x2a8] sm:$0xf0]  ;;  %v7058_v8 = vld [vmem:[%s12519_s4 + $0x2c0] sm:$0xf] }
 0x485   : > { %v9945_v32 = vadd.f32 %v9589_v18, %v1799_v9  ;;  %v9947_v1 = vadd.f32 %v2177_v35, %v1841_v31  ;;  %v7187_v18 = vor.u32 %v8263_v55, %v7184_v28  ;;  %v1553_v9 = vadd.f32 %v9383_v22, %v9808_v54  ;;  %v9989_v31 = vpop.f32.mrf.mxu0  ;;  %v8237_v28 = vld [vmem:[%s12519_s4 + $0x2a4] sm:$0xf] }
 0x486   : > { %v7047_v21 = vor.u32 %v8237_v28, %v7044_v36 }
 0x487   : > { %7227 = vmatmul.msk.bf16.gmra.mxu3 %vm1386_vm6, %v7187_v18  ;;  %2459 = vmatmul.bf16.gmra.mxu0 %v7051_v33 }
 0x488   : > { %v9978_v26 = vpop.f32.mrf.mxu3 }
 0x48a   : > { %v1800_v17 = vpop.f32.mrf.mxu2  ;;  %v2110_v56 = vpop.f32.mrf.mxu1 }
 0x48b   : > { %v1801_v2 = vadd.f32 %v1800_v17, %v9491_v50  ;;  %v2180_v57 = vadd.f32 %v9889_v19, %v2110_v56  ;;  %v1777_v50 = vadd.f32 %v9837_v43, %v1553_v9  ;;  %v8265_v43 = vld [vmem:[%s12519_s4 + $0x384] sm:$0xf]  ;;  %v8242_v17 = vld [vmem:[%s12519_s4 + $0x2c4] sm:$0xf0]  ;;  %v1849_v56 = vadd.f32 %v9463_v62, %v9851_v37 }
 0x48d   : > { %v9981_v58 = vadd.f32 %v9598_v12, %v1801_v2  ;;  %v9985_v5 = vadd.f32 %v2180_v57, %v1844_v23  ;;  %2809 = vmatmul.bf16.gmra.mxu1 %v7167_v41  ;;  %v1846_v12 = vadd.f32 %v9432_v60, %v1777_v50  ;;  %v7174_v60 = vld [vmem:[%s12519_s4 + $0x360] sm:$0xf]  ;;  %v7059_v2 = vor.u32 %v8242_v17, %v7058_v8 }
 0x48e   : > { %v1558_v57 = vadd.f32 %v9418_v6, %v9855_v25  ;;  %v1854_v8 = vadd.f32 %v9499_v61, %v9895_v13  ;;  %v12546_v13 = vld [vmem:[#allocation6_spill] sm:$0xff] }
 0x48f   : > { %7093 = vmatmul.msk.bf16.gmra.mxu2 %vm1386_vm6, %v7039_v44 }
 0x490   : > { %v9994_v55 = vpop.f32.mrf.mxu3  ;;  %v1782_v62 = vadd.f32 %v9879_v14, %v1558_v57  ;;  %v8267_v14 = vld [vmem:[%s12519_s4 + $0x394] sm:$0xf] }
 0x492   : > { %v1803_v51 = vpop.f32.mrf.mxu2  ;;  %v2112_v19 = vpop.f32.mrf.mxu1 }
 0x493   : > { %v1804_v38 = vadd.f32 %v1803_v51, %v9501_v15  ;;  %v2182_v35 = vadd.f32 %v9899_v34, %v2112_v19  ;;  %v7192_v15 = vld [vmem:[%s12519_s4 + $0x388] sm:$0xf0]  ;;  %v8262_v34 = vld [vmem:[%s12519_s4 + $0x364] sm:$0xf0]  ;;  %v1851_v51 = vadd.f32 %v9469_v24, %v1782_v62  ;;  %v7182_v24 = vld [vmem:[%s12519_s4 + $0x370] sm:$0xf] }
 0x494   : > { %v7175_v18 = vor.u32 %v8262_v34, %v7174_v60  ;;  %v10020_v40 = vpop.f32.mrf.mxu0  ;;  %v7066_v34 = vld [vmem:[%s12519_s4 + $0x2d0] sm:$0xf] }
 0x495   : > { %v9997_v22 = vadd.f32 %v9626_v48, %v1804_v38  ;;  %v9999_v54 = vadd.f32 %v2182_v35, %v1846_v12  ;;  %v7195_v48 = vor.u32 %v8265_v43, %v7192_v15  ;;  %v8239_v12 = vld [vmem:[%s12519_s4 + $0x2b4] sm:$0xf]  ;;  %v7052_v35 = vld [vmem:[%s12519_s4 + $0x2b8] sm:$0xf0] }
 0x497   : > { %7228 = vmatmul.msk.bf16.gmra.mxu3 %vm1386_vm6, %v7195_v48  ;;  %2464 = vmatmul.bf16.gmra.mxu0 %v7059_v2  ;;  %v8244_v48 = vld [vmem:[%s12519_s4 + $0x2d4] sm:$0xf0] }
 0x498   : > { %v10032_v33 = vpop.f32.mrf.mxu3 }
 0x49a   : > { %v1805_v29 = vpop.f32.mrf.mxu2  ;;  %v2115_v39 = vpop.f32.mrf.mxu1 }
 0x49b   : > { %v1806_v41 = vadd.f32 %v1805_v29, %v9527_v49  ;;  %v2185_v44 = vadd.f32 %v9932_v20, %v2115_v39  ;;  %v3438_v49 = vpop.permute.xlu0 %3437  ;;  %v7055_v29 = vor.u32 %v8239_v12, %v7052_v35  ;;  %v7074_v12 = vld [vmem:[%s12519_s4 + $0x2e0] sm:$0xf]  ;;  %v8246_v35 = vld [vmem:[%s12519_s4 + $0x2e4] sm:$0xf0] }
 0x49c   : > { %3500 = vmatpush.bf16.msrb.mxu1 %v3438_v49  ;;  %v10043_v20 = vpop.f32.mrf.mxu0  ;;  %v12547_v49 = vld [vmem:[#allocation5_spill] sm:$0xff] }
 0x49d   : > { %v10035_v23 = vadd.f32 %v9637_v63, %v1806_v41  ;;  %v10039_v9 = vadd.f32 %v2185_v44, %v1849_v56  ;;  %2814 = vmatmul.bf16.gmra.mxu1 %v7175_v18  ;;  %v7067_v18 = vor.u32 %v8244_v48, %v7066_v34 }
 0x49f   : > { %7094 = vmatmul.msk.bf16.gmra.mxu2 %vm1386_vm6, %v7047_v21  ;;  %v12545_v21 = vld [vmem:[#allocation4_spill] sm:$0xff] }
 0x4a0   : > { %v10048_v6 = vpop.f32.mrf.mxu3  ;;  %v1563_v2 = vadd.f32 %v12545_v21, %v9989_v31 }
 0x4a2   : > { %v1808_v37 = vpop.f32.mrf.mxu2  ;;  %v2117_v63 = vpop.f32.mrf.mxu1 }
 0x4a3   : > { %v1809_v50 = vadd.f32 %v1808_v37, %v9530_v45  ;;  %v2187_v38 = vadd.f32 %v9942_v42, %v2117_v63  ;;  %v7200_v45 = vld [vmem:[%s12519_s4 + $0x398] sm:$0xf0]  ;;  %v8264_v42 = vld [vmem:[%s12519_s4 + $0x374] sm:$0xf0]  ;;  %v7208_v63 = vld [vmem:[%s12519_s4 + $0x3a8] sm:$0xf0] }
 0x4a4   : > { %v7183_v15 = vor.u32 %v8264_v42, %v7182_v24  ;;  %v10074_v60 = vpop.f32.mrf.mxu0 }
 0x4a5   : > { %v10051_v25 = vadd.f32 %v9671_v46, %v1809_v50  ;;  %v10053_v19 = vadd.f32 %v2187_v38, %v1851_v51  ;;  %v7203_v46 = vor.u32 %v8267_v14, %v7200_v45  ;;  %v7190_v51 = vld [vmem:[%s12519_s4 + $0x380] sm:$0xf]  ;;  %v8241_v14 = vld [vmem:[%s12519_s4 + $0x2c4] sm:$0xf]  ;;  %v7060_v45 = vld [vmem:[%s12519_s4 + $0x2c8] sm:$0xf0] }
 0x4a6   : > { %v7063_v34 = vor.u32 %v8241_v14, %v7060_v45 }
 0x4a7   : > { %7229 = vmatmul.msk.bf16.gmra.mxu3 %vm1386_vm6, %v7203_v46  ;;  %2469 = vmatmul.bf16.gmra.mxu0 %v7067_v18  ;;  %v12549_v18 = vld [vmem:[#allocation8_spill] sm:$0xff] }
 0x4a8   : > { %v10086_v41 = vpop.f32.mrf.mxu3 }
 0x4aa   : > { %v1810_v43 = vpop.f32.mrf.mxu2  ;;  %v2120_v36 = vpop.f32.mrf.mxu1 }
 0x4ab   : > { %v1811_v28 = vadd.f32 %v1810_v43, %v9554_v53  ;;  %v2190_v17 = vadd.f32 %v9978_v26, %v2120_v36  ;;  %v1787_v53 = vadd.f32 %v9922_v11, %v1563_v2  ;;  %v8269_v11 = vld [vmem:[%s12519_s4 + $0x3a4] sm:$0xf]  ;;  %v12548_v43 = vld [vmem:[#allocation7_spill] sm:$0xff] }
 0x4ac   : > { %v10097_v61 = vpop.f32.mrf.mxu0  ;;  %v7211_v38 = vor.u32 %v8269_v11, %v7208_v63 }
 0x4ad   : > { %v10089_v39 = vadd.f32 %v9680_v27, %v1811_v28  ;;  %v10093_v56 = vadd.f32 %v2190_v17, %v1854_v8  ;;  %2819 = vmatmul.bf16.gmra.mxu1 %v7183_v15  ;;  %v1856_v27 = vadd.f32 %v12547_v49, %v1787_v53  ;;  %v7075_v28 = vor.u32 %v8246_v35, %v7074_v12 }
 0x4af   : > { %7095 = vmatmul.msk.bf16.gmra.mxu2 %vm1386_vm6, %v7055_v29 }
 0x4b0   : > { %v10102_v37 = vpop.f32.mrf.mxu3 }
 0x4b2   : > { %v1813_v44 = vpop.f32.mrf.mxu2  ;;  %v2122_v57 = vpop.f32.mrf.mxu1 }
 0x4b3   : > { %v1814_v26 = vadd.f32 %v1813_v44, %v12546_v13  ;;  %v2192_v62 = vadd.f32 %v9994_v55, %v2122_v57  ;;  %v8266_v55 = vld [vmem:[%s12519_s4 + $0x384] sm:$0xf0]  ;;  %v7216_v57 = vld [vmem:[%s12519_s4 + $0x3b8] sm:$0xf0] }
 0x4b4   : > { %v7191_v42 = vor.u32 %v8266_v55, %v7190_v51  ;;  %v10128_v46 = vpop.f32.mrf.mxu0  ;;  %v7082_v55 = vld [vmem:[%s12519_s4 + $0x2f0] sm:$0xf] }
 0x4b5   : > { %v10105_v31 = vadd.f32 %v9714_v4, %v1814_v26  ;;  %v10107_v50 = vadd.f32 %v2192_v62, %v1856_v27  ;;  %v3436_v4 = vpop.permute.xlu0 %3435  ;;  %v8271_v26 = vld [vmem:[%s12519_s4 + $0x3b4] sm:$0xf]  ;;  %v7068_v62 = vld [vmem:[%s12519_s4 + $0x2d8] sm:$0xf0] }
 0x4b6   : > { %3501 = vmatpush.bf16.msrb.mxu1 %v3436_v4  ;;  %v7219_v27 = vor.u32 %v8271_v26, %v7216_v57  ;;  %v8248_v4 = vld [vmem:[%s12519_s4 + $0x2f4] sm:$0xf0]  ;;  %v3072_v26 = vpop.permute.xlu1 %3071 }
 0x4b7   : > { %7230 = vmatmul.msk.bf16.gmra.mxu3 %vm1386_vm6, %v7211_v38  ;;  %2474 = vmatmul.bf16.gmra.mxu0 %v7075_v28 }
 0x4b8   : > { %v10138_v29 = vpop.f32.mrf.mxu3 }
 0x4ba   : > { %v1815_v24 = vpop.f32.mrf.mxu2  ;;  %v2785_v48 = vpop.f32.mrf.mxu1 }
 0x4bb   : > { %v1816_v15 = vadd.f32 %v1815_v24, %v12548_v43  ;;  %v2855_v36 = vadd.f32 %v10032_v33, %v2785_v48  ;;  %v7083_v24 = vor.u32 %v8248_v4, %v7082_v55 }
 0x4bc   : > { %v10144_v21 = vpop.f32.mrf.mxu0 }
 0x4bd   : > { %v10141_v8 = vadd.f32 %v12549_v18, %v1816_v15  ;;  %2824 = vmatmul.bf16.gmra.mxu1 %v7191_v42  ;;  %v3074_v15 = vpop.permute.xlu2 %3073 }
 0x4be   : > { %3142 = vmatpush.bf16.msra.mxu0 %v3074_v15 }
 0x4bf   : > { %7096 = vmatmul.msk.bf16.gmra.mxu2 %vm1386_vm6, %v7063_v34  ;;  %v3434_v34 = vpop.permute.xlu0 %3433 }
 0x4c0   : > { %v10148_v13 = vpop.f32.mrf.mxu3  ;;  %3502 = vmatpush.bf16.msrb.mxu1 %v3434_v34 }
 0x4c2   : > { %v2494_v17 = vpop.f32.mrf.mxu2  ;;  %v2787_v53 = vpop.f32.mrf.mxu1  ;;  %3143 = vmatpush.bf16.msra.mxu0 %v3072_v26 }
 0x4c3   : > { %v2495_v2 = vadd.f32 %v2494_v17, %v10020_v40  ;;  %v2857_v44 = vadd.f32 %v10048_v6, %v2787_v53  ;;  %v7198_v40 = vld [vmem:[%s12519_s4 + $0x390] sm:$0xf]  ;;  %v8268_v6 = vld [vmem:[%s12519_s4 + $0x394] sm:$0xf0]  ;;  %v8297_v17 = vld [vmem:[%s12519_s4 + $0x484] sm:$0xf] }
 0x4c4   : > { %v7199_v63 = vor.u32 %v8268_v6, %v7198_v40  ;;  %v10172_v51 = vpop.f32.mrf.mxu0 }
 0x4c5   : > { %v2554_v33 = vadd.f32 %v2495_v2, %v9945_v32  ;;  %v8243_v32 = vld [vmem:[%s12519_s4 + $0x2d4] sm:$0xf]  ;;  %v7392_v2 = vld [vmem:[%s12519_s4 + $0x488] sm:$0xf0]  ;;  %v3432_v55 = vpop.permute.xlu2 %3431 }
 0x4c6   : > { %v7071_v14 = vor.u32 %v8243_v32, %v7068_v62  ;;  %v8274_v32 = vld [vmem:[%s12519_s4 + $0x3c4] sm:$0xf0]  ;;  %3503 = vmatpush.bf16.msrb.mxu1 %v3432_v55 }
 0x4c7   : > { %v10157_v49 = vadd.f32 %v2855_v36, %v2554_v33  ;;  %7231 = vmatmul.msk.bf16.gmra.mxu3 %vm1386_vm6, %v7219_v27  ;;  %2479 = vmatmul.bf16.gmra.mxu0 %v7083_v24  ;;  %v7076_v33 = vld [vmem:[%s12519_s4 + $0x2e8] sm:$0xf0]  ;;  %v7258_v27 = vld [vmem:[%s12519_s4 + $0x3c0] sm:$0xf] }
 0x4c8   : > { %v10182_v12 = vpop.f32.mrf.mxu3  ;;  %v7259_v4 = vor.u32 %v8274_v32, %v7258_v27 }
 0x4ca   : > { %v2496_v11 = vpop.f32.mrf.mxu2  ;;  %v2790_v45 = vpop.f32.mrf.mxu1 }
 0x4cb   : > { %v2497_v38 = vadd.f32 %v2496_v11, %v10043_v20  ;;  %v2860_v42 = vadd.f32 %v10086_v41, %v2790_v45 }
 0x4cc   : > { %v10188_v48 = vpop.f32.mrf.mxu0 }
 0x4cd   : > { %v2555_v35 = vadd.f32 %v2497_v38, %v9981_v58  ;;  %2829 = vmatmul.bf16.gmra.mxu1 %v7199_v63 }
 0x4cf   : > { %v10185_v43 = vadd.f32 %v2857_v44, %v2555_v35  ;;  %7097 = vmatmul.msk.bf16.gmra.mxu2 %vm1386_vm6, %v7071_v14  ;;  %v7395_v44 = vor.u32 %v8297_v17, %v7392_v2 }
 0x4d0   : > { %v10192_v18 = vpop.f32.mrf.mxu3 }
 0x4d2   : > { %v2499_v20 = vpop.f32.mrf.mxu2  ;;  %v2792_v41 = vpop.f32.mrf.mxu1 }
 0x4d3   : > { %v2500_v28 = vadd.f32 %v2499_v20, %v10074_v60  ;;  %v2862_v36 = vadd.f32 %v10102_v37, %v2792_v41  ;;  %v7206_v60 = vld [vmem:[%s12519_s4 + $0x3a0] sm:$0xf]  ;;  %v8270_v37 = vld [vmem:[%s12519_s4 + $0x3a4] sm:$0xf0] }
 0x4d4   : > { %v7207_v40 = vor.u32 %v8270_v37, %v7206_v60  ;;  %v10216_v6 = vpop.f32.mrf.mxu0  ;;  %v7266_v37 = vld [vmem:[%s12519_s4 + $0x3d0] sm:$0xf] }
 0x4d5   : > { %v2556_v58 = vadd.f32 %v2500_v28, %v9997_v22  ;;  %v8245_v22 = vld [vmem:[%s12519_s4 + $0x2e4] sm:$0xf]  ;;  %v7400_v28 = vld [vmem:[%s12519_s4 + $0x498] sm:$0xf0] }
 0x4d6   : > { %v7079_v11 = vor.u32 %v8245_v22, %v7076_v33 }
 0x4d7   : > { %v10201_v53 = vadd.f32 %v2860_v42, %v2556_v58  ;;  %7484 = vmatmul.msk.bf16.vlgmr.msrb.gmra.mxu3 %vm1386_vm6, %v7395_v44  ;;  %3144 = vmatmul.bf16.vlgmr.msra.gmra.mxu0 %v7259_v4  ;;  %v7084_v58 = vld [vmem:[%s12519_s4 + $0x2f8] sm:$0xf0]  ;;  %v8276_v44 = vld [vmem:[%s12519_s4 + $0x3d4] sm:$0xf0] }
 0x4d8   : > { %v10226_v14 = vpop.f32.mrf.mxu3 }
 0x4da   : > { %v2501_v57 = vpop.f32.mrf.mxu2  ;;  %v2795_v63 = vpop.f32.mrf.mxu1 }
 0x4db   : > { %v2502_v62 = vadd.f32 %v2501_v57, %v10097_v61  ;;  %v2865_v38 = vadd.f32 %v10138_v29, %v2795_v63  ;;  %v7267_v57 = vor.u32 %v8276_v44, %v7266_v37 }
 0x4dc   : > { %v10232_v35 = vpop.f32.mrf.mxu0 }
 0x4dd   : > { %v2557_v45 = vadd.f32 %v2502_v62, %v10035_v23  ;;  %2834 = vmatmul.bf16.gmra.mxu1 %v7207_v40  ;;  %v8299_v23 = vld [vmem:[%s12519_s4 + $0x494] sm:$0xf] }
 0x4df   : > { %v10229_v24 = vadd.f32 %v2862_v36, %v2557_v45  ;;  %7098 = vmatmul.msk.bf16.gmra.mxu2 %vm1386_vm6, %v7079_v11  ;;  %v7403_v36 = vor.u32 %v8299_v23, %v7400_v28  ;;  %v7408_v45 = vld [vmem:[%s12519_s4 + $0x4a8] sm:$0xf0]  ;;  %v7274_v28 = vld [vmem:[%s12519_s4 + $0x3e0] sm:$0xf] }
 0x4e0   : > { %v10236_v29 = vpop.f32.mrf.mxu3 }
 0x4e2   : > { %v2504_v42 = vpop.f32.mrf.mxu2  ;;  %v2797_v15 = vpop.f32.mrf.mxu1 }
 0x4e3   : > { %v2505_v61 = vadd.f32 %v2504_v42, %v10128_v46  ;;  %v2867_v34 = vadd.f32 %v10148_v13, %v2797_v15  ;;  %v7214_v46 = vld [vmem:[%s12519_s4 + $0x3b0] sm:$0xf]  ;;  %v8272_v13 = vld [vmem:[%s12519_s4 + $0x3b4] sm:$0xf0]  ;;  %v7260_v15 = vld [vmem:[%s12519_s4 + $0x3c8] sm:$0xf0] }
 0x4e4   : > { %v7215_v2 = vor.u32 %v8272_v13, %v7214_v46  ;;  %v10260_v60 = vpop.f32.mrf.mxu0  ;;  %v8278_v46 = vld [vmem:[%s12519_s4 + $0x3e4] sm:$0xf0] }
 0x4e5   : > { %v2558_v20 = vadd.f32 %v2505_v61, %v10051_v25  ;;  %v8247_v25 = vld [vmem:[%s12519_s4 + $0x2f4] sm:$0xf] }
 0x4e6   : > { %v7087_v33 = vor.u32 %v8247_v25, %v7084_v58  ;;  %v7275_v58 = vor.u32 %v8278_v46, %v7274_v28 }
 0x4e7   : > { %v10245_v41 = vadd.f32 %v2865_v38, %v2558_v20  ;;  %7485 = vmatmul.msk.bf16.gmra.mxu3 %vm1386_vm6, %v7403_v36  ;;  %3149 = vmatmul.bf16.gmra.mxu0 %v7267_v57 }
 0x4e8   : > { %v10270_v27 = vpop.f32.mrf.mxu3 }
 0x4ea   : > { %v2506_v17 = vpop.f32.mrf.mxu2  ;;  %v2800_v26 = vpop.f32.mrf.mxu1 }
 0x4eb   : > { %v2507_v22 = vadd.f32 %v2506_v17, %v10144_v21  ;;  %v2870_v40 = vadd.f32 %v10182_v12, %v2800_v26 }
 0x4ec   : > { %v10276_v63 = vpop.f32.mrf.mxu0 }
 0x4ed   : > { %v2559_v32 = vadd.f32 %v2507_v22, %v10089_v39  ;;  %2839 = vmatmul.bf16.gmra.mxu1 %v7215_v2  ;;  %v8301_v39 = vld [vmem:[%s12519_s4 + $0x4a4] sm:$0xf] }
 0x4ee   : > { %v7411_v61 = vor.u32 %v8301_v39, %v7408_v45  ;;  %v7282_v45 = vld [vmem:[%s12519_s4 + $0x3f0] sm:$0xf] }
 0x4ef   : > { %v10273_v62 = vadd.f32 %v2867_v34, %v2559_v32  ;;  %7099 = vmatmul.msk.bf16.gmra.mxu2 %vm1386_vm6, %v7087_v33  ;;  %v7416_v32 = vld [vmem:[%s12519_s4 + $0x4b8] sm:$0xf0] }
 0x4f0   : > { %v10280_v38 = vpop.f32.mrf.mxu3 }
 0x4f2   : > { %v2509_v11 = vpop.f32.mrf.mxu2  ;;  %v2802_v55 = vpop.f32.mrf.mxu1 }
 0x4f3   : > { %v2510_v21 = vadd.f32 %v2509_v11, %v10172_v51  ;;  %v2872_v4 = vadd.f32 %v10192_v18, %v2802_v55  ;;  %v7390_v51 = vld [vmem:[%s12519_s4 + $0x480] sm:$0xf]  ;;  %v8298_v18 = vld [vmem:[%s12519_s4 + $0x484] sm:$0xf0]  ;;  %v7268_v55 = vld [vmem:[%s12519_s4 + $0x3d8] sm:$0xf0] }
 0x4f4   : > { %v7391_v20 = vor.u32 %v8298_v18, %v7390_v51  ;;  %v10304_v23 = vpop.f32.mrf.mxu0  ;;  %v8280_v51 = vld [vmem:[%s12519_s4 + $0x3f4] sm:$0xf0] }
 0x4f5   : > { %v2560_v12 = vadd.f32 %v2510_v21, %v10105_v31  ;;  %v8273_v31 = vld [vmem:[%s12519_s4 + $0x3c4] sm:$0xf] }
 0x4f6   : > { %v7263_v36 = vor.u32 %v8273_v31, %v7260_v15  ;;  %v7283_v15 = vor.u32 %v8280_v51, %v7282_v45 }
 0x4f7   : > { %v10289_v42 = vadd.f32 %v2870_v40, %v2560_v12  ;;  %7486 = vmatmul.msk.bf16.gmra.mxu3 %vm1386_vm6, %v7411_v61  ;;  %3154 = vmatmul.bf16.gmra.mxu0 %v7275_v58 }
 0x4f8   : > { %v10314_v2 = vpop.f32.mrf.mxu3 }
 0x4fa   : > { %v2511_v34 = vpop.f32.mrf.mxu2  ;;  %v2805_v25 = vpop.f32.mrf.mxu1 }
 0x4fb   : > { %v2512_v13 = vadd.f32 %v2511_v34, %v10188_v48  ;;  %v2875_v17 = vadd.f32 %v10226_v14, %v2805_v25 }
 0x4fc   : > { %v10320_v33 = vpop.f32.mrf.mxu0 }
 0x4fd   : > { %v2561_v37 = vadd.f32 %v2512_v13, %v10141_v8  ;;  %3504 = vmatmul.bf16.vlgmr.msrb.gmra.mxu1 %v7391_v20  ;;  %v8303_v8 = vld [vmem:[%s12519_s4 + $0x4b4] sm:$0xf] }
 0x4fe   : > { %v7419_v21 = vor.u32 %v8303_v8, %v7416_v32  ;;  %v7290_v32 = vld [vmem:[%s12519_s4 + $0x400] sm:$0xf] }
 0x4ff   : > { %v10317_v44 = vadd.f32 %v2872_v4, %v2561_v37  ;;  %7352 = vmatmul.msk.bf16.vlgmr.msra.gmra.mxu2 %vm1386_vm6, %v7263_v36  ;;  %v7424_v37 = vld [vmem:[%s12519_s4 + $0x4c8] sm:$0xf0] }
 0x500   : > { %v10324_v40 = vpop.f32.mrf.mxu3 }
 0x502   : > { %v2514_v22 = vpop.f32.mrf.mxu2  ;;  %v2807_v26 = vpop.f32.mrf.mxu1 }
 0x503   : > { %v2515_v48 = vadd.f32 %v2514_v22, %v10216_v6  ;;  %v2877_v57 = vadd.f32 %v10236_v29, %v2807_v26  ;;  %v7398_v6 = vld [vmem:[%s12519_s4 + $0x490] sm:$0xf]  ;;  %v8300_v29 = vld [vmem:[%s12519_s4 + $0x494] sm:$0xf0]  ;;  %v7276_v26 = vld [vmem:[%s12519_s4 + $0x3e8] sm:$0xf0] }
 0x504   : > { %v7399_v12 = vor.u32 %v8300_v29, %v7398_v6  ;;  %v10348_v39 = vpop.f32.mrf.mxu0  ;;  %v8282_v6 = vld [vmem:[%s12519_s4 + $0x404] sm:$0xf0] }
 0x505   : > { %v2562_v14 = vadd.f32 %v2515_v48, %v9762_v30  ;;  %v8275_v30 = vld [vmem:[%s12519_s4 + $0x3d4] sm:$0xf] }
 0x506   : > { %v7271_v61 = vor.u32 %v8275_v30, %v7268_v55  ;;  %v7291_v55 = vor.u32 %v8282_v6, %v7290_v32 }
 0x507   : > { %v10333_v11 = vadd.f32 %v2875_v17, %v2562_v14  ;;  %7487 = vmatmul.msk.bf16.gmra.mxu3 %vm1386_vm6, %v7419_v21  ;;  %3159 = vmatmul.bf16.gmra.mxu0 %v7283_v15 }
 0x50a   : > { %v2516_v4 = vpop.f32.mrf.mxu2  ;;  %v2810_v31 = vpop.f32.mrf.mxu1 }
 0x50b   : > { %v2517_v18 = vadd.f32 %v2516_v4, %v10232_v35  ;;  %v2880_v34 = vadd.f32 %v10270_v27, %v2810_v31  ;;  %v10358_v20 = vpop.f32.mrf.mxu3 }
 0x50c   : > { %v10364_v36 = vpop.f32.mrf.mxu0 }
 0x50d   : > { %v2563_v28 = vadd.f32 %v2517_v18, %v9773_v7  ;;  %3509 = vmatmul.bf16.gmra.mxu1 %v7399_v12  ;;  %v8305_v7 = vld [vmem:[%s12519_s4 + $0x4c4] sm:$0xf] }
 0x50e   : > { %v7427_v48 = vor.u32 %v8305_v7, %v7424_v37  ;;  %v7298_v37 = vld [vmem:[%s12519_s4 + $0x410] sm:$0xf] }
 0x50f   : > { %v10361_v46 = vadd.f32 %v2877_v57, %v2563_v28  ;;  %7353 = vmatmul.msk.bf16.gmra.mxu2 %vm1386_vm6, %v7271_v61  ;;  %v7432_v28 = vld [vmem:[%s12519_s4 + $0x4d8] sm:$0xf0] }
 0x512   : > { %v2519_v13 = vpop.f32.mrf.mxu2  ;;  %v2812_v25 = vpop.f32.mrf.mxu1 }
 0x513   : > { %v2520_v35 = vadd.f32 %v2519_v13, %v10260_v60  ;;  %v2882_v58 = vadd.f32 %v10280_v38, %v2812_v25  ;;  %v10368_v17 = vpop.f32.mrf.mxu3  ;;  %v7406_v60 = vld [vmem:[%s12519_s4 + $0x4a0] sm:$0xf]  ;;  %v8302_v38 = vld [vmem:[%s12519_s4 + $0x4a4] sm:$0xf0]  ;;  %v7284_v25 = vld [vmem:[%s12519_s4 + $0x3f8] sm:$0xf0] }
 0x514   : > { %v7407_v14 = vor.u32 %v8302_v38, %v7406_v60  ;;  %v10392_v8 = vpop.f32.mrf.mxu0  ;;  %v8284_v60 = vld [vmem:[%s12519_s4 + $0x414] sm:$0xf0] }
 0x515   : > { %v2564_v27 = vadd.f32 %v2520_v35, %v9805_v52  ;;  %v8277_v52 = vld [vmem:[%s12519_s4 + $0x3e4] sm:$0xf] }
 0x516   : > { %v7279_v21 = vor.u32 %v8277_v52, %v7276_v26  ;;  %v7299_v26 = vor.u32 %v8284_v60, %v7298_v37 }
 0x517   : > { %v10377_v22 = vadd.f32 %v2880_v34, %v2564_v27  ;;  %7488 = vmatmul.msk.bf16.gmra.mxu3 %vm1386_vm6, %v7427_v48  ;;  %3164 = vmatmul.bf16.gmra.mxu0 %v7291_v55 }
 0x51a   : > { %v2521_v57 = vpop.f32.mrf.mxu2  ;;  %v2815_v30 = vpop.f32.mrf.mxu1 }
 0x51b   : > { %v2522_v29 = vadd.f32 %v2521_v57, %v10276_v63  ;;  %v2885_v4 = vadd.f32 %v10314_v2, %v2815_v30  ;;  %v10402_v12 = vpop.f32.mrf.mxu3 }
 0x51c   : > { %v10408_v61 = vpop.f32.mrf.mxu0 }
 0x51d   : > { %v2565_v45 = vadd.f32 %v2522_v29, %v9816_v10  ;;  %3514 = vmatmul.bf16.gmra.mxu1 %v7407_v14  ;;  %v8307_v10 = vld [vmem:[%s12519_s4 + $0x4d4] sm:$0xf] }
 0x51e   : > { %v7435_v35 = vor.u32 %v8307_v10, %v7432_v28  ;;  %v7306_v28 = vld [vmem:[%s12519_s4 + $0x420] sm:$0xf] }
 0x51f   : > { %v10405_v51 = vadd.f32 %v2882_v58, %v2565_v45  ;;  %7354 = vmatmul.msk.bf16.gmra.mxu2 %vm1386_vm6, %v7279_v21  ;;  %v7440_v45 = vld [vmem:[%s12519_s4 + $0x4e8] sm:$0xf0] }
 0x522   : > { %v2524_v18 = vpop.f32.mrf.mxu2  ;;  %v2817_v31 = vpop.f32.mrf.mxu1 }
 0x523   : > { %v2525_v63 = vadd.f32 %v2524_v18, %v10304_v23  ;;  %v2887_v15 = vadd.f32 %v10324_v40, %v2817_v31  ;;  %v10412_v34 = vpop.f32.mrf.mxu3  ;;  %v7414_v23 = vld [vmem:[%s12519_s4 + $0x4b0] sm:$0xf]  ;;  %v8304_v40 = vld [vmem:[%s12519_s4 + $0x4b4] sm:$0xf0]  ;;  %v7292_v31 = vld [vmem:[%s12519_s4 + $0x408] sm:$0xf0] }
 0x524   : > { %v7415_v27 = vor.u32 %v8304_v40, %v7414_v23  ;;  %v10436_v7 = vpop.f32.mrf.mxu0  ;;  %v8286_v23 = vld [vmem:[%s12519_s4 + $0x424] sm:$0xf0] }
 0x525   : > { %v2566_v2 = vadd.f32 %v2525_v63, %v9847_v16  ;;  %v8279_v16 = vld [vmem:[%s12519_s4 + $0x3f4] sm:$0xf] }
 0x526   : > { %v7287_v48 = vor.u32 %v8279_v16, %v7284_v25  ;;  %v7307_v25 = vor.u32 %v8286_v23, %v7306_v28 }
 0x527   : > { %v10421_v13 = vadd.f32 %v2885_v4, %v2566_v2  ;;  %7489 = vmatmul.msk.bf16.gmra.mxu3 %vm1386_vm6, %v7435_v35  ;;  %3169 = vmatmul.bf16.gmra.mxu0 %v7299_v26 }
 0x52a   : > { %v2526_v58 = vpop.f32.mrf.mxu2  ;;  %v2820_v52 = vpop.f32.mrf.mxu1 }
 0x52b   : > { %v2527_v38 = vadd.f32 %v2526_v58, %v10320_v33  ;;  %v2890_v57 = vadd.f32 %v10358_v20, %v2820_v52  ;;  %v10446_v14 = vpop.f32.mrf.mxu3 }
 0x52c   : > { %v10452_v21 = vpop.f32.mrf.mxu0 }
 0x52d   : > { %v2567_v32 = vadd.f32 %v2527_v38, %v9858_v0  ;;  %3519 = vmatmul.bf16.gmra.mxu1 %v7415_v27  ;;  %v8309_v0 = vld [vmem:[%s12519_s4 + $0x4e4] sm:$0xf] }
 0x52e   : > { %v7443_v63 = vor.u32 %v8309_v0, %v7440_v45  ;;  %v7314_v45 = vld [vmem:[%s12519_s4 + $0x430] sm:$0xf] }
 0x52f   : > { %v10449_v6 = vadd.f32 %v2887_v15, %v2567_v32  ;;  %7355 = vmatmul.msk.bf16.gmra.mxu2 %vm1386_vm6, %v7287_v48  ;;  %v7448_v32 = vld [vmem:[%s12519_s4 + $0x4f8] sm:$0xf0] }
 0x532   : > { %v2529_v29 = vpop.f32.mrf.mxu2  ;;  %v2822_v30 = vpop.f32.mrf.mxu1 }
 0x533   : > { %v2530_v33 = vadd.f32 %v2529_v29, %v10348_v39  ;;  %v2892_v55 = vadd.f32 %v10368_v17, %v2822_v30  ;;  %v10456_v4 = vpop.f32.mrf.mxu3  ;;  %v7422_v39 = vld [vmem:[%s12519_s4 + $0x4c0] sm:$0xf]  ;;  %v8306_v17 = vld [vmem:[%s12519_s4 + $0x4c4] sm:$0xf0]  ;;  %v7300_v30 = vld [vmem:[%s12519_s4 + $0x418] sm:$0xf0] }
 0x534   : > { %v7423_v2 = vor.u32 %v8306_v17, %v7422_v39  ;;  %v10480_v10 = vpop.f32.mrf.mxu0  ;;  %v8288_v39 = vld [vmem:[%s12519_s4 + $0x434] sm:$0xf0] }
 0x535   : > { %v2568_v20 = vadd.f32 %v2530_v33, %v9891_v3  ;;  %v8281_v3 = vld [vmem:[%s12519_s4 + $0x404] sm:$0xf] }
 0x536   : > { %v7295_v35 = vor.u32 %v8281_v3, %v7292_v31  ;;  %v7315_v31 = vor.u32 %v8288_v39, %v7314_v45 }
 0x537   : > { %v10465_v18 = vadd.f32 %v2890_v57, %v2568_v20  ;;  %7490 = vmatmul.msk.bf16.gmra.mxu3 %vm1386_vm6, %v7443_v63  ;;  %3174 = vmatmul.bf16.gmra.mxu0 %v7307_v25 }
 0x53a   : > { %v2531_v15 = vpop.f32.mrf.mxu2  ;;  %v2825_v16 = vpop.f32.mrf.mxu1 }
 0x53b   : > { %v2532_v40 = vadd.f32 %v2531_v15, %v10364_v36  ;;  %v2895_v58 = vadd.f32 %v10402_v12, %v2825_v16  ;;  %v10490_v27 = vpop.f32.mrf.mxu3 }
 0x53c   : > { %v10496_v48 = vpop.f32.mrf.mxu0 }
 0x53d   : > { %v2569_v37 = vadd.f32 %v2532_v40, %v9901_v59  ;;  %3524 = vmatmul.bf16.gmra.mxu1 %v7423_v2  ;;  %v8311_v59 = vld [vmem:[%s12519_s4 + $0x4f4] sm:$0xf] }
 0x53e   : > { %v7451_v33 = vor.u32 %v8311_v59, %v7448_v32  ;;  %v7322_v32 = vld [vmem:[%s12519_s4 + $0x440] sm:$0xf] }
 0x53f   : > { %v10493_v60 = vadd.f32 %v2892_v55, %v2569_v37  ;;  %7356 = vmatmul.msk.bf16.gmra.mxu2 %vm1386_vm6, %v7295_v35  ;;  %v7456_v37 = vld [vmem:[%s12519_s4 + $0x508] sm:$0xf0] }
 0x542   : > { %v2534_v38 = vpop.f32.mrf.mxu2  ;;  %v2827_v52 = vpop.f32.mrf.mxu1 }
 0x543   : > { %v2535_v36 = vadd.f32 %v2534_v38, %v10392_v8  ;;  %v2897_v26 = vadd.f32 %v10412_v34, %v2827_v52  ;;  %v10500_v57 = vpop.f32.mrf.mxu3  ;;  %v7430_v8 = vld [vmem:[%s12519_s4 + $0x4d0] sm:$0xf]  ;;  %v8308_v34 = vld [vmem:[%s12519_s4 + $0x4d4] sm:$0xf0]  ;;  %v7308_v52 = vld [vmem:[%s12519_s4 + $0x428] sm:$0xf0] }
 0x544   : > { %v7431_v20 = vor.u32 %v8308_v34, %v7430_v8  ;;  %v10524_v0 = vpop.f32.mrf.mxu0  ;;  %v8290_v8 = vld [vmem:[%s12519_s4 + $0x444] sm:$0xf0] }
 0x545   : > { %v2570_v12 = vadd.f32 %v2535_v36, %v9936_v47  ;;  %v8283_v47 = vld [vmem:[%s12519_s4 + $0x414] sm:$0xf] }
 0x546   : > { %v7303_v63 = vor.u32 %v8283_v47, %v7300_v30  ;;  %v7323_v30 = vor.u32 %v8290_v8, %v7322_v32 }
 0x547   : > { %v10509_v29 = vadd.f32 %v2895_v58, %v2570_v12  ;;  %7491 = vmatmul.msk.bf16.gmra.mxu3 %vm1386_vm6, %v7451_v33  ;;  %3179 = vmatmul.bf16.gmra.mxu0 %v7315_v31 }
 0x54a   : > { %v2536_v55 = vpop.f32.mrf.mxu2  ;;  %v2830_v3 = vpop.f32.mrf.mxu1 }
 0x54b   : > { %v2537_v17 = vadd.f32 %v2536_v55, %v10408_v61  ;;  %v2900_v15 = vadd.f32 %v10446_v14, %v2830_v3  ;;  %v10534_v2 = vpop.f32.mrf.mxu3 }
 0x54c   : > { %v10540_v35 = vpop.f32.mrf.mxu0 }
 0x54d   : > { %v2571_v28 = vadd.f32 %v2537_v17, %v9947_v1  ;;  %3529 = vmatmul.bf16.gmra.mxu1 %v7431_v20  ;;  %v8313_v1 = vld [vmem:[%s12519_s4 + $0x504] sm:$0xf] }
 0x54e   : > { %v7459_v36 = vor.u32 %v8313_v1, %v7456_v37 }
 0x54f   : > { %v10537_v23 = vadd.f32 %v2897_v26, %v2571_v28  ;;  %7357 = vmatmul.msk.bf16.gmra.mxu2 %vm1386_vm6, %v7303_v63  ;;  %v7464_v28 = vld [vmem:[%s12519_s4 + $0x518] sm:$0xf0] }
 0x552   : > { %v2539_v40 = vpop.f32.mrf.mxu2  ;;  %v2832_v16 = vpop.f32.mrf.mxu1 }
 0x553   : > { %v2540_v61 = vadd.f32 %v2539_v40, %v10436_v7  ;;  %v2902_v25 = vadd.f32 %v10456_v4, %v2832_v16  ;;  %v10544_v58 = vpop.f32.mrf.mxu3  ;;  %v7438_v7 = vld [vmem:[%s12519_s4 + $0x4e0] sm:$0xf]  ;;  %v8310_v4 = vld [vmem:[%s12519_s4 + $0x4e4] sm:$0xf0]  ;;  %v8287_v16 = vld [vmem:[%s12519_s4 + $0x434] sm:$0xf] }
 0x554   : > { %v7439_v12 = vor.u32 %v8310_v4, %v7438_v7  ;;  %v10568_v59 = vpop.f32.mrf.mxu0  ;;  %v7330_v4 = vld [vmem:[%s12519_s4 + $0x450] sm:$0xf] }
 0x555   : > { %v2572_v14 = vadd.f32 %v2540_v61, %v9985_v5  ;;  %v8285_v5 = vld [vmem:[%s12519_s4 + $0x424] sm:$0xf] }
 0x556   : > { %v7311_v33 = vor.u32 %v8285_v5, %v7308_v52 }
 0x557   : > { %v10553_v38 = vadd.f32 %v2900_v15, %v2572_v14  ;;  %7492 = vmatmul.msk.bf16.gmra.mxu3 %vm1386_vm6, %v7459_v36  ;;  %3184 = vmatmul.bf16.gmra.mxu0 %v7323_v30  ;;  %v8292_v36 = vld [vmem:[%s12519_s4 + $0x454] sm:$0xf0] }
 0x55a   : > { %v2541_v26 = vpop.f32.mrf.mxu2  ;;  %v2835_v47 = vpop.f32.mrf.mxu1 }
 0x55b   : > { %v2542_v34 = vadd.f32 %v2541_v26, %v10452_v21  ;;  %v2905_v55 = vadd.f32 %v10490_v27, %v2835_v47  ;;  %v10578_v20 = vpop.f32.mrf.mxu3 }
 0x55c   : > { %v10584_v63 = vpop.f32.mrf.mxu0 }
 0x55d   : > { %v2573_v45 = vadd.f32 %v2542_v34, %v9999_v54  ;;  %3534 = vmatmul.bf16.gmra.mxu1 %v7439_v12  ;;  %v8315_v54 = vld [vmem:[%s12519_s4 + $0x514] sm:$0xf]  ;;  %v7331_v12 = vor.u32 %v8292_v36, %v7330_v4 }
 0x55e   : > { %v7467_v61 = vor.u32 %v8315_v54, %v7464_v28 }
 0x55f   : > { %v10581_v39 = vadd.f32 %v2902_v25, %v2573_v45  ;;  %7358 = vmatmul.msk.bf16.gmra.mxu2 %vm1386_vm6, %v7311_v33  ;;  %v7316_v25 = vld [vmem:[%s12519_s4 + $0x438] sm:$0xf0] }
 0x560   : > { %v7319_v52 = vor.u32 %v8287_v16, %v7316_v25 }
 0x562   : > { %v2544_v17 = vpop.f32.mrf.mxu2  ;;  %v2837_v3 = vpop.f32.mrf.mxu1 }
 0x563   : > { %v2545_v21 = vadd.f32 %v2544_v17, %v10480_v10  ;;  %v2907_v31 = vadd.f32 %v10500_v57, %v2837_v3  ;;  %v10588_v15 = vpop.f32.mrf.mxu3  ;;  %v7446_v10 = vld [vmem:[%s12519_s4 + $0x4f0] sm:$0xf]  ;;  %v8312_v57 = vld [vmem:[%s12519_s4 + $0x4f4] sm:$0xf0] }
 0x564   : > { %v7447_v37 = vor.u32 %v8312_v57, %v7446_v10  ;;  %v10616_v7 = vpop.f32.mrf.mxu0  ;;  %v7338_v57 = vld [vmem:[%s12519_s4 + $0x460] sm:$0xf] }
 0x565   : > { %v2574_v27 = vadd.f32 %v2545_v21, %v10039_v9  ;;  %v3733_v9 = vld [vmem:[%s12521_s6] sm:$0xf]  ;;  %v7472_v21 = vld [vmem:[%s12519_s4 + $0x528] sm:$0xf0] }
 0x566   : > { %v3746_v14 = vsel %vm199_vm0, %v3733_v9, 0  ;;  %v8294_v9 = vld [vmem:[%s12519_s4 + $0x464] sm:$0xf0] }
 0x567   : > { %v10597_v40 = vadd.f32 %v2905_v55, %v2574_v27  ;;  %3755 = vmatpush.bf16.msrb.mxu0 %v3746_v14  ;;  %7493 = vmatmul.msk.bf16.gmra.mxu3 %vm1386_vm6, %v7467_v61  ;;  %v7324_v27 = vld [vmem:[%s12519_s4 + $0x448] sm:$0xf0]  ;;  %v7339_v14 = vor.u32 %v8294_v9, %v7338_v57 }
 0x568   : > { %3189 = vmatmul.bf16.gmra.mxu0 %v7331_v12 }
 0x56a   : > { %v2546_v1 = vpop.f32.mrf.mxu2  ;;  %v2840_v26 = vpop.f32.mrf.mxu1 }
 0x56b   : > { %v2547_v5 = vadd.f32 %v2546_v1, %v10496_v48  ;;  %v2910_v32 = vadd.f32 %v10534_v2, %v2840_v26  ;;  %v10626_v8 = vpop.f32.mrf.mxu3 }
 0x56c   : > { %v10632_v30 = vpop.f32.mrf.mxu0 }
 0x56d   : > { %v2575_v34 = vadd.f32 %v2547_v5, %v10053_v19  ;;  %3539 = vmatmul.bf16.gmra.mxu1 %v7447_v37  ;;  %v8317_v19 = vld [vmem:[%s12519_s4 + $0x524] sm:$0xf] }
 0x56f   : > { %v10629_v33 = vadd.f32 %v2907_v31, %v2575_v34  ;;  %7359 = vmatmul.msk.bf16.gmra.mxu2 %vm1386_vm6, %v7319_v52  ;;  %v7475_v31 = vor.u32 %v8317_v19, %v7472_v21  ;;  %v7480_v34 = vld [vmem:[%s12519_s4 + $0x538] sm:$0xf0]  ;;  %v3659_v19 = vld [vmem:[%s12520_s5 + $0x8] sm:$0xff] }
 0x572   : > { %v2549_v47 = vpop.f32.mrf.mxu2  ;;  %v2842_v55 = vpop.f32.mrf.mxu1 }
 0x573   : > { %v2550_v48 = vadd.f32 %v2549_v47, %v10524_v0  ;;  %v2912_v45 = vadd.f32 %v10544_v58, %v2842_v55  ;;  %v10636_v17 = vpop.f32.mrf.mxu3  ;;  %v7454_v0 = vld [vmem:[%s12519_s4 + $0x500] sm:$0xf]  ;;  %v8314_v58 = vld [vmem:[%s12519_s4 + $0x504] sm:$0xf0]  ;;  %v8291_v55 = vld [vmem:[%s12519_s4 + $0x454] sm:$0xf] }
 0x574   : > { %v7455_v28 = vor.u32 %v8314_v58, %v7454_v0  ;;  %v10660_v10 = vpop.f32.mrf.mxu0  ;;  %v7346_v58 = vld [vmem:[%s12519_s4 + $0x470] sm:$0xf] }
 0x575   : > { %v2576_v2 = vadd.f32 %v2550_v48, %v10093_v56  ;;  %v8289_v56 = vld [vmem:[%s12519_s4 + $0x444] sm:$0xf] }
 0x576   : > { %v7327_v16 = vor.u32 %v8289_v56, %v7324_v27 }
 0x577   : > { %v10645_v3 = vadd.f32 %v2910_v32, %v2576_v2  ;;  %7494 = vmatmul.msk.bf16.gmra.mxu3 %vm1386_vm6, %v7475_v31  ;;  %v8511_v2 = vmov 0   ;;  %v8296_v31 = vld [vmem:[%s12519_s4 + $0x474] sm:$0xf0] }
 0x578   : > { %3194 = vmatmul.bf16.gmra.mxu0 %v7339_v14  ;;  %8456 = vset.pattern.permute.xlu0 %v8511_v2  ;;  %v3661_v14 = vld [vmem:[%s12520_s5 + $0x18] sm:$0xff] }
 0x579   : > { %8457 = vset.pattern.permute.xlu1 %v8511_v2  ;;  %8458 = vset.pattern.permute.xlu2 %v8511_v2 }
 0x57a   : > { %v2551_v54 = vpop.f32.mrf.mxu2  ;;  %v3505_v25 = vpop.f32.mrf.mxu1  ;;  %3689 = vperm.xlu1 %8457, %v3659_v19  }
 0x57b   : > { %v2552_v61 = vadd.f32 %v2551_v54, %v10540_v35  ;;  %v3575_v1 = vadd.f32 %v10578_v20, %v3505_v25  ;;  %v10670_v37 = vpop.f32.mrf.mxu3 }
 0x57c   : > { %v10678_v12 = vpop.f32.mrf.mxu0 }
 0x57d   : > { %v2577_v4 = vadd.f32 %v2552_v61, %v10107_v50  ;;  %3544 = vmatmul.bf16.gmra.mxu1 %v7455_v28  ;;  %v8319_v50 = vld [vmem:[%s12519_s4 + $0x534] sm:$0xf]  ;;  %v7347_v28 = vor.u32 %v8296_v31, %v7346_v58 }
 0x57e   : > { %v7483_v48 = vor.u32 %v8319_v50, %v7480_v34 }
 0x57f   : > { %v10673_v36 = vadd.f32 %v2912_v45, %v2577_v4  ;;  %7360 = vmatmul.msk.bf16.gmra.mxu2 %vm1386_vm6, %v7327_v16  ;;  %v7332_v45 = vld [vmem:[%s12519_s4 + $0x458] sm:$0xf0] }
 0x580   : > { %v7335_v27 = vor.u32 %v8291_v55, %v7332_v45 }
 0x581   : > { %12550 = vst [vmem:[#allocation4_spill] sm:$0xff] %v10673_v36 }
 0x582   : > { %v3214_v5 = vpop.f32.mrf.mxu2  ;;  %v3507_v26 = vpop.f32.mrf.mxu1  ;;  %3699 = vperm.xlu1 %8457, %v3661_v14  }
 0x583   : > { %v3215_v52 = vadd.f32 %v3214_v5, %v10568_v59  ;;  %v3577_v35 = vadd.f32 %v10588_v15, %v3507_v26  ;;  %v10681_v32 = vpop.f32.mrf.mxu3  ;;  %v7462_v59 = vld [vmem:[%s12519_s4 + $0x510] sm:$0xf]  ;;  %v3658_v15 = vld [vmem:[%s12520_s5] sm:$0xff] }
 0x584   : > { %3684 = vperm.xlu0 %8456, %v3658_v15   ;;  %v3160_v61 = vpop.f32.mrf.mxu0  ;;  %v7470_v26 = vld [vmem:[%s12519_s4 + $0x520] sm:$0xf] }
 0x585   : > { %v3274_v20 = vadd.f32 %v3215_v52, %v10157_v49  ;;  %v8316_v49 = vld [vmem:[%s12519_s4 + $0x514] sm:$0xf0] }
 0x586   : > { %v7463_v0 = vor.u32 %v8316_v49, %v7462_v59 }
 0x587   : > { %v10689_v47 = vadd.f32 %v3575_v1, %v3274_v20  ;;  %7495 = vmatmul.msk.bf16.gmra.mxu3 %vm1386_vm6, %v7483_v48  ;;  %v8293_v20 = vld [vmem:[%s12519_s4 + $0x464] sm:$0xf] }
 0x588   : > { %3199 = vmatmul.bf16.gmra.mxu0 %v7347_v28 }
 0x58a   : > { %v3216_v21 = vpop.f32.mrf.mxu2  ;;  %v3510_v54 = vpop.f32.mrf.mxu1 }
 0x58b   : > { %v3217_v56 = vadd.f32 %v3216_v21, %v10584_v63  ;;  %v3580_v57 = vadd.f32 %v10626_v8, %v3510_v54  ;;  %v3589_v25 = vpop.f32.mrf.mxu3  ;;  %v3663_v63 = vld [vmem:[%s12520_s5 + $0x28] sm:$0xff] }
 0x58c   : > { %3709 = vperm.xlu0 %8456, %v3663_v63  }
 0x58d   : > { %v3275_v9 = vadd.f32 %v3217_v56, %v10185_v43  ;;  %3549 = vmatmul.bf16.gmra.mxu1 %v7463_v0 }
 0x58f   : > { %v10719_v16 = vadd.f32 %v3577_v35, %v3275_v9  ;;  %7361 = vmatmul.msk.bf16.gmra.mxu2 %vm1386_vm6, %v7335_v27  ;;  %v8318_v35 = vld [vmem:[%s12519_s4 + $0x524] sm:$0xf0] }
 0x590   : > { %v7471_v34 = vor.u32 %v8318_v35, %v7470_v26 }
 0x592   : > { %v3219_v1 = vpop.f32.mrf.mxu2  ;;  %v3512_v8 = vpop.f32.mrf.mxu1 }
 0x593   : > { %v3220_v43 = vadd.f32 %v3219_v1, %v10616_v7  ;;  %v3582_v4 = vadd.f32 %v10636_v17, %v3512_v8  ;;  %v7340_v7 = vld [vmem:[%s12519_s4 + $0x468] sm:$0xf0]  ;;  %v3162_v17 = vpop.f32.mrf.mxu0  ;;  %v3660_v8 = vld [vmem:[%s12520_s5 + $0x10] sm:$0xff] }
 0x594   : > { %v7343_v49 = vor.u32 %v8293_v20, %v7340_v7  ;;  %3694 = vperm.xlu2 %8458, %v3660_v8   ;;  %v3662_v7 = vld [vmem:[%s12520_s5 + $0x20] sm:$0xff]  ;;  %s8514_s5 = smov (%p1134_p1), 127  }
 0x595   : > { %v3276_v5 = vadd.f32 %v3220_v43, %v10201_v53  ;;  %v3591_v53 = vpop.f32.mrf.mxu3 }
 0x597   : > { %v10731_v52 = vadd.f32 %v3580_v57, %v3276_v5 }
 0x59a   : > { %v3221_v50 = vpop.f32.mrf.mxu2  ;;  %v3515_v15 = vpop.f32.mrf.mxu1 }
 0x59b   : > { %v3222_v59 = vadd.f32 %v3221_v50, %v10632_v30  ;;  %v3585_v48 = vadd.f32 %v10670_v37, %v3515_v15  ;;  %v3165_v19 = vpop.f32.mrf.mxu0  ;;  %v8320_v37 = vld [vmem:[%s12519_s4 + $0x534] sm:$0xf0] }
 0x59c   : > { %3704 = vperm.xlu2 %8458, %v3662_v7  }
 0x59d   : > { %v3277_v55 = vadd.f32 %v3222_v59, %v10229_v24  ;;  %3554 = vmatmul.bf16.gmra.mxu1 %v7471_v34  ;;  %v3594_v58 = vpop.f32.mrf.mxu3  ;;  %v7478_v24 = vld [vmem:[%s12519_s4 + $0x530] sm:$0xf] }
 0x59f   : > { %v10748_v45 = vadd.f32 %v3582_v4, %v3277_v55  ;;  %7362 = vmatmul.msk.bf16.gmra.mxu2 %vm1386_vm6, %v7343_v49 }
 0x5a2   : > { %v3224_v2 = vpop.f32.mrf.mxu2  ;;  %v3517_v0 = vpop.f32.mrf.mxu1 }
 0x5a3   : > { %v3225_v21 = vadd.f32 %v3224_v2, %v10660_v10  ;;  %v3587_v31 = vadd.f32 %v10681_v32, %v3517_v0  ;;  %v8295_v10 = vld [vmem:[%s12519_s4 + $0x474] sm:$0xf]  ;;  %v7348_v32 = vld [vmem:[%s12519_s4 + $0x478] sm:$0xf0]  ;;  %v3167_v14 = vpop.f32.mrf.mxu0  ;;  %s8513_s4 = smov (%p1134_p1), 123  }
 0x5a4   : > { %v7351_v28 = vor.u32 %v8295_v10, %v7348_v32 }
 0x5a5   : > { %v3278_v30 = vadd.f32 %v3225_v21, %v10245_v41  ;;  %v7479_v41 = vor.u32 %v8320_v37, %v7478_v24  ;;  %v3596_v1 = vpop.f32.mrf.mxu3 }
 0x5a7   : > { %v10754_v56 = vadd.f32 %v3585_v48, %v3278_v30 }
 0x5aa   : > { %v3226_v27 = vpop.f32.mrf.mxu2  ;;  %v3520_v57 = vpop.f32.mrf.mxu1 }
 0x5ab   : > { %v3227_v54 = vadd.f32 %v3226_v27, %v10678_v12  ;;  %v3590_v9 = vadd.f32 %v3589_v25, %v3520_v57  ;;  %v3170_v35 = vpop.f32.mrf.mxu0 }
 0x5ad   : > { %v3279_v63 = vadd.f32 %v3227_v54, %v10273_v62  ;;  %3559 = vmatmul.bf16.gmra.mxu1 %v7479_v41  ;;  %v3599_v62 = vpop.f32.mrf.mxu3 }
 0x5af   : > { %v10770_v43 = vadd.f32 %v3587_v31, %v3279_v63  ;;  %7363 = vmatmul.msk.bf16.gmra.mxu2 %vm1386_vm6, %v7351_v28 }
 0x5b1   : > { %12551 = vst [vmem:[#allocation6_spill] sm:$0xff] %v10770_v43 }
 0x5b2   : > { %v3229_v4 = vpop.f32.mrf.mxu2  ;;  %v3522_v12 = vpop.f32.mrf.mxu1 }
 0x5b3   : > { %v3230_v5 = vadd.f32 %v3229_v4, %v3160_v61  ;;  %v3592_v26 = vadd.f32 %v3591_v53, %v3522_v12 }
 0x5b5   : > { %v3280_v25 = vadd.f32 %v3230_v5, %v10289_v42  ;;  %v3172_v42 = vpop.f32.mrf.mxu0  ;;  %v3601_v48 = vpop.f32.mrf.mxu3 }
 0x5b7   : > { %v10777_v20 = vadd.f32 %v3590_v9, %v3280_v25 }
 0x5ba   : > { %v3231_v34 = vpop.f32.mrf.mxu2  ;;  %v3525_v49 = vpop.f32.mrf.mxu1 }
 0x5bb   : > { %v3232_v59 = vadd.f32 %v3231_v34, %v3162_v17  ;;  %v3595_v61 = vadd.f32 %v3594_v58, %v3525_v49 }
 0x5bd   : > { %v3281_v53 = vadd.f32 %v3232_v59, %v10317_v44  ;;  %v3175_v44 = vpop.f32.mrf.mxu0  ;;  %v3604_v32 = vpop.f32.mrf.mxu3 }
 0x5bf   : > { %v10785_v15 = vadd.f32 %v3592_v26, %v3281_v53 }
 0x5c2   : > { %v3234_v2 = vpop.f32.mrf.mxu2  ;;  %v3527_v0 = vpop.f32.mrf.mxu1 }
 0x5c3   : > { %v3235_v21 = vadd.f32 %v3234_v2, %v3165_v19  ;;  %v3597_v31 = vadd.f32 %v3596_v1, %v3527_v0 }
 0x5c5   : > { %v3282_v30 = vadd.f32 %v3235_v21, %v10333_v11  ;;  %v3177_v63 = vpop.f32.mrf.mxu0  ;;  %v3606_v8 = vpop.f32.mrf.mxu3 }
 0x5c7   : > { %v10790_v24 = vadd.f32 %v3595_v61, %v3282_v30 }
 0x5ca   : > { %v3236_v58 = vpop.f32.mrf.mxu2  ;;  %v3530_v10 = vpop.f32.mrf.mxu1 }
 0x5cb   : > { %v3237_v37 = vadd.f32 %v3236_v58, %v3167_v14  ;;  %v3600_v27 = vadd.f32 %v3599_v62, %v3530_v10 }
 0x5cd   : > { %v3283_v41 = vadd.f32 %v3237_v37, %v10361_v46  ;;  %v3180_v25 = vpop.f32.mrf.mxu0 }
 0x5cf   : > { %v10795_v54 = vadd.f32 %v3597_v31, %v3283_v41 }
 0x5d2   : > { %v3239_v28 = vpop.f32.mrf.mxu2  ;;  %v3532_v57 = vpop.f32.mrf.mxu1 }
 0x5d3   : > { %v3240_v11 = vadd.f32 %v3239_v28, %v3170_v35  ;;  %v3602_v9 = vadd.f32 %v3601_v48, %v3532_v57  ;;  %v3609_v35 = vpop.f32.mrf.mxu3 }
 0x5d5   : > { %v3284_v1 = vadd.f32 %v3240_v11, %v10377_v22  ;;  %v3182_v59 = vpop.f32.mrf.mxu0 }
 0x5d7   : > { %v10800_v4 = vadd.f32 %v3600_v27, %v3284_v1 }
 0x5da   : > { %v3241_v5 = vpop.f32.mrf.mxu2  ;;  %v3535_v12 = vpop.f32.mrf.mxu1 }
 0x5db   : > { %v3242_v46 = vadd.f32 %v3241_v5, %v3172_v42  ;;  %v10809_v49 = vpop.f32.mrf.mxu3 }
 0x5dd   : > { %v3285_v26 = vadd.f32 %v3242_v46, %v10405_v51  ;;  %v10811_v2 = vpop.f32.mrf.mxu0  ;;  %v3605_v46 = vadd.f32 %v3604_v32, %v3535_v12 }
 0x5df   : > { %v10805_v62 = vadd.f32 %v3602_v9, %v3285_v26 }
 0x5e1   : > { %12552 = vst [vmem:[#allocation5_spill] sm:$0xff] %v10805_v62 }
 0x5e2   : > { %v3244_v34 = vpop.f32.mrf.mxu2  ;;  %v3537_v22 = vpop.f32.mrf.mxu1 }
 0x5e3   : > { %v10815_v51 = vpop.f32.mrf.mxu3  ;;  %v3245_v11 = vadd.f32 %v3244_v34, %v3175_v44  ;;  %v12555_v44 = vmax.f32 %v10689_v47, %v10777_v20  ;;  %v3607_v12 = vadd.f32 %v3606_v8, %v3537_v22  ;;  %v12556_v20 = vmax.f32 %v10719_v16, %v10785_v15 }
 0x5e5   : > { %v10819_v31 = vpop.f32.mrf.mxu0  ;;  %v3286_v5 = vadd.f32 %v3245_v11, %v10421_v13 }
 0x5e7   : > { %v3646_v17 = vadd.f32 %v3605_v46, %v3286_v5 }
 0x5ea   : > { %v3246_v61 = vpop.f32.mrf.mxu2  ;;  %v3540_v53 = vpop.f32.mrf.mxu1 }
 0x5eb   : > { %v10821_v30 = vpop.f32.mrf.mxu3  ;;  %v3247_v55 = vadd.f32 %v3246_v61, %v3177_v63 }
 0x5ec   : > { %12553 = vst [vmem:[#allocation7_spill] sm:$0xff] %v10821_v30  ;;  %v3690_v8 = vpop.permute.xlu1 %3689 }
 0x5ed   : > { %v3190_v10 = vpop.f32.mrf.mxu0  ;;  %v3287_v36 = vadd.f32 %v3247_v55, %v10449_v6 }
 0x5ee   : > { %v3695_v46 = vpop.permute.xlu2 %3694 }
 0x5f2   : > { %v3249_v48 = vpop.f32.mrf.mxu2  ;;  %v10813_v42 = vpop.f32.mrf.mxu1 }
 0x5f3   : > { %v3619_v27 = vpop.f32.mrf.mxu3  ;;  %v3250_v63 = vadd.f32 %v3249_v48, %v3180_v25  ;;  %v3612_v5 = vadd.f32 %v10809_v49, %v10813_v42 }
 0x5f5   : > { %v3192_v57 = vpop.f32.mrf.mxu0 }
 0x5fa   : > { %v3251_v21 = vpop.f32.mrf.mxu2  ;;  %v10817_v0 = vpop.f32.mrf.mxu1 }
 0x5fb   : > { %v3621_v9 = vpop.f32.mrf.mxu3 }
 0x602   : > { %v10823_v58 = vpop.f32.mrf.mxu2  ;;  %v10825_v37 = vpop.f32.mrf.mxu1 }
 0x603   : > { %12554 = vst [vmem:[#allocation8_spill] sm:$0xff] %v10825_v37  ;;  %v3195_v37 = vpop.f32.mrf.mxu0  ;;  %v3624_v13 = vpop.f32.mrf.mxu3 }
 0x60a   : > { %v10827_v41 = vpop.f32.mrf.mxu2  ;;  %v3550_v28 = vpop.f32.mrf.mxu1 }
 0x60b   : > { %v3620_v7 = vadd.f32 %v3619_v27, %v3550_v28  ;;  %v3647_v28 = vadd.f32 %v3607_v12, %v3287_v36  ;;  %v3197_v36 = vpop.f32.mrf.mxu0  ;;  %v3626_v25 = vpop.f32.mrf.mxu3 }
 0x612   : > { %v3259_v1 = vpop.f32.mrf.mxu2  ;;  %v3552_v14 = vpop.f32.mrf.mxu1 }
 0x613   : > { %v3260_v26 = vadd.f32 %v3259_v1, %v3190_v10  ;;  %v3622_v27 = vadd.f32 %v3621_v9, %v3552_v14 }
 0x615   : > { %v3292_v19 = vadd.f32 %v3260_v26, %v10553_v38  ;;  %v3685_v38 = vpop.permute.xlu0 %3684 }
 0x617   : > { %v3652_v50 = vadd.f32 %v3620_v7, %v3292_v19  ;;  %v3610_v7 = vadd.f32 %v3609_v35, %v3540_v53 }
 0x619   : > { %v3670_v62 = vmax.f32 %v3646_v17, %v3652_v50 }
 0x61a   : > { %v3261_v43 = vpop.f32.mrf.mxu2  ;;  %v3555_v32 = vpop.f32.mrf.mxu1 }
 0x61b   : > { %v3262_v30 = vadd.f32 %v3261_v43, %v3192_v57  ;;  %v3676_v34 = vmax.f32 %v12555_v44, %v3670_v62  ;;  %v3288_v43 = vadd.f32 %v3250_v63, %v10465_v18  ;;  %v3625_v47 = vadd.f32 %v3624_v13, %v3555_v32  ;;  %v3629_v13 = vpop.f32.mrf.mxu3 }
 0x61c   : > { %v3255_v44 = vadd.f32 %v10823_v58, %v10811_v2 }
 0x61d   : > { %v3293_v10 = vadd.f32 %v3262_v30, %v10581_v39  ;;  %v3712_v50 = vadd.f32 %v3685_v38, %v3676_v34  ;;  %v3648_v48 = vadd.f32 %v3610_v7, %v3288_v43  ;;  %v3252_v30 = vadd.f32 %v3251_v21, %v3182_v59  ;;  %v3200_v34 = vpop.f32.mrf.mxu0 }
 0x61f   : > { %v3653_v19 = vadd.f32 %v3622_v27, %v3293_v10  ;;  %v3718_v22 = vmax.f32 %v3712_v50, 0.0  ;;  %v3289_v16 = vadd.f32 %v3252_v30, %v10493_v60  ;;  %v12558_v27 = vmax.f32 %v10748_v45, %v10795_v54  ;;  %v12563_v30 = vld [vmem:[#allocation6_spill] sm:$0xff] }
 0x620   : > { %v3257_v50 = vadd.f32 %v10827_v41, %v10819_v31  ;;  %v12562_v41 = vld [vmem:[#allocation4_spill] sm:$0xff] }
 0x621   : > { %v3671_v17 = vmax.f32 %v3647_v28, %v3653_v19  ;;  %v3724_v11 = vmin.f32 %v3718_v22, 6.0  ;;  %v3649_v26 = vadd.f32 %v3612_v5, %v3289_v16  ;;  %v3700_v28 = vpop.permute.xlu1 %3699  ;;  %v12561_v22 = vld [vmem:[#allocation7_spill] sm:$0xff] }
 0x622   : > { %v3264_v6 = vpop.f32.mrf.mxu2  ;;  %v3557_v61 = vpop.f32.mrf.mxu1  ;;  %v3291_v45 = vadd.f32 %v3257_v50, %v10537_v23 }
 0x623   : > { %v3265_v55 = vadd.f32 %v3264_v6, %v3195_v37  ;;  %v3677_v62 = vmax.f32 %v12556_v20, %v3671_v17  ;;  %v3627_v21 = vadd.f32 %v3626_v25, %v3557_v61  ;;  %v3631_v43 = vpop.f32.mrf.mxu3  ;;  %v3705_v61 = vpop.permute.xlu2 %3704 }
 0x625   : > { %v3294_v39 = vadd.f32 %v3265_v55, %v10597_v40  ;;  %v3713_v14 = vadd.f32 %v3690_v8, %v3677_v62  ;;  %v12557_v40 = vmax.f32 %v10731_v52, %v10790_v24  ;;  %v3615_v24 = vadd.f32 %v10815_v51, %v10817_v0  ;;  %v12560_v8 = vld [vmem:[#allocation8_spill] sm:$0xff] }
 0x626   : > { %v3617_v31 = vadd.f32 %v12561_v22, %v12560_v8 }
 0x627   : > { %v3654_v35 = vadd.f32 %v3625_v47, %v3294_v39  ;;  %v3719_v53 = vmax.f32 %v3713_v14, 0.0 }
 0x629   : > { %v3725_v18 = vmin.f32 %v3719_v53, 6.0  ;;  %v3672_v37 = vmax.f32 %v3648_v48, %v3654_v35  ;;  %v12564_v35 = vld [vmem:[#allocation5_spill] sm:$0xff] }
 0x62a   : > { %v3266_v57 = vpop.f32.mrf.mxu2  ;;  %v3560_v32 = vpop.f32.mrf.mxu1  ;;  %v12565_v53 = vmax.f32 %v12563_v30, %v12564_v35 }
 0x62b   : > { %v3730_v15 = vpack.c.bf16 %v3725_v18, %v3724_v11  ;;  %v3267_v9 = vadd.f32 %v3266_v57, %v3197_v36  ;;  %v3678_v1 = vmax.f32 %v12557_v40, %v3672_v37  ;;  %v3630_v10 = vadd.f32 %v3629_v13, %v3560_v32 }
 0x62c   : > { %v3651_v36 = vadd.f32 %v3617_v31, %v3291_v45  ;;  %v8336_v45 = vld [vmem:[%s12522_s7 + $0x14] sm:$0xf0] (%p1134_p1)  ;;  %v8337_v31 = vld [vmem:[%s12522_s7 + $0x24] sm:$0xf] (%p1134_p1) }
 0x62d   : > { %v3295_v59 = vadd.f32 %v3267_v9, %v10629_v33  ;;  %7496 = vmatmul.msk.bf16.vlgmr.msrb.gmra.mxu0 %vm3734_vm7, %v3730_v15  ;;  %v3714_v12 = vadd.f32 %v3695_v46, %v3678_v1  ;;  %v3290_v33 = vadd.f32 %v3255_v44, %v10509_v29  ;;  %v3202_v29 = vpop.f32.mrf.mxu0 }
 0x62f   : > { %v3655_v60 = vadd.f32 %v3627_v21, %v3295_v59  ;;  %v3720_v2 = vmax.f32 %v3714_v12, 0.0  ;;  %v3650_v19 = vadd.f32 %v3615_v24, %v3290_v33 }
 0x631   : > { %v3673_v52 = vmax.f32 %v3649_v26, %v3655_v60  ;;  %v3726_v0 = vmin.f32 %v3720_v2, 6.0 }
 0x632   : > { %v3269_v49 = vpop.f32.mrf.mxu2  ;;  %v3562_v47 = vpop.f32.mrf.mxu1 }
 0x633   : > { %v3270_v42 = vadd.f32 %v3269_v49, %v3200_v34  ;;  %v3679_v38 = vmax.f32 %v12558_v27, %v3673_v52  ;;  %v3632_v14 = vadd.f32 %v3631_v43, %v3562_v47  ;;  %v7659_v43 = vld [vmem:[%s12522_s7 + $0x18] sm:$0xf0] (%p1134_p1)  ;;  %v7657_v47 = vld [vmem:[%s12522_s7 + $0x10] sm:$0xf] (%p1134_p1) }
 0x635   : > { %v3296_v58 = vadd.f32 %v3270_v42, %v10645_v3  ;;  %v3715_v63 = vadd.f32 %v3700_v28, %v3679_v38  ;;  %v12559_v3 = vmax.f32 %v10754_v56, %v10800_v4  ;;  %v3710_v56 = vpop.permute.xlu0 %3709 }
 0x637   : > { %v3656_v17 = vadd.f32 %v3630_v10, %v3296_v58  ;;  %v3721_v51 = vmax.f32 %v3715_v63, 0.0  ;;  %v8333_v63 = vld [vmem:[%s12522_s7 + $0x4] sm:$0xf] (%p1134_p1) }
 0x639   : > { %v3727_v7 = vmin.f32 %v3721_v51, 6.0  ;;  %v3674_v6 = vmax.f32 %v3650_v19, %v3656_v17  ;;  %v7651_v19 = vld [vmem:[%s12522_s7 + $0x8] sm:$0xf0] (%p1134_p1)  ;;  %v7649_v17 = vld [vmem:[%s12522_s7] sm:$0xf] (%p1134_p1) }
 0x63a   : > { %v3271_v55 = vpop.f32.mrf.mxu2  ;;  %v7654_v50 = vor.u32 (%p1134_p1), %v8333_v63, %v7651_v19  ;;  %v8334_v51 = vld [vmem:[%s12522_s7 + $0x4] sm:$0xf0] (%p1134_p1)  ;;  %v8357_v19 = vld [vmem:[%s12522_s7 + $0xc4] sm:$0xf] (%p1134_p1) }
 0x63b   : > { %v3731_v54 = vpack.c.bf16 %v3727_v7, %v3726_v0  ;;  %v3272_v20 = vadd.f32 %v3271_v55, %v3202_v29  ;;  %v3680_v62 = vmax.f32 %v12559_v3, %v3674_v6  ;;  %v7650_v0 = vor.u32 (%p1134_p1), %v8334_v51, %v7649_v17  ;;  %v8335_v6 = vld [vmem:[%s12522_s7 + $0x14] sm:$0xf] (%p1134_p1) }
 0x63c   :  { %v7662_v55 = vor.u32 (%p1134_p1), %v8335_v6, %v7659_v43  ;;  %v8345_v43 = vld [vmem:[%s12522_s7 + $0x64] sm:$0xf] (%p1134_p1) }
 0x63d   : > { %v3297_v39 = vadd.f32 %v3272_v20, %v12562_v41  ;;  %7497 = vmatmul.msk.bf16.gmra.mxu0 %vm3734_vm7, %v3731_v54  ;;  %v3716_v48 = vadd.f32 %v3705_v61, %v3680_v62  ;;  %v7658_v54 = vor.u32 (%p1134_p1), %v8336_v45, %v7657_v47  ;;  %v7667_v41 = vld [vmem:[%s12522_s7 + $0x28] sm:$0xf0] (%p1134_p1) }
 0x63f   : > { %v3657_v25 = vadd.f32 %v3632_v14, %v3297_v39  ;;  %v3722_v4 = vmax.f32 %v3716_v48, 0.0  ;;  %v7670_v14 = vor.u32 (%p1134_p1), %v8337_v31, %v7667_v41  ;;  %v8351_v48 = vld [vmem:[%s12522_s7 + $0x94] sm:$0xf] (%p1134_p1)  ;;  %v7554_v31 = vld [vmem:[%s12522_s7 + $0xd8] sm:$0xf0] (%p1134_p1) }
 0x641   : > { %v3675_v23 = vmax.f32 %v3651_v36, %v3657_v25  ;;  %v3728_v57 = vmin.f32 %v3722_v4, 6.0  ;;  %v7665_v36 = vld [vmem:[%s12522_s7 + $0x20] sm:$0xf] (%p1134_p1)  ;;  %v8338_v25 = vld [vmem:[%s12522_s7 + $0x24] sm:$0xf0] (%p1134_p1) }
 0x642   :  { %v7666_v61 = vor.u32 (%p1134_p1), %v8338_v25, %v7665_v36  ;;  %v7552_v36 = vld [vmem:[%s12522_s7 + $0xd0] sm:$0xf] (%p1134_p1)  ;;  %v8360_v25 = vld [vmem:[%s12522_s7 + $0xd4] sm:$0xf0] (%p1134_p1) }
 0x643   : > { %v3681_v11 = vmax.f32 %v12565_v53, %v3675_v23  ;;  %v7522_v23 = vld [vmem:[%s12522_s7 + $0x98] sm:$0xf0] (%p1134_p1) }
 0x644   :  { %v7525_v35 = vor.u32 (%p1134_p1), %v8351_v48, %v7522_v23  ;;  %v8347_v48 = vld [vmem:[%s12522_s7 + $0x74] sm:$0xf] (%p1134_p1)  ;;  %v7707_v23 = vld [vmem:[%s12522_s7 + $0x78] sm:$0xf0] (%p1134_p1) }
 0x645   : > { %v3717_v18 = vadd.f32 %v3710_v56, %v3681_v11  ;;  %v7520_v11 = vld [vmem:[%s12522_s7 + $0x90] sm:$0xf] (%p1134_p1)  ;;  %v8352_v56 = vld [vmem:[%s12522_s7 + $0x94] sm:$0xf0] (%p1134_p1) }
 0x647   : > { %v3723_v37 = vmax.f32 %v3717_v18, 0.0  ;;  %v7521_v18 = vor.u32 (%p1134_p1), %v8352_v56, %v7520_v11  ;;  %v8348_v11 = vld [vmem:[%s12522_s7 + $0x74] sm:$0xf0] (%p1134_p1) }
 0x649   : > { %v3729_v16 = vmin.f32 %v3723_v37, 6.0  ;;  %v8339_v37 = vld [vmem:[%s12522_s7 + $0x34] sm:$0xf] (%p1134_p1) }
 0x64b   : > { %v3732_v15 = vpack.c.bf16 %v3729_v16, %v3728_v57  ;;  %v7675_v57 = vld [vmem:[%s12522_s7 + $0x38] sm:$0xf0] (%p1134_p1) }
 0x64c   :  { %v7678_v16 = vor.u32 (%p1134_p1), %v8339_v37, %v7675_v57  ;;  %v8361_v37 = vld [vmem:[%s12522_s7 + $0xe4] sm:$0xf] (%p1134_p1)  ;;  %v7562_v57 = vld [vmem:[%s12522_s7 + $0xe8] sm:$0xf0] (%p1134_p1) }
 0x64d   : > { %7498 = vmatmul.msk.bf16.gmra.mxu0 %vm3734_vm7, %v3732_v15  ;;  %v7673_v15 = vld [vmem:[%s12522_s7 + $0x30] sm:$0xf] (%p1134_p1) }
 0x6aa   : > { %v3757_v9 = vpop.f32.mrf.mxu0 }
 0x6ab   : > { %v3772_v40 = vpack.c.bf16 %v3757_v9, %v3757_v9  ;;  %v8340_v9 = vld [vmem:[%s12522_s7 + $0x34] sm:$0xf0] (%p1134_p1) }
 0x6ad   : > { %3784 = vst.msk [vmem:[%s3782_s1] sm:$0xf] %vm3783_vm8, %v3772_v40  ;;  %v7674_v40 = vor.u32 (%p1134_p1), %v8340_v9, %v7673_v15  ;;  %v7565_v15 = vor.u32 (%p1134_p1), %v8361_v37, %v7562_v57  ;;  %v7584_v37 = vld [vmem:[%s12522_s7 + $0x110] sm:$0xf] (%p1134_p1)  ;;  %v8368_v57 = vld [vmem:[%s12522_s7 + $0x114] sm:$0xf0] (%p1134_p1) }
 0x6b2   : > { %v3759_v1 = vpop.f32.mrf.mxu0 }
 0x6b3   : > { %v3773_v5 = vpack.c.bf16 %v3759_v1, %v3759_v1  ;;  %v8353_v1 = vld [vmem:[%s12522_s7 + $0xa4] sm:$0xf] (%p1134_p1) }
 0x6b5   : > { %3785 = vst.msk [vmem:[%s3782_s1 + $0x4] sm:$0xf] %vm3783_vm8, %v3773_v5  ;;  %v7530_v5 = vld [vmem:[%s12522_s7 + $0xa8] sm:$0xf0] (%p1134_p1) }
 0x6ba   : > { %v3762_v59 = vpop.f32.mrf.mxu0 }
 0x6bb   : > { %v3774_v21 = vpack.c.bf16 %v3762_v59, %v3762_v59  ;;  %v7533_v59 = vor.u32 (%p1134_p1), %v8353_v1, %v7530_v5  ;;  %v7560_v1 = vld [vmem:[%s12522_s7 + $0xe0] sm:$0xf] (%p1134_p1)  ;;  %v8362_v5 = vld [vmem:[%s12522_s7 + $0xe4] sm:$0xf0] (%p1134_p1) }
 0x6bd   : > { %3786 = vst.msk [vmem:[%s3782_s1 + $0x8] sm:$0xf] %vm3783_vm8, %v3774_v21  ;;  %v7528_v21 = vld [vmem:[%s12522_s7 + $0xa0] sm:$0xf] (%p1134_p1) }
 0x6c2   : > { %v3764_v46 = vpop.f32.mrf.mxu0 }
 0x6c3   : > { %v3775_v26 = vpack.c.bf16 %v3764_v46, %v3764_v46  ;;  %v8354_v46 = vld [vmem:[%s12522_s7 + $0xa4] sm:$0xf0] (%p1134_p1) }
 0x6c5   : > { %3787 = vst.msk [vmem:[%s3782_s1 + $0xc] sm:$0xf] %vm3783_vm8, %v3775_v26  ;;  %v7529_v26 = vor.u32 (%p1134_p1), %v8354_v46, %v7528_v21  ;;  %v8349_v21 = vld [vmem:[%s12522_s7 + $0x84] sm:$0xf] (%p1134_p1)  ;;  %v7715_v46 = vld [vmem:[%s12522_s7 + $0x88] sm:$0xf0] (%p1134_p1) }
 0x6ca   : > { %v3767_v44 = vpop.f32.mrf.mxu0 }
 0x6cb   : > { %v3776_v60 = vpack.c.bf16 %v3767_v44, %v3767_v44  ;;  %v8341_v44 = vld [vmem:[%s12522_s7 + $0x44] sm:$0xf] (%p1134_p1) }
 0x6cd   : > { %3788 = vst.msk [vmem:[%s3782_s1 + $0x10] sm:$0xf] %vm3783_vm8, %v3776_v60  ;;  %v7683_v60 = vld [vmem:[%s12522_s7 + $0x48] sm:$0xf0] (%p1134_p1) }
 0x6d1   :  { %1136 = sbr.rel (!%p1134_p1) target bundleno = 636 (0x27c), region = 134 }
 0x6d2   : > { %v3769_v34 = vpop.f32.mrf.mxu0 }
 0x6d3   : > { %v3777_v13 = vpack.c.bf16 %v3769_v34, %v3769_v34  ;;  %v7686_v34 = vor.u32 (%p1134_p1), %v8341_v44, %v7683_v60  ;;  %v7718_v44 = vor.u32 (%p1134_p1), %v8349_v21, %v7715_v46  ;;  %v7713_v60 = vld [vmem:[%s12522_s7 + $0x80] sm:$0xf] (%p1134_p1) }
 0x6d5   : > { %3789 = vst.msk [vmem:[%s3782_s1 + $0x14] sm:$0xf] %vm3783_vm8, %v3777_v13  ;;  %v7681_v13 = vld [vmem:[%s12522_s7 + $0x40] sm:$0xf] (%p1134_p1) }
 0x6dc   :  { %v8328_v32 = vld [vmem:[#allocation3 + $0x38] sm:$0xff]  ;;  %v8326_v12 = vld [vmem:[#allocation3 + $0x28] sm:$0xff]  ;;  %v8327_v24 = vld [vmem:[#allocation3 + $0x30] sm:$0xff] }
 0x6dd   :  { %4006 = vrot.lane.b32.xlu0 %v8328_v32, %s8512_s20  ;;  %4002 = vrot.lane.b32.xlu1 %v8326_v12, %s8512_s20  ;;  %v8332_v52 = vld [vmem:[#allocation3 + $0x58] sm:$0xff]  ;;  %v8325_v49 = vld [vmem:[#allocation3 + $0x20] sm:$0xff]  ;;  %v8331_v33 = vld [vmem:[#allocation3 + $0x50] sm:$0xff] }
 0x6de   :  { %4284 = vmatpush.bf16.msra.mxu2 %v8328_v32  ;;  %4014 = vrot.lane.b32.xlu2 %v8332_v52, %s8512_s20  ;;  %v8324_v42 = vld [vmem:[#allocation3 + $0x18] sm:$0xff]  ;;  %v8330_v10 = vld [vmem:[#allocation3 + $0x48] sm:$0xff]  ;;  %v8323_v27 = vld [vmem:[#allocation3 + $0x10] sm:$0xff] }
 0x6df   :  { %4342 = vmatpush.bf16.msra.mxu3 %v8332_v52  ;;  %v8329_v38 = vld [vmem:[#allocation3 + $0x40] sm:$0xff]  ;;  %v8322_v28 = vld [vmem:[#allocation3 + $0x8] sm:$0xff] }
 0x6e0   :  { %v8321_v2 = vld [vmem:[#allocation3] sm:$0xff] }
 0x6e2   :  { %4285 = vmatpush.bf16.msra.mxu2 %v8327_v24 }
 0x6e3   :  { %4343 = vmatpush.bf16.msra.mxu3 %v8331_v33 }
 0x6e5   :  { %4004 = vrot.lane.b32.xlu0 %v8327_v24, %s8512_s20  ;;  %4000 = vrot.lane.b32.xlu1 %v8325_v49, %s8512_s20 }
 0x6e6   :  { %4286 = vmatpush.bf16.msra.mxu2 %v8326_v12  ;;  %3998 = vrot.lane.b32.xlu2 %v8324_v42, %s8512_s20 }
 0x6e7   :  { %4344 = vmatpush.bf16.msra.mxu3 %v8330_v10 }
 0x6ea   :  { %4287 = vmatpush.bf16.msra.mxu2 %v8325_v49 }
 0x6eb   :  { %4345 = vmatpush.bf16.msra.mxu3 %v8329_v38 }
 0x6ed   :  { %4012 = vrot.lane.b32.xlu0 %v8331_v33, %s8512_s20  ;;  %3996 = vrot.lane.b32.xlu1 %v8323_v27, %s8512_s20 }
 0x6ee   :  { %4288 = vmatpush.bf16.msra.mxu2 %v8324_v42  ;;  %4010 = vrot.lane.b32.xlu2 %v8330_v10, %s8512_s20 }
 0x6ef   :  { %7719 = vmatmul.msk.bf16.vlgmr.msra.gmra.mxu3 %vm4028_vm9, %v7654_v50  ;;  %v7546_v50 = vld [vmem:[%s12522_s7 + $0xc8] sm:$0xf0] }
 0x6f0   :  { %v7549_v17 = vor.u32 %v8357_v19, %v7546_v50  ;;  %v8369_v50 = vld [vmem:[%s12522_s7 + $0x124] sm:$0xf] }
 0x6f2   :  { %4289 = vmatpush.bf16.msra.mxu2 %v8323_v27 }
 0x6f5   :  { %4008 = vrot.lane.b32.xlu1 %v8329_v38, %s8512_s20  ;;  %3994 = vrot.lane.b32.xlu0 %v8322_v28, %s8512_s20 }
 0x6f6   :  { %4290 = vmatpush.bf16.msra.mxu2 %v8322_v28  ;;  %3992 = vrot.lane.b32.xlu2 %v8321_v2, %s8512_s20 }
 0x6fa   :  { %4291 = vmatpush.bf16.msra.mxu2 %v8321_v2 }
 0x6fd   :  { %4795 = vrot.lane.b32.xlu1 %v8328_v32, %s8513_s4  ;;  %4506 = vrot.lane.b32.xlu0 %v8328_v32, %s8514_s5  ;;  %v8342_v32 = vld [vmem:[%s12522_s7 + $0x44] sm:$0xf0] }
 0x6fe   :  { %4504 = vrot.lane.b32.xlu2 %v8327_v24, %s8514_s5  ;;  %4292 = vmatmul.bf16.vlgmr.msra.gmra.mxu2 %v7650_v0 }
 0x6ff   :  { %7720 = vmatmul.msk.bf16.gmra.mxu3 %vm4028_vm9, %v7662_v55  ;;  %v7699_v55 = vld [vmem:[%s12522_s7 + $0x68] sm:$0xf0] }
 0x700   :  { %v7702_v45 = vor.u32 %v8345_v43, %v7699_v55  ;;  %v8365_v55 = vld [vmem:[%s12522_s7 + $0x104] sm:$0xf] }
 0x705   :  { %4502 = vrot.lane.b32.xlu1 %v8326_v12, %s8514_s5  ;;  %4793 = vrot.lane.b32.xlu0 %v8327_v24, %s8513_s4  ;;  %v7538_v24 = vld [vmem:[%s12522_s7 + $0xb8] sm:$0xf0] }
 0x706   :  { %4514 = vrot.lane.b32.xlu2 %v8332_v52, %s8514_s5 }
 0x70d   :  { %4500 = vrot.lane.b32.xlu1 %v8325_v49, %s8514_s5  ;;  %4791 = vrot.lane.b32.xlu0 %v8326_v12, %s8513_s4  ;;  %v7682_v12 = vor.u32 %v8342_v32, %v7681_v13 }
 0x70e   :  { %4803 = vrot.lane.b32.xlu2 %v8332_v52, %s8513_s4  ;;  %4297 = vmatmul.bf16.gmra.mxu2 %v7658_v54  ;;  %v8355_v52 = vld [vmem:[%s12522_s7 + $0xb4] sm:$0xf]  ;;  %v7697_v54 = vld [vmem:[%s12522_s7 + $0x60] sm:$0xf] }
 0x70f   :  { %7721 = vmatmul.msk.bf16.gmra.mxu3 %vm4028_vm9, %v7670_v14 }
 0x715   :  { %4789 = vrot.lane.b32.xlu1 %v8325_v49, %s8513_s4  ;;  %4512 = vrot.lane.b32.xlu0 %v8331_v33, %s8514_s5  ;;  %v7541_v49 = vor.u32 %v8355_v52, %v7538_v24  ;;  %v8363_v52 = vld [vmem:[%s12522_s7 + $0xf4] sm:$0xf]  ;;  %v7570_v24 = vld [vmem:[%s12522_s7 + $0xf8] sm:$0xf0] }
 0x716   :  { %4498 = vrot.lane.b32.xlu2 %v8324_v42, %s8514_s5 }
 0x71d   :  { %4510 = vrot.lane.b32.xlu1 %v8330_v10, %s8514_s5  ;;  %4801 = vrot.lane.b32.xlu0 %v8331_v33, %s8513_s4  ;;  %v7536_v33 = vld [vmem:[%s12522_s7 + $0xb0] sm:$0xf] }
 0x71e   :  { %4787 = vrot.lane.b32.xlu2 %v8324_v42, %s8513_s4  ;;  %4302 = vmatmul.bf16.gmra.mxu2 %v7666_v61  ;;  %v8356_v42 = vld [vmem:[%s12522_s7 + $0xb4] sm:$0xf0] }
 0x71f   :  { %7722 = vmatmul.msk.bf16.gmra.mxu3 %vm4028_vm9, %v7678_v16 }
 0x725   :  { %4799 = vrot.lane.b32.xlu1 %v8330_v10, %s8513_s4  ;;  %4496 = vrot.lane.b32.xlu0 %v8323_v27, %s8514_s5  ;;  %v7537_v10 = vor.u32 %v8356_v42, %v7536_v33  ;;  %v7573_v33 = vor.u32 %v8363_v52, %v7570_v24 }
 0x726   :  { %4508 = vrot.lane.b32.xlu2 %v8329_v38, %s8514_s5 }
 0x72d   :  { %4494 = vrot.lane.b32.xlu1 %v8322_v28, %s8514_s5  ;;  %4785 = vrot.lane.b32.xlu0 %v8323_v27, %s8513_s4  ;;  %v8343_v27 = vld [vmem:[%s12522_s7 + $0x54] sm:$0xf] }
 0x72e   :  { %4797 = vrot.lane.b32.xlu2 %v8329_v38, %s8513_s4  ;;  %4307 = vmatmul.bf16.gmra.mxu2 %v7674_v40  ;;  %v7691_v38 = vld [vmem:[%s12522_s7 + $0x58] sm:$0xf0] }
 0x72f   :  { %7723 = vmatmul.msk.bf16.gmra.mxu3 %vm4028_vm9, %v7686_v34  ;;  %v8350_v34 = vld [vmem:[%s12522_s7 + $0x84] sm:$0xf0] }
 0x730   :  { %v7714_v32 = vor.u32 %v8350_v34, %v7713_v60 }
 0x735   :  { %4492 = vrot.lane.b32.xlu1 %v8321_v2, %s8514_s5  ;;  %4783 = vrot.lane.b32.xlu0 %v8322_v28, %s8513_s4  ;;  %v7694_v28 = vor.u32 %v8343_v27, %v7691_v38 }
 0x736   :  { %4781 = vrot.lane.b32.xlu2 %v8321_v2, %s8513_s4  ;;  %v7689_v2 = vld [vmem:[%s12522_s7 + $0x50] sm:$0xf] }
 0x738   :  { %v4015_v58 = vpop.permute.xlu2 %4014 }
 0x739   :  { %4114 = vmatpush.bf16.msra.mxu1 %v4015_v58  ;;  %v8344_v58 = vld [vmem:[%s12522_s7 + $0x54] sm:$0xf0] }
 0x73a   :  { %v7690_v63 = vor.u32 %v8344_v58, %v7689_v2  ;;  %v8364_v2 = vld [vmem:[%s12522_s7 + $0xf4] sm:$0xf0] }
 0x73e   :  { %4312 = vmatmul.bf16.gmra.mxu2 %v7682_v12 }
 0x73f   :  { %7724 = vmatmul.msk.bf16.gmra.mxu3 %vm4028_vm9, %v7694_v28  ;;  %v7568_v28 = vld [vmem:[%s12522_s7 + $0xf0] sm:$0xf] }
 0x740   :  { %v3999_v20 = vpop.permute.xlu2 %3998 }
 0x748   :  { %v4011_v39 = vpop.permute.xlu2 %4010 }
 0x74e   :  { %4317 = vmatmul.bf16.gmra.mxu2 %v7690_v63  ;;  %v7569_v63 = vor.u32 %v8364_v2, %v7568_v28  ;;  %v8388_v28 = vld [vmem:[%s12522_s7 + $0x1b4] sm:$0xf0] }
 0x74f   :  { %v4007_v7 = vpop.permute.xlu0 %4006  ;;  %v4003_v29 = vpop.permute.xlu1 %4002  ;;  %7725 = vmatmul.msk.bf16.gmra.mxu3 %vm4028_vm9, %v7702_v45 }
 0x750   :  { %4056 = vmatpush.bf16.msra.mxu0 %v4007_v7  ;;  %v3993_v4 = vpop.permute.xlu2 %3992  ;;  %v7544_v7 = vld [vmem:[%s12522_s7 + $0xc0] sm:$0xf] }
 0x757   :  { %v4005_v3 = vpop.permute.xlu0 %4004  ;;  %v4001_v62 = vpop.permute.xlu1 %4000 }
 0x758   :  { %4057 = vmatpush.bf16.msra.mxu0 %v4005_v3  ;;  %v4505_v0 = vpop.permute.xlu2 %4504 }
 0x75c   :  { %4058 = vmatpush.bf16.msra.mxu0 %v4003_v29  ;;  %v8358_v29 = vld [vmem:[%s12522_s7 + $0xc4] sm:$0xf0] }
 0x75d   :  { %v7545_v47 = vor.u32 %v8358_v29, %v7544_v7  ;;  %v8387_v7 = vld [vmem:[%s12522_s7 + $0x1b4] sm:$0xf]  ;;  %v7849_v29 = vld [vmem:[%s12522_s7 + $0x1b8] sm:$0xf0] }
 0x75e   :  { %v7852_v43 = vor.u32 %v8387_v7, %v7849_v29 }
 0x75f   :  { %v4013_v8 = vpop.permute.xlu0 %4012  ;;  %v3997_v22 = vpop.permute.xlu1 %3996 }
 0x760   :  { %4059 = vmatpush.bf16.msra.mxu0 %v4001_v62  ;;  %4115 = vmatpush.bf16.msra.mxu1 %v4013_v8  ;;  %v4515_v8 = vpop.permute.xlu2 %4514 }
 0x761   :  { %4613 = vmatpush.bf16.msrb.mxu3 %v4515_v8  ;;  %v7576_v8 = vld [vmem:[%s12522_s7 + $0x100] sm:$0xf] }
 0x764   :  { %4060 = vmatpush.bf16.msra.mxu0 %v3999_v20  ;;  %4116 = vmatpush.bf16.msra.mxu1 %v4011_v39  ;;  %v8346_v20 = vld [vmem:[%s12522_s7 + $0x64] sm:$0xf0] }
 0x765   :  { %v7698_v3 = vor.u32 %v8346_v20, %v7697_v54 }
 0x767   :  { %v4009_v30 = vpop.permute.xlu1 %4008  ;;  %v3995_v53 = vpop.permute.xlu0 %3994  ;;  %4322 = vmatmul.bf16.gmra.mxu2 %v7698_v3 }
 0x768   :  { %4061 = vmatpush.bf16.msra.mxu0 %v3997_v22  ;;  %4117 = vmatpush.bf16.msra.mxu1 %v4009_v30  ;;  %v8359_v22 = vld [vmem:[%s12522_s7 + $0xd4] sm:$0xf]  ;;  %v4804_v61 = vpop.permute.xlu2 %4803  ;;  %v7553_v30 = vor.u32 %v8360_v25, %v7552_v36  ;;  %v7758_v25 = vld [vmem:[%s12522_s7 + $0x138] sm:$0xf0] }
 0x769   :  { %v7557_v41 = vor.u32 %v8359_v22, %v7554_v31  ;;  %4902 = vmatpush.bf16.msrb.mxu2 %v4804_v61  ;;  %v8366_v22 = vld [vmem:[%s12522_s7 + $0x104] sm:$0xf0]  ;;  %v8371_v36 = vld [vmem:[%s12522_s7 + $0x134] sm:$0xf] }
 0x76a   :  { %v7761_v61 = vor.u32 %v8371_v36, %v7758_v25 }
 0x76b   :  { %7638 = vmatmul.msk.bf16.vlgmr.msra.gmra.mxu1 %vm4028_vm9, %v7525_v35  ;;  %v7710_v35 = vor.u32 %v8347_v48, %v7707_v23  ;;  %v8389_v48 = vld [vmem:[%s12522_s7 + $0x1c4] sm:$0xf]  ;;  %v7857_v23 = vld [vmem:[%s12522_s7 + $0x1c8] sm:$0xf0] }
 0x76c   :  { %4062 = vmatpush.bf16.msra.mxu0 %v3995_v53  ;;  %v7705_v53 = vld [vmem:[%s12522_s7 + $0x70] sm:$0xf] }
 0x76d   :  { %7726 = vmatmul.msk.bf16.gmra.mxu3 %vm4028_vm9, %v7710_v35  ;;  %v8367_v35 = vld [vmem:[%s12522_s7 + $0x114] sm:$0xf] }
 0x76f   :  { %v4796_v51 = vpop.permute.xlu1 %4795  ;;  %v4507_v6 = vpop.permute.xlu0 %4506 }
 0x770   :  { %4063 = vmatpush.bf16.msra.mxu0 %v3993_v4  ;;  %4555 = vmatpush.bf16.msrb.mxu1 %v4507_v6  ;;  %v7706_v4 = vor.u32 %v8348_v11, %v7705_v53  ;;  %v4499_v16 = vpop.permute.xlu2 %4498  ;;  %v7586_v53 = vld [vmem:[%s12522_s7 + $0x118] sm:$0xf0] }
 0x771   :  { %v7589_v11 = vor.u32 %v8367_v35, %v7586_v53  ;;  %v8377_v53 = vld [vmem:[%s12522_s7 + $0x164] sm:$0xf] }
 0x773   :  { %4064 = vmatmul.bf16.vlgmr.msra.gmra.mxu0 %v7521_v18 }
 0x774   :  { %4844 = vmatpush.bf16.msrb.mxu0 %v4796_v51  ;;  %4556 = vmatpush.bf16.msrb.mxu1 %v4505_v0  ;;  %v7750_v51 = vld [vmem:[%s12522_s7 + $0x128] sm:$0xf0] }
 0x775   :  { %v7753_v0 = vor.u32 %v8369_v50, %v7750_v51  ;;  %v8375_v51 = vld [vmem:[%s12522_s7 + $0x154] sm:$0xf] }
 0x777   :  { %v4503_v62 = vpop.permute.xlu1 %4502  ;;  %v4794_v39 = vpop.permute.xlu0 %4793  ;;  %4327 = vmatmul.bf16.gmra.mxu2 %v7706_v4 }
 0x778   :  { %4557 = vmatpush.bf16.msrb.mxu1 %v4503_v62  ;;  %4845 = vmatpush.bf16.msrb.mxu0 %v4794_v39 }
 0x77b   :  { %7639 = vmatmul.msk.bf16.gmra.mxu1 %vm4028_vm9, %v7533_v59  ;;  %v4788_v59 = vpop.permute.xlu2 %4787 }
 0x77d   :  { %7727 = vmatmul.msk.bf16.gmra.mxu3 %vm4028_vm9, %v7718_v44  ;;  %v7865_v44 = vld [vmem:[%s12522_s7 + $0x1d8] sm:$0xf0] }
 0x77f   :  { %v4501_v14 = vpop.permute.xlu1 %4500  ;;  %v4792_v56 = vpop.permute.xlu0 %4791 }
 0x780   :  { %4558 = vmatpush.bf16.msrb.mxu1 %v4501_v14  ;;  %4846 = vmatpush.bf16.msrb.mxu0 %v4792_v56 }
 0x781   :  { %v11109_v42 = vpop.f32.mrf.mxu2 }
 0x783   :  { %4069 = vmatmul.bf16.gmra.mxu0 %v7529_v26  ;;  %v7561_v26 = vor.u32 %v8362_v5, %v7560_v1  ;;  %v7766_v1 = vld [vmem:[%s12522_s7 + $0x148] sm:$0xf0] }
 0x784   :  { %4559 = vmatpush.bf16.msrb.mxu1 %v4499_v16  ;;  %v7585_v16 = vor.u32 %v8368_v57, %v7584_v37 }
 0x787   :  { %v4790_v18 = vpop.permute.xlu1 %4789  ;;  %v4513_v9 = vpop.permute.xlu0 %4512  ;;  %4332 = vmatmul.bf16.gmra.mxu2 %v7714_v32  ;;  %v8370_v32 = vld [vmem:[%s12522_s7 + $0x124] sm:$0xf0] }
 0x788   :  { %4847 = vmatpush.bf16.msrb.mxu0 %v4790_v18  ;;  %4614 = vmatpush.bf16.msrb.mxu3 %v4513_v9 }
 0x789   :  { %v11120_v19 = vpop.f32.mrf.mxu2 }
 0x78b   :  { %7640 = vmatmul.msk.bf16.gmra.mxu1 %vm4028_vm9, %v7541_v49  ;;  %v11107_v49 = vpop.f32.mrf.mxu3 }
 0x78c   :  { %4848 = vmatpush.bf16.msrb.mxu0 %v4788_v59 }
 0x78f   :  { %v4511_v40 = vpop.permute.xlu1 %4510  ;;  %v4802_v13 = vpop.permute.xlu0 %4801 }
 0x790   :  { %4615 = vmatpush.bf16.msrb.mxu3 %v4511_v40  ;;  %4903 = vmatpush.bf16.msrb.mxu2 %v4802_v13  ;;  %v8373_v40 = vld [vmem:[%s12522_s7 + $0x144] sm:$0xf]  ;;  %v7748_v13 = vld [vmem:[%s12522_s7 + $0x120] sm:$0xf] }
 0x791   :  { %v11144_v3 = vpop.f32.mrf.mxu2  ;;  %v7769_v46 = vor.u32 %v8373_v40, %v7766_v1  ;;  %v7749_v52 = vor.u32 %v8370_v32, %v7748_v13  ;;  %v7764_v40 = vld [vmem:[%s12522_s7 + $0x140] sm:$0xf]  ;;  %v8374_v1 = vld [vmem:[%s12522_s7 + $0x144] sm:$0xf0]  ;;  %v8392_v32 = vld [vmem:[%s12522_s7 + $0x1d4] sm:$0xf0] }
 0x793   :  { %4074 = vmatmul.bf16.gmra.mxu0 %v7537_v10  ;;  %v4509_v10 = vpop.permute.xlu2 %4508  ;;  %v11118_v58 = vpop.f32.mrf.mxu3 }
 0x794   :  { %4616 = vmatpush.bf16.msrb.mxu3 %v4509_v10 }
 0x797   :  { %v4800_v12 = vpop.permute.xlu1 %4799  ;;  %v4497_v27 = vpop.permute.xlu0 %4496  ;;  %7818 = vmatmul.msk.bf16.vlgmr.msrb.gmra.mxu3 %vm4028_vm9, %v7753_v0 }
 0x798   :  { %4904 = vmatpush.bf16.msrb.mxu2 %v4800_v12  ;;  %4560 = vmatpush.bf16.msrb.mxu1 %v4497_v27 }
 0x799   :  { %v11155_v14 = vpop.f32.mrf.mxu2 }
 0x79b   :  { %7641 = vmatmul.msk.bf16.gmra.mxu1 %vm4028_vm9, %v7549_v17  ;;  %v4798_v17 = vpop.permute.xlu2 %4797  ;;  %v11142_v20 = vpop.f32.mrf.mxu3 }
 0x79c   :  { %4905 = vmatpush.bf16.msrb.mxu2 %v4798_v17 }
 0x79f   :  { %v4495_v38 = vpop.permute.xlu1 %4494  ;;  %v4786_v6 = vpop.permute.xlu0 %4785  ;;  %7917 = vmatmul.msk.bf16.vlgmr.msrb.gmra.mxu2 %vm4028_vm9, %v7852_v43  ;;  %v7873_v43 = vld [vmem:[%s12522_s7 + $0x1e8] sm:$0xf0] }
 0x7a0   :  { %4561 = vmatpush.bf16.msrb.mxu1 %v4495_v38  ;;  %4849 = vmatpush.bf16.msrb.mxu0 %v4786_v6 }
 0x7a1   :  { %v11179_v18 = vpop.f32.mrf.mxu2 }
 0x7a3   :  { %4079 = vmatmul.bf16.gmra.mxu0 %v7545_v47  ;;  %v7578_v47 = vld [vmem:[%s12522_s7 + $0x108] sm:$0xf0]  ;;  %v4782_v31 = vpop.permute.xlu2 %4781  ;;  %v11153_v39 = vpop.f32.mrf.mxu3 }
 0x7a4   :  { %v7581_v54 = vor.u32 %v8365_v55, %v7578_v47 }
 0x7a7   :  { %v4493_v45 = vpop.permute.xlu1 %4492  ;;  %v4784_v62 = vpop.permute.xlu0 %4783  ;;  %7819 = vmatmul.msk.bf16.gmra.mxu3 %vm4028_vm9, %v7761_v61  ;;  %v8390_v61 = vld [vmem:[%s12522_s7 + $0x1c4] sm:$0xf0] }
 0x7a8   :  { %4562 = vmatpush.bf16.msrb.mxu1 %v4493_v45  ;;  %4850 = vmatpush.bf16.msrb.mxu0 %v4784_v62  ;;  %v7756_v45 = vld [vmem:[%s12522_s7 + $0x130] sm:$0xf] }
 0x7a9   :  { %v11196_v21 = vpop.f32.mrf.mxu2 }
 0x7ab   :  { %7642 = vmatmul.msk.bf16.gmra.mxu1 %vm4028_vm9, %v7557_v41  ;;  %v7577_v41 = vor.u32 %v8366_v22, %v7576_v8  ;;  %v11177_v4 = vpop.f32.mrf.mxu3 }
 0x7ac   :  { %4851 = vmatpush.bf16.msrb.mxu0 %v4782_v31 }
 0x7b1   :  { %v11218_v27 = vpop.f32.mrf.mxu2 }
 0x7b3   :  { %4084 = vmatmul.bf16.gmra.mxu0 %v7553_v30  ;;  %v7860_v30 = vor.u32 %v8389_v48, %v7857_v23  ;;  %v11194_v59 = vpop.f32.mrf.mxu3 }
 0x7b5   :  { %7918 = vmatmul.msk.bf16.gmra.mxu2 %vm4028_vm9, %v7860_v30 }
 0x7b7   :  { %7820 = vmatmul.msk.bf16.gmra.mxu3 %vm4028_vm9, %v7769_v46  ;;  %v7765_v46 = vor.u32 %v8374_v1, %v7764_v40 }
 0x7b9   :  { %v11238_v29 = vpop.f32.mrf.mxu2 }
 0x7bb   :  { %7643 = vmatmul.msk.bf16.gmra.mxu1 %vm4028_vm9, %v7565_v15  ;;  %v11216_v10 = vpop.f32.mrf.mxu3 }
 0x7c1   :  { %v11260_v36 = vpop.f32.mrf.mxu2 }
 0x7c3   :  { %4089 = vmatmul.bf16.gmra.mxu0 %v7561_v26  ;;  %v8391_v26 = vld [vmem:[%s12522_s7 + $0x1d4] sm:$0xf]  ;;  %v11236_v7 = vpop.f32.mrf.mxu3 }
 0x7c4   :  { %v7868_v34 = vor.u32 %v8391_v26, %v7865_v44 }
 0x7c6   :  { %7919 = vmatmul.msk.bf16.gmra.mxu2 %vm4028_vm9, %v7868_v34 }
 0x7c9   :  { %v11280_v37 = vpop.f32.mrf.mxu2 }
 0x7cb   :  { %7644 = vmatmul.msk.bf16.gmra.mxu1 %vm4028_vm9, %v7573_v33 }
 0x7d1   :  { %v11302_v34 = vpop.f32.mrf.mxu2 }
 0x7d3   :  { %4094 = vmatmul.bf16.gmra.mxu0 %v7569_v63 }
 0x7db   :  { %7645 = vmatmul.msk.bf16.gmra.mxu1 %vm4028_vm9, %v7581_v54  ;;  %v8372_v54 = vld [vmem:[%s12522_s7 + $0x134] sm:$0xf0] }
 0x7dc   :  { %v7757_v8 = vor.u32 %v8372_v54, %v7756_v45 }
 0x7e3   :  { %4099 = vmatmul.bf16.gmra.mxu0 %v7577_v41  ;;  %v11258_v41 = vpop.f32.mrf.mxu3 }
 0x7e8   :  { %v4119_v56 = vpop.f32.mrf.mxu1 }
 0x7eb   :  { %7646 = vmatmul.msk.bf16.gmra.mxu1 %vm4028_vm9, %v7589_v11 }
 0x7f0   :  { %v4065_v15 = vpop.f32.mrf.mxu0  ;;  %v4121_v9 = vpop.f32.mrf.mxu1 }
 0x7f1   :  { %v4120_v5 = vadd.f32 %v4119_v56, %v4065_v15  ;;  %v11278_v56 = vpop.f32.mrf.mxu3 }
 0x7f3   :  { %v4294_v60 = vadd.f32 %v11109_v42, %v4120_v5  ;;  %4104 = vmatmul.bf16.gmra.mxu0 %v7585_v16  ;;  %v7881_v16 = vld [vmem:[%s12522_s7 + $0x1f8] sm:$0xf0] }
 0x7f5   :  { %v11212_v12 = vadd.f32 %v11107_v49, %v4294_v60  ;;  %v7847_v49 = vld [vmem:[%s12522_s7 + $0x1b0] sm:$0xf] }
 0x7f6   :  { %v7848_v63 = vor.u32 %v8388_v28, %v7847_v49 }
 0x7f8   :  { %v4067_v24 = vpop.f32.mrf.mxu0  ;;  %v4124_v33 = vpop.f32.mrf.mxu1 }
 0x7f9   :  { %v4122_v42 = vadd.f32 %v4121_v9, %v4067_v24  ;;  %v11300_v60 = vpop.f32.mrf.mxu3 }
 0x7fb   :  { %v4296_v38 = vadd.f32 %v11120_v19, %v4122_v42  ;;  %4563 = vmatmul.bf16.vlgmr.msrb.gmra.mxu1 %v7749_v52  ;;  %v7774_v19 = vld [vmem:[%s12522_s7 + $0x158] sm:$0xf0] }
 0x7fc   :  { %v7777_v6 = vor.u32 %v8375_v51, %v7774_v19 }
 0x7fd   :  { %v11228_v2 = vadd.f32 %v11118_v58, %v4296_v38  ;;  %v8393_v58 = vld [vmem:[%s12522_s7 + $0x1e4] sm:$0xf]  ;;  %v8379_v38 = vld [vmem:[%s12522_s7 + $0x174] sm:$0xf] }
 0x7fe   :  { %v7876_v47 = vor.u32 %v8393_v58, %v7873_v43  ;;  %7821 = vmatmul.msk.bf16.gmra.mxu3 %vm4028_vm9, %v7777_v6  ;;  %v8376_v6 = vld [vmem:[%s12522_s7 + $0x154] sm:$0xf0] }
 0x800   :  { %v4070_v50 = vpop.f32.mrf.mxu0  ;;  %v4126_v17 = vpop.f32.mrf.mxu1  ;;  %7920 = vmatmul.msk.bf16.gmra.mxu2 %vm4028_vm9, %v7876_v47 }
 0x801   :  { %v4125_v0 = vadd.f32 %v4124_v33, %v4070_v50  ;;  %v11320_v28 = vpop.f32.mrf.mxu3 }
 0x803   :  { %v4299_v55 = vadd.f32 %v11144_v3, %v4125_v0  ;;  %4852 = vmatmul.bf16.vlgmr.msrb.gmra.mxu0 %v7848_v63  ;;  %v11322_v63 = vpop.f32.mrf.mxu2  ;;  %v7772_v0 = vld [vmem:[%s12522_s7 + $0x150] sm:$0xf] }
 0x804   :  { %v7773_v43 = vor.u32 %v8376_v6, %v7772_v0 }
 0x805   :  { %v11254_v62 = vadd.f32 %v11142_v20, %v4299_v55  ;;  %v7855_v20 = vld [vmem:[%s12522_s7 + $0x1c0] sm:$0xf] }
 0x806   :  { %v7856_v23 = vor.u32 %v8390_v61, %v7855_v20  ;;  %v8381_v61 = vld [vmem:[%s12522_s7 + $0x184] sm:$0xf] }
 0x808   :  { %v4072_v22 = vpop.f32.mrf.mxu0  ;;  %v4129_v3 = vpop.f32.mrf.mxu1 }
 0x809   :  { %v4127_v31 = vadd.f32 %v4126_v17, %v4072_v22  ;;  %v7889_v17 = vld [vmem:[%s12522_s7 + $0x208] sm:$0xf0]  ;;  %v11342_v45 = vpop.f32.mrf.mxu3  ;;  %v8394_v22 = vld [vmem:[%s12522_s7 + $0x1e4] sm:$0xf0] }
 0x80a   :  { %12566 = vst [vmem:[#allocation9_spill] sm:$0xff] %v11342_v45 }
 0x80b   :  { %v4301_v25 = vadd.f32 %v11155_v14, %v4127_v31  ;;  %4568 = vmatmul.bf16.gmra.mxu1 %v7757_v8  ;;  %v7782_v14 = vld [vmem:[%s12522_s7 + $0x168] sm:$0xf0]  ;;  %v11344_v54 = vpop.f32.mrf.mxu2 }
 0x80c   :  { %v7785_v57 = vor.u32 %v8377_v53, %v7782_v14  ;;  %12567 = vst [vmem:[#allocation10_spill] sm:$0xff] %v11344_v54  ;;  %v7897_v14 = vld [vmem:[%s12522_s7 + $0x218] sm:$0xf0] }
 0x80d   :  { %v11270_v48 = vadd.f32 %v11153_v39, %v4301_v25  ;;  %v8395_v39 = vld [vmem:[%s12522_s7 + $0x1f4] sm:$0xf] }
 0x80e   :  { %v7884_v9 = vor.u32 %v8395_v39, %v7881_v16  ;;  %7822 = vmatmul.msk.bf16.gmra.mxu3 %vm4028_vm9, %v7785_v57  ;;  %v7780_v39 = vld [vmem:[%s12522_s7 + $0x160] sm:$0xf]  ;;  %v8378_v16 = vld [vmem:[%s12522_s7 + $0x164] sm:$0xf0] }
 0x810   :  { %v4075_v30 = vpop.f32.mrf.mxu0  ;;  %v4131_v35 = vpop.f32.mrf.mxu1  ;;  %7921 = vmatmul.msk.bf16.gmra.mxu2 %vm4028_vm9, %v7884_v9  ;;  %v7781_v9 = vor.u32 %v8378_v16, %v7780_v39 }
 0x811   :  { %v4130_v11 = vadd.f32 %v4129_v3, %v4075_v30  ;;  %v11362_v30 = vpop.f32.mrf.mxu3 }
 0x813   :  { %v4304_v15 = vadd.f32 %v11179_v18, %v4130_v11  ;;  %4857 = vmatmul.bf16.gmra.mxu0 %v7856_v23 }
 0x815   :  { %v11296_v5 = vadd.f32 %v11177_v4, %v4304_v15  ;;  %v7863_v4 = vld [vmem:[%s12522_s7 + $0x1d0] sm:$0xf] }
 0x816   :  { %v7864_v24 = vor.u32 %v8392_v32, %v7863_v4 }
 0x818   :  { %v4077_v26 = vpop.f32.mrf.mxu0  ;;  %v4134_v18 = vpop.f32.mrf.mxu1 }
 0x819   :  { %v4132_v44 = vadd.f32 %v4131_v35, %v4077_v26  ;;  %v11364_v35 = vpop.f32.mrf.mxu2 }
 0x81b   :  { %v4306_v13 = vadd.f32 %v11196_v21, %v4132_v44  ;;  %4573 = vmatmul.bf16.gmra.mxu1 %v7765_v46  ;;  %v7790_v21 = vld [vmem:[%s12522_s7 + $0x178] sm:$0xf0]  ;;  %v11384_v46 = vpop.f32.mrf.mxu3  ;;  %v8396_v44 = vld [vmem:[%s12522_s7 + $0x1f4] sm:$0xf0] }
 0x81c   :  { %v7793_v50 = vor.u32 %v8379_v38, %v7790_v21 }
 0x81d   :  { %v11312_v52 = vadd.f32 %v11194_v59, %v4306_v13  ;;  %v8397_v59 = vld [vmem:[%s12522_s7 + $0x204] sm:$0xf] }
 0x81e   :  { %v7892_v19 = vor.u32 %v8397_v59, %v7889_v17  ;;  %7823 = vmatmul.msk.bf16.gmra.mxu3 %vm4028_vm9, %v7793_v50  ;;  %v7905_v50 = vld [vmem:[%s12522_s7 + $0x228] sm:$0xf0] }
 0x820   :  { %v4080_v33 = vpop.f32.mrf.mxu0  ;;  %v4136_v42 = vpop.f32.mrf.mxu1  ;;  %7922 = vmatmul.msk.bf16.gmra.mxu2 %vm4028_vm9, %v7892_v19  ;;  %v8380_v19 = vld [vmem:[%s12522_s7 + $0x174] sm:$0xf0] }
 0x821   :  { %v4135_v49 = vadd.f32 %v4134_v18, %v4080_v33  ;;  %v11386_v26 = vpop.f32.mrf.mxu2  ;;  %v8383_v33 = vld [vmem:[%s12522_s7 + $0x194] sm:$0xf] }
 0x823   :  { %v4309_v51 = vadd.f32 %v11218_v27, %v4135_v49  ;;  %4862 = vmatmul.bf16.gmra.mxu0 %v7864_v24  ;;  %v11404_v38 = vpop.f32.mrf.mxu3 }
 0x824   :  { %12568 = vst [vmem:[#allocation11_spill] sm:$0xff] %v11404_v38 }
 0x825   :  { %v11338_v58 = vadd.f32 %v11216_v10, %v4309_v51  ;;  %v7871_v10 = vld [vmem:[%s12522_s7 + $0x1e0] sm:$0xf]  ;;  %v7788_v51 = vld [vmem:[%s12522_s7 + $0x170] sm:$0xf] }
 0x826   :  { %v7872_v31 = vor.u32 %v8394_v22, %v7871_v10  ;;  %v7789_v6 = vor.u32 %v8380_v19, %v7788_v51  ;;  %v8398_v10 = vld [vmem:[%s12522_s7 + $0x204] sm:$0xf0] }
 0x827   :  { %v8402_v51 = vld [vmem:[%s12522_s7 + $0x224] sm:$0xf0] }
 0x828   :  { %v4082_v55 = vpop.f32.mrf.mxu0  ;;  %v4139_v27 = vpop.f32.mrf.mxu1 }
 0x829   :  { %v4137_v47 = vadd.f32 %v4136_v42, %v4082_v55  ;;  %v11406_v21 = vpop.f32.mrf.mxu2 }
 0x82b   :  { %v4311_v8 = vadd.f32 %v11238_v29, %v4137_v47  ;;  %4578 = vmatmul.bf16.gmra.mxu1 %v7773_v43  ;;  %v7798_v29 = vld [vmem:[%s12522_s7 + $0x188] sm:$0xf0] }
 0x82c   :  { %v7801_v53 = vor.u32 %v8381_v61, %v7798_v29  ;;  %v7814_v61 = vld [vmem:[%s12522_s7 + $0x1a8] sm:$0xf0] }
 0x82d   :  { %v11354_v3 = vadd.f32 %v11236_v7, %v4311_v8  ;;  %v8399_v7 = vld [vmem:[%s12522_s7 + $0x214] sm:$0xf] }
 0x82e   :  { %v7900_v57 = vor.u32 %v8399_v7, %v7897_v14  ;;  %7824 = vmatmul.msk.bf16.gmra.mxu3 %vm4028_vm9, %v7801_v53  ;;  %v7913_v53 = vld [vmem:[%s12522_s7 + $0x238] sm:$0xf0] }
 0x830   :  { %v4085_v25 = vpop.f32.mrf.mxu0  ;;  %v4141_v20 = vpop.f32.mrf.mxu1  ;;  %7923 = vmatmul.msk.bf16.gmra.mxu2 %vm4028_vm9, %v7900_v57  ;;  %v8382_v57 = vld [vmem:[%s12522_s7 + $0x184] sm:$0xf0] }
 0x831   :  { %v4140_v23 = vadd.f32 %v4139_v27, %v4085_v25  ;;  %v11428_v27 = vpop.f32.mrf.mxu3  ;;  %v11430_v47 = vpop.f32.mrf.mxu2 }
 0x832   :  { %12571 = vst [vmem:[#allocation14_spill] sm:$0xff] %v11428_v27 }
 0x833   :  { %v4314_v11 = vadd.f32 %v11260_v36, %v4140_v23  ;;  %4867 = vmatmul.bf16.gmra.mxu0 %v7872_v31  ;;  %12572 = vst [vmem:[#allocation15_spill] sm:$0xff] %v11430_v47 }
 0x835   :  { %v11380_v15 = vadd.f32 %v11258_v41, %v4314_v11  ;;  %v7879_v41 = vld [vmem:[%s12522_s7 + $0x1f0] sm:$0xf]  ;;  %v7796_v11 = vld [vmem:[%s12522_s7 + $0x180] sm:$0xf] }
 0x836   :  { %v7880_v4 = vor.u32 %v8396_v44, %v7879_v41  ;;  %v7797_v39 = vor.u32 %v8382_v57, %v7796_v11  ;;  %v4974_v11 = vld [vmem:[%s12523_s8 + $0x20] sm:$0xf]  ;;  %v7911_v57 = vld [vmem:[%s12522_s7 + $0x230] sm:$0xf] }
 0x838   :  { %v4087_v40 = vpop.f32.mrf.mxu0  ;;  %v4144_v36 = vpop.f32.mrf.mxu1 }
 0x839   :  { %v4142_v1 = vadd.f32 %v4141_v20, %v4087_v40  ;;  %v11452_v29 = vpop.f32.mrf.mxu3  ;;  %v11460_v7 = vpop.f32.mrf.mxu2 }
 0x83a   :  { %12575 = vst [vmem:[#allocation18_spill] sm:$0xff] %v11452_v29 }
 0x83b   :  { %v4316_v18 = vadd.f32 %v11280_v37, %v4142_v1  ;;  %4583 = vmatmul.bf16.gmra.mxu1 %v7781_v9  ;;  %v7806_v37 = vld [vmem:[%s12522_s7 + $0x198] sm:$0xf0]  ;;  %12576 = vst [vmem:[#allocation19_spill] sm:$0xff] %v11460_v7  ;;  %v8400_v1 = vld [vmem:[%s12522_s7 + $0x214] sm:$0xf0] }
 0x83c   :  { %v7809_v49 = vor.u32 %v8383_v33, %v7806_v37  ;;  %v8384_v33 = vld [vmem:[%s12522_s7 + $0x194] sm:$0xf0]  ;;  %v8515_v37 = vmov 0  }
 0x83d   :  { %v11396_v13 = vadd.f32 %v11278_v56, %v4316_v18  ;;  %v8401_v56 = vld [vmem:[%s12522_s7 + $0x224] sm:$0xf]  ;;  %8460 = vset.pattern.permute.xlu1 %v8515_v37  ;;  %8461 = vset.pattern.permute.xlu2 %v8515_v37 }
 0x83e   :  { %v7908_v17 = vor.u32 %v8401_v56, %v7905_v50  ;;  %7825 = vmatmul.msk.bf16.gmra.mxu3 %vm4028_vm9, %v7809_v49  ;;  %8459 = vset.pattern.permute.xlu0 %v8515_v37 }
 0x83f   :  { %5051 = vperm.xlu0 %8459, %v4974_v11  }
 0x840   :  { %v4090_v32 = vpop.f32.mrf.mxu0  ;;  %v4146_v24 = vpop.f32.mrf.mxu1  ;;  %7924 = vmatmul.msk.bf16.gmra.mxu2 %vm4028_vm9, %v7908_v17  ;;  %v7903_v17 = vld [vmem:[%s12522_s7 + $0x220] sm:$0xf] }
 0x841   :  { %v4145_v42 = vadd.f32 %v4144_v36, %v4090_v32  ;;  %v11474_v40 = vpop.f32.mrf.mxu3  ;;  %v7895_v36 = vld [vmem:[%s12522_s7 + $0x210] sm:$0xf]  ;;  %v11482_v18 = vpop.f32.mrf.mxu2 }
 0x842   :  { %v7896_v41 = vor.u32 %v8400_v1, %v7895_v36 }
 0x843   :  { %v4319_v59 = vadd.f32 %v11302_v34, %v4145_v42  ;;  %4872 = vmatmul.bf16.gmra.mxu0 %v7880_v4 }
 0x845   :  { %v11422_v0 = vadd.f32 %v11300_v60, %v4319_v59  ;;  %v7887_v60 = vld [vmem:[%s12522_s7 + $0x200] sm:$0xf]  ;;  %v4973_v59 = vld [vmem:[%s12523_s8 + $0x18] sm:$0xff] }
 0x846   :  { %v7888_v31 = vor.u32 %v8398_v10, %v7887_v60  ;;  %5046 = vperm.xlu1 %8460, %v4973_v59   ;;  %v7812_v10 = vld [vmem:[%s12522_s7 + $0x1a0] sm:$0xf] }
 0x847   :  { %12569 = vst [vmem:[#allocation12_spill] sm:$0xff] %v11422_v0 }
 0x848   :  { %v4092_v43 = vpop.f32.mrf.mxu0  ;;  %v11426_v34 = vpop.f32.mrf.mxu1 }
 0x849   :  { %12570 = vst [vmem:[#allocation13_spill] sm:$0xff] %v11426_v34  ;;  %v4147_v55 = vadd.f32 %v4146_v24, %v4092_v43  ;;  %v11488_v32 = vpop.f32.mrf.mxu3  ;;  %v7804_v24 = vld [vmem:[%s12522_s7 + $0x190] sm:$0xf]  ;;  %v11496_v49 = vpop.f32.mrf.mxu2 }
 0x84a   :  { %v7805_v42 = vor.u32 %v8384_v33, %v7804_v24  ;;  %v4970_v24 = vld [vmem:[%s12523_s8] sm:$0xff] }
 0x84b   :  { %v4321_v8 = vadd.f32 %v11322_v63, %v4147_v55  ;;  %4588 = vmatmul.bf16.gmra.mxu1 %v7789_v6  ;;  %v8385_v63 = vld [vmem:[%s12522_s7 + $0x1a4] sm:$0xf]  ;;  %v7904_v6 = vor.u32 %v8402_v51, %v7903_v17 }
 0x84c   :  { %v7817_v23 = vor.u32 %v8385_v63, %v7814_v61 }
 0x84d   :  { %v11440_v22 = vadd.f32 %v11320_v28, %v4321_v8  ;;  %v8403_v28 = vld [vmem:[%s12522_s7 + $0x234] sm:$0xf]  ;;  %v4971_v8 = vld [vmem:[%s12523_s8 + $0x8] sm:$0xff] }
 0x84e   :  { %v7916_v14 = vor.u32 %v8403_v28, %v7913_v53  ;;  %7826 = vmatmul.msk.bf16.gmra.mxu3 %vm4028_vm9, %v7817_v23  ;;  %5036 = vperm.xlu1 %8460, %v4971_v8   ;;  %v4972_v53 = vld [vmem:[%s12523_s8 + $0x10] sm:$0xff] }
 0x84f   :  { %12573 = vst [vmem:[#allocation16_spill] sm:$0xff] %v11440_v22  ;;  %5041 = vperm.xlu2 %8461, %v4972_v53  }
 0x850   :  { %v11442_v25 = vpop.f32.mrf.mxu0  ;;  %v11444_v20 = vpop.f32.mrf.mxu1  ;;  %7925 = vmatmul.msk.bf16.gmra.mxu2 %vm4028_vm9, %v7916_v14 }
 0x851   :  { %12574 = vst [vmem:[#allocation17_spill] sm:$0xff] %v11442_v25  ;;  %v11511_v19 = vpop.f32.mrf.mxu3  ;;  %v11520_v60 = vpop.f32.mrf.mxu2 }
 0x853   :  { %4877 = vmatmul.bf16.gmra.mxu0 %v7888_v31  ;;  %v8386_v31 = vld [vmem:[%s12522_s7 + $0x1a4] sm:$0xf0] }
 0x854   :  { %v7813_v63 = vor.u32 %v8386_v31, %v7812_v10 }
 0x857   :  { %5031 = vperm.xlu2 %8461, %v4970_v24  }
 0x858   :  { %v11470_v16 = vpop.f32.mrf.mxu0  ;;  %v11472_v9 = vpop.f32.mrf.mxu1 }
 0x859   :  { %v11528_v61 = vpop.f32.mrf.mxu3  ;;  %v11535_v14 = vpop.f32.mrf.mxu2 }
 0x85b   :  { %4593 = vmatmul.bf16.gmra.mxu1 %v7797_v39  ;;  %v8404_v39 = vld [vmem:[%s12522_s7 + $0x234] sm:$0xf0]  ;;  %s8516_s7 = smov 126  }
 0x85c   :  { %v7912_v36 = vor.u32 %v8404_v39, %v7911_v57 }
 0x860   :  { %v11484_v44 = vpop.f32.mrf.mxu0  ;;  %v11486_v4 = vpop.f32.mrf.mxu1 }
 0x861   :  { %v4628_v33 = vpop.f32.mrf.mxu3  ;;  %v4917_v37 = vpop.f32.mrf.mxu2 }
 0x863   :  { %4882 = vmatmul.bf16.gmra.mxu0 %v7896_v41 }
 0x868   :  { %v11498_v56 = vpop.f32.mrf.mxu0  ;;  %v11500_v50 = vpop.f32.mrf.mxu1 }
 0x869   :  { %v4630_v17 = vpop.f32.mrf.mxu3  ;;  %v4919_v51 = vpop.f32.mrf.mxu2 }
 0x86b   :  { %4598 = vmatmul.bf16.gmra.mxu1 %v7805_v42 }
 0x870   :  { %v11513_v43 = vpop.f32.mrf.mxu0  ;;  %v11515_v55 = vpop.f32.mrf.mxu1 }
 0x871   :  { %12577 = vst [vmem:[#allocation20_spill] sm:$0xff] %v11515_v55 }
 0x873   :  { %4887 = vmatmul.bf16.gmra.mxu0 %v7904_v6 }
 0x878   :  { %v11530_v23 = vpop.f32.mrf.mxu0  ;;  %v4564_v28 = vpop.f32.mrf.mxu1 }
 0x879   :  { %12578 = vst [vmem:[#allocation21_spill] sm:$0xff] %v11530_v23  ;;  %v4619_v24 = vadd.f32 %v11474_v40, %v4564_v28 }
 0x87b   :  { %4603 = vmatmul.bf16.gmra.mxu1 %v7813_v63  ;;  %v4663_v38 = vadd.f32 %v4619_v24, %v11212_v12 }
 0x880   :  { %v4566_v1 = vpop.f32.mrf.mxu1  ;;  %v4853_v41 = vpop.f32.mrf.mxu0 }
 0x881   :  { %v4633_v10 = vpop.f32.mrf.mxu3  ;;  %v4908_v0 = vadd.f32 %v11482_v18, %v4853_v41 }
 0x883   :  { %4892 = vmatmul.bf16.gmra.mxu0 %v7912_v36  ;;  %v4922_v53 = vpop.f32.mrf.mxu2 }
 0x888   :  { %v4569_v42 = vpop.f32.mrf.mxu1  ;;  %v4855_v59 = vpop.f32.mrf.mxu0 }
 0x889   :  { %v4635_v11 = vpop.f32.mrf.mxu3  ;;  %v4910_v12 = vadd.f32 %v11496_v49, %v4855_v59  ;;  %v4624_v28 = vadd.f32 %v11511_v19, %v4569_v42 }
 0x88b   :  { %v4924_v29 = vpop.f32.mrf.mxu2 }
 0x890   :  { %v4571_v6 = vpop.f32.mrf.mxu1  ;;  %v4858_v8 = vpop.f32.mrf.mxu0 }
 0x891   :  { %v4638_v23 = vpop.f32.mrf.mxu3  ;;  %v4626_v42 = vadd.f32 %v11528_v61, %v4571_v6 }
 0x898   :  { %v4574_v31 = vpop.f32.mrf.mxu1  ;;  %v4860_v63 = vpop.f32.mrf.mxu0 }
 0x899   :  { %v4629_v45 = vadd.f32 %v4628_v33, %v4574_v31 }
 0x89b   :  { %v4667_v36 = vadd.f32 %v4629_v45, %v11296_v5  ;;  %v4621_v45 = vadd.f32 %v11488_v32, %v4566_v1 }
 0x8a0   :  { %v4576_v57 = vpop.f32.mrf.mxu1  ;;  %v4863_v39 = vpop.f32.mrf.mxu0 }
 0x8a1   :  { %v4631_v54 = vadd.f32 %v4630_v17, %v4576_v57  ;;  %v4918_v22 = vadd.f32 %v4917_v37, %v4863_v39  ;;  %v4927_v37 = vpop.f32.mrf.mxu2  ;;  %v11554_v57 = vadd.f32 %v4908_v0, %v4663_v38  ;;  %v4664_v38 = vadd.f32 %v4621_v45, %v11228_v2 }
 0x8a2   :  { %v4913_v2 = vadd.f32 %v11520_v60, %v4858_v8 }
 0x8a3   :  { %v4668_v25 = vadd.f32 %v4631_v54, %v11312_v52  ;;  %v4956_v27 = vadd.f32 %v4918_v22, %v4667_v36  ;;  %v11567_v18 = vadd.f32 %v4910_v12, %v4664_v38 }
 0x8a5   :  { %v4981_v33 = vrot.slane %v4956_v27, 4 }
 0x8a8   :  { %v4579_v7 = vpop.f32.mrf.mxu1  ;;  %v4865_v34 = vpop.f32.mrf.mxu0 }
 0x8a9   :  { %v4920_v55 = vadd.f32 %v4919_v51, %v4865_v34  ;;  %v4634_v31 = vadd.f32 %v4633_v10, %v4579_v7  ;;  %v11569_v32 = vpop.f32.mrf.mxu2  ;;  %v4665_v10 = vadd.f32 %v4624_v28, %v11254_v62  ;;  %v4152_v28 = vadd.f32 %v11444_v20, %v11470_v16 }
 0x8ab   :  { %v4957_v47 = vadd.f32 %v4920_v55, %v4668_v25  ;;  %v4669_v22 = vadd.f32 %v4634_v31, %v11338_v58  ;;  %v11582_v36 = vadd.f32 %v4913_v2, %v4665_v10  ;;  %v4666_v31 = vadd.f32 %v4626_v42, %v11270_v48 }
 0x8ac   :  { %v4326_v2 = vadd.f32 %v11364_v35, %v4152_v28  ;;  %v12579_v28 = vld [vmem:[#allocation11_spill] sm:$0xff] }
 0x8ad   :  { %v4982_v17 = vrot.slane %v4957_v47, 4  ;;  %v11564_v47 = vpop.f32.mrf.mxu3 }
 0x8af   :  { %v11557_v5 = vsel %vm199_vm0, %v4981_v33, %v4982_v17 }
 0x8b0   :  { %v4581_v52 = vpop.f32.mrf.mxu1  ;;  %v4868_v54 = vpop.f32.mrf.mxu0  ;;  %v4995_v34 = vmax.f32 %v11554_v57, %v11557_v5 }
 0x8b1   :  { %v4923_v25 = vadd.f32 %v4922_v53, %v4868_v54  ;;  %v4636_v0 = vadd.f32 %v4635_v11, %v4581_v52  ;;  %v11591_v62 = vpop.f32.mrf.mxu2 }
 0x8b3   :  { %v4958_v7 = vadd.f32 %v4923_v25, %v4669_v22  ;;  %v4670_v41 = vadd.f32 %v4636_v0, %v11354_v3 }
 0x8b5   :  { %v4984_v40 = vrot.slane %v4958_v7, 4  ;;  %v11580_v39 = vpop.f32.mrf.mxu3 }
 0x8b7   :  { %v11572_v55 = vsel %vm199_vm0, %v4982_v17, %v4984_v40 }
 0x8b8   :  { %v4584_v58 = vpop.f32.mrf.mxu1  ;;  %v4870_v1 = vpop.f32.mrf.mxu0  ;;  %v4996_v49 = vmax.f32 %v11567_v18, %v11572_v55 }
 0x8b9   :  { %v4925_v59 = vadd.f32 %v4924_v29, %v4870_v1  ;;  %v4639_v53 = vadd.f32 %v4638_v23, %v4584_v58  ;;  %v4915_v23 = vadd.f32 %v11535_v14, %v4860_v63  ;;  %v11606_v22 = vpop.f32.mrf.mxu2  ;;  %v4155_v1 = vadd.f32 %v11472_v9, %v11484_v44 }
 0x8bb   :  { %v4959_v51 = vadd.f32 %v4925_v59, %v4670_v41  ;;  %v4671_v60 = vadd.f32 %v4639_v53, %v11380_v15  ;;  %v11595_v45 = vadd.f32 %v4915_v23, %v4666_v31  ;;  %v4329_v10 = vadd.f32 %v11386_v26, %v4155_v1  ;;  %v11642_v1 = vpop.permute.xlu1 %5046 }
 0x8bd   :  { %v4986_v11 = vrot.slane %v4959_v51, 4  ;;  %v11600_v6 = vpop.f32.mrf.mxu3  ;;  %v4383_v16 = vadd.f32 %v11384_v46, %v4329_v10 }
 0x8bf   :  { %v11585_v19 = vsel %vm199_vm0, %v4984_v40, %v4986_v11 }
 0x8c0   :  { %v4997_v3 = vmax.f32 %v11582_v36, %v11585_v19  ;;  %v4586_v29 = vpop.f32.mrf.mxu1  ;;  %v4873_v24 = vpop.f32.mrf.mxu0 }
 0x8c1   :  { %v4928_v8 = vadd.f32 %v4927_v37, %v4873_v24  ;;  %v11612_v25 = vpop.f32.mrf.mxu2  ;;  %v4641_v9 = vadd.f32 %v11564_v47, %v4586_v29 }
 0x8c3   :  { %v4960_v33 = vadd.f32 %v4928_v8, %v4671_v60  ;;  %v4157_v60 = vadd.f32 %v11486_v4, %v11498_v56  ;;  %v4672_v4 = vadd.f32 %v4641_v9, %v11396_v13  ;;  %v12583_v9 = vld [vmem:[#allocation20_spill] sm:$0xff] }
 0x8c5   :  { %v4988_v17 = vrot.slane %v4960_v33, 4  ;;  %v11610_v63 = vpop.f32.mrf.mxu3 }
 0x8c7   :  { %v11598_v61 = vsel %vm199_vm0, %v4986_v11, %v4988_v17  ;;  %v11602_v52 = vmax.f32 %v4956_v27, %v4988_v17  ;;  %v4380_v11 = vadd.f32 %v11362_v30, %v4326_v2  ;;  %v4331_v30 = vadd.f32 %v11406_v21, %v4157_v60 }
 0x8c8   :  { %v4998_v15 = vmax.f32 %v11595_v45, %v11598_v61  ;;  %v4589_v37 = vpop.f32.mrf.mxu1  ;;  %v4875_v54 = vpop.f32.mrf.mxu0  ;;  %v5132_v45 = vld [vmem:[%s12524_s9 + $0xf8] sm:$0xff]  ;;  %v5101_v61 = vld [vmem:[%s12524_s9] sm:$0xff] }
 0x8c9   :  { %v4939_v38 = vpop.f32.mrf.mxu2  ;;  %v4930_v31 = vadd.f32 %v11569_v32, %v4875_v54  ;;  %v4644_v32 = vadd.f32 %v11580_v39, %v4589_v37 }
 0x8cb   :  { %v4961_v29 = vadd.f32 %v4930_v31, %v4672_v4  ;;  %v12586_v31 = vld [vmem:[#allocation13_spill] sm:$0xff] }
 0x8cd   :  { %v4650_v27 = vpop.f32.mrf.mxu3 }
 0x8d0   :  { %v11608_v14 = vpop.f32.mrf.mxu1  ;;  %v4878_v48 = vpop.f32.mrf.mxu0 }
 0x8d1   :  { %v4942_v51 = vpop.f32.mrf.mxu2  ;;  %v4646_v57 = vadd.f32 %v11600_v6, %v11608_v14  ;;  %v12588_v14 = vld [vmem:[#allocation16_spill] sm:$0xff] }
 0x8d5   :  { %v4653_v58 = vpop.f32.mrf.mxu3 }
 0x8d8   :  { %v11614_v12 = vpop.f32.mrf.mxu1  ;;  %v11616_v7 = vpop.f32.mrf.mxu0 }
 0x8d9   :  { %v4944_v56 = vpop.f32.mrf.mxu2  ;;  %v4649_v18 = vadd.f32 %v11610_v63, %v11614_v12 }
 0x8dd   :  { %v4655_v8 = vpop.f32.mrf.mxu3 }
 0x8e0   :  { %v4596_v0 = vpop.f32.mrf.mxu1  ;;  %v11618_v40 = vpop.f32.mrf.mxu0 }
 0x8e1   :  { %v4651_v53 = vadd.f32 %v4650_v27, %v4596_v0  ;;  %v11635_v27 = vpop.permute.xlu2 %5041  ;;  %v4160_v0 = vadd.f32 %v11500_v50, %v11513_v43  ;;  %v12580_v43 = vld [vmem:[#allocation15_spill] sm:$0xff] }
 0x8e3   :  { %v4676_v20 = vadd.f32 %v4651_v53, %v4380_v11  ;;  %v4334_v53 = vadd.f32 %v12580_v43, %v4160_v0 }
 0x8e5   :  { %v4658_v10 = vpop.f32.mrf.mxu3 }
 0x8e8   :  { %v4599_v41 = vpop.f32.mrf.mxu1  ;;  %v4885_v59 = vpop.f32.mrf.mxu0 }
 0x8e9   :  { %v4654_v42 = vadd.f32 %v4653_v58, %v4599_v41  ;;  %v4940_v24 = vadd.f32 %v4939_v38, %v4885_v59  ;;  %v4385_v58 = vadd.f32 %v12579_v28, %v4331_v30  ;;  %v5032_v39 = vpop.permute.xlu2 %5031  ;;  %v4674_v28 = vadd.f32 %v4646_v57, %v12588_v14 }
 0x8eb   :  { %v4677_v35 = vadd.f32 %v4654_v42, %v4383_v16  ;;  %v11631_v33 = vadd.f32 %v4940_v24, %v4676_v20  ;;  %v12581_v42 = vld [vmem:[#allocation12_spill] sm:$0xff]  ;;  %v4947_v16 = vpop.f32.mrf.mxu2 }
 0x8ec   :  { %v4673_v24 = vadd.f32 %v4644_v32, %v12581_v42 }
 0x8ed   :  { %v5005_v46 = vrot.slane %v11631_v33, 4 }
 0x8f0   :  { %v4601_v44 = vpop.f32.mrf.mxu1  ;;  %v4888_v23 = vpop.f32.mrf.mxu0 }
 0x8f1   :  { %v4943_v26 = vadd.f32 %v4942_v51, %v4888_v23  ;;  %v4656_v38 = vadd.f32 %v4655_v8, %v4601_v44  ;;  %v4933_v51 = vadd.f32 %v11591_v62, %v4878_v48  ;;  %v12582_v8 = vld [vmem:[#allocation21_spill] sm:$0xff]  ;;  %v12584_v23 = vld [vmem:[#allocation14_spill] sm:$0xff] }
 0x8f2   :  { %v4162_v44 = vadd.f32 %v12583_v9, %v12582_v8  ;;  %v4388_v62 = vadd.f32 %v12584_v23, %v4334_v53 }
 0x8f3   :  { %v4966_v17 = vadd.f32 %v4943_v26, %v4677_v35  ;;  %v4678_v59 = vadd.f32 %v4656_v38, %v4385_v58  ;;  %v4962_v37 = vadd.f32 %v4933_v51, %v4673_v24  ;;  %v12585_v26 = vld [vmem:[#allocation17_spill] sm:$0xff] }
 0x8f4   :  { %v4150_v30 = vadd.f32 %v12586_v31, %v12585_v26 }
 0x8f5   :  { %v5006_v47 = vrot.slane %v4966_v17, 4 }
 0x8f7   :  { %v5007_v21 = vsel %vm199_vm0, %v5005_v46, %v5006_v47  ;;  %v4935_v46 = vadd.f32 %v11606_v22, %v11616_v7  ;;  %v12590_v22 = vld [vmem:[#allocation18_spill] sm:$0xff] }
 0x8f8   :  { %v4604_v54 = vpop.f32.mrf.mxu1  ;;  %v4890_v41 = vpop.f32.mrf.mxu0  ;;  %v5019_v13 = vmax.f32 %v4961_v29, %v5007_v21  ;;  %v12587_v29 = vld [vmem:[#allocation19_spill] sm:$0xff] }
 0x8f9   :  { %v4945_v2 = vadd.f32 %v4944_v56, %v4890_v41  ;;  %v4659_v60 = vadd.f32 %v4658_v10, %v4604_v54  ;;  %v5037_v56 = vpop.permute.xlu1 %5036  ;;  %v4336_v0 = vadd.f32 %v12587_v29, %v4162_v44  ;;  %v4660_v21 = vpop.f32.mrf.mxu3  ;;  %v12589_v54 = vld [vmem:[#allocation10_spill] sm:$0xff] }
 0x8fa   :  { %v5024_v50 = vmax.f32 %v4995_v34, %v5019_v13  ;;  %v4324_v41 = vadd.f32 %v12589_v54, %v4150_v30  ;;  %v8024_v54 = vld [vmem:[%s12524_s9 + $0x200] sm:$0xff] }
 0x8fb   :  { %v4967_v11 = vadd.f32 %v4945_v2, %v4678_v59  ;;  %v4679_v17 = vadd.f32 %v4659_v60, %v4388_v62  ;;  %v4963_v2 = vadd.f32 %v4935_v46, %v4674_v28  ;;  %v4390_v7 = vadd.f32 %v12590_v22, %v4336_v0  ;;  %v5105_v28 = vld [vmem:[%s12524_s9 + $0x20] sm:$0xff]  ;;  %v8026_v22 = vld [vmem:[%s12524_s9 + $0x210] sm:$0xff] }
 0x8fc   :  { %v5054_v5 = vadd.f32 %v5032_v39, %v5024_v50  ;;  %v4949_v50 = vpop.f32.mrf.mxu2  ;;  %v4938_v39 = vadd.f32 %v11612_v25, %v11618_v40 }
 0x8fd   :  { %v5008_v20 = vrot.slane %v4967_v11, 4  ;;  %v12591_v11 = vld [vmem:[#allocation9_spill] sm:$0xff] }
 0x8fe   :  { %v5059_v58 = vmax.f32 %v5054_v5, 0.0  ;;  %v4378_v42 = vadd.f32 %v12591_v11, %v4324_v41  ;;  %v5106_v41 = vld [vmem:[%s12524_s9 + $0x28] sm:$0xff] }
 0x8ff   :  { %v5009_v48 = vsel %vm199_vm0, %v5006_v47, %v5008_v20  ;;  %v8029_v11 = vld [vmem:[%s12524_s9 + $0x228] sm:$0xff] }
 0x900   :  { %v4893_v34 = vpop.f32.mrf.mxu0  ;;  %v5020_v35 = vmax.f32 %v4962_v37, %v5009_v48  ;;  %v4606_v38 = vpop.f32.mrf.mxu1  ;;  %v5064_v55 = vmin.f32 %v5059_v58, 6.0  ;;  %v4675_v8 = vadd.f32 %v4649_v18, %v4378_v42  ;;  %v8027_v18 = vld [vmem:[%s12524_s9 + $0x218] sm:$0xff]  ;;  %v5111_v42 = vld [vmem:[%s12524_s9 + $0x50] sm:$0xff] }
 0x901   :  { %v4948_v4 = vadd.f32 %v4947_v16, %v4893_v34  ;;  %v4661_v13 = vadd.f32 %v4660_v21, %v4606_v38  ;;  %v5052_v48 = vpop.permute.xlu0 %5051 }
 0x902   :  { %v5025_v47 = vmax.f32 %v4996_v49, %v5020_v35  ;;  %v4964_v12 = vadd.f32 %v4938_v39, %v4675_v8  ;;  %v5112_v39 = vld [vmem:[%s12524_s9 + $0x58] sm:$0xff]  ;;  %v7968_v8 = vld [vmem:[%s12524_s9 + $0x148] sm:$0xff] }
 0x903   :  { %v4968_v6 = vadd.f32 %v4948_v4, %v4679_v17  ;;  %v4680_v24 = vadd.f32 %v4661_v13, %v4390_v7  ;;  %v5104_v4 = vld [vmem:[%s12524_s9 + $0x18] sm:$0xff]  ;;  %v7961_v13 = vld [vmem:[%s12524_s9 + $0x110] sm:$0xff] }
 0x904   :  { %v5055_v32 = vadd.f32 %v5037_v56, %v5025_v47  ;;  %v7959_v47 = vld [vmem:[%s12524_s9 + $0x100] sm:$0xff]  ;;  %v5108_v7 = vld [vmem:[%s12524_s9 + $0x38] sm:$0xff] }
 0x905   :  { %v5010_v59 = vrot.slane %v4968_v6, 4 }
 0x906   :  { %v5060_v51 = vmax.f32 %v5055_v32, 0.0  ;;  %v7960_v32 = vld [vmem:[%s12524_s9 + $0x108] sm:$0xff] }
 0x907   :  { %v5011_v10 = vsel %vm199_vm0, %v5008_v20, %v5010_v59 }
 0x908   :  { %v5021_v49 = vmax.f32 %v4963_v2, %v5011_v10  ;;  %v5065_v43 = vmin.f32 %v5060_v51, 6.0  ;;  %v4895_v53 = vpop.f32.mrf.mxu0  ;;  %v5107_v2 = vld [vmem:[%s12524_s9 + $0x30] sm:$0xff]  ;;  %v7962_v51 = vld [vmem:[%s12524_s9 + $0x118] sm:$0xff]  ;;  %v7963_v10 = vld [vmem:[%s12524_s9 + $0x120] sm:$0xff] }
 0x909   :  { %v4950_v60 = vadd.f32 %v4949_v50, %v4895_v53  ;;  %v8028_v50 = vld [vmem:[%s12524_s9 + $0x220] sm:$0xff]  ;;  %v7965_v53 = vld [vmem:[%s12524_s9 + $0x130] sm:$0xff] }
 0x90a   :  { %v5026_v37 = vmax.f32 %v4997_v3, %v5021_v49  ;;  %v8462_v20 = vpack.i.bf16 %v5064_v55, %v5065_v43  ;;  %v7964_v49 = vld [vmem:[%s12524_s9 + $0x128] sm:$0xff] }
 0x90b   :  { %v4969_v16 = vadd.f32 %v4950_v60, %v4680_v24  ;;  %v7966_v24 = vld [vmem:[%s12524_s9 + $0x138] sm:$0xff]  ;;  %v8030_v60 = vld [vmem:[%s12524_s9 + $0x230] sm:$0xff] }
 0x90c   :  { %8463 = vrot.lane.b32.xlu2 %v8462_v20, %s8514_s5  ;;  %v5056_v23 = vadd.f32 %v11635_v27, %v5026_v37  ;;  %v5103_v27 = vld [vmem:[%s12524_s9 + $0x10] sm:$0xff]  ;;  %v7967_v37 = vld [vmem:[%s12524_s9 + $0x140] sm:$0xff] }
 0x90d   :  { %v5012_v63 = vrot.slane %v4969_v16, 4  ;;  %v5113_v16 = vld [vmem:[%s12524_s9 + $0x60] sm:$0xff] }
 0x90e   :  { %v5061_v3 = vmax.f32 %v5056_v23, 0.0  ;;  %v5115_v23 = vld [vmem:[%s12524_s9 + $0x70] sm:$0xff] }
 0x90f   :  { %v5013_v9 = vsel %vm199_vm0, %v5010_v59, %v5012_v63  ;;  %v5023_v44 = vmax.f32 %v11631_v33, %v5012_v63  ;;  %v8025_v59 = vld [vmem:[%s12524_s9 + $0x208] sm:$0xff]  ;;  %v8032_v63 = vld [vmem:[%s12524_s9 + $0x240] sm:$0xff] }
 0x910   :  { %v5022_v62 = vmax.f32 %v4964_v12, %v5013_v9  ;;  %v5066_v35 = vmin.f32 %v5061_v3, 6.0  ;;  %v5114_v12 = vld [vmem:[%s12524_s9 + $0x68] sm:$0xff]  ;;  %v7969_v9 = vld [vmem:[%s12524_s9 + $0x150] sm:$0xff] }
 0x911   :  { %v5028_v25 = vmax.f32 %v11602_v52, %v5023_v44  ;;  %v8033_v44 = vld [vmem:[%s12524_s9 + $0x248] sm:$0xff] }
 0x912   :  { %v5027_v36 = vmax.f32 %v4998_v15, %v5022_v62  ;;  %v5102_v15 = vld [vmem:[%s12524_s9 + $0x8] sm:$0xff]  ;;  %v7970_v62 = vld [vmem:[%s12524_s9 + $0x158] sm:$0xff] }
 0x913   :  { %v5058_v19 = vadd.f32 %v5052_v48, %v5028_v25  ;;  %v8034_v48 = vld [vmem:[%s12524_s9 + $0x250] sm:$0xff]  ;;  %v5116_v25 = vld [vmem:[%s12524_s9 + $0x78] sm:$0xff] }
 0x914   :  { %8478 = vrot.lane.b32.xlu2 %v8462_v20, %s8516_s7  ;;  %v5057_v40 = vadd.f32 %v11642_v1, %v5027_v36  ;;  %v8031_v20 = vld [vmem:[%s12524_s9 + $0x238] sm:$0xff]  ;;  %v7971_v36 = vld [vmem:[%s12524_s9 + $0x160] sm:$0xff] }
 0x915   :  { %v5063_v57 = vmax.f32 %v5058_v19, 0.0  ;;  %v8035_v19 = vld [vmem:[%s12524_s9 + $0x258] sm:$0xff] }
 0x916   :  { %v5062_v5 = vmax.f32 %v5057_v40, 0.0  ;;  %v5117_v40 = vld [vmem:[%s12524_s9 + $0x80] sm:$0xff] }
 0x917   :  { %v5068_v34 = vmin.f32 %v5063_v57, 6.0  ;;  %v7972_v57 = vld [vmem:[%s12524_s9 + $0x168] sm:$0xff] }
 0x918   :  { %v5067_v33 = vmin.f32 %v5062_v5, 6.0  ;;  %v8036_v5 = vld [vmem:[%s12524_s9 + $0x260] sm:$0xff] }
 0x919   :  { %5423 = vrot.lane.b32.xlu0 %v5068_v34, %s8514_s5  ;;  %7926 = vmatpush.msk.msra.mxu1 %vm199_vm0, %v5068_v34 }
 0x91a   :  { %8413 = vmatpush.msk.msra.mxu3 %vm199_vm0, %v5068_v34  ;;  %v8467_v52 = vpack.i.bf16 %v5066_v35, %v5067_v33 }
 0x91b   :  { %5245 = vmatpush.msra.mxu1 %v5067_v33 }
 0x91c   :  { %8414 = vmatpush.msra.mxu3 %v5067_v33  ;;  %8468 = vrot.lane.b32.xlu1 %v8467_v52, %s8514_s5  ;;  %v5118_v33 = vld [vmem:[%s12524_s9 + $0x88] sm:$0xff] }
 0x91d   :  { %5246 = vmatpush.msra.mxu1 %v5066_v35 }
 0x91e   :  { %8415 = vmatpush.msra.mxu3 %v5066_v35  ;;  %v7973_v35 = vld [vmem:[%s12524_s9 + $0x170] sm:$0xff] }
 0x91f   :  { %5247 = vmatpush.msra.mxu1 %v5065_v43 }
 0x920   :  { %8416 = vmatpush.msra.mxu3 %v5065_v43  ;;  %v5110_v43 = vld [vmem:[%s12524_s9 + $0x48] sm:$0xff] }
 0x921   :  { %5713 = vrot.lane.b32.xlu0 %v5068_v34, %s8516_s7  ;;  %5248 = vmatpush.msra.mxu1 %v5064_v55 }
 0x922   :  { %8417 = vmatpush.msra.mxu3 %v5064_v55  ;;  %7927 = vmatmul.msk.f32.vlgmr.msra.gmra.mxu1 %vm1091_vm4, %v5101_v61  ;;  %v5109_v55 = vld [vmem:[%s12524_s9 + $0x40] sm:$0xff]  ;;  %v5119_v61 = vld [vmem:[%s12524_s9 + $0x90] sm:$0xff] }
 0x923   :  { %7958 = vmatmul.msk.f32.vlgmr.msra.gmra.mxu3 %vm1091_vm4, %v5132_v45 }
 0x924   :  { %8473 = vrot.lane.b32.xlu1 %v8467_v52, %s8516_s7  ;;  %v8037_v52 = vld [vmem:[%s12524_s9 + $0x268] sm:$0xff] }
 0x92a   :  { %7928 = vmatmul.msk.f32.gmra.mxu1 %vm1091_vm4, %v5102_v15  ;;  %v7974_v15 = vld [vmem:[%s12524_s9 + $0x178] sm:$0xff] }
 0x932   :  { %7929 = vmatmul.msk.f32.gmra.mxu1 %vm1091_vm4, %v5103_v27  ;;  %v8038_v27 = vld [vmem:[%s12524_s9 + $0x270] sm:$0xff] }
 0x93a   :  { %7930 = vmatmul.msk.f32.gmra.mxu1 %vm1091_vm4, %v5104_v4 }
 0x942   :  { %7931 = vmatmul.msk.f32.gmra.mxu1 %vm1091_vm4, %v5105_v28 }
 0x94a   :  { %7932 = vmatmul.msk.f32.gmra.mxu1 %vm1091_vm4, %v5106_v41  ;;  %v5123_v41 = vld [vmem:[%s12524_s9 + $0xb0] sm:$0xff] }
 0x952   :  { %7933 = vmatmul.msk.f32.gmra.mxu1 %vm1091_vm4, %v5107_v2  ;;  %v8042_v2 = vld [vmem:[%s12524_s9 + $0x290] sm:$0xff] }
 0x95a   :  { %7934 = vmatmul.msk.f32.gmra.mxu1 %vm1091_vm4, %v5108_v7  ;;  %v5124_v7 = vld [vmem:[%s12524_s9 + $0xb8] sm:$0xff] }
 0x962   :  { %7935 = vmatmul.msk.f32.gmra.mxu1 %vm1091_vm4, %v5109_v55  ;;  %v8043_v55 = vld [vmem:[%s12524_s9 + $0x298] sm:$0xff] }
 0x966   :  { %v8464_v26 = vpop.permute.xlu2 %8463 }
 0x967   :  { %v8465_v56 = vunpack.i.l.bf16 %v8464_v26  ;;  %v8466_v38 = vunpack.i.h.bf16 %v8464_v26 }
 0x96a   :  { %7936 = vmatmul.msk.f32.gmra.mxu1 %vm1091_vm4, %v5110_v43  ;;  %v5125_v43 = vld [vmem:[%s12524_s9 + $0xc0] sm:$0xff] }
 0x96e   :  { %v8479_v6 = vpop.permute.xlu2 %8478 }
 0x96f   :  { %v8480_v58 = vunpack.i.l.bf16 %v8479_v6  ;;  %v8481_v21 = vunpack.i.h.bf16 %v8479_v6 }
 0x972   :  { %7937 = vmatmul.msk.f32.gmra.mxu1 %vm1091_vm4, %v5111_v42  ;;  %v8044_v42 = vld [vmem:[%s12524_s9 + $0x2a0] sm:$0xff] }
 0x97a   :  { %7938 = vmatmul.msk.f32.gmra.mxu1 %vm1091_vm4, %v5112_v39  ;;  %v5126_v39 = vld [vmem:[%s12524_s9 + $0xc8] sm:$0xff] }
 0x982   :  { %7939 = vmatmul.msk.f32.gmra.mxu1 %vm1091_vm4, %v5113_v16  ;;  %v8045_v16 = vld [vmem:[%s12524_s9 + $0x2a8] sm:$0xff] }
 0x98a   :  { %7940 = vmatmul.msk.f32.gmra.mxu1 %vm1091_vm4, %v5114_v12  ;;  %v5127_v12 = vld [vmem:[%s12524_s9 + $0xd0] sm:$0xff] }
 0x98b   :  { %v5424_v1 = vpop.permute.xlu0 %5423 }
 0x98c   :  { %7991 = vmatpush.msk.msrb.mxu3 %vm199_vm0, %v5424_v1 }
 0x98e   :  { %v8469_v31 = vpop.permute.xlu1 %8468 }
 0x98f   :  { %v8470_v30 = vunpack.i.l.bf16 %v8469_v31  ;;  %v8471_v17 = vunpack.i.h.bf16 %v8469_v31  ;;  %v5120_v31 = vld [vmem:[%s12524_s9 + $0x98] sm:$0xff] }
 0x991   :  { %5539 = vmatpush.msrb.mxu3 %v8470_v30  ;;  %v7975_v30 = vld [vmem:[%s12524_s9 + $0x180] sm:$0xff] }
 0x992   :  { %7941 = vmatmul.msk.f32.gmra.mxu1 %vm1091_vm4, %v5115_v23  ;;  %v8046_v23 = vld [vmem:[%s12524_s9 + $0x2b0] sm:$0xff] }
 0x993   :  { %v5714_v46 = vpop.permute.xlu0 %5713  ;;  %5540 = vmatpush.msrb.mxu3 %v8471_v17  ;;  %v8039_v17 = vld [vmem:[%s12524_s9 + $0x278] sm:$0xff] }
 0x994   :  { %8056 = vmatpush.msk.msra.mxu0 %vm199_vm0, %v5714_v46  ;;  %v5121_v46 = vld [vmem:[%s12524_s9 + $0xa0] sm:$0xff] }
 0x995   :  { %5541 = vmatpush.msrb.mxu3 %v8465_v56 }
 0x996   :  { %v8474_v29 = vpop.permute.xlu1 %8473 }
 0x997   :  { %v8475_v0 = vunpack.i.l.bf16 %v8474_v29  ;;  %5542 = vmatpush.msrb.mxu3 %v8466_v38  ;;  %v8476_v14 = vunpack.i.h.bf16 %v8474_v29  ;;  %v8040_v29 = vld [vmem:[%s12524_s9 + $0x280] sm:$0xff] }
 0x998   :  { %7992 = vmatmul.msk.f32.vlgmr.msrb.gmra.mxu3 %vm1091_vm4, %v7959_v47  ;;  %v7976_v47 = vld [vmem:[%s12524_s9 + $0x188] sm:$0xff] }
 0x999   :  { %5829 = vmatpush.msra.mxu0 %v8475_v0 }
 0x99a   :  { %7942 = vmatmul.msk.f32.gmra.mxu1 %vm1091_vm4, %v5116_v25  ;;  %v5128_v25 = vld [vmem:[%s12524_s9 + $0xd8] sm:$0xff] }
 0x99b   :  { %5830 = vmatpush.msra.mxu0 %v8476_v14  ;;  %v5122_v14 = vld [vmem:[%s12524_s9 + $0xa8] sm:$0xff] }
 0x99d   :  { %5831 = vmatpush.msra.mxu0 %v8480_v58  ;;  %v7977_v58 = vld [vmem:[%s12524_s9 + $0x190] sm:$0xff] }
 0x99f   :  { %5832 = vmatpush.msra.mxu0 %v8481_v21  ;;  %v11861_v3 = vpop.f32.mrf.mxu1  ;;  %v8041_v21 = vld [vmem:[%s12524_s9 + $0x288] sm:$0xff] }
 0x9a0   :  { %7993 = vmatmul.msk.f32.gmra.mxu3 %vm1091_vm4, %v7960_v32  ;;  %8057 = vmatmul.msk.f32.vlgmr.msra.gmra.mxu0 %vm1091_vm4, %v8024_v54 }
 0x9a2   :  { %7943 = vmatmul.msk.f32.gmra.mxu1 %vm1091_vm4, %v5117_v40  ;;  %v8047_v40 = vld [vmem:[%s12524_s9 + $0x2b8] sm:$0xff] }
 0x9a6   :  { %v11903_v1 = vpop.f32.mrf.mxu3 }
 0x9a7   :  { %v11875_v34 = vpop.f32.mrf.mxu1 }
 0x9a8   :  { %7994 = vmatmul.msk.f32.gmra.mxu3 %vm1091_vm4, %v7961_v13  ;;  %8058 = vmatmul.msk.f32.gmra.mxu0 %vm1091_vm4, %v8025_v59  ;;  %v7978_v59 = vld [vmem:[%s12524_s9 + $0x198] sm:$0xff] }
 0x9aa   :  { %7944 = vmatmul.msk.f32.gmra.mxu1 %vm1091_vm4, %v5118_v33  ;;  %v5129_v33 = vld [vmem:[%s12524_s9 + $0xe0] sm:$0xff] }
 0x9af   :  { %v11889_v45 = vpop.f32.mrf.mxu1 }
 0x9b0   :  { %7995 = vmatmul.msk.f32.gmra.mxu3 %vm1091_vm4, %v7962_v51  ;;  %8059 = vmatmul.msk.f32.gmra.mxu0 %vm1091_vm4, %v8026_v22 }
 0x9b2   :  { %7945 = vmatmul.msk.f32.gmra.mxu1 %vm1091_vm4, %v5119_v61  ;;  %v8048_v61 = vld [vmem:[%s12524_s9 + $0x2c0] sm:$0xff] }
 0x9b7   :  { %v11905_v26 = vpop.f32.mrf.mxu1 }
 0x9b8   :  { %7996 = vmatmul.msk.f32.gmra.mxu3 %vm1091_vm4, %v7963_v10  ;;  %8060 = vmatmul.msk.f32.gmra.mxu0 %vm1091_vm4, %v8027_v18  ;;  %v7979_v18 = vld [vmem:[%s12524_s9 + $0x1a0] sm:$0xff] }
 0x9ba   :  { %7946 = vmatmul.msk.f32.gmra.mxu1 %vm1091_vm4, %v5120_v31  ;;  %v5130_v31 = vld [vmem:[%s12524_s9 + $0xe8] sm:$0xff] }
 0x9bf   :  { %v11919_v4 = vpop.f32.mrf.mxu1 }
 0x9c0   :  { %7997 = vmatmul.msk.f32.gmra.mxu3 %vm1091_vm4, %v7964_v49  ;;  %8061 = vmatmul.msk.f32.gmra.mxu0 %vm1091_vm4, %v8028_v50 }
 0x9c2   :  { %7947 = vmatmul.msk.f32.gmra.mxu1 %vm1091_vm4, %v5121_v46  ;;  %v8049_v46 = vld [vmem:[%s12524_s9 + $0x2c8] sm:$0xff] }
 0x9c7   :  { %v11937_v0 = vpop.f32.mrf.mxu1 }
 0x9c8   :  { %7998 = vmatmul.msk.f32.gmra.mxu3 %vm1091_vm4, %v7965_v53  ;;  %8062 = vmatmul.msk.f32.gmra.mxu0 %vm1091_vm4, %v8029_v11  ;;  %v7980_v11 = vld [vmem:[%s12524_s9 + $0x1a8] sm:$0xff] }
 0x9ca   :  { %7948 = vmatmul.msk.f32.gmra.mxu1 %vm1091_vm4, %v5122_v14 }
 0x9cf   :  { %v11955_v32 = vpop.f32.mrf.mxu1 }
 0x9d0   :  { %7999 = vmatmul.msk.f32.gmra.mxu3 %vm1091_vm4, %v7966_v24  ;;  %8063 = vmatmul.msk.f32.gmra.mxu0 %vm1091_vm4, %v8030_v60 }
 0x9d2   :  { %7949 = vmatmul.msk.f32.gmra.mxu1 %vm1091_vm4, %v5123_v41 }
 0x9d7   :  { %v11973_v51 = vpop.f32.mrf.mxu1 }
 0x9d8   :  { %8000 = vmatmul.msk.f32.gmra.mxu3 %vm1091_vm4, %v7967_v37  ;;  %8064 = vmatmul.msk.f32.gmra.mxu0 %vm1091_vm4, %v8031_v20  ;;  %v7981_v20 = vld [vmem:[%s12524_s9 + $0x1b0] sm:$0xff] }
 0x9da   :  { %7950 = vmatmul.msk.f32.gmra.mxu1 %vm1091_vm4, %v5124_v7  ;;  %v7987_v7 = vld [vmem:[%s12524_s9 + $0x1e0] sm:$0xff] }
 0x9df   :  { %v11991_v49 = vpop.f32.mrf.mxu1 }
 0x9e0   :  { %8001 = vmatmul.msk.f32.gmra.mxu3 %vm1091_vm4, %v7968_v8  ;;  %8065 = vmatmul.msk.f32.gmra.mxu0 %vm1091_vm4, %v8032_v63 }
 0x9e2   :  { %7951 = vmatmul.msk.f32.gmra.mxu1 %vm1091_vm4, %v5125_v43 }
 0x9e7   :  { %v12009_v24 = vpop.f32.mrf.mxu1 }
 0x9e8   :  { %8002 = vmatmul.msk.f32.gmra.mxu3 %vm1091_vm4, %v7969_v9  ;;  %8066 = vmatmul.msk.f32.gmra.mxu0 %vm1091_vm4, %v8033_v44  ;;  %v7982_v44 = vld [vmem:[%s12524_s9 + $0x1b8] sm:$0xff] }
 0x9ea   :  { %7952 = vmatmul.msk.f32.gmra.mxu1 %vm1091_vm4, %v5126_v39  ;;  %v8052_v39 = vld [vmem:[%s12524_s9 + $0x2e0] sm:$0xff] }
 0x9ef   :  { %v12027_v8 = vpop.f32.mrf.mxu1 }
 0x9f0   :  { %8003 = vmatmul.msk.f32.gmra.mxu3 %vm1091_vm4, %v7970_v62  ;;  %8067 = vmatmul.msk.f32.gmra.mxu0 %vm1091_vm4, %v8034_v48 }
 0x9f2   :  { %7953 = vmatmul.msk.f32.gmra.mxu1 %vm1091_vm4, %v5127_v12 }
 0x9f7   :  { %v12045_v62 = vpop.f32.mrf.mxu1 }
 0x9f8   :  { %8004 = vmatmul.msk.f32.gmra.mxu3 %vm1091_vm4, %v7971_v36  ;;  %8068 = vmatmul.msk.f32.gmra.mxu0 %vm1091_vm4, %v8035_v19  ;;  %v7983_v19 = vld [vmem:[%s12524_s9 + $0x1c0] sm:$0xff] }
 0x9fa   :  { %7954 = vmatmul.msk.f32.gmra.mxu1 %vm1091_vm4, %v5128_v25 }
 0xa00   :  { %8005 = vmatmul.msk.f32.gmra.mxu3 %vm1091_vm4, %v7972_v57  ;;  %8069 = vmatmul.msk.f32.gmra.mxu0 %vm1091_vm4, %v8036_v5  ;;  %v12063_v57 = vpop.f32.mrf.mxu1 }
 0xa02   :  { %7955 = vmatmul.msk.f32.gmra.mxu1 %vm1091_vm4, %v5129_v33 }
 0xa08   :  { %8006 = vmatmul.msk.f32.gmra.mxu3 %vm1091_vm4, %v7973_v35  ;;  %8070 = vmatmul.msk.f32.gmra.mxu0 %vm1091_vm4, %v8037_v52  ;;  %v7984_v52 = vld [vmem:[%s12524_s9 + $0x1c8] sm:$0xff] }
 0xa0a   :  { %7956 = vmatmul.msk.f32.gmra.mxu1 %vm1091_vm4, %v5130_v31  ;;  %v5084_v31 = vld [vmem:[%s12525_s10 + $0x78] sm:$0xff] }
 0xa10   :  { %8007 = vmatmul.msk.f32.gmra.mxu3 %vm1091_vm4, %v7974_v15  ;;  %8071 = vmatmul.msk.f32.gmra.mxu0 %vm1091_vm4, %v8038_v27  ;;  %v5289_v27 = vpop.f32.mrf.mxu1 }
 0xa18   :  { %8008 = vmatmul.msk.f32.gmra.mxu3 %vm1091_vm4, %v7975_v30  ;;  %8072 = vmatmul.msk.f32.gmra.mxu0 %vm1091_vm4, %v8039_v17  ;;  %v7985_v17 = vld [vmem:[%s12524_s9 + $0x1d0] sm:$0xff]  ;;  %v5292_v41 = vpop.f32.mrf.mxu1 }
 0xa1b   :  { %v11921_v56 = vpop.f32.mrf.mxu3 }
 0xa1d   :  { %v11926_v38 = vpop.f32.mrf.mxu0 }
 0xa20   :  { %8009 = vmatmul.msk.f32.gmra.mxu3 %vm1091_vm4, %v7976_v47  ;;  %8073 = vmatmul.msk.f32.gmra.mxu0 %vm1091_vm4, %v8040_v29  ;;  %v5131_v29 = vld [vmem:[%s12524_s9 + $0xf0] sm:$0xff] }
 0xa21   :  { %7957 = vmatmul.msk.f32.gmra.mxu1 %vm1091_vm4, %v5131_v29 }
 0xa23   :  { %v11939_v6 = vpop.f32.mrf.mxu3 }
 0xa25   :  { %v11944_v28 = vpop.f32.mrf.mxu0 }
 0xa28   :  { %8010 = vmatmul.msk.f32.gmra.mxu3 %vm1091_vm4, %v7977_v58  ;;  %8074 = vmatmul.msk.f32.gmra.mxu0 %vm1091_vm4, %v8041_v21  ;;  %v7986_v58 = vld [vmem:[%s12524_s9 + $0x1d8] sm:$0xff]  ;;  %v8050_v21 = vld [vmem:[%s12524_s9 + $0x2d0] sm:$0xff] }
 0xa2b   :  { %v11957_v54 = vpop.f32.mrf.mxu3 }
 0xa2d   :  { %v11962_v13 = vpop.f32.mrf.mxu0 }
 0xa30   :  { %8011 = vmatmul.msk.f32.gmra.mxu3 %vm1091_vm4, %v7978_v59  ;;  %8075 = vmatmul.msk.f32.gmra.mxu0 %vm1091_vm4, %v8042_v2 }
 0xa33   :  { %v11975_v22 = vpop.f32.mrf.mxu3 }
 0xa35   :  { %v11980_v10 = vpop.f32.mrf.mxu0 }
 0xa38   :  { %8012 = vmatmul.msk.f32.gmra.mxu3 %vm1091_vm4, %v7979_v18  ;;  %8076 = vmatmul.msk.f32.gmra.mxu0 %vm1091_vm4, %v8043_v55  ;;  %v8051_v18 = vld [vmem:[%s12524_s9 + $0x2d8] sm:$0xff]  ;;  %v5295_v55 = vpop.f32.mrf.mxu1 }
 0xa39   :  { %v5361_v29 = vadd.f32 %v5295_v55, %v5084_v31  ;;  %v8055_v55 = vld [vmem:[%s12524_s9 + $0x2f8] sm:$0xff] }
 0xa3b   :  { %v11993_v50 = vpop.f32.mrf.mxu3 }
 0xa3d   :  { %v11998_v53 = vpop.f32.mrf.mxu0 }
 0xa40   :  { %8013 = vmatmul.msk.f32.gmra.mxu3 %vm1091_vm4, %v7980_v11  ;;  %8077 = vmatmul.msk.f32.gmra.mxu0 %vm1091_vm4, %v8044_v42  ;;  %v7988_v42 = vld [vmem:[%s12524_s9 + $0x1e8] sm:$0xff] }
 0xa43   :  { %v12011_v60 = vpop.f32.mrf.mxu3 }
 0xa45   :  { %v12016_v37 = vpop.f32.mrf.mxu0 }
 0xa48   :  { %8014 = vmatmul.msk.f32.gmra.mxu3 %vm1091_vm4, %v7981_v20  ;;  %8078 = vmatmul.msk.f32.gmra.mxu0 %vm1091_vm4, %v8045_v16  ;;  %v5298_v20 = vpop.f32.mrf.mxu1 }
 0xa4b   :  { %v12029_v63 = vpop.f32.mrf.mxu3 }
 0xa4d   :  { %v12034_v9 = vpop.f32.mrf.mxu0 }
 0xa50   :  { %8015 = vmatmul.msk.f32.gmra.mxu3 %vm1091_vm4, %v7982_v44  ;;  %8079 = vmatmul.msk.f32.gmra.mxu0 %vm1091_vm4, %v8046_v23  ;;  %v7989_v44 = vld [vmem:[%s12524_s9 + $0x1f0] sm:$0xff]  ;;  %v8053_v23 = vld [vmem:[%s12524_s9 + $0x2e8] sm:$0xff] }
 0xa53   :  { %v12047_v48 = vpop.f32.mrf.mxu3 }
 0xa55   :  { %v12052_v36 = vpop.f32.mrf.mxu0 }
 0xa58   :  { %8016 = vmatmul.msk.f32.gmra.mxu3 %vm1091_vm4, %v7983_v19  ;;  %8080 = vmatmul.msk.f32.gmra.mxu0 %vm1091_vm4, %v8047_v40  ;;  %v5301_v19 = vpop.f32.mrf.mxu1  ;;  %v5083_v40 = vld [vmem:[%s12525_s10 + $0x70] sm:$0xff] }
 0xa5b   :  { %v12065_v5 = vpop.f32.mrf.mxu3 }
 0xa5d   :  { %v12070_v35 = vpop.f32.mrf.mxu0 }
 0xa60   :  { %8017 = vmatmul.msk.f32.gmra.mxu3 %vm1091_vm4, %v7984_v52  ;;  %8081 = vmatmul.msk.f32.gmra.mxu0 %vm1091_vm4, %v8048_v61  ;;  %v7990_v52 = vld [vmem:[%s12524_s9 + $0x1f8] sm:$0xff]  ;;  %v8054_v61 = vld [vmem:[%s12524_s9 + $0x2f0] sm:$0xff] }
 0xa63   :  { %v12081_v15 = vpop.f32.mrf.mxu3 }
 0xa65   :  { %v12086_v30 = vpop.f32.mrf.mxu0 }
 0xa68   :  { %8018 = vmatmul.msk.f32.gmra.mxu3 %vm1091_vm4, %v7985_v17  ;;  %8082 = vmatmul.msk.f32.gmra.mxu0 %vm1091_vm4, %v8049_v46  ;;  %v5082_v17 = vld [vmem:[%s12525_s10 + $0x68] sm:$0xff]  ;;  %v5360_v46 = vadd.f32 %v5292_v41, %v5083_v40  ;;  %v12172_v40 = vpop.f32.mrf.mxu1 }
 0xa6b   :  { %v12097_v47 = vpop.f32.mrf.mxu3 }
 0xa6d   :  { %v12102_v14 = vpop.f32.mrf.mxu0 }
 0xa70   :  { %8019 = vmatmul.msk.f32.gmra.mxu3 %vm1091_vm4, %v7986_v58  ;;  %8083 = vmatmul.msk.f32.gmra.mxu0 %vm1091_vm4, %v8050_v21  ;;  %v5081_v58 = vld [vmem:[%s12525_s10 + $0x60] sm:$0xff]  ;;  %v5359_v21 = vadd.f32 %v5289_v27, %v5082_v17 }
 0xa71   :  { %v5358_v41 = vadd.f32 %v12063_v57, %v5081_v58  ;;  %v5085_v27 = vld [vmem:[%s12525_s10 + $0x80] sm:$0xff]  ;;  %v5078_v57 = vld [vmem:[%s12525_s10 + $0x48] sm:$0xff] }
 0xa72   :  { %v5077_v58 = vld [vmem:[%s12525_s10 + $0x40] sm:$0xff] }
 0xa73   :  { %v5577_v59 = vpop.f32.mrf.mxu3 }
 0xa75   :  { %v12113_v2 = vpop.f32.mrf.mxu0 }
 0xa78   :  { %8020 = vmatmul.msk.f32.gmra.mxu3 %vm1091_vm4, %v7987_v7  ;;  %8084 = vmatmul.msk.f32.gmra.mxu0 %vm1091_vm4, %v8051_v18  ;;  %v5080_v7 = vld [vmem:[%s12525_s10 + $0x58] sm:$0xff] }
 0xa7b   :  { %v5580_v43 = vpop.f32.mrf.mxu3 }
 0xa7c   :  { %v5652_v17 = vadd.f32 %v5580_v43, %v5358_v41  ;;  %v5354_v43 = vadd.f32 %v11991_v49, %v5077_v58 }
 0xa7d   :  { %v5870_v11 = vpop.f32.mrf.mxu0 }
 0xa80   :  { %8021 = vmatmul.msk.f32.gmra.mxu3 %vm1091_vm4, %v7988_v42  ;;  %8085 = vmatmul.msk.f32.gmra.mxu0 %vm1091_vm4, %v8052_v39  ;;  %v5079_v42 = vld [vmem:[%s12525_s10 + $0x50] sm:$0xff] }
 0xa83   :  { %v5583_v16 = vpop.f32.mrf.mxu3 }
 0xa85   :  { %v5873_v12 = vpop.f32.mrf.mxu0 }
 0xa88   :  { %8022 = vmatmul.msk.f32.gmra.mxu3 %vm1091_vm4, %v7989_v44  ;;  %8086 = vmatmul.msk.f32.gmra.mxu0 %vm1091_vm4, %v8053_v23 }
 0xa8b   :  { %v5586_v25 = vpop.f32.mrf.mxu3 }
 0xa8c   :  { %v5654_v39 = vadd.f32 %v5586_v25, %v5360_v46  ;;  %v5356_v25 = vadd.f32 %v12027_v8, %v5079_v42  ;;  %v5075_v42 = vld [vmem:[%s12525_s10 + $0x30] sm:$0xff] }
 0xa8d   :  { %v5876_v33 = vpop.f32.mrf.mxu0 }
 0xa8e   :  { %v5944_v46 = vadd.f32 %v5876_v33, %v5654_v39  ;;  %v5650_v33 = vadd.f32 %v12097_v47, %v5356_v25  ;;  %v5074_v47 = vld [vmem:[%s12525_s10 + $0x28] sm:$0xff] }
 0xa90   :  { %8023 = vmatmul.msk.f32.gmra.mxu3 %vm1091_vm4, %v7990_v52  ;;  %8087 = vmatmul.msk.f32.gmra.mxu0 %vm1091_vm4, %v8054_v61  ;;  %v5357_v52 = vadd.f32 %v12045_v62, %v5080_v7  ;;  %v5653_v61 = vadd.f32 %v5583_v16, %v5359_v21  ;;  %v5355_v62 = vadd.f32 %v12009_v24, %v5078_v57  ;;  %v5076_v7 = vld [vmem:[%s12525_s10 + $0x38] sm:$0xff] }
 0xa92   :  { %v5651_v16 = vadd.f32 %v5577_v59, %v5357_v52  ;;  %v5943_v21 = vadd.f32 %v5873_v12, %v5653_v61  ;;  %v5086_v59 = vld [vmem:[%s12525_s10 + $0x88] sm:$0xff]  ;;  %v5353_v12 = vadd.f32 %v11973_v51, %v5076_v7  ;;  %v5649_v41 = vadd.f32 %v12081_v15, %v5355_v62  ;;  %v5073_v15 = vld [vmem:[%s12525_s10 + $0x20] sm:$0xff] }
 0xa93   :  { %v5589_v18 = vpop.f32.mrf.mxu3  ;;  %v5363_v51 = vadd.f32 %v5301_v19, %v5086_v59 }
 0xa94   :  { %v5655_v44 = vadd.f32 %v5589_v18, %v5361_v29  ;;  %v5362_v29 = vadd.f32 %v5298_v20, %v5085_v27  ;;  %v5942_v18 = vadd.f32 %v5870_v11, %v5652_v17  ;;  %v5941_v49 = vadd.f32 %v12113_v2, %v5651_v16  ;;  %v5307_v11 = vpop.f32.mrf.mxu1 }
 0xa95   :  { %v5879_v23 = vpop.f32.mrf.mxu0  ;;  %v5351_v2 = vadd.f32 %v11937_v0, %v5074_v47  ;;  %v5647_v27 = vadd.f32 %v12047_v48, %v5353_v12  ;;  %v5939_v52 = vadd.f32 %v12086_v30, %v5649_v41  ;;  %v5071_v0 = vld [vmem:[%s12525_s10 + $0x10] sm:$0xff]  ;;  %v5090_v41 = vld [vmem:[%s12525_s10 + $0xa8] sm:$0xff] }
 0xa96   :  { %v5945_v31 = vadd.f32 %v5879_v23, %v5655_v44  ;;  %v5352_v44 = vadd.f32 %v11955_v32, %v5075_v42  ;;  %v5648_v23 = vadd.f32 %v12065_v5, %v5354_v43  ;;  %v5072_v32 = vld [vmem:[%s12525_s10 + $0x18] sm:$0xff]  ;;  %v5087_v30 = vld [vmem:[%s12525_s10 + $0x90] sm:$0xff]  ;;  %v5348_v17 = vadd.f32 %v11889_v45, %v5071_v0 }
 0xa97   :  { %v5349_v57 = vadd.f32 %v11905_v26, %v5072_v32  ;;  %v5645_v25 = vadd.f32 %v12011_v60, %v5351_v2  ;;  %v5364_v26 = vadd.f32 %v12172_v40, %v5087_v30  ;;  %v5069_v60 = vld [vmem:[%s12525_s10] sm:$0xff] }
 0xa98   :  { %8088 = vmatmul.msk.f32.gmra.mxu0 %vm1091_vm4, %v8055_v55  ;;  %6010 = vmatpush.msra.mxu2 %v5945_v31  ;;  %v5940_v55 = vadd.f32 %v12102_v14, %v5650_v33  ;;  %v5350_v14 = vadd.f32 %v11919_v4, %v5073_v15  ;;  %v5646_v19 = vadd.f32 %v12029_v63, %v5352_v44  ;;  %v5091_v15 = vld [vmem:[%s12525_s10 + $0xb0] sm:$0xff] }
 0xa99   :  { %v5938_v61 = vadd.f32 %v12070_v35, %v5648_v23  ;;  %v5937_v4 = vadd.f32 %v12052_v36, %v5647_v27  ;;  %v5070_v35 = vld [vmem:[%s12525_s10 + $0x8] sm:$0xff]  ;;  %v5643_v62 = vadd.f32 %v11975_v22, %v5349_v57  ;;  %v5935_v16 = vadd.f32 %v12016_v37, %v5645_v25  ;;  %v5970_v25 = vld [vmem:[%s12526_s11 + $0x40] sm:$0xff] }
 0xa9a   :  { %6011 = vmatpush.msra.mxu2 %v5944_v46  ;;  %v5644_v46 = vadd.f32 %v11993_v50, %v5350_v14  ;;  %v5347_v58 = vadd.f32 %v11875_v34, %v5070_v35  ;;  %v5346_v50 = vadd.f32 %v11861_v3, %v5069_v60  ;;  %v5968_v14 = vld [vmem:[%s12526_s11 + $0x30] sm:$0xff]  ;;  %v5093_v35 = vld [vmem:[%s12525_s10 + $0xc0] sm:$0xff] }
 0xa9b   :  { %v5592_v8 = vpop.f32.mrf.mxu3  ;;  %v5933_v22 = vadd.f32 %v11980_v10, %v5643_v62 }
 0xa9c   :  { %v5656_v20 = vadd.f32 %v5592_v8, %v5362_v29  ;;  %6012 = vmatpush.msra.mxu2 %v5943_v21  ;;  %v5936_v29 = vadd.f32 %v12034_v9, %v5646_v19  ;;  %v5310_v36 = vpop.f32.mrf.mxu1  ;;  %v5642_v9 = vadd.f32 %v11957_v54, %v5348_v17  ;;  %v5934_v21 = vadd.f32 %v11998_v53, %v5644_v46  ;;  %v5088_v8 = vld [vmem:[%s12525_s10 + $0x98] sm:$0xff] }
 0xa9d   :  { %v5882_v24 = vpop.f32.mrf.mxu0  ;;  %v5641_v34 = vadd.f32 %v11939_v6, %v5347_v58  ;;  %v5640_v3 = vadd.f32 %v11921_v56, %v5346_v50  ;;  %v5365_v53 = vadd.f32 %v5307_v11, %v5088_v8  ;;  %v5962_v6 = vld [vmem:[%s12526_s11] sm:$0xff] }
 0xa9e   :  { %v12198_v39 = vadd.f32 %v5882_v24, %v5656_v20  ;;  %6013 = vmatpush.msra.mxu2 %v5942_v18  ;;  %v5932_v54 = vadd.f32 %v11962_v13, %v5642_v9  ;;  %v5089_v56 = vld [vmem:[%s12525_s10 + $0xa0] sm:$0xff] }
 0xa9f   :  { %v5931_v43 = vadd.f32 %v11944_v28, %v5641_v34  ;;  %v5930_v20 = vadd.f32 %v11926_v38, %v5640_v3  ;;  %v5366_v28 = vadd.f32 %v5310_v36, %v5089_v56  ;;  %v5964_v38 = vld [vmem:[%s12526_s11 + $0x10] sm:$0xff] }
 0xaa0   :  { %6014 = vmatpush.msra.mxu2 %v5941_v49  ;;  %v5972_v36 = vld [vmem:[%s12526_s11 + $0x50] sm:$0xff] }
 0xaa1   :  { %v5984_v56 = vld [vmem:[%s12526_s11 + $0xb0] sm:$0xff] }
 0xaa2   :  { %6015 = vmatpush.msra.mxu2 %v5940_v55  ;;  %v5966_v55 = vld [vmem:[%s12526_s11 + $0x20] sm:$0xff] }
 0xaa3   :  { %v5595_v5 = vpop.f32.mrf.mxu3 }
 0xaa4   :  { %v5657_v31 = vadd.f32 %v5595_v5, %v5363_v51  ;;  %6016 = vmatpush.msra.mxu2 %v5939_v52  ;;  %v5313_v18 = vpop.f32.mrf.mxu1 }
 0xaa5   :  { %v5885_v48 = vpop.f32.mrf.mxu0  ;;  %v5367_v11 = vadd.f32 %v5313_v18, %v5090_v41 }
 0xaa6   :  { %v12227_v63 = vadd.f32 %v5885_v48, %v5657_v31  ;;  %6017 = vmatpush.msra.mxu2 %v5938_v61  ;;  %v5092_v61 = vld [vmem:[%s12525_s10 + $0xb8] sm:$0xff] }
 0xaa8   :  { %6018 = vmatpush.msra.mxu2 %v5937_v4 }
 0xaaa   :  { %6019 = vmatpush.msra.mxu2 %v5936_v29 }
 0xaab   :  { %v5598_v45 = vpop.f32.mrf.mxu3 }
 0xaac   :  { %v5658_v40 = vadd.f32 %v5598_v45, %v5364_v26  ;;  %6020 = vmatpush.msra.mxu2 %v5935_v16  ;;  %v5316_v49 = vpop.f32.mrf.mxu1  ;;  %v5974_v45 = vld [vmem:[%s12526_s11 + $0x60] sm:$0xff] }
 0xaad   :  { %v5888_v7 = vpop.f32.mrf.mxu0  ;;  %v5368_v52 = vadd.f32 %v5316_v49, %v5091_v15  ;;  %v5097_v49 = vld [vmem:[%s12525_s10 + $0xe0] sm:$0xff] }
 0xaae   :  { %v12250_v37 = vadd.f32 %v5888_v7, %v5658_v40  ;;  %6021 = vmatpush.msra.mxu2 %v5934_v21  ;;  %v5976_v40 = vld [vmem:[%s12526_s11 + $0x70] sm:$0xff] }
 0xab0   :  { %6022 = vmatpush.msra.mxu2 %v5933_v22  ;;  %v5978_v22 = vld [vmem:[%s12526_s11 + $0x80] sm:$0xff] }
 0xab2   :  { %6023 = vmatpush.msra.mxu2 %v5932_v54 }
 0xab3   :  { %v5601_v33 = vpop.f32.mrf.mxu3 }
 0xab4   :  { %v5659_v42 = vadd.f32 %v5601_v33, %v5365_v53  ;;  %6024 = vmatpush.msra.mxu2 %v5931_v43  ;;  %v5319_v27 = vpop.f32.mrf.mxu1  ;;  %v5980_v43 = vld [vmem:[%s12526_s11 + $0x90] sm:$0xff] }
 0xab5   :  { %v5891_v10 = vpop.f32.mrf.mxu0  ;;  %v5369_v0 = vadd.f32 %v5319_v27, %v5092_v61  ;;  %v5094_v61 = vld [vmem:[%s12525_s10 + $0xc8] sm:$0xff] }
 0xab6   :  { %v12262_v13 = vadd.f32 %v5891_v10, %v5659_v42  ;;  %6025 = vmatpush.msra.mxu2 %v5930_v20  ;;  %v5982_v42 = vld [vmem:[%s12526_s11 + $0xa0] sm:$0xff] }
 0xab7   :  { %6026 = vmatmul.f32.vlgmr.msra.gmra.mxu2 %v5962_v6 }
 0xabb   :  { %v5604_v24 = vpop.f32.mrf.mxu3 }
 0xabc   :  { %v5660_v59 = vadd.f32 %v5604_v24, %v5366_v28  ;;  %v5322_v48 = vpop.f32.mrf.mxu1  ;;  %v5099_v28 = vld [vmem:[%s12525_s10 + $0xf0] sm:$0xff] }
 0xabd   :  { %v5894_v12 = vpop.f32.mrf.mxu0  ;;  %v5370_v46 = vadd.f32 %v5322_v48, %v5093_v35 }
 0xabe   :  { %v12270_v47 = vadd.f32 %v5894_v12, %v5660_v59  ;;  %v5098_v12 = vld [vmem:[%s12525_s10 + $0xe8] sm:$0xff] }
 0xabf   :  { %6029 = vmatmul.f32.gmra.mxu2 %v5964_v38  ;;  %v5100_v38 = vld [vmem:[%s12525_s10 + $0xf8] sm:$0xff] }
 0xac3   :  { %v5607_v44 = vpop.f32.mrf.mxu3 }
 0xac4   :  { %v5661_v23 = vadd.f32 %v5607_v44, %v5367_v11  ;;  %v5325_v26 = vpop.f32.mrf.mxu1  ;;  %v5377_v11 = vadd.f32 %v11903_v1, %v5100_v38 }
 0xac5   :  { %v5897_v51 = vpop.f32.mrf.mxu0 }
 0xac6   :  { %v12278_v2 = vadd.f32 %v5897_v51, %v5661_v23  ;;  %v5096_v23 = vld [vmem:[%s12525_s10 + $0xd8] sm:$0xff] }
 0xac7   :  { %6032 = vmatmul.f32.gmra.mxu2 %v5966_v55 }
 0xacb   :  { %v5610_v32 = vpop.f32.mrf.mxu3 }
 0xacc   :  { %v5662_v5 = vadd.f32 %v5610_v32, %v5368_v52  ;;  %v5328_v9 = vpop.f32.mrf.mxu1  ;;  %v5986_v52 = vld [vmem:[%s12526_s11 + $0xc0] sm:$0xff]  ;;  %v5095_v32 = vld [vmem:[%s12525_s10 + $0xd0] sm:$0xff] }
 0xacd   :  { %v5900_v19 = vpop.f32.mrf.mxu0 }
 0xace   :  { %v12286_v31 = vadd.f32 %v5900_v19, %v5662_v5 }
 0xacf   :  { %6035 = vmatmul.f32.gmra.mxu2 %v5968_v14 }
 0xad3   :  { %v5613_v30 = vpop.f32.mrf.mxu3 }
 0xad4   :  { %v5663_v57 = vadd.f32 %v5613_v30, %v5369_v0  ;;  %v5331_v8 = vpop.f32.mrf.mxu1  ;;  %v5372_v0 = vadd.f32 %v5328_v9, %v5095_v32  ;;  %v5973_v9 = vld [vmem:[%s12526_s11 + $0x58] sm:$0xff] }
 0xad5   :  { %v5903_v4 = vpop.f32.mrf.mxu0  ;;  %v5373_v14 = vadd.f32 %v5331_v8, %v5096_v23  ;;  %v5977_v8 = vld [vmem:[%s12526_s11 + $0x78] sm:$0xff] }
 0xad6   :  { %v12294_v17 = vadd.f32 %v5903_v4, %v5663_v57  ;;  %v5371_v57 = vadd.f32 %v5325_v26, %v5094_v61  ;;  %v5990_v26 = vld [vmem:[%s12526_s11 + $0xe0] sm:$0xff] }
 0xad7   :  { %6038 = vmatmul.f32.gmra.mxu2 %v5970_v25  ;;  %v5998_v61 = vld [vmem:[%s12527_s12 + $0x20] sm:$0xff] }
 0xadb   :  { %v5616_v29 = vpop.f32.mrf.mxu3 }
 0xadc   :  { %v5664_v60 = vadd.f32 %v5616_v29, %v5370_v46  ;;  %v5334_v54 = vpop.f32.mrf.mxu1  ;;  %v5988_v29 = vld [vmem:[%s12526_s11 + $0xd0] sm:$0xff] }
 0xadd   :  { %v5906_v58 = vpop.f32.mrf.mxu0  ;;  %v5374_v51 = vadd.f32 %v5334_v54, %v5097_v49  ;;  %v5981_v54 = vld [vmem:[%s12526_s11 + $0x98] sm:$0xff] }
 0xade   :  { %v12299_v62 = vadd.f32 %v5906_v58, %v5664_v60 }
 0xadf   :  { %6041 = vmatmul.f32.gmra.mxu2 %v5972_v36 }
 0xae3   :  { %v5619_v16 = vpop.f32.mrf.mxu3 }
 0xae4   :  { %v5337_v18 = vpop.f32.mrf.mxu1  ;;  %v5665_v60 = vadd.f32 %v5619_v16, %v5371_v57  ;;  %v5992_v16 = vld [vmem:[%s12526_s11 + $0xf0] sm:$0xff]  ;;  %v5999_v57 = vld [vmem:[%s12527_s12 + $0x28] sm:$0xff] }
 0xae5   :  { %v12304_v50 = vpop.f32.mrf.mxu0  ;;  %v5375_v44 = vadd.f32 %v5337_v18, %v5098_v12  ;;  %v5985_v18 = vld [vmem:[%s12526_s11 + $0xb8] sm:$0xff]  ;;  %v5994_v12 = vld [vmem:[%s12527_s12] sm:$0xff] }
 0xae7   :  { %6044 = vmatmul.f32.gmra.mxu2 %v5974_v45  ;;  %v5955_v45 = vadd.f32 %v12304_v50, %v5665_v60 }
 0xaeb   :  { %v5622_v21 = vpop.f32.mrf.mxu3 }
 0xaec   :  { %v5340_v24 = vpop.f32.mrf.mxu1  ;;  %v5666_v35 = vadd.f32 %v5622_v21, %v5372_v0 }
 0xaed   :  { %v5912_v7 = vpop.f32.mrf.mxu0  ;;  %v5376_v41 = vadd.f32 %v5340_v24, %v5099_v28  ;;  %v5991_v28 = vld [vmem:[%s12526_s11 + $0xe8] sm:$0xff] }
 0xaee   :  { %v5956_v58 = vadd.f32 %v5912_v7, %v5666_v35 }
 0xaef   :  { %6047 = vmatmul.f32.gmra.mxu2 %v5976_v40  ;;  %v5975_v40 = vld [vmem:[%s12526_s11 + $0x68] sm:$0xff] }
 0xaf3   :  { %v5625_v34 = vpop.f32.mrf.mxu3 }
 0xaf4   :  { %v5667_v25 = vadd.f32 %v5625_v34, %v5373_v14 }
 0xaf5   :  { %v5915_v3 = vpop.f32.mrf.mxu0 }
 0xaf6   :  { %v5957_v36 = vadd.f32 %v5915_v3, %v5667_v25 }
 0xaf7   :  { %6050 = vmatmul.f32.gmra.mxu2 %v5978_v22  ;;  %v5979_v22 = vld [vmem:[%s12526_s11 + $0x88] sm:$0xff] }
 0xafb   :  { %v5628_v53 = vpop.f32.mrf.mxu3 }
 0xafc   :  { %v5668_v48 = vadd.f32 %v5628_v53, %v5374_v51 }
 0xafd   :  { %v5918_v33 = vpop.f32.mrf.mxu0 }
 0xafe   :  { %v5958_v46 = vadd.f32 %v5918_v33, %v5668_v48 }
 0xaff   :  { %6053 = vmatmul.f32.gmra.mxu2 %v5980_v43  ;;  %v5983_v43 = vld [vmem:[%s12526_s11 + $0xa8] sm:$0xff] }
 0xb03   :  { %v5631_v20 = vpop.f32.mrf.mxu3 }
 0xb04   :  { %v5669_v1 = vadd.f32 %v5631_v20, %v5375_v44  ;;  %v5995_v44 = vld [vmem:[%s12527_s12 + $0x8] sm:$0xff] }
 0xb05   :  { %v5921_v6 = vpop.f32.mrf.mxu0 }
 0xb06   :  { %v5959_v4 = vadd.f32 %v5921_v6, %v5669_v1 }
 0xb07   :  { %6056 = vmatmul.f32.gmra.mxu2 %v5982_v42  ;;  %v5987_v42 = vld [vmem:[%s12526_s11 + $0xc8] sm:$0xff] }
 0xb0b   :  { %v5634_v10 = vpop.f32.mrf.mxu3 }
 0xb0c   :  { %v5670_v15 = vadd.f32 %v5634_v10, %v5376_v41  ;;  %v5989_v10 = vld [vmem:[%s12526_s11 + $0xd8] sm:$0xff] }
 0xb0d   :  { %v5924_v59 = vpop.f32.mrf.mxu0 }
 0xb0e   :  { %v5960_v30 = vadd.f32 %v5924_v59, %v5670_v15  ;;  %v5993_v59 = vld [vmem:[%s12526_s11 + $0xf8] sm:$0xff]  ;;  %v5996_v15 = vld [vmem:[%s12527_s12 + $0x10] sm:$0xff] }
 0xb0f   :  { %6059 = vmatmul.f32.gmra.mxu2 %v5984_v56 }
 0xb13   :  { %v5637_v55 = vpop.f32.mrf.mxu3 }
 0xb14   :  { %v5671_v27 = vadd.f32 %v5637_v55, %v5377_v11 }
 0xb15   :  { %v5927_v5 = vpop.f32.mrf.mxu0 }
 0xb16   :  { %v5961_v19 = vadd.f32 %v5927_v5, %v5671_v27  ;;  %v5997_v5 = vld [vmem:[%s12527_s12 + $0x18] sm:$0xff] }
 0xb17   :  { %6062 = vmatmul.f32.gmra.mxu2 %v5986_v52 }
 0xb18   :  { %6075 = vmatpush.msrb.mxu2 %v5961_v19 }
 0xb1a   :  { %6076 = vmatpush.msrb.mxu2 %v5960_v30 }
 0xb1c   :  { %6077 = vmatpush.msrb.mxu2 %v5959_v4 }
 0xb1e   :  { %6078 = vmatpush.msrb.mxu2 %v5958_v46  ;;  %v6000_v46 = vld [vmem:[%s12527_s12 + $0x30] sm:$0xff] }
 0xb1f   :  { %6065 = vmatmul.f32.gmra.mxu2 %v5988_v29 }
 0xb20   :  { %6079 = vmatpush.msrb.mxu2 %v5957_v36 }
 0xb22   :  { %6080 = vmatpush.msrb.mxu2 %v5956_v58  ;;  %v6001_v58 = vld [vmem:[%s12527_s12 + $0x38] sm:$0xff] }
 0xb24   :  { %6081 = vmatpush.msrb.mxu2 %v5955_v45 }
 0xb26   :  { %6082 = vmatpush.msrb.mxu2 %v12299_v62  ;;  %v5971_v62 = vld [vmem:[%s12526_s11 + $0x48] sm:$0xff] }
 0xb27   :  { %6068 = vmatmul.f32.gmra.mxu2 %v5990_v26 }
 0xb28   :  { %6083 = vmatpush.msrb.mxu2 %v12294_v17  ;;  %v5963_v17 = vld [vmem:[%s12526_s11 + $0x8] sm:$0xff] }
 0xb2a   :  { %6084 = vmatpush.msrb.mxu2 %v12286_v31  ;;  %v5965_v31 = vld [vmem:[%s12526_s11 + $0x18] sm:$0xff] }
 0xb2c   :  { %6085 = vmatpush.msrb.mxu2 %v12278_v2 }
 0xb2e   :  { %6086 = vmatpush.msrb.mxu2 %v12270_v47 }
 0xb2f   :  { %6071 = vmatmul.f32.gmra.mxu2 %v5992_v16 }
 0xb30   :  { %6087 = vmatpush.msrb.mxu2 %v12262_v13  ;;  %v5969_v13 = vld [vmem:[%s12526_s11 + $0x38] sm:$0xff] }
 0xb32   :  { %6088 = vmatpush.msrb.mxu2 %v12250_v37  ;;  %v5967_v37 = vld [vmem:[%s12526_s11 + $0x28] sm:$0xff] }
 0xb34   :  { %6089 = vmatpush.msrb.mxu2 %v12227_v63 }
 0xb36   :  { %6090 = vmatpush.msrb.mxu2 %v12198_v39 }
 0xb37   :  { %6091 = vmatmul.f32.vlgmr.msrb.gmra.mxu2 %v5963_v17  ;;  %v6002_v17 = vld [vmem:[%s12527_s12 + $0x40] sm:$0xff] }
 0xb3a   :  { %v6027_v2 = vpop.f32.mrf.mxu2 }
 0xb3b   :  { %v6028_v41 = vadd.f32 %v6027_v2, %v5994_v12 }
 0xb3f   :  { %6094 = vmatmul.f32.gmra.mxu2 %v5965_v31 }
 0xb42   :  { %v6030_v47 = vpop.f32.mrf.mxu2 }
 0xb43   :  { %v6031_v23 = vadd.f32 %v6030_v47, %v5995_v44  ;;  %v6143_v44 = vld [vmem:[%s12528_s13 + $0x18] sm:$0xff] }
 0xb47   :  { %6097 = vmatmul.f32.gmra.mxu2 %v5967_v37 }
 0xb4a   :  { %v6033_v63 = vpop.f32.mrf.mxu2 }
 0xb4b   :  { %v6034_v27 = vadd.f32 %v6033_v63, %v5996_v15  ;;  %v6146_v15 = vld [vmem:[%s12529_s14 + $0x10] sm:$0xff] }
 0xb4f   :  { %6100 = vmatmul.f32.gmra.mxu2 %v5969_v13 }
 0xb52   :  { %v6036_v39 = vpop.f32.mrf.mxu2 }
 0xb53   :  { %v6037_v14 = vadd.f32 %v6036_v39, %v5997_v5 }
 0xb57   :  { %6103 = vmatmul.f32.gmra.mxu2 %v5971_v62 }
 0xb5a   :  { %v6039_v50 = vpop.f32.mrf.mxu2 }
 0xb5b   :  { %v6040_v0 = vadd.f32 %v6039_v50, %v5998_v61  ;;  %v6177_v61 = vld [vmem:[%s12530_s15] sm:$0x3] }
 0xb5f   :  { %6106 = vmatmul.f32.gmra.mxu2 %v5973_v9  ;;  %v6009_v9 = vld [vmem:[%s12527_s12 + $0x78] sm:$0xff] }
 0xb62   :  { %v6042_v21 = vpop.f32.mrf.mxu2 }
 0xb63   :  { %v6043_v25 = vadd.f32 %v6042_v21, %v5999_v57  ;;  %v6008_v21 = vld [vmem:[%s12527_s12 + $0x70] sm:$0xff] }
 0xb67   :  { %6109 = vmatmul.f32.gmra.mxu2 %v5975_v40 }
 0xb6a   :  { %v6045_v7 = vpop.f32.mrf.mxu2 }
 0xb6b   :  { %v6046_v29 = vadd.f32 %v6045_v7, %v6000_v46  ;;  %v6007_v7 = vld [vmem:[%s12527_s12 + $0x68] sm:$0xff] }
 0xb6f   :  { %6112 = vmatmul.f32.gmra.mxu2 %v5977_v8 }
 0xb72   :  { %v6048_v34 = vpop.f32.mrf.mxu2 }
 0xb73   :  { %v6049_v45 = vadd.f32 %v6048_v34, %v6001_v58 }
 0xb77   :  { %6115 = vmatmul.f32.gmra.mxu2 %v5979_v22 }
 0xb7a   :  { %v6051_v3 = vpop.f32.mrf.mxu2 }
 0xb7b   :  { %v6052_v2 = vadd.f32 %v6051_v3, %v6002_v17  ;;  %v6006_v3 = vld [vmem:[%s12527_s12 + $0x60] sm:$0xff] }
 0xb7f   :  { %6118 = vmatmul.f32.gmra.mxu2 %v5981_v54 }
 0xb82   :  { %v12395_v53 = vpop.f32.mrf.mxu2 }
 0xb87   :  { %6121 = vmatmul.f32.gmra.mxu2 %v5983_v43 }
 0xb8a   :  { %v12400_v33 = vpop.f32.mrf.mxu2 }
 0xb8f   :  { %6124 = vmatmul.f32.gmra.mxu2 %v5985_v18  ;;  %v6005_v18 = vld [vmem:[%s12527_s12 + $0x58] sm:$0xff] }
 0xb92   :  { %v12405_v20 = vpop.f32.mrf.mxu2 }
 0xb97   :  { %6127 = vmatmul.f32.gmra.mxu2 %v5987_v42 }
 0xb9a   :  { %v12410_v6 = vpop.f32.mrf.mxu2 }
 0xb9b   :  { %v6064_v42 = vadd.f32 %v12410_v6, %v6006_v3 }
 0xb9f   :  { %6130 = vmatmul.f32.gmra.mxu2 %v5989_v10 }
 0xba2   :  { %v6066_v56 = vpop.f32.mrf.mxu2 }
 0xba3   :  { %v6067_v54 = vadd.f32 %v6066_v56, %v6007_v7  ;;  %v6003_v56 = vld [vmem:[%s12527_s12 + $0x48] sm:$0xff] }
 0xba4   :  { %v6055_v6 = vadd.f32 %v12395_v53, %v6003_v56  ;;  %v6141_v53 = vld [vmem:[%s12528_s13 + $0x8] sm:$0xff] }
 0xba7   :  { %6133 = vmatmul.f32.gmra.mxu2 %v5991_v28  ;;  %v6004_v28 = vld [vmem:[%s12527_s12 + $0x50] sm:$0xff] }
 0xbaa   :  { %v6069_v24 = vpop.f32.mrf.mxu2 }
 0xbab   :  { %v6070_v34 = vadd.f32 %v6069_v24, %v6008_v21  ;;  %v6061_v24 = vadd.f32 %v12405_v20, %v6005_v18  ;;  %v6142_v20 = vld [vmem:[%s12528_s13 + $0x10] sm:$0xff] }
 0xbaf   :  { %6136 = vmatmul.f32.gmra.mxu2 %v5993_v59 }
 0xbb2   :  { %v6072_v38 = vpop.f32.mrf.mxu2 }
 0xbb3   :  { %v6073_v40 = vadd.f32 %v6072_v38, %v6009_v9  ;;  %v6058_v38 = vadd.f32 %v12400_v33, %v6004_v28  ;;  %v6140_v33 = vld [vmem:[%s12528_s13] sm:$0xff] }
 0xbba   :  { %v6092_v49 = vpop.f32.mrf.mxu2 }
 0xbbb   :  { %v12424_v11 = vadd.f32 %v6092_v49, %v6028_v41 }
 0xbc2   :  { %v6095_v55 = vpop.f32.mrf.mxu2 }
 0xbc3   :  { %v12429_v51 = vadd.f32 %v6095_v55, %v6031_v23 }
 0xbca   :  { %v6098_v52 = vpop.f32.mrf.mxu2 }
 0xbcb   :  { %v12434_v32 = vadd.f32 %v6098_v52, %v6034_v27 }
 0xbd2   :  { %v6101_v1 = vpop.f32.mrf.mxu2 }
 0xbd3   :  { %v6102_v19 = vadd.f32 %v6101_v1, %v6037_v14  ;;  %v6144_v14 = vld [vmem:[%s12529_s14] sm:$0xff] }
 0xbda   :  { %v6104_v48 = vpop.f32.mrf.mxu2 }
 0xbdb   :  { %v6105_v30 = vadd.f32 %v6104_v48, %v6040_v0  ;;  %v6178_v0 = vld [vmem:[%s12531_s16] sm:$0x3] }
 0xbe2   :  { %v6107_v4 = vpop.f32.mrf.mxu2 }
 0xbe3   :  { %v6108_v35 = vadd.f32 %v6107_v4, %v6043_v25 }
 0xbea   :  { %v6110_v60 = vpop.f32.mrf.mxu2 }
 0xbeb   :  { %v6111_v36 = vadd.f32 %v6110_v60, %v6046_v29 }
 0xbf2   :  { %v6113_v26 = vpop.f32.mrf.mxu2 }
 0xbf3   :  { %v6114_v16 = vadd.f32 %v6113_v26, %v6049_v45 }
 0xbfa   :  { %v6116_v31 = vpop.f32.mrf.mxu2 }
 0xbfb   :  { %v6117_v47 = vadd.f32 %v6116_v31, %v6052_v2 }
 0xc02   :  { %v6119_v37 = vpop.f32.mrf.mxu2 }
 0xc03   :  { %v6120_v49 = vadd.f32 %v6119_v37, %v6055_v6 }
 0xc0a   :  { %v6122_v63 = vpop.f32.mrf.mxu2 }
 0xc0b   :  { %v6123_v41 = vadd.f32 %v6122_v63, %v6058_v38 }
 0xc12   :  { %v6125_v13 = vpop.f32.mrf.mxu2 }
 0xc13   :  { %v6126_v12 = vadd.f32 %v6125_v13, %v6061_v24 }
 0xc1a   :  { %v6128_v39 = vpop.f32.mrf.mxu2 }
 0xc1b   :  { %v6129_v59 = vadd.f32 %v6128_v39, %v6064_v42 }
 0xc22   :  { %v6131_v62 = vpop.f32.mrf.mxu2 }
 0xc23   :  { %v6132_v10 = vadd.f32 %v6131_v62, %v6067_v54 }
 0xc2a   :  { %v6134_v50 = vpop.f32.mrf.mxu2 }
 0xc2b   :  { %v6135_v43 = vadd.f32 %v6134_v50, %v6070_v34 }
 0xc32   :  { %v6137_v8 = vpop.f32.mrf.mxu2 }
 0xc33   :  { %v6138_v22 = vadd.f32 %v6137_v8, %v6073_v40 }
 0xc35   :  { %6148 = vmatpush.msrb.mxu1 %v6138_v22 }
 0xc37   :  { %6149 = vmatpush.msrb.mxu1 %v6135_v43 }
 0xc39   :  { %6150 = vmatpush.msrb.mxu1 %v6132_v10 }
 0xc3b   :  { %6151 = vmatpush.msrb.mxu1 %v6129_v59 }
 0xc3d   :  { %6152 = vmatpush.msrb.mxu1 %v6126_v12 }
 0xc3f   :  { %6153 = vmatpush.msrb.mxu1 %v6123_v41 }
 0xc41   :  { %6154 = vmatpush.msrb.mxu1 %v6120_v49 }
 0xc43   :  { %6155 = vmatpush.msrb.mxu1 %v6117_v47 }
 0xc45   :  { %6156 = vmatpush.msrb.mxu1 %v6114_v16 }
 0xc47   :  { %6157 = vmatpush.msrb.mxu1 %v6111_v36 }
 0xc49   :  { %6158 = vmatpush.msrb.mxu1 %v6108_v35 }
 0xc4b   :  { %6159 = vmatpush.msrb.mxu1 %v6105_v30 }
 0xc4d   :  { %6160 = vmatpush.msrb.mxu1 %v6102_v19 }
 0xc4f   :  { %6161 = vmatpush.msrb.mxu1 %v12434_v32  ;;  %v6145_v32 = vld [vmem:[%s12529_s14 + $0x8] sm:$0xff] }
 0xc51   :  { %6162 = vmatpush.msrb.mxu1 %v12429_v51 }
 0xc53   :  { %6163 = vmatpush.msrb.mxu1 %v12424_v11  ;;  %v6147_v11 = vld [vmem:[%s12529_s14 + $0x18] sm:$0xff] }
 0xc54   :  { %6164 = vmatmul.f32.vlgmr.msrb.gmra.mxu1 %v6140_v33 }
 0xc5c   :  { %6167 = vmatmul.f32.gmra.mxu1 %v6141_v53 }
 0xc64   :  { %6170 = vmatmul.f32.gmra.mxu1 %v6142_v20 }
 0xc6c   :  { %6173 = vmatmul.f32.gmra.mxu1 %v6143_v44 }
 0xcd1   :  { %v6165_v23 = vpop.f32.mrf.mxu1 }
 0xcd2   :  { %v6166_v19 = vadd.f32 %v6165_v23, %v6144_v14 }
 0xcd9   :  { %v6168_v55 = vpop.f32.mrf.mxu1 }
 0xcda   :  { %v6169_v1 = vadd.f32 %v6168_v55, %v6145_v32 }
 0xce1   :  { %v6171_v51 = vpop.f32.mrf.mxu1 }
 0xce2   :  { %v6172_v5 = vadd.f32 %v6171_v51, %v6146_v15 }
 0xce9   :  { %v6174_v27 = vpop.f32.mrf.mxu1 }
 0xcea   :  { %v6175_v52 = vadd.f32 %v6174_v27, %v6147_v11 }
 0xcec   :  { %6195 = vmatpush.msra.mxu3 %v6175_v52 }
 0xcee   :  { %6196 = vmatpush.msra.mxu3 %v6172_v5 }
 0xcf0   :  { %6197 = vmatpush.msra.mxu3 %v6169_v1 }
 0xcf2   :  { %6198 = vmatpush.msra.mxu3 %v6166_v19 }
 0xcf3   :  { %8089 = vmatmul.msk.f32.vlgmr.msra.gmra.mxu3 %vm6179_vm10, %v6177_v61 }
 0xd76   :  { %v6200_v48 = vpop.f32.mrf.mxu3 }
 0xd77   :  { %v6201_v30 = vadd.f32 %v6200_v48, %v6178_v0 }
 0xd79   :  { %6204 = vst.msk [vmem:[%s12532_s17] sm:$0x3] %vm6203_vm11, %v6201_v30 }

</bundles_post_ra>
